<compile_context>
chip_gen: v6e
topology: v6e:2x2x1
jax: 0.10.0
libtpu: 0.0.40
codegen_flags: <defaults>
</compile_context>

<pallas_src>
import functools

import numpy as np
import jax
import jax.numpy as jnp
from jax.experimental import pallas as pl
from jax.experimental.pallas import tpu as pltpu

VTH = 0.1  # spike threshold for the LMU membrane


def block_kernel(x_ref, mask_ref, w_u_ref, a_ref, b_ref, w_proj_ref,
                 w_fc1_ref, b_fc1_ref, dw_w_ref, dw_b_ref,
                 w_fc2_ref, b_fc2_ref, out_ref, *, H, W, N, ch_chunk):
    """One grid step = S lane-packed batch groups stacked along the sublane axis.

    x_ref / out_ref: (M, GC) with M = S * N token rows and G batch elements packed along the
    lane axis (block-diagonal weights).  mask_ref (M, 128) f32 holds, per token row:
      lanes 0..8   : destination-validity mask of the 9 depthwise-conv taps (row-major di,dj)
      lanes 16..   : prefix masks (local_token >= 2**p) used by the parallel scan
    so the recurrence and the conv never leak across the S stacked groups.
    """
    M, GC = x_ref.shape
    GCh = w_fc1_ref.shape[1]
    n_chunks = GCh // ch_chunk

    x = x_ref[...]                                                    # (M, GC) f32

    # ---------------- attn: SLMU ----------------
    # input projection kept in f32 (feeds the spike threshold through the recurrence)
    u = jnp.dot(x, w_u_ref[...], preferred_element_type=jnp.float32)  # (M, GC)

    # Kogge-Stone parallel scan of  h_t = a * h_{t-1} + b * u_t ,  h_0 = 0.
    # `a` is time-invariant, so the multiplier applied at step d is exactly a^d for every
    # unmasked row: keep only a (1, GC) a_pow vector and square it each pass.
    Bv = b_ref[...] * u                                               # (M, GC)
    a_pow = a_ref[...]                                                # (1, GC) == a^d, d=1
    d, p = 1, 0
    while d < N:                                                      # log2(N) unrolled passes
        prev = pltpu.roll(Bv, shift=d, axis=0) * mask_ref[:, 16 + p:17 + p]
        Bv = a_pow * prev + Bv
        a_pow = a_pow * a_pow
        d *= 2
        p += 1
    # Bv[t] == h_t  (h_0 = 0)

    spikes = jnp.where(Bv > VTH, 1.0, 0.0).astype(jnp.bfloat16)       # exact 0/1 in bf16
    attn_out = jnp.dot(spikes, w_proj_ref[...],
                       preferred_element_type=jnp.float32)            # (M, GC)
    x1 = x + attn_out                                                 # residual 1

    # ---------------- mlp: ConvFFN, chunked over the hidden lanes ----------------
    # fc2 contracts over the hidden dim, so per-chunk accumulation into `y` is exact.
    y = jnp.zeros((M, GC), jnp.float32)
    for ci in range(n_chunks):
        c0 = ci * ch_chunk
        # fc1 slice kept in f32 (feeds the conv>0 spike threshold)
        h1 = jnp.dot(x1, w_fc1_ref[:, c0:c0 + ch_chunk],
                     preferred_element_type=jnp.float32) \
             + b_fc1_ref[:, c0:c0 + ch_chunk]                         # (M, ch_chunk)

        dw_c = dw_w_ref[:, c0:c0 + ch_chunk]                          # (9, ch_chunk), once/chunk

        # 3x3 depthwise conv (padding=1, nn.Conv2d cross-correlation) over the HxW token grid:
        # 8 sublane rolls + precomputed boundary masks + per-channel FMAs (VPU/XLU only).
        acc = h1 * dw_c[4:5, :]                                       # center tap, never masked
        k = 0
        for di in (-1, 0, 1):
            for dj in (-1, 0, 1):
                if di == 0 and dj == 0:
                    k += 1
                    continue
                off = di * W + dj
                shifted = pltpu.roll(h1, shift=(-off) % M, axis=0)    # shifted[t] = h1[t + off]
                acc = acc + (shifted * mask_ref[:, k:k + 1]) * dw_c[k:k + 1, :]
                k += 1
        conv = acc + dw_b_ref[:, c0:c0 + ch_chunk]

        spiked = jnp.where(conv > 0.0, 1.0, 0.0).astype(jnp.bfloat16)  # spike activation
        y = y + jnp.dot(spiked, w_fc2_ref[c0:c0 + ch_chunk, :],
                        preferred_element_type=jnp.float32)            # (M, GC) accumulate

    out_ref[...] = x1 + y + b_fc2_ref[...]                            # residual 2


# ---------------------------------------------------------------------------
# Host-side packing (done ONCE for a whole network of Blocks, not per call).
# ---------------------------------------------------------------------------

def choose_packing(B, C, N, lanes=128, target_m=256, min_grid=2):
    """G batch elems per 128-lane group; S groups stacked along sublanes (M = S*N)."""
    G = max(1, min(B, lanes // C)) if C <= lanes else 1
    while B % G:
        G -= 1
    n_groups = B // G
    best = 1
    for S in range(1, n_groups + 1):
        if n_groups % S:
            continue
        if S * N > target_m:
            break
        if S == 1 or n_groups // S >= min_grid:   # keep >=2 grid steps (v7x dual-TC)
            best = S
    return G, best


def pack_activations(x, G, S):
    B, N, C = x.shape
    q = B // (G * S)
    return (x.reshape(q, S, G, N, C)
             .transpose(0, 1, 3, 2, 4)
             .reshape(q, S * N, G * C))


def unpack_activations(xp, B, N, C, G, S):
    q = B // (G * S)
    return (xp.reshape(q, S, N, G, C)
              .transpose(0, 1, 3, 2, 4)
              .reshape(B, N, C))


def pack_params(params, G):
    """Block-diagonal weights + lane-tiled per-channel params (group-major lanes)."""
    def bdiag(w, dtype):
        return jnp.kron(jnp.eye(G, dtype=jnp.float32),
                        w.astype(jnp.float32)).astype(dtype)
    tile = lambda v: jnp.tile(v, (1, G))
    return dict(
        w_u=bdiag(params["w_u"], jnp.float32),      # feeds spike threshold -> f32
        a=tile(params["a"]),
        b=tile(params["b"]),
        w_proj=bdiag(params["w_proj"], jnp.bfloat16),   # spike LHS is exact 0/1
        w_fc1=bdiag(params["w_fc1"], jnp.float32),  # feeds spike threshold -> f32
        b_fc1=tile(params["b_fc1"]),
        dw_w=jnp.tile(params["dw_w"], (1, G)),
        dw_b=tile(params["dw_b"]),
        w_fc2=bdiag(params["w_fc2"], jnp.bfloat16),
        b_fc2=tile(params["b_fc2"]),
    )


def build_mask_table(H, W, S):
    """(S*N, 128) f32: lanes 0..8 = conv-tap validity, lanes 16.. = scan prefix masks."""
    N = H * W
    t = np.arange(N)
    i, j = t // W, t % W
    cols = np.zeros((N, 128), np.float32)
    k = 0
    for di in (-1, 0, 1):
        for dj in (-1, 0, 1):
            valid = np.ones(N, bool)
            if di == -1:
                valid &= (i >= 1)
            elif di == 1:
                valid &= (i <= H - 2)
            if dj == -1:
                valid &= (j >= 1)
            elif dj == 1:
                valid &= (j <= W - 2)
            cols[:, k] = valid.astype(np.float32)
            k += 1
    d, p = 1, 0
    while d < N:
        cols[:, 16 + p] = (t >= d).astype(np.float32)
        d *= 2
        p += 1
    assert 16 + p <= 128
    return jnp.asarray(np.tile(cols, (S, 1)))


def block_forward_packed(xp, pp, mask_tbl, H, W, ch_chunk=128):
    """Run one Block on already-packed activations (n_steps, S*N, G*C)."""
    n_steps, M, GC = xp.shape
    N = H * W
    GCh = pp["w_fc1"].shape[1]
    ch_chunk = min(ch_chunk, GCh)
    if GCh % ch_chunk != 0:
        ch_chunk = GCh
    assert M % N == 0

    kernel = functools.partial(block_kernel, H=H, W=W, N=N, ch_chunk=ch_chunk)

    def const(*shape):
        return pl.BlockSpec(shape, lambda g: (0,) * len(shape))

    grid_spec = pltpu.PrefetchScalarGridSpec(
        num_scalar_prefetch=0,
        grid=(n_steps,),
        in_specs=[
            pl.BlockSpec((None, M, GC), lambda g: (g, 0, 0)),   # x (per-step block)
            const(M, 128),       # mask table (conv taps + scan prefixes)
            const(GC, GC),       # w_u   (f32, block-diag)
            const(1, GC),        # a
            const(1, GC),        # b
            const(GC, GC),       # w_proj (bf16, block-diag)
            const(GC, GCh),      # w_fc1 (f32, block-diag)
            const(1, GCh),       # b_fc1
            const(9, GCh),       # dw_w (3x3 taps, row-major (di,dj))
            const(1, GCh),       # dw_b
            const(GCh, GC),      # w_fc2 (bf16, block-diag)
            const(1, GC),        # b_fc2
        ],
        out_specs=pl.BlockSpec((None, M, GC), lambda g: (g, 0, 0)),
    )

    return pl.pallas_call(
        kernel,
        out_shape=jax.ShapeDtypeStruct((n_steps, M, GC), jnp.float32),
        grid_spec=grid_spec,
        compiler_params=pltpu.CompilerParams(
            dimension_semantics=("parallel",)),   # batch-group steps are independent
    )(xp, mask_tbl, pp["w_u"], pp["a"], pp["b"], pp["w_proj"],
      pp["w_fc1"], pp["b_fc1"], pp["dw_w"], pp["dw_b"],
      pp["w_fc2"], pp["b_fc2"])


def block_forward(x, params, H, W):
    """Convenience wrapper: pack -> one Block -> unpack (a network would pack once for all layers)."""
    B, N, C = x.shape
    assert N == H * W
    G, S = choose_packing(B, C, N)
    pp = pack_params(params, G)
    mask_tbl = build_mask_table(H, W, S)
    xp = pack_activations(x, G, S)
    out_p = block_forward_packed(xp, pp, mask_tbl, H, W)
    return unpack_activations(out_p, B, N, C, G, S)


def init_params(key, C, Ch):
    ks = jax.random.split(key, 6)
    a = jnp.linspace(0.85, 0.99, C, dtype=jnp.float32).reshape(1, C)
    return dict(
        w_u=jax.random.normal(ks[0], (C, C), jnp.float32) / np.sqrt(C),
        a=a,
        b=(1.0 - a),
        w_proj=jax.random.normal(ks[1], (C, C), jnp.float32) / np.sqrt(C),
        w_fc1=jax.random.normal(ks[2], (C, Ch), jnp.float32) / np.sqrt(C),
        b_fc1=jnp.zeros((1, Ch), jnp.float32),
        # dw_w[k, c] corresponds to nn.Conv2d depthwise weight[c, 0, k // 3, k % 3]
        # (row-major over (di, dj)); keep this ordering when porting real weights.
        dw_w=jax.random.normal(ks[3], (9, Ch), jnp.float32) / 3.0,
        dw_b=jnp.zeros((1, Ch), jnp.float32),
        w_fc2=jax.random.normal(ks[4], (Ch, C), jnp.float32) / np.sqrt(Ch),
        b_fc2=jnp.zeros((1, C), jnp.float32),
    )


if __name__ == "__main__":
    # Block(dim=32, num_heads=4, mlp_ratio=4.0) -> hidden = 128; tokens on an 8x8 grid.
    # B=16 batch elements: G=4 fill the 128 lanes, S=2 groups stack along sublanes
    # (M = 128 MXU rows) and the grid still has 2 parallel steps (v7x dual-TC).
    B, H, W, C = 16, 8, 8, 32
    N = H * W
    Ch = int(C * 4.0)

    key = jax.random.PRNGKey(0)
    kx, kp = jax.random.split(key)
    x = jax.random.normal(kx, (B, N, C), jnp.float32)   # layout: (B, N=H*W, C)
    params = init_params(kp, C, Ch)

    # Pack ONCE (activations + params + masks).  In a multi-Block network the activations stay
    # in this packed layout across all layers; the unpack happens once after the last Block.
    G, S = choose_packing(B, C, N)
    pp = pack_params(params, G)
    mask_tbl = build_mask_table(H, W, S)
    xp = pack_activations(x, G, S)

    out_p = block_forward_packed(xp, pp, mask_tbl, H, W)   # one Block forward
    out = unpack_activations(out_p, B, N, C, G, S)

    jax.block_until_ready(out)
    assert out.shape == (B, N, C) and out.dtype == jnp.float32
    assert bool(jnp.isfinite(out).all())
    print("KERNEL_OK")
</pallas_src>

<mosaic_0001>
module attributes {stable_mosaic.version = 11 : i64} {
  func.func @block_kernel(%arg0: i32, %arg1: memref<1x128x128xf32, #tpu.memory_space<vmem>>, %arg2: memref<128x128xf32, #tpu.memory_space<vmem>>, %arg3: memref<128x128xf32, #tpu.memory_space<vmem>>, %arg4: memref<1x128xf32, #tpu.memory_space<vmem>>, %arg5: memref<1x128xf32, #tpu.memory_space<vmem>>, %arg6: memref<128x128xbf16, #tpu.memory_space<vmem>>, %arg7: memref<128x512xf32, #tpu.memory_space<vmem>>, %arg8: memref<1x512xf32, #tpu.memory_space<vmem>>, %arg9: memref<9x512xf32, #tpu.memory_space<vmem>>, %arg10: memref<1x512xf32, #tpu.memory_space<vmem>>, %arg11: memref<512x128xbf16, #tpu.memory_space<vmem>>, %arg12: memref<1x128xf32, #tpu.memory_space<vmem>>, %arg13: memref<1x128x128xf32, #tpu.memory_space<vmem>>) attributes {dimension_semantics = [#tpu.dimension_semantics<parallel>], iteration_bounds = array<i64: 2>, scalar_prefetch = 0 : i64, scratch_operands = 0 : i64, tpu.core_type = #tpu.core_type<tc>, window_params = [{transform_indices = @transform_0, window_bounds = array<i64: 1, 128, 128>}, {pipeline_mode = #tpu.pipeline_mode<synchronous>, transform_indices = @transform_1, window_bounds = array<i64: 128, 128>}, {pipeline_mode = #tpu.pipeline_mode<synchronous>, transform_indices = @transform_2, window_bounds = array<i64: 128, 128>}, {pipeline_mode = #tpu.pipeline_mode<synchronous>, transform_indices = @transform_3, window_bounds = array<i64: 1, 128>}, {pipeline_mode = #tpu.pipeline_mode<synchronous>, transform_indices = @transform_4, window_bounds = array<i64: 1, 128>}, {pipeline_mode = #tpu.pipeline_mode<synchronous>, transform_indices = @transform_5, window_bounds = array<i64: 128, 128>}, {pipeline_mode = #tpu.pipeline_mode<synchronous>, transform_indices = @transform_6, window_bounds = array<i64: 128, 512>}, {pipeline_mode = #tpu.pipeline_mode<synchronous>, transform_indices = @transform_7, window_bounds = array<i64: 1, 512>}, {pipeline_mode = #tpu.pipeline_mode<synchronous>, transform_indices = @transform_8, window_bounds = array<i64: 9, 512>}, {pipeline_mode = #tpu.pipeline_mode<synchronous>, transform_indices = @transform_9, window_bounds = array<i64: 1, 512>}, {pipeline_mode = #tpu.pipeline_mode<synchronous>, transform_indices = @transform_10, window_bounds = array<i64: 512, 128>}, {pipeline_mode = #tpu.pipeline_mode<synchronous>, transform_indices = @transform_11, window_bounds = array<i64: 1, 128>}, {transform_indices = @transform_12, window_bounds = array<i64: 1, 128, 128>}]} {
    %c0 = arith.constant 0 : index
    %c0_0 = arith.constant 0 : index
    %c0_1 = arith.constant 0 : index
    %0 = vector.load %arg1[%c0, %c0_0, %c0_1] : memref<1x128x128xf32, #tpu.memory_space<vmem>>, vector<1x128x128xf32>
    %1 = vector.shape_cast %0 : vector<1x128x128xf32> to vector<128x128xf32>
    %c0_2 = arith.constant 0 : index
    %c0_3 = arith.constant 0 : index
    %2 = vector.load %arg3[%c0_2, %c0_3] : memref<128x128xf32, #tpu.memory_space<vmem>>, vector<128x128xf32>
    %cst = arith.constant dense<0.000000e+00> : vector<128x128xf32>
    %3 = tpu.matmul %1, %2, %cst {dimension_numbers = #tpu.dot_dimension_numbers<[1], [0], [0], [1], [0, 0, 1, 1], [], []>} : vector<128x128xf32>, vector<128x128xf32>, vector<128x128xf32> -> vector<128x128xf32>
    %c0_4 = arith.constant 0 : index
    %c0_5 = arith.constant 0 : index
    %4 = vector.load %arg5[%c0_4, %c0_5] : memref<1x128xf32, #tpu.memory_space<vmem>>, vector<1x128xf32>
    %5 = vector.broadcast %4 : vector<1x128xf32> to vector<128x128xf32>
    %6 = arith.mulf %5, %3 : vector<128x128xf32>
    %c0_6 = arith.constant 0 : index
    %c0_7 = arith.constant 0 : index
    %7 = vector.load %arg4[%c0_6, %c0_7] : memref<1x128xf32, #tpu.memory_space<vmem>>, vector<1x128xf32>
    %c1_i32 = arith.constant 1 : i32
    %8 = tpu.dynamic_rotate %6 by %c1_i32 dim 0 : vector<128x128xf32>, i32 -> vector<128x128xf32>
    %c0_8 = arith.constant 0 : index
    %c16 = arith.constant 16 : index
    %9 = vector.load %arg2[%c0_8, %c16] : memref<128x128xf32, #tpu.memory_space<vmem>>, vector<128x1xf32>
    %10 = vector.broadcast %9 : vector<128x1xf32> to vector<128x128xf32>
    %11 = arith.mulf %8, %10 : vector<128x128xf32>
    %12 = vector.broadcast %7 : vector<1x128xf32> to vector<128x128xf32>
    %13 = arith.mulf %12, %11 : vector<128x128xf32>
    %14 = arith.addf %13, %6 : vector<128x128xf32>
    %15 = arith.mulf %7, %7 : vector<1x128xf32>
    %c2_i32 = arith.constant 2 : i32
    %16 = tpu.dynamic_rotate %14 by %c2_i32 dim 0 : vector<128x128xf32>, i32 -> vector<128x128xf32>
    %c0_9 = arith.constant 0 : index
    %c17 = arith.constant 17 : index
    %17 = vector.load %arg2[%c0_9, %c17] : memref<128x128xf32, #tpu.memory_space<vmem>>, vector<128x1xf32>
    %18 = vector.broadcast %17 : vector<128x1xf32> to vector<128x128xf32>
    %19 = arith.mulf %16, %18 : vector<128x128xf32>
    %20 = vector.broadcast %15 : vector<1x128xf32> to vector<128x128xf32>
    %21 = arith.mulf %20, %19 : vector<128x128xf32>
    %22 = arith.addf %21, %14 : vector<128x128xf32>
    %23 = arith.mulf %15, %15 : vector<1x128xf32>
    %c4_i32 = arith.constant 4 : i32
    %24 = tpu.dynamic_rotate %22 by %c4_i32 dim 0 : vector<128x128xf32>, i32 -> vector<128x128xf32>
    %c0_10 = arith.constant 0 : index
    %c18 = arith.constant 18 : index
    %25 = vector.load %arg2[%c0_10, %c18] : memref<128x128xf32, #tpu.memory_space<vmem>>, vector<128x1xf32>
    %26 = vector.broadcast %25 : vector<128x1xf32> to vector<128x128xf32>
    %27 = arith.mulf %24, %26 : vector<128x128xf32>
    %28 = vector.broadcast %23 : vector<1x128xf32> to vector<128x128xf32>
    %29 = arith.mulf %28, %27 : vector<128x128xf32>
    %30 = arith.addf %29, %22 : vector<128x128xf32>
    %31 = arith.mulf %23, %23 : vector<1x128xf32>
    %c8_i32 = arith.constant 8 : i32
    %32 = tpu.dynamic_rotate %30 by %c8_i32 dim 0 : vector<128x128xf32>, i32 -> vector<128x128xf32>
    %c0_11 = arith.constant 0 : index
    %c19 = arith.constant 19 : index
    %33 = vector.load %arg2[%c0_11, %c19] : memref<128x128xf32, #tpu.memory_space<vmem>>, vector<128x1xf32>
    %34 = vector.broadcast %33 : vector<128x1xf32> to vector<128x128xf32>
    %35 = arith.mulf %32, %34 : vector<128x128xf32>
    %36 = vector.broadcast %31 : vector<1x128xf32> to vector<128x128xf32>
    %37 = arith.mulf %36, %35 : vector<128x128xf32>
    %38 = arith.addf %37, %30 : vector<128x128xf32>
    %39 = arith.mulf %31, %31 : vector<1x128xf32>
    %c16_i32 = arith.constant 16 : i32
    %40 = tpu.dynamic_rotate %38 by %c16_i32 dim 0 : vector<128x128xf32>, i32 -> vector<128x128xf32>
    %c0_12 = arith.constant 0 : index
    %c20 = arith.constant 20 : index
    %41 = vector.load %arg2[%c0_12, %c20] : memref<128x128xf32, #tpu.memory_space<vmem>>, vector<128x1xf32>
    %42 = vector.broadcast %41 : vector<128x1xf32> to vector<128x128xf32>
    %43 = arith.mulf %40, %42 : vector<128x128xf32>
    %44 = vector.broadcast %39 : vector<1x128xf32> to vector<128x128xf32>
    %45 = arith.mulf %44, %43 : vector<128x128xf32>
    %46 = arith.addf %45, %38 : vector<128x128xf32>
    %47 = arith.mulf %39, %39 : vector<1x128xf32>
    %c32_i32 = arith.constant 32 : i32
    %48 = tpu.dynamic_rotate %46 by %c32_i32 dim 0 : vector<128x128xf32>, i32 -> vector<128x128xf32>
    %c0_13 = arith.constant 0 : index
    %c21 = arith.constant 21 : index
    %49 = vector.load %arg2[%c0_13, %c21] : memref<128x128xf32, #tpu.memory_space<vmem>>, vector<128x1xf32>
    %50 = vector.broadcast %49 : vector<128x1xf32> to vector<128x128xf32>
    %51 = arith.mulf %48, %50 : vector<128x128xf32>
    %52 = vector.broadcast %47 : vector<1x128xf32> to vector<128x128xf32>
    %53 = arith.mulf %52, %51 : vector<128x128xf32>
    %54 = arith.addf %53, %46 : vector<128x128xf32>
    %cst_14 = arith.constant 1.000000e-01 : f32
    %55 = vector.broadcast %cst_14 : f32 to vector<128x128xf32>
    %56 = arith.cmpf ogt, %54, %55 : vector<128x128xf32>
    %cst_15 = arith.constant 1.000000e+00 : f32
    %cst_16 = arith.constant 0.000000e+00 : f32
    %57 = vector.broadcast %cst_15 : f32 to vector<128x128xf32>
    %58 = vector.broadcast %cst_16 : f32 to vector<128x128xf32>
    %59 = arith.select %56, %57, %58 : vector<128x128xi1>, vector<128x128xf32>
    %60 = arith.truncf %59 : vector<128x128xf32> to vector<128x128xbf16>
    %c0_17 = arith.constant 0 : index
    %c0_18 = arith.constant 0 : index
    %61 = vector.load %arg6[%c0_17, %c0_18] : memref<128x128xbf16, #tpu.memory_space<vmem>>, vector<128x128xbf16>
    %cst_19 = arith.constant dense<0.000000e+00> : vector<128x128xf32>
    %62 = tpu.matmul %60, %61, %cst_19 {dimension_numbers = #tpu.dot_dimension_numbers<[1], [0], [0], [1], [0, 0, 1, 1], [], []>} : vector<128x128xbf16>, vector<128x128xbf16>, vector<128x128xf32> -> vector<128x128xf32>
    %63 = arith.addf %1, %62 : vector<128x128xf32>
    %cst_20 = arith.constant 0.000000e+00 : f32
    %64 = vector.broadcast %cst_20 : f32 to vector<128x128xf32>
    %c0_21 = arith.constant 0 : index
    %c0_22 = arith.constant 0 : index
    %65 = vector.load %arg7[%c0_21, %c0_22] : memref<128x512xf32, #tpu.memory_space<vmem>>, vector<128x128xf32>
    %cst_23 = arith.constant dense<0.000000e+00> : vector<128x128xf32>
    %66 = tpu.matmul %63, %65, %cst_23 {dimension_numbers = #tpu.dot_dimension_numbers<[1], [0], [0], [1], [0, 0, 1, 1], [], []>} : vector<128x128xf32>, vector<128x128xf32>, vector<128x128xf32> -> vector<128x128xf32>
    %c0_24 = arith.constant 0 : index
    %c0_25 = arith.constant 0 : index
    %67 = vector.load %arg8[%c0_24, %c0_25] : memref<1x512xf32, #tpu.memory_space<vmem>>, vector<1x128xf32>
    %68 = vector.broadcast %67 : vector<1x128xf32> to vector<128x128xf32>
    %69 = arith.addf %66, %68 : vector<128x128xf32>
    %c0_26 = arith.constant 0 : index
    %c0_27 = arith.constant 0 : index
    %70 = vector.load %arg9[%c0_26, %c0_27] : memref<9x512xf32, #tpu.memory_space<vmem>>, vector<9x128xf32>
    %71 = vector.extract_strided_slice %70 {offsets = [4, 0], sizes = [1, 128], strides = [1, 1]} : vector<9x128xf32> to vector<1x128xf32>
    %72 = vector.broadcast %71 : vector<1x128xf32> to vector<128x128xf32>
    %73 = arith.mulf %69, %72 : vector<128x128xf32>
    %c9_i32 = arith.constant 9 : i32
    %74 = tpu.dynamic_rotate %69 by %c9_i32 dim 0 : vector<128x128xf32>, i32 -> vector<128x128xf32>
    %c0_28 = arith.constant 0 : index
    %c0_29 = arith.constant 0 : index
    %75 = vector.load %arg2[%c0_28, %c0_29] : memref<128x128xf32, #tpu.memory_space<vmem>>, vector<128x1xf32>
    %76 = vector.broadcast %75 : vector<128x1xf32> to vector<128x128xf32>
    %77 = arith.mulf %74, %76 : vector<128x128xf32>
    %78 = vector.extract_strided_slice %70 {offsets = [0, 0], sizes = [1, 128], strides = [1, 1]} : vector<9x128xf32> to vector<1x128xf32>
    %79 = vector.broadcast %78 : vector<1x128xf32> to vector<128x128xf32>
    %80 = arith.mulf %77, %79 : vector<128x128xf32>
    %81 = arith.addf %73, %80 : vector<128x128xf32>
    %c8_i32_30 = arith.constant 8 : i32
    %82 = tpu.dynamic_rotate %69 by %c8_i32_30 dim 0 : vector<128x128xf32>, i32 -> vector<128x128xf32>
    %c0_31 = arith.constant 0 : index
    %c1 = arith.constant 1 : index
    %83 = vector.load %arg2[%c0_31, %c1] : memref<128x128xf32, #tpu.memory_space<vmem>>, vector<128x1xf32>
    %84 = vector.broadcast %83 : vector<128x1xf32> to vector<128x128xf32>
    %85 = arith.mulf %82, %84 : vector<128x128xf32>
    %86 = vector.extract_strided_slice %70 {offsets = [1, 0], sizes = [1, 128], strides = [1, 1]} : vector<9x128xf32> to vector<1x128xf32>
    %87 = vector.broadcast %86 : vector<1x128xf32> to vector<128x128xf32>
    %88 = arith.mulf %85, %87 : vector<128x128xf32>
    %89 = arith.addf %81, %88 : vector<128x128xf32>
    %c7_i32 = arith.constant 7 : i32
    %90 = tpu.dynamic_rotate %69 by %c7_i32 dim 0 : vector<128x128xf32>, i32 -> vector<128x128xf32>
    %c0_32 = arith.constant 0 : index
    %c2 = arith.constant 2 : index
    %91 = vector.load %arg2[%c0_32, %c2] : memref<128x128xf32, #tpu.memory_space<vmem>>, vector<128x1xf32>
    %92 = vector.broadcast %91 : vector<128x1xf32> to vector<128x128xf32>
    %93 = arith.mulf %90, %92 : vector<128x128xf32>
    %94 = vector.extract_strided_slice %70 {offsets = [2, 0], sizes = [1, 128], strides = [1, 1]} : vector<9x128xf32> to vector<1x128xf32>
    %95 = vector.broadcast %94 : vector<1x128xf32> to vector<128x128xf32>
    %96 = arith.mulf %93, %95 : vector<128x128xf32>
    %97 = arith.addf %89, %96 : vector<128x128xf32>
    %c1_i32_33 = arith.constant 1 : i32
    %98 = tpu.dynamic_rotate %69 by %c1_i32_33 dim 0 : vector<128x128xf32>, i32 -> vector<128x128xf32>
    %c0_34 = arith.constant 0 : index
    %c3 = arith.constant 3 : index
    %99 = vector.load %arg2[%c0_34, %c3] : memref<128x128xf32, #tpu.memory_space<vmem>>, vector<128x1xf32>
    %100 = vector.broadcast %99 : vector<128x1xf32> to vector<128x128xf32>
    %101 = arith.mulf %98, %100 : vector<128x128xf32>
    %102 = vector.extract_strided_slice %70 {offsets = [3, 0], sizes = [1, 128], strides = [1, 1]} : vector<9x128xf32> to vector<1x128xf32>
    %103 = vector.broadcast %102 : vector<1x128xf32> to vector<128x128xf32>
    %104 = arith.mulf %101, %103 : vector<128x128xf32>
    %105 = arith.addf %97, %104 : vector<128x128xf32>
    %c127_i32 = arith.constant 127 : i32
    %106 = tpu.dynamic_rotate %69 by %c127_i32 dim 0 : vector<128x128xf32>, i32 -> vector<128x128xf32>
    %c0_35 = arith.constant 0 : index
    %c5 = arith.constant 5 : index
    %107 = vector.load %arg2[%c0_35, %c5] : memref<128x128xf32, #tpu.memory_space<vmem>>, vector<128x1xf32>
    %108 = vector.broadcast %107 : vector<128x1xf32> to vector<128x128xf32>
    %109 = arith.mulf %106, %108 : vector<128x128xf32>
    %110 = vector.extract_strided_slice %70 {offsets = [5, 0], sizes = [1, 128], strides = [1, 1]} : vector<9x128xf32> to vector<1x128xf32>
    %111 = vector.broadcast %110 : vector<1x128xf32> to vector<128x128xf32>
    %112 = arith.mulf %109, %111 : vector<128x128xf32>
    %113 = arith.addf %105, %112 : vector<128x128xf32>
    %c121_i32 = arith.constant 121 : i32
    %114 = tpu.dynamic_rotate %69 by %c121_i32 dim 0 : vector<128x128xf32>, i32 -> vector<128x128xf32>
    %c0_36 = arith.constant 0 : index
    %c6 = arith.constant 6 : index
    %115 = vector.load %arg2[%c0_36, %c6] : memref<128x128xf32, #tpu.memory_space<vmem>>, vector<128x1xf32>
    %116 = vector.broadcast %115 : vector<128x1xf32> to vector<128x128xf32>
    %117 = arith.mulf %114, %116 : vector<128x128xf32>
    %118 = vector.extract_strided_slice %70 {offsets = [6, 0], sizes = [1, 128], strides = [1, 1]} : vector<9x128xf32> to vector<1x128xf32>
    %119 = vector.broadcast %118 : vector<1x128xf32> to vector<128x128xf32>
    %120 = arith.mulf %117, %119 : vector<128x128xf32>
    %121 = arith.addf %113, %120 : vector<128x128xf32>
    %c120_i32 = arith.constant 120 : i32
    %122 = tpu.dynamic_rotate %69 by %c120_i32 dim 0 : vector<128x128xf32>, i32 -> vector<128x128xf32>
    %c0_37 = arith.constant 0 : index
    %c7 = arith.constant 7 : index
    %123 = vector.load %arg2[%c0_37, %c7] : memref<128x128xf32, #tpu.memory_space<vmem>>, vector<128x1xf32>
    %124 = vector.broadcast %123 : vector<128x1xf32> to vector<128x128xf32>
    %125 = arith.mulf %122, %124 : vector<128x128xf32>
    %126 = vector.extract_strided_slice %70 {offsets = [7, 0], sizes = [1, 128], strides = [1, 1]} : vector<9x128xf32> to vector<1x128xf32>
    %127 = vector.broadcast %126 : vector<1x128xf32> to vector<128x128xf32>
    %128 = arith.mulf %125, %127 : vector<128x128xf32>
    %129 = arith.addf %121, %128 : vector<128x128xf32>
    %c119_i32 = arith.constant 119 : i32
    %130 = tpu.dynamic_rotate %69 by %c119_i32 dim 0 : vector<128x128xf32>, i32 -> vector<128x128xf32>
    %c0_38 = arith.constant 0 : index
    %c8 = arith.constant 8 : index
    %131 = vector.load %arg2[%c0_38, %c8] : memref<128x128xf32, #tpu.memory_space<vmem>>, vector<128x1xf32>
    %132 = vector.broadcast %131 : vector<128x1xf32> to vector<128x128xf32>
    %133 = arith.mulf %130, %132 : vector<128x128xf32>
    %134 = vector.extract_strided_slice %70 {offsets = [8, 0], sizes = [1, 128], strides = [1, 1]} : vector<9x128xf32> to vector<1x128xf32>
    %135 = vector.broadcast %134 : vector<1x128xf32> to vector<128x128xf32>
    %136 = arith.mulf %133, %135 : vector<128x128xf32>
    %137 = arith.addf %129, %136 : vector<128x128xf32>
    %c0_39 = arith.constant 0 : index
    %c0_40 = arith.constant 0 : index
    %138 = vector.load %arg10[%c0_39, %c0_40] : memref<1x512xf32, #tpu.memory_space<vmem>>, vector<1x128xf32>
    %139 = vector.broadcast %138 : vector<1x128xf32> to vector<128x128xf32>
    %140 = arith.addf %137, %139 : vector<128x128xf32>
    %cst_41 = arith.constant 0.000000e+00 : f32
    %141 = vector.broadcast %cst_41 : f32 to vector<128x128xf32>
    %142 = arith.cmpf ogt, %140, %141 : vector<128x128xf32>
    %cst_42 = arith.constant 1.000000e+00 : f32
    %cst_43 = arith.constant 0.000000e+00 : f32
    %143 = vector.broadcast %cst_42 : f32 to vector<128x128xf32>
    %144 = vector.broadcast %cst_43 : f32 to vector<128x128xf32>
    %145 = arith.select %142, %143, %144 : vector<128x128xi1>, vector<128x128xf32>
    %146 = arith.truncf %145 : vector<128x128xf32> to vector<128x128xbf16>
    %c0_44 = arith.constant 0 : index
    %c0_45 = arith.constant 0 : index
    %147 = vector.load %arg11[%c0_44, %c0_45] : memref<512x128xbf16, #tpu.memory_space<vmem>>, vector<128x128xbf16>
    %cst_46 = arith.constant dense<0.000000e+00> : vector<128x128xf32>
    %148 = tpu.matmul %146, %147, %cst_46 {dimension_numbers = #tpu.dot_dimension_numbers<[1], [0], [0], [1], [0, 0, 1, 1], [], []>} : vector<128x128xbf16>, vector<128x128xbf16>, vector<128x128xf32> -> vector<128x128xf32>
    %149 = arith.addf %64, %148 : vector<128x128xf32>
    %c0_47 = arith.constant 0 : index
    %c128 = arith.constant 128 : index
    %150 = vector.load %arg7[%c0_47, %c128] : memref<128x512xf32, #tpu.memory_space<vmem>>, vector<128x128xf32>
    %cst_48 = arith.constant dense<0.000000e+00> : vector<128x128xf32>
    %151 = tpu.matmul %63, %150, %cst_48 {dimension_numbers = #tpu.dot_dimension_numbers<[1], [0], [0], [1], [0, 0, 1, 1], [], []>} : vector<128x128xf32>, vector<128x128xf32>, vector<128x128xf32> -> vector<128x128xf32>
    %c0_49 = arith.constant 0 : index
    %c128_50 = arith.constant 128 : index
    %152 = vector.load %arg8[%c0_49, %c128_50] : memref<1x512xf32, #tpu.memory_space<vmem>>, vector<1x128xf32>
    %153 = vector.broadcast %152 : vector<1x128xf32> to vector<128x128xf32>
    %154 = arith.addf %151, %153 : vector<128x128xf32>
    %c0_51 = arith.constant 0 : index
    %c128_52 = arith.constant 128 : index
    %155 = vector.load %arg9[%c0_51, %c128_52] : memref<9x512xf32, #tpu.memory_space<vmem>>, vector<9x128xf32>
    %156 = vector.extract_strided_slice %155 {offsets = [4, 0], sizes = [1, 128], strides = [1, 1]} : vector<9x128xf32> to vector<1x128xf32>
    %157 = vector.broadcast %156 : vector<1x128xf32> to vector<128x128xf32>
    %158 = arith.mulf %154, %157 : vector<128x128xf32>
    %c9_i32_53 = arith.constant 9 : i32
    %159 = tpu.dynamic_rotate %154 by %c9_i32_53 dim 0 : vector<128x128xf32>, i32 -> vector<128x128xf32>
    %c0_54 = arith.constant 0 : index
    %c0_55 = arith.constant 0 : index
    %160 = vector.load %arg2[%c0_54, %c0_55] : memref<128x128xf32, #tpu.memory_space<vmem>>, vector<128x1xf32>
    %161 = vector.broadcast %160 : vector<128x1xf32> to vector<128x128xf32>
    %162 = arith.mulf %159, %161 : vector<128x128xf32>
    %163 = vector.extract_strided_slice %155 {offsets = [0, 0], sizes = [1, 128], strides = [1, 1]} : vector<9x128xf32> to vector<1x128xf32>
    %164 = vector.broadcast %163 : vector<1x128xf32> to vector<128x128xf32>
    %165 = arith.mulf %162, %164 : vector<128x128xf32>
    %166 = arith.addf %158, %165 : vector<128x128xf32>
    %c8_i32_56 = arith.constant 8 : i32
    %167 = tpu.dynamic_rotate %154 by %c8_i32_56 dim 0 : vector<128x128xf32>, i32 -> vector<128x128xf32>
    %c0_57 = arith.constant 0 : index
    %c1_58 = arith.constant 1 : index
    %168 = vector.load %arg2[%c0_57, %c1_58] : memref<128x128xf32, #tpu.memory_space<vmem>>, vector<128x1xf32>
    %169 = vector.broadcast %168 : vector<128x1xf32> to vector<128x128xf32>
    %170 = arith.mulf %167, %169 : vector<128x128xf32>
    %171 = vector.extract_strided_slice %155 {offsets = [1, 0], sizes = [1, 128], strides = [1, 1]} : vector<9x128xf32> to vector<1x128xf32>
    %172 = vector.broadcast %171 : vector<1x128xf32> to vector<128x128xf32>
    %173 = arith.mulf %170, %172 : vector<128x128xf32>
    %174 = arith.addf %166, %173 : vector<128x128xf32>
    %c7_i32_59 = arith.constant 7 : i32
    %175 = tpu.dynamic_rotate %154 by %c7_i32_59 dim 0 : vector<128x128xf32>, i32 -> vector<128x128xf32>
    %c0_60 = arith.constant 0 : index
    %c2_61 = arith.constant 2 : index
    %176 = vector.load %arg2[%c0_60, %c2_61] : memref<128x128xf32, #tpu.memory_space<vmem>>, vector<128x1xf32>
    %177 = vector.broadcast %176 : vector<128x1xf32> to vector<128x128xf32>
    %178 = arith.mulf %175, %177 : vector<128x128xf32>
    %179 = vector.extract_strided_slice %155 {offsets = [2, 0], sizes = [1, 128], strides = [1, 1]} : vector<9x128xf32> to vector<1x128xf32>
    %180 = vector.broadcast %179 : vector<1x128xf32> to vector<128x128xf32>
    %181 = arith.mulf %178, %180 : vector<128x128xf32>
    %182 = arith.addf %174, %181 : vector<128x128xf32>
    %c1_i32_62 = arith.constant 1 : i32
    %183 = tpu.dynamic_rotate %154 by %c1_i32_62 dim 0 : vector<128x128xf32>, i32 -> vector<128x128xf32>
    %c0_63 = arith.constant 0 : index
    %c3_64 = arith.constant 3 : index
    %184 = vector.load %arg2[%c0_63, %c3_64] : memref<128x128xf32, #tpu.memory_space<vmem>>, vector<128x1xf32>
    %185 = vector.broadcast %184 : vector<128x1xf32> to vector<128x128xf32>
    %186 = arith.mulf %183, %185 : vector<128x128xf32>
    %187 = vector.extract_strided_slice %155 {offsets = [3, 0], sizes = [1, 128], strides = [1, 1]} : vector<9x128xf32> to vector<1x128xf32>
    %188 = vector.broadcast %187 : vector<1x128xf32> to vector<128x128xf32>
    %189 = arith.mulf %186, %188 : vector<128x128xf32>
    %190 = arith.addf %182, %189 : vector<128x128xf32>
    %c127_i32_65 = arith.constant 127 : i32
    %191 = tpu.dynamic_rotate %154 by %c127_i32_65 dim 0 : vector<128x128xf32>, i32 -> vector<128x128xf32>
    %c0_66 = arith.constant 0 : index
    %c5_67 = arith.constant 5 : index
    %192 = vector.load %arg2[%c0_66, %c5_67] : memref<128x128xf32, #tpu.memory_space<vmem>>, vector<128x1xf32>
    %193 = vector.broadcast %192 : vector<128x1xf32> to vector<128x128xf32>
    %194 = arith.mulf %191, %193 : vector<128x128xf32>
    %195 = vector.extract_strided_slice %155 {offsets = [5, 0], sizes = [1, 128], strides = [1, 1]} : vector<9x128xf32> to vector<1x128xf32>
    %196 = vector.broadcast %195 : vector<1x128xf32> to vector<128x128xf32>
    %197 = arith.mulf %194, %196 : vector<128x128xf32>
    %198 = arith.addf %190, %197 : vector<128x128xf32>
    %c121_i32_68 = arith.constant 121 : i32
    %199 = tpu.dynamic_rotate %154 by %c121_i32_68 dim 0 : vector<128x128xf32>, i32 -> vector<128x128xf32>
    %c0_69 = arith.constant 0 : index
    %c6_70 = arith.constant 6 : index
    %200 = vector.load %arg2[%c0_69, %c6_70] : memref<128x128xf32, #tpu.memory_space<vmem>>, vector<128x1xf32>
    %201 = vector.broadcast %200 : vector<128x1xf32> to vector<128x128xf32>
    %202 = arith.mulf %199, %201 : vector<128x128xf32>
    %203 = vector.extract_strided_slice %155 {offsets = [6, 0], sizes = [1, 128], strides = [1, 1]} : vector<9x128xf32> to vector<1x128xf32>
    %204 = vector.broadcast %203 : vector<1x128xf32> to vector<128x128xf32>
    %205 = arith.mulf %202, %204 : vector<128x128xf32>
    %206 = arith.addf %198, %205 : vector<128x128xf32>
    %c120_i32_71 = arith.constant 120 : i32
    %207 = tpu.dynamic_rotate %154 by %c120_i32_71 dim 0 : vector<128x128xf32>, i32 -> vector<128x128xf32>
    %c0_72 = arith.constant 0 : index
    %c7_73 = arith.constant 7 : index
    %208 = vector.load %arg2[%c0_72, %c7_73] : memref<128x128xf32, #tpu.memory_space<vmem>>, vector<128x1xf32>
    %209 = vector.broadcast %208 : vector<128x1xf32> to vector<128x128xf32>
    %210 = arith.mulf %207, %209 : vector<128x128xf32>
    %211 = vector.extract_strided_slice %155 {offsets = [7, 0], sizes = [1, 128], strides = [1, 1]} : vector<9x128xf32> to vector<1x128xf32>
    %212 = vector.broadcast %211 : vector<1x128xf32> to vector<128x128xf32>
    %213 = arith.mulf %210, %212 : vector<128x128xf32>
    %214 = arith.addf %206, %213 : vector<128x128xf32>
    %c119_i32_74 = arith.constant 119 : i32
    %215 = tpu.dynamic_rotate %154 by %c119_i32_74 dim 0 : vector<128x128xf32>, i32 -> vector<128x128xf32>
    %c0_75 = arith.constant 0 : index
    %c8_76 = arith.constant 8 : index
    %216 = vector.load %arg2[%c0_75, %c8_76] : memref<128x128xf32, #tpu.memory_space<vmem>>, vector<128x1xf32>
    %217 = vector.broadcast %216 : vector<128x1xf32> to vector<128x128xf32>
    %218 = arith.mulf %215, %217 : vector<128x128xf32>
    %219 = vector.extract_strided_slice %155 {offsets = [8, 0], sizes = [1, 128], strides = [1, 1]} : vector<9x128xf32> to vector<1x128xf32>
    %220 = vector.broadcast %219 : vector<1x128xf32> to vector<128x128xf32>
    %221 = arith.mulf %218, %220 : vector<128x128xf32>
    %222 = arith.addf %214, %221 : vector<128x128xf32>
    %c0_77 = arith.constant 0 : index
    %c128_78 = arith.constant 128 : index
    %223 = vector.load %arg10[%c0_77, %c128_78] : memref<1x512xf32, #tpu.memory_space<vmem>>, vector<1x128xf32>
    %224 = vector.broadcast %223 : vector<1x128xf32> to vector<128x128xf32>
    %225 = arith.addf %222, %224 : vector<128x128xf32>
    %cst_79 = arith.constant 0.000000e+00 : f32
    %226 = vector.broadcast %cst_79 : f32 to vector<128x128xf32>
    %227 = arith.cmpf ogt, %225, %226 : vector<128x128xf32>
    %cst_80 = arith.constant 1.000000e+00 : f32
    %cst_81 = arith.constant 0.000000e+00 : f32
    %228 = vector.broadcast %cst_80 : f32 to vector<128x128xf32>
    %229 = vector.broadcast %cst_81 : f32 to vector<128x128xf32>
    %230 = arith.select %227, %228, %229 : vector<128x128xi1>, vector<128x128xf32>
    %231 = arith.truncf %230 : vector<128x128xf32> to vector<128x128xbf16>
    %c128_82 = arith.constant 128 : index
    %c0_83 = arith.constant 0 : index
    %232 = vector.load %arg11[%c128_82, %c0_83] : memref<512x128xbf16, #tpu.memory_space<vmem>>, vector<128x128xbf16>
    %cst_84 = arith.constant dense<0.000000e+00> : vector<128x128xf32>
    %233 = tpu.matmul %231, %232, %cst_84 {dimension_numbers = #tpu.dot_dimension_numbers<[1], [0], [0], [1], [0, 0, 1, 1], [], []>} : vector<128x128xbf16>, vector<128x128xbf16>, vector<128x128xf32> -> vector<128x128xf32>
    %234 = arith.addf %149, %233 : vector<128x128xf32>
    %c0_85 = arith.constant 0 : index
    %c256 = arith.constant 256 : index
    %235 = vector.load %arg7[%c0_85, %c256] : memref<128x512xf32, #tpu.memory_space<vmem>>, vector<128x128xf32>
    %cst_86 = arith.constant dense<0.000000e+00> : vector<128x128xf32>
    %236 = tpu.matmul %63, %235, %cst_86 {dimension_numbers = #tpu.dot_dimension_numbers<[1], [0], [0], [1], [0, 0, 1, 1], [], []>} : vector<128x128xf32>, vector<128x128xf32>, vector<128x128xf32> -> vector<128x128xf32>
    %c0_87 = arith.constant 0 : index
    %c256_88 = arith.constant 256 : index
    %237 = vector.load %arg8[%c0_87, %c256_88] : memref<1x512xf32, #tpu.memory_space<vmem>>, vector<1x128xf32>
    %238 = vector.broadcast %237 : vector<1x128xf32> to vector<128x128xf32>
    %239 = arith.addf %236, %238 : vector<128x128xf32>
    %c0_89 = arith.constant 0 : index
    %c256_90 = arith.constant 256 : index
    %240 = vector.load %arg9[%c0_89, %c256_90] : memref<9x512xf32, #tpu.memory_space<vmem>>, vector<9x128xf32>
    %241 = vector.extract_strided_slice %240 {offsets = [4, 0], sizes = [1, 128], strides = [1, 1]} : vector<9x128xf32> to vector<1x128xf32>
    %242 = vector.broadcast %241 : vector<1x128xf32> to vector<128x128xf32>
    %243 = arith.mulf %239, %242 : vector<128x128xf32>
    %c9_i32_91 = arith.constant 9 : i32
    %244 = tpu.dynamic_rotate %239 by %c9_i32_91 dim 0 : vector<128x128xf32>, i32 -> vector<128x128xf32>
    %c0_92 = arith.constant 0 : index
    %c0_93 = arith.constant 0 : index
    %245 = vector.load %arg2[%c0_92, %c0_93] : memref<128x128xf32, #tpu.memory_space<vmem>>, vector<128x1xf32>
    %246 = vector.broadcast %245 : vector<128x1xf32> to vector<128x128xf32>
    %247 = arith.mulf %244, %246 : vector<128x128xf32>
    %248 = vector.extract_strided_slice %240 {offsets = [0, 0], sizes = [1, 128], strides = [1, 1]} : vector<9x128xf32> to vector<1x128xf32>
    %249 = vector.broadcast %248 : vector<1x128xf32> to vector<128x128xf32>
    %250 = arith.mulf %247, %249 : vector<128x128xf32>
    %251 = arith.addf %243, %250 : vector<128x128xf32>
    %c8_i32_94 = arith.constant 8 : i32
    %252 = tpu.dynamic_rotate %239 by %c8_i32_94 dim 0 : vector<128x128xf32>, i32 -> vector<128x128xf32>
    %c0_95 = arith.constant 0 : index
    %c1_96 = arith.constant 1 : index
    %253 = vector.load %arg2[%c0_95, %c1_96] : memref<128x128xf32, #tpu.memory_space<vmem>>, vector<128x1xf32>
    %254 = vector.broadcast %253 : vector<128x1xf32> to vector<128x128xf32>
    %255 = arith.mulf %252, %254 : vector<128x128xf32>
    %256 = vector.extract_strided_slice %240 {offsets = [1, 0], sizes = [1, 128], strides = [1, 1]} : vector<9x128xf32> to vector<1x128xf32>
    %257 = vector.broadcast %256 : vector<1x128xf32> to vector<128x128xf32>
    %258 = arith.mulf %255, %257 : vector<128x128xf32>
    %259 = arith.addf %251, %258 : vector<128x128xf32>
    %c7_i32_97 = arith.constant 7 : i32
    %260 = tpu.dynamic_rotate %239 by %c7_i32_97 dim 0 : vector<128x128xf32>, i32 -> vector<128x128xf32>
    %c0_98 = arith.constant 0 : index
    %c2_99 = arith.constant 2 : index
    %261 = vector.load %arg2[%c0_98, %c2_99] : memref<128x128xf32, #tpu.memory_space<vmem>>, vector<128x1xf32>
    %262 = vector.broadcast %261 : vector<128x1xf32> to vector<128x128xf32>
    %263 = arith.mulf %260, %262 : vector<128x128xf32>
    %264 = vector.extract_strided_slice %240 {offsets = [2, 0], sizes = [1, 128], strides = [1, 1]} : vector<9x128xf32> to vector<1x128xf32>
    %265 = vector.broadcast %264 : vector<1x128xf32> to vector<128x128xf32>
    %266 = arith.mulf %263, %265 : vector<128x128xf32>
    %267 = arith.addf %259, %266 : vector<128x128xf32>
    %c1_i32_100 = arith.constant 1 : i32
    %268 = tpu.dynamic_rotate %239 by %c1_i32_100 dim 0 : vector<128x128xf32>, i32 -> vector<128x128xf32>
    %c0_101 = arith.constant 0 : index
    %c3_102 = arith.constant 3 : index
    %269 = vector.load %arg2[%c0_101, %c3_102] : memref<128x128xf32, #tpu.memory_space<vmem>>, vector<128x1xf32>
    %270 = vector.broadcast %269 : vector<128x1xf32> to vector<128x128xf32>
    %271 = arith.mulf %268, %270 : vector<128x128xf32>
    %272 = vector.extract_strided_slice %240 {offsets = [3, 0], sizes = [1, 128], strides = [1, 1]} : vector<9x128xf32> to vector<1x128xf32>
    %273 = vector.broadcast %272 : vector<1x128xf32> to vector<128x128xf32>
    %274 = arith.mulf %271, %273 : vector<128x128xf32>
    %275 = arith.addf %267, %274 : vector<128x128xf32>
    %c127_i32_103 = arith.constant 127 : i32
    %276 = tpu.dynamic_rotate %239 by %c127_i32_103 dim 0 : vector<128x128xf32>, i32 -> vector<128x128xf32>
    %c0_104 = arith.constant 0 : index
    %c5_105 = arith.constant 5 : index
    %277 = vector.load %arg2[%c0_104, %c5_105] : memref<128x128xf32, #tpu.memory_space<vmem>>, vector<128x1xf32>
    %278 = vector.broadcast %277 : vector<128x1xf32> to vector<128x128xf32>
    %279 = arith.mulf %276, %278 : vector<128x128xf32>
    %280 = vector.extract_strided_slice %240 {offsets = [5, 0], sizes = [1, 128], strides = [1, 1]} : vector<9x128xf32> to vector<1x128xf32>
    %281 = vector.broadcast %280 : vector<1x128xf32> to vector<128x128xf32>
    %282 = arith.mulf %279, %281 : vector<128x128xf32>
    %283 = arith.addf %275, %282 : vector<128x128xf32>
    %c121_i32_106 = arith.constant 121 : i32
    %284 = tpu.dynamic_rotate %239 by %c121_i32_106 dim 0 : vector<128x128xf32>, i32 -> vector<128x128xf32>
    %c0_107 = arith.constant 0 : index
    %c6_108 = arith.constant 6 : index
    %285 = vector.load %arg2[%c0_107, %c6_108] : memref<128x128xf32, #tpu.memory_space<vmem>>, vector<128x1xf32>
    %286 = vector.broadcast %285 : vector<128x1xf32> to vector<128x128xf32>
    %287 = arith.mulf %284, %286 : vector<128x128xf32>
    %288 = vector.extract_strided_slice %240 {offsets = [6, 0], sizes = [1, 128], strides = [1, 1]} : vector<9x128xf32> to vector<1x128xf32>
    %289 = vector.broadcast %288 : vector<1x128xf32> to vector<128x128xf32>
    %290 = arith.mulf %287, %289 : vector<128x128xf32>
    %291 = arith.addf %283, %290 : vector<128x128xf32>
    %c120_i32_109 = arith.constant 120 : i32
    %292 = tpu.dynamic_rotate %239 by %c120_i32_109 dim 0 : vector<128x128xf32>, i32 -> vector<128x128xf32>
    %c0_110 = arith.constant 0 : index
    %c7_111 = arith.constant 7 : index
    %293 = vector.load %arg2[%c0_110, %c7_111] : memref<128x128xf32, #tpu.memory_space<vmem>>, vector<128x1xf32>
    %294 = vector.broadcast %293 : vector<128x1xf32> to vector<128x128xf32>
    %295 = arith.mulf %292, %294 : vector<128x128xf32>
    %296 = vector.extract_strided_slice %240 {offsets = [7, 0], sizes = [1, 128], strides = [1, 1]} : vector<9x128xf32> to vector<1x128xf32>
    %297 = vector.broadcast %296 : vector<1x128xf32> to vector<128x128xf32>
    %298 = arith.mulf %295, %297 : vector<128x128xf32>
    %299 = arith.addf %291, %298 : vector<128x128xf32>
    %c119_i32_112 = arith.constant 119 : i32
    %300 = tpu.dynamic_rotate %239 by %c119_i32_112 dim 0 : vector<128x128xf32>, i32 -> vector<128x128xf32>
    %c0_113 = arith.constant 0 : index
    %c8_114 = arith.constant 8 : index
    %301 = vector.load %arg2[%c0_113, %c8_114] : memref<128x128xf32, #tpu.memory_space<vmem>>, vector<128x1xf32>
    %302 = vector.broadcast %301 : vector<128x1xf32> to vector<128x128xf32>
    %303 = arith.mulf %300, %302 : vector<128x128xf32>
    %304 = vector.extract_strided_slice %240 {offsets = [8, 0], sizes = [1, 128], strides = [1, 1]} : vector<9x128xf32> to vector<1x128xf32>
    %305 = vector.broadcast %304 : vector<1x128xf32> to vector<128x128xf32>
    %306 = arith.mulf %303, %305 : vector<128x128xf32>
    %307 = arith.addf %299, %306 : vector<128x128xf32>
    %c0_115 = arith.constant 0 : index
    %c256_116 = arith.constant 256 : index
    %308 = vector.load %arg10[%c0_115, %c256_116] : memref<1x512xf32, #tpu.memory_space<vmem>>, vector<1x128xf32>
    %309 = vector.broadcast %308 : vector<1x128xf32> to vector<128x128xf32>
    %310 = arith.addf %307, %309 : vector<128x128xf32>
    %cst_117 = arith.constant 0.000000e+00 : f32
    %311 = vector.broadcast %cst_117 : f32 to vector<128x128xf32>
    %312 = arith.cmpf ogt, %310, %311 : vector<128x128xf32>
    %cst_118 = arith.constant 1.000000e+00 : f32
    %cst_119 = arith.constant 0.000000e+00 : f32
    %313 = vector.broadcast %cst_118 : f32 to vector<128x128xf32>
    %314 = vector.broadcast %cst_119 : f32 to vector<128x128xf32>
    %315 = arith.select %312, %313, %314 : vector<128x128xi1>, vector<128x128xf32>
    %316 = arith.truncf %315 : vector<128x128xf32> to vector<128x128xbf16>
    %c256_120 = arith.constant 256 : index
    %c0_121 = arith.constant 0 : index
    %317 = vector.load %arg11[%c256_120, %c0_121] : memref<512x128xbf16, #tpu.memory_space<vmem>>, vector<128x128xbf16>
    %cst_122 = arith.constant dense<0.000000e+00> : vector<128x128xf32>
    %318 = tpu.matmul %316, %317, %cst_122 {dimension_numbers = #tpu.dot_dimension_numbers<[1], [0], [0], [1], [0, 0, 1, 1], [], []>} : vector<128x128xbf16>, vector<128x128xbf16>, vector<128x128xf32> -> vector<128x128xf32>
    %319 = arith.addf %234, %318 : vector<128x128xf32>
    %c0_123 = arith.constant 0 : index
    %c384 = arith.constant 384 : index
    %320 = vector.load %arg7[%c0_123, %c384] : memref<128x512xf32, #tpu.memory_space<vmem>>, vector<128x128xf32>
    %cst_124 = arith.constant dense<0.000000e+00> : vector<128x128xf32>
    %321 = tpu.matmul %63, %320, %cst_124 {dimension_numbers = #tpu.dot_dimension_numbers<[1], [0], [0], [1], [0, 0, 1, 1], [], []>} : vector<128x128xf32>, vector<128x128xf32>, vector<128x128xf32> -> vector<128x128xf32>
    %c0_125 = arith.constant 0 : index
    %c384_126 = arith.constant 384 : index
    %322 = vector.load %arg8[%c0_125, %c384_126] : memref<1x512xf32, #tpu.memory_space<vmem>>, vector<1x128xf32>
    %323 = vector.broadcast %322 : vector<1x128xf32> to vector<128x128xf32>
    %324 = arith.addf %321, %323 : vector<128x128xf32>
    %c0_127 = arith.constant 0 : index
    %c384_128 = arith.constant 384 : index
    %325 = vector.load %arg9[%c0_127, %c384_128] : memref<9x512xf32, #tpu.memory_space<vmem>>, vector<9x128xf32>
    %326 = vector.extract_strided_slice %325 {offsets = [4, 0], sizes = [1, 128], strides = [1, 1]} : vector<9x128xf32> to vector<1x128xf32>
    %327 = vector.broadcast %326 : vector<1x128xf32> to vector<128x128xf32>
    %328 = arith.mulf %324, %327 : vector<128x128xf32>
    %c9_i32_129 = arith.constant 9 : i32
    %329 = tpu.dynamic_rotate %324 by %c9_i32_129 dim 0 : vector<128x128xf32>, i32 -> vector<128x128xf32>
    %c0_130 = arith.constant 0 : index
    %c0_131 = arith.constant 0 : index
    %330 = vector.load %arg2[%c0_130, %c0_131] : memref<128x128xf32, #tpu.memory_space<vmem>>, vector<128x1xf32>
    %331 = vector.broadcast %330 : vector<128x1xf32> to vector<128x128xf32>
    %332 = arith.mulf %329, %331 : vector<128x128xf32>
    %333 = vector.extract_strided_slice %325 {offsets = [0, 0], sizes = [1, 128], strides = [1, 1]} : vector<9x128xf32> to vector<1x128xf32>
    %334 = vector.broadcast %333 : vector<1x128xf32> to vector<128x128xf32>
    %335 = arith.mulf %332, %334 : vector<128x128xf32>
    %336 = arith.addf %328, %335 : vector<128x128xf32>
    %c8_i32_132 = arith.constant 8 : i32
    %337 = tpu.dynamic_rotate %324 by %c8_i32_132 dim 0 : vector<128x128xf32>, i32 -> vector<128x128xf32>
    %c0_133 = arith.constant 0 : index
    %c1_134 = arith.constant 1 : index
    %338 = vector.load %arg2[%c0_133, %c1_134] : memref<128x128xf32, #tpu.memory_space<vmem>>, vector<128x1xf32>
    %339 = vector.broadcast %338 : vector<128x1xf32> to vector<128x128xf32>
    %340 = arith.mulf %337, %339 : vector<128x128xf32>
    %341 = vector.extract_strided_slice %325 {offsets = [1, 0], sizes = [1, 128], strides = [1, 1]} : vector<9x128xf32> to vector<1x128xf32>
    %342 = vector.broadcast %341 : vector<1x128xf32> to vector<128x128xf32>
    %343 = arith.mulf %340, %342 : vector<128x128xf32>
    %344 = arith.addf %336, %343 : vector<128x128xf32>
    %c7_i32_135 = arith.constant 7 : i32
    %345 = tpu.dynamic_rotate %324 by %c7_i32_135 dim 0 : vector<128x128xf32>, i32 -> vector<128x128xf32>
    %c0_136 = arith.constant 0 : index
    %c2_137 = arith.constant 2 : index
    %346 = vector.load %arg2[%c0_136, %c2_137] : memref<128x128xf32, #tpu.memory_space<vmem>>, vector<128x1xf32>
    %347 = vector.broadcast %346 : vector<128x1xf32> to vector<128x128xf32>
    %348 = arith.mulf %345, %347 : vector<128x128xf32>
    %349 = vector.extract_strided_slice %325 {offsets = [2, 0], sizes = [1, 128], strides = [1, 1]} : vector<9x128xf32> to vector<1x128xf32>
    %350 = vector.broadcast %349 : vector<1x128xf32> to vector<128x128xf32>
    %351 = arith.mulf %348, %350 : vector<128x128xf32>
    %352 = arith.addf %344, %351 : vector<128x128xf32>
    %c1_i32_138 = arith.constant 1 : i32
    %353 = tpu.dynamic_rotate %324 by %c1_i32_138 dim 0 : vector<128x128xf32>, i32 -> vector<128x128xf32>
    %c0_139 = arith.constant 0 : index
    %c3_140 = arith.constant 3 : index
    %354 = vector.load %arg2[%c0_139, %c3_140] : memref<128x128xf32, #tpu.memory_space<vmem>>, vector<128x1xf32>
    %355 = vector.broadcast %354 : vector<128x1xf32> to vector<128x128xf32>
    %356 = arith.mulf %353, %355 : vector<128x128xf32>
    %357 = vector.extract_strided_slice %325 {offsets = [3, 0], sizes = [1, 128], strides = [1, 1]} : vector<9x128xf32> to vector<1x128xf32>
    %358 = vector.broadcast %357 : vector<1x128xf32> to vector<128x128xf32>
    %359 = arith.mulf %356, %358 : vector<128x128xf32>
    %360 = arith.addf %352, %359 : vector<128x128xf32>
    %c127_i32_141 = arith.constant 127 : i32
    %361 = tpu.dynamic_rotate %324 by %c127_i32_141 dim 0 : vector<128x128xf32>, i32 -> vector<128x128xf32>
    %c0_142 = arith.constant 0 : index
    %c5_143 = arith.constant 5 : index
    %362 = vector.load %arg2[%c0_142, %c5_143] : memref<128x128xf32, #tpu.memory_space<vmem>>, vector<128x1xf32>
    %363 = vector.broadcast %362 : vector<128x1xf32> to vector<128x128xf32>
    %364 = arith.mulf %361, %363 : vector<128x128xf32>
    %365 = vector.extract_strided_slice %325 {offsets = [5, 0], sizes = [1, 128], strides = [1, 1]} : vector<9x128xf32> to vector<1x128xf32>
    %366 = vector.broadcast %365 : vector<1x128xf32> to vector<128x128xf32>
    %367 = arith.mulf %364, %366 : vector<128x128xf32>
    %368 = arith.addf %360, %367 : vector<128x128xf32>
    %c121_i32_144 = arith.constant 121 : i32
    %369 = tpu.dynamic_rotate %324 by %c121_i32_144 dim 0 : vector<128x128xf32>, i32 -> vector<128x128xf32>
    %c0_145 = arith.constant 0 : index
    %c6_146 = arith.constant 6 : index
    %370 = vector.load %arg2[%c0_145, %c6_146] : memref<128x128xf32, #tpu.memory_space<vmem>>, vector<128x1xf32>
    %371 = vector.broadcast %370 : vector<128x1xf32> to vector<128x128xf32>
    %372 = arith.mulf %369, %371 : vector<128x128xf32>
    %373 = vector.extract_strided_slice %325 {offsets = [6, 0], sizes = [1, 128], strides = [1, 1]} : vector<9x128xf32> to vector<1x128xf32>
    %374 = vector.broadcast %373 : vector<1x128xf32> to vector<128x128xf32>
    %375 = arith.mulf %372, %374 : vector<128x128xf32>
    %376 = arith.addf %368, %375 : vector<128x128xf32>
    %c120_i32_147 = arith.constant 120 : i32
    %377 = tpu.dynamic_rotate %324 by %c120_i32_147 dim 0 : vector<128x128xf32>, i32 -> vector<128x128xf32>
    %c0_148 = arith.constant 0 : index
    %c7_149 = arith.constant 7 : index
    %378 = vector.load %arg2[%c0_148, %c7_149] : memref<128x128xf32, #tpu.memory_space<vmem>>, vector<128x1xf32>
    %379 = vector.broadcast %378 : vector<128x1xf32> to vector<128x128xf32>
    %380 = arith.mulf %377, %379 : vector<128x128xf32>
    %381 = vector.extract_strided_slice %325 {offsets = [7, 0], sizes = [1, 128], strides = [1, 1]} : vector<9x128xf32> to vector<1x128xf32>
    %382 = vector.broadcast %381 : vector<1x128xf32> to vector<128x128xf32>
    %383 = arith.mulf %380, %382 : vector<128x128xf32>
    %384 = arith.addf %376, %383 : vector<128x128xf32>
    %c119_i32_150 = arith.constant 119 : i32
    %385 = tpu.dynamic_rotate %324 by %c119_i32_150 dim 0 : vector<128x128xf32>, i32 -> vector<128x128xf32>
    %c0_151 = arith.constant 0 : index
    %c8_152 = arith.constant 8 : index
    %386 = vector.load %arg2[%c0_151, %c8_152] : memref<128x128xf32, #tpu.memory_space<vmem>>, vector<128x1xf32>
    %387 = vector.broadcast %386 : vector<128x1xf32> to vector<128x128xf32>
    %388 = arith.mulf %385, %387 : vector<128x128xf32>
    %389 = vector.extract_strided_slice %325 {offsets = [8, 0], sizes = [1, 128], strides = [1, 1]} : vector<9x128xf32> to vector<1x128xf32>
    %390 = vector.broadcast %389 : vector<1x128xf32> to vector<128x128xf32>
    %391 = arith.mulf %388, %390 : vector<128x128xf32>
    %392 = arith.addf %384, %391 : vector<128x128xf32>
    %c0_153 = arith.constant 0 : index
    %c384_154 = arith.constant 384 : index
    %393 = vector.load %arg10[%c0_153, %c384_154] : memref<1x512xf32, #tpu.memory_space<vmem>>, vector<1x128xf32>
    %394 = vector.broadcast %393 : vector<1x128xf32> to vector<128x128xf32>
    %395 = arith.addf %392, %394 : vector<128x128xf32>
    %cst_155 = arith.constant 0.000000e+00 : f32
    %396 = vector.broadcast %cst_155 : f32 to vector<128x128xf32>
    %397 = arith.cmpf ogt, %395, %396 : vector<128x128xf32>
    %cst_156 = arith.constant 1.000000e+00 : f32
    %cst_157 = arith.constant 0.000000e+00 : f32
    %398 = vector.broadcast %cst_156 : f32 to vector<128x128xf32>
    %399 = vector.broadcast %cst_157 : f32 to vector<128x128xf32>
    %400 = arith.select %397, %398, %399 : vector<128x128xi1>, vector<128x128xf32>
    %401 = arith.truncf %400 : vector<128x128xf32> to vector<128x128xbf16>
    %c384_158 = arith.constant 384 : index
    %c0_159 = arith.constant 0 : index
    %402 = vector.load %arg11[%c384_158, %c0_159] : memref<512x128xbf16, #tpu.memory_space<vmem>>, vector<128x128xbf16>
    %cst_160 = arith.constant dense<0.000000e+00> : vector<128x128xf32>
    %403 = tpu.matmul %401, %402, %cst_160 {dimension_numbers = #tpu.dot_dimension_numbers<[1], [0], [0], [1], [0, 0, 1, 1], [], []>} : vector<128x128xbf16>, vector<128x128xbf16>, vector<128x128xf32> -> vector<128x128xf32>
    %404 = arith.addf %319, %403 : vector<128x128xf32>
    %405 = arith.addf %63, %404 : vector<128x128xf32>
    %c0_161 = arith.constant 0 : index
    %c0_162 = arith.constant 0 : index
    %406 = vector.load %arg12[%c0_161, %c0_162] : memref<1x128xf32, #tpu.memory_space<vmem>>, vector<1x128xf32>
    %407 = vector.broadcast %406 : vector<1x128xf32> to vector<128x128xf32>
    %408 = arith.addf %405, %407 : vector<128x128xf32>
    %c0_163 = arith.constant 0 : index
    %c0_164 = arith.constant 0 : index
    %c0_165 = arith.constant 0 : index
    %409 = vector.load %arg13[%c0_163, %c0_164, %c0_165] : memref<1x128x128xf32, #tpu.memory_space<vmem>>, vector<1x128x128xf32>
    %410 = vector.shape_cast %409 : vector<1x128x128xf32> to vector<128x128xf32>
    %411 = vector.shape_cast %408 : vector<128x128xf32> to vector<1x128x128xf32>
    tpu.vector_store %arg13[%c0_163, %c0_164, %c0_165], %411 {strides = array<i32>} : memref<1x128x128xf32, #tpu.memory_space<vmem>>, vector<1x128x128xf32>,
    return
  }
  func.func @transform_0(%arg0: i32) -> (i32, i32, i32) {
    %c0_i32 = arith.constant 0 : i32
    %c0_i32_0 = arith.constant 0 : i32
    %c0_i32_1 = arith.constant 0 : i32
    return %arg0, %c0_i32, %c0_i32_0 : i32, i32, i32
  }
  func.func @transform_1(%arg0: i32) -> (i32, i32) {
    %c0_i32 = arith.constant 0 : i32
    %c0_i32_0 = arith.constant 0 : i32
    %c0_i32_1 = arith.constant 0 : i32
    return %c0_i32, %c0_i32_0 : i32, i32
  }
  func.func @transform_2(%arg0: i32) -> (i32, i32) {
    %c0_i32 = arith.constant 0 : i32
    %c0_i32_0 = arith.constant 0 : i32
    %c0_i32_1 = arith.constant 0 : i32
    return %c0_i32, %c0_i32_0 : i32, i32
  }
  func.func @transform_3(%arg0: i32) -> (i32, i32) {
    %c0_i32 = arith.constant 0 : i32
    %c0_i32_0 = arith.constant 0 : i32
    %c0_i32_1 = arith.constant 0 : i32
    return %c0_i32, %c0_i32_0 : i32, i32
  }
  func.func @transform_4(%arg0: i32) -> (i32, i32) {
    %c0_i32 = arith.constant 0 : i32
    %c0_i32_0 = arith.constant 0 : i32
    %c0_i32_1 = arith.constant 0 : i32
    return %c0_i32, %c0_i32_0 : i32, i32
  }
  func.func @transform_5(%arg0: i32) -> (i32, i32) {
    %c0_i32 = arith.constant 0 : i32
    %c0_i32_0 = arith.constant 0 : i32
    %c0_i32_1 = arith.constant 0 : i32
    return %c0_i32, %c0_i32_0 : i32, i32
  }
  func.func @transform_6(%arg0: i32) -> (i32, i32) {
    %c0_i32 = arith.constant 0 : i32
    %c0_i32_0 = arith.constant 0 : i32
    %c0_i32_1 = arith.constant 0 : i32
    return %c0_i32, %c0_i32_0 : i32, i32
  }
  func.func @transform_7(%arg0: i32) -> (i32, i32) {
    %c0_i32 = arith.constant 0 : i32
    %c0_i32_0 = arith.constant 0 : i32
    %c0_i32_1 = arith.constant 0 : i32
    return %c0_i32, %c0_i32_0 : i32, i32
  }
  func.func @transform_8(%arg0: i32) -> (i32, i32) {
    %c0_i32 = arith.constant 0 : i32
    %c0_i32_0 = arith.constant 0 : i32
    %c0_i32_1 = arith.constant 0 : i32
    return %c0_i32, %c0_i32_0 : i32, i32
  }
  func.func @transform_9(%arg0: i32) -> (i32, i32) {
    %c0_i32 = arith.constant 0 : i32
    %c0_i32_0 = arith.constant 0 : i32
    %c0_i32_1 = arith.constant 0 : i32
    return %c0_i32, %c0_i32_0 : i32, i32
  }
  func.func @transform_10(%arg0: i32) -> (i32, i32) {
    %c0_i32 = arith.constant 0 : i32
    %c0_i32_0 = arith.constant 0 : i32
    %c0_i32_1 = arith.constant 0 : i32
    return %c0_i32, %c0_i32_0 : i32, i32
  }
  func.func @transform_11(%arg0: i32) -> (i32, i32) {
    %c0_i32 = arith.constant 0 : i32
    %c0_i32_0 = arith.constant 0 : i32
    %c0_i32_1 = arith.constant 0 : i32
    return %c0_i32, %c0_i32_0 : i32, i32
  }
  func.func @transform_12(%arg0: i32) -> (i32, i32, i32) {
    %c0_i32 = arith.constant 0 : i32
    %c0_i32_0 = arith.constant 0 : i32
    %c0_i32_1 = arith.constant 0 : i32
    return %arg0, %c0_i32, %c0_i32_0 : i32, i32, i32
  }
}

</mosaic_0001>

<bundles_post_ra>
// kernel: tpu_custom_call.1
= control target key start
LH: loop header
LB: loop body
LE: loop exit
PB: predicated region body
PF: predicated region fallthrough
CT: control target
= control target key end

     0   :  { %s12982_s0 = inlined_call_operand.hbm [shape: f32[2,128,128], index: 0, kind: input, shape index: {}]   ;;  %s12983_s1 = inlined_call_operand.hbm [shape: f32[128,128], index: 1, kind: input, shape index: {}]   ;;  %s12984_s2 = inlined_call_operand.hbm [shape: f32[128,128], index: 2, kind: input, shape index: {}]   ;;  %s12985_s3 = inlined_call_operand.vmem [shape: f32[1,128], index: 3, kind: input, shape index: {}]   ;;  %s12986_s4 = inlined_call_operand.hbm [shape: f32[1,128], index: 4, kind: input, shape index: {}]   ;;  %s12987_s5 = inlined_call_operand.hbm [shape: bf16[128,128], index: 5, kind: input, shape index: {}]   ;;  %s12988_s6 = inlined_call_operand.hbm [shape: f32[128,512], index: 6, kind: input, shape index: {}]   ;;  %s12989_s7 = inlined_call_operand.vmem [shape: f32[1,512], index: 7, kind: input, shape index: {}]   ;;  %s12990_s8 = inlined_call_operand.hbm [shape: f32[9,512], index: 8, kind: input, shape index: {}]   ;;  %s12991_s9 = inlined_call_operand.vmem [shape: f32[1,512], index: 9, kind: input, shape index: {}]   ;;  %s12992_s10 = inlined_call_operand.hbm [shape: bf16[512,128], index: 10, kind: input, shape index: {}]   ;;  %s12993_s11 = inlined_call_operand.vmem [shape: f32[1,128], index: 11, kind: input, shape index: {}]   ;;  %s12994_s12 = inlined_call_operand.hbm [shape: f32[2,128,128], index: 12, kind: output, shape index: {}]  }
   0x1   :  { %13606 = sst [smem:[#allocation295_spill]] %s12983_s1 }
   0x2   :  { %13607 = sst [smem:[#allocation296_spill]] %s12984_s2 }
   0x3   :  { %13608 = sst [smem:[#allocation297_spill]] %s12986_s4 }
   0x4   :  { %13609 = sst [smem:[#allocation298_spill]] %s12987_s5 }
   0x5   :  { %13610 = sst [smem:[#allocation299_spill]] %s12988_s6 }
   0x6   :  { %13611 = sst [smem:[#allocation300_spill]] %s12990_s8 }
   0x7   :  { %13612 = sst [smem:[#allocation301_spill]] %s12994_s12 }
   0x8   :  { %17 = vsyncpa [#allocation3], 0 }
   0x9   :  { %19 = vsyncpa [#allocation3 + $0x1], 0 }
   0xa   :  { %20 = vsyncpa [#allocation6], 0 }
   0xb   :  { %21 = vsyncpa [#allocation9], 0 }
   0xc   :  { %22 = vsyncpa [#allocation12], 0 }
   0xd   :  { %23 = vsyncpa [#allocation15], 0 }
   0xe   :  { %24 = vsyncpa [#allocation4], 0 }
   0xf   :  { %26 = vsyncpa [#allocation4 + $0x1], 0  ;;  %s7686_s21 = smov 0   ;;  %s7688_s22 = smov 0  }
  0x10   :  { %s7690_s23 = smov 0   ;;  %s7692_s24 = smov 0  }
  0x11 LB: > { %s7589_s25 = smov [#allocation5]   ;;  %s7707_s27 = sadd.s32 4294967295, %s7587_s24   ;;  %s7587_s24 = sphi %s7692_s24, %s14935_s24   ;;  %s7583_s23 = sphi %s7690_s23, %s14934_s23   ;;  %s7579_s22 = sphi %s7688_s22, %s14933_s22   ;;  %s7575_s21 = sphi %s7686_s21, %s14932_s21  }
  0x12   : > { %s332_s26 = sshll.u32 %s7589_s25, 4  ;;  %p6128_p0 = scmp.ge.s32.totalorder %s7587_s24, 1  ;;  %s333_s26 = int_to_ptr.vmem [resolvable:$true] %s332_s26 }
  0x13   : > { %p13001_p1 = scmp.eq.s32.totalorder %s7707_s27, 0  ;;  %p320_p2 = scmp.lt.s32.totalorder %s7587_s24, 3 }
  0x14   : > { %s7590_s29 = smov [#allocation8]   ;;  %s7591_s14 = smov [#allocation11]  }
  0x15   : > { %p7712_p3 = pnand %p6128_p0, %p320_p2  ;;  %s362_s30 = sshll.u32 %s7590_s29, 4  ;;  %s363_s30 = int_to_ptr.vmem [resolvable:$true] %s362_s30 }
  0x16   : > { %s385_s15 = sshll.u32 %s7591_s14, 4  ;;  %s7308_s17 = scalar_lea.vmem %s333_s26, 2048  ;;  %s7725_s15 = int_to_ptr.vmem [resolvable:$true] %s385_s15 }
  0x17   : > { %s13613_s28 = scalar_select %p7712_p3, 1, 0 }
  0x18   : > { %p7003_p5 = pneg %p7712_p3  ;;  %p7309_p8 = scmp.ne.s32.totalorder %s333_s26, %s7308_s17 }
  0x19   : > { %p7316_p11 = scmp.lt.s32.totalorder %s333_s26, %s333_s26  ;;  %p7317_p12 = scmp.lt.s32.totalorder %s7308_s17, %s7308_s17 }
  0x1a   : > { %p7721_p6 = pnand %p7003_p5, %p13001_p1 }
  0x1b   : > { %p7318_p13 = por %p7317_p12, %p7316_p11 }
  0x1c   : > { %p7729_p7 = pneg %p7721_p6 }
  0x1e   : > { %p7311_p9 = pnand %p7309_p8, %p7729_p7 }
  0x20   : > { %p7312_p10 = pneg %p7311_p9 }
  0x22   : > { %p7319_p0 = pnand %p7318_p13, %p7312_p10 }
  0x24   : > { %7322 = shalt.err (!%p7319_p0)
}
  0x25   : > { %s12996_s18 = smov 128   ;;  %s12998_s19 = smov 8  }
  0x26   : > { %s13616_s1 = sld [smem:[#allocation295_spill]]  ;;  %s7334_s29 = scalar_lea.vmem %s363_s30, 16 }
  0x27   : > { %p7335_p2 = scmp.ne.s32.totalorder %s363_s30, %s7334_s29  ;;  %s7341_s14 = scalar_lea.vmem %s363_s30, 32 }
  0x28   : > { %p7342_p9 = scmp.lt.s32.totalorder %s363_s30, %s363_s30  ;;  %p7343_p10 = scmp.lt.s32.totalorder %s7341_s14, %s7334_s29 }
  0x29   : > { %p7337_p5 = pnand %p7335_p2, %p7729_p7 }
  0x2a   : > { %p7344_p11 = por %p7343_p10, %p7342_p9 }
  0x2b   : > { %p7338_p8 = pneg %p7337_p5 }
  0x2c   : > { %7006 = dma.hbm_to_vmem [thread:$0]  (!%p7721_p6), %s13616_s1, 2048, %s333_s26, [#allocation6], %s12996_s18, %s12996_s18, %s12998_s19  }
  0x2d   : > { %p7345_p12 = pnand %p7344_p11, %p7338_p8 }
  0x2f   : > { %7348 = shalt.err (!%p7345_p12)
}
  0x30   : > { %s13617_s4 = sld [smem:[#allocation297_spill]]  ;;  %s7360_s26 = scalar_lea.vmem %s7725_s15, 8192 }
  0x31   : > { %p7361_p13 = scmp.ne.s32.totalorder %s7725_s15, %s7360_s26  ;;  %p7368_p5 = scmp.lt.s32.totalorder %s7725_s15, %s7725_s15 }
  0x32   : > { %p7369_p9 = scmp.lt.s32.totalorder %s7360_s26, %s7360_s26 }
  0x33   : > { %p7363_p0 = pnand %p7361_p13, %p7729_p7 }
  0x34   : > { %p7370_p8 = por %p7369_p9, %p7368_p5 }
  0x35   : > { %p7364_p2 = pneg %p7363_p0 }
  0x36   : > { %7012 = dma.hbm_to_vmem [thread:$0]  (!%p7721_p6), %s13617_s4, 16, %s363_s30, [#allocation9]  }
  0x37   : > { %p7371_p10 = pnand %p7370_p8, %p7364_p2 }
  0x39   : > { %7374 = shalt.err (!%p7371_p10)
}
  0x3a   : > { %s12999_s20 = smov 512   ;;  %s13000_s12 = smov 32  }
  0x3b   : > { %s13618_s6 = sld [smem:[#allocation299_spill]]  ;;  %s7596_s29 = smov [#allocation7]  }
  0x3c   : > { %s345_s14 = sshll.u32 %s7596_s29, 4  ;;  %s7597_s17 = smov [#allocation10]   ;;  %s346_s14 = int_to_ptr.vmem [resolvable:$true] %s345_s14 }
  0x3d   : > { %s372_s26 = sshll.u32 %s7597_s17, 4  ;;  %s7386_s18 = scalar_lea.vmem %s346_s14, 2048  ;;  %s373_s26 = int_to_ptr.vmem [resolvable:$true] %s372_s26 }
  0x3e   : > { %p7387_p11 = scmp.ne.s32.totalorder %s346_s14, %s7386_s18  ;;  %p7394_p0 = scmp.lt.s32.totalorder %s346_s14, %s346_s14 }
  0x3f   : > { %p7395_p2 = scmp.lt.s32.totalorder %s7386_s18, %s7386_s18 }
  0x40   : > { %p7389_p12 = pnand %p7387_p11, %p7729_p7 }
  0x41   : > { %7018 = dma.hbm_to_vmem [thread:$0]  (!%p7721_p6), %s13618_s6, 8192, %s7725_s15, [#allocation12], %s12999_s20, %s12999_s20, %s13000_s12  }
  0x42   : > { %p7390_p13 = pneg %p7389_p12  ;;  %p7396_p5 = por %p7395_p2, %p7394_p0 }
  0x44   : > { %p7397_p9 = pnand %p7396_p5, %p7390_p13 }
  0x46   : > { %7400 = shalt.err (!%p7397_p9)
}
  0x47   : > { %s13619_s30 = smov 128   ;;  %s13620_s2 = sld [smem:[#allocation296_spill]] }
  0x48   : > { %s7412_s29 = scalar_lea.vmem %s373_s26, 1024  ;;  %p7420_p12 = scmp.lt.s32.totalorder %s373_s26, %s373_s26 }
  0x49   : > { %p7413_p8 = scmp.ne.s32.totalorder %s373_s26, %s7412_s29  ;;  %p7421_p0 = scmp.lt.s32.totalorder %s7412_s29, %s7412_s29 }
  0x4b   : > { %p7415_p10 = pnand %p7413_p8, %p7729_p7  ;;  %p7422_p13 = por %p7421_p0, %p7420_p12 }
  0x4d   : > { %7009 = dma.hbm_to_vmem [thread:$0]  (!%p7721_p6), %s13620_s2, 2048, %s346_s14, [#allocation6], %s13619_s30, %s13619_s30, %s12998_s19  }
  0x4e   : > { %p7416_p11 = pneg %p7415_p10 }
  0x50   : > { %p7423_p2 = pnand %p7422_p13, %p7416_p11 }
  0x52   : > { %7426 = shalt.err (!%p7423_p2)
}
  0x53   : > { %s7598_s18 = smov 64   ;;  %s7599_s17 = smov 4  }
  0x54   : > { %s13621_s5 = sld [smem:[#allocation298_spill]]  ;;  %s7600_s25 = smov [#allocation13]  }
  0x55   : > { %s401_s19 = sshll.u32 %s7600_s25, 4  ;;  %s7601_s20 = smov [#allocation14]   ;;  %s402_s19 = int_to_ptr.vmem [resolvable:$true] %s401_s19 }
  0x56   : > { %s417_s29 = sshll.u32 %s7601_s20, 4  ;;  %s7438_s12 = scalar_lea.vmem %s402_s19, 1024  ;;  %s418_s29 = int_to_ptr.vmem [resolvable:$true] %s417_s29 }
  0x57   : > { %p7439_p5 = scmp.ne.s32.totalorder %s402_s19, %s7438_s12  ;;  %p7446_p10 = scmp.lt.s32.totalorder %s402_s19, %s402_s19 }
  0x58   : > { %p7447_p11 = scmp.lt.s32.totalorder %s7438_s12, %s7438_s12 }
  0x59   : > { %p7441_p9 = pnand %p7439_p5, %p7729_p7 }
  0x5a   : > { %7015 = dma.hbm_to_vmem [thread:$0]  (!%p7721_p6), %s13621_s5, 1024, %s373_s26, [#allocation9], %s7598_s18, %s7598_s18, %s7599_s17  }
  0x5b   : > { %p7442_p8 = pneg %p7441_p9  ;;  %p7448_p12 = por %p7447_p11, %p7446_p10 }
  0x5d   : > { %p7449_p0 = pnand %p7448_p12, %p7442_p8 }
  0x5f   : > { %7452 = shalt.err (!%p7449_p0)
}
  0x60   : > { %s13622_s1 = smov 32   ;;  %s13623_s14 = smov 512  }
  0x61   : > { %s13624_s8 = sld [smem:[#allocation300_spill]]  ;;  %s7464_s20 = scalar_lea.vmem %s418_s29, 4096 }
  0x62   : > { %p7465_p13 = scmp.ne.s32.totalorder %s418_s29, %s7464_s20  ;;  %p7472_p9 = scmp.lt.s32.totalorder %s418_s29, %s418_s29 }
  0x63   : > { %p7473_p10 = scmp.lt.s32.totalorder %s7464_s20, %s7464_s20 }
  0x64   : > { %p7467_p2 = pnand %p7465_p13, %p7729_p7 }
  0x65   : > { %p7474_p8 = por %p7473_p10, %p7472_p9 }
  0x66   : > { %p7468_p5 = pneg %p7467_p2 }
  0x67   : > { %7021 = dma.hbm_to_vmem [thread:$0]  (!%p7721_p6), %s13624_s8, 1024, %s402_s19, [#allocation12], %s13623_s14, %s13623_s14, %s13622_s1  }
  0x68   : > { %p7475_p11 = pnand %p7474_p8, %p7468_p5 }
  0x6a   : > { %7478 = shalt.err (!%p7475_p11)
}
  0x6b   : > { %7024 = dma.hbm_to_vmem [thread:$0]  (!%p7721_p6), %s12992_s10, 4096, %s418_s29, [#allocation15], %s7598_s18, %s7598_s18, %s7599_s17  }
  0x6c   : > { %s6127_s1 = sadd.s32 4294967294, %s7587_s24   ;;  %s7807_s13 = sadd.s32 1, %s7587_s24  }
  0x6d   : > { %s39_s16 = sadd.s32 1, %s7583_s23  ;;  %s36_s19 = ssub.s32 %s7587_s24, %s7807_s13 }
  0x6e   : > { %p46_p7 = scmp.ne.s32.totalorder %s7583_s23, %s7579_s22  ;;  %p37_p12 = scmp.eq.s32.totalorder %s36_s19, 0 }
  0x6f   : > { %p47_p0 = scmp.eq.s32.totalorder %s7587_s24, 0  ;;  %p52_p13 = scmp.ne.s32.totalorder %s7579_s22, %s7575_s21 }
  0x70   : > { %p307_p2 = scmp.eq.s32.totalorder %s7707_s27, 1  ;;  %p313_p10 = scmp.eq.s32.totalorder %s6127_s1, 1 }
  0x71   : > { %s7819_s14 = scalar_select %p37_p12, %s7583_s23, %s39_s16  }
  0x72   : > { %p48_p5 = por %p47_p0, %p46_p7  ;;  %p7823_p9 = por %p13001_p1, %p52_p13 }
  0x73   : > { %p7827_p6 = por %p307_p2, %p46_p7  ;;  %p7040_p8 = scmp.lt.s32.totalorder %s7587_s24, 2 }
  0x74   : > { %s13625_s26 = scalar_select %p7823_p9, 1, 0 }
  0x75   : > { %s13626_s18 = scalar_select %p7827_p6, 1, 0 }
  0x76   : > { %s434_s17 = sand.u32 1, %s7583_s23   ;;  %p7833_p11 = por %p313_p10, %p52_p13 }
  0x77   : > { %s6137_s15 = sshll.u32 %s434_s17, 7  ;;  %s6289_s20 = sshll.u32 %s7587_s24, 11 }
  0x78   : > { %s13627_s29 = scalar_select %p7833_p11, 1, 0 }
  0x79   : > { %s7841_s16 = scalar_lea.hbm %s12982_s0, %s6289_s20  ;;  %s438_s19 = scalar_lea.vmem [#allocation2], %s6137_s15 }
  0x7a   : > { %s445_s2 = sshll.u32 %s438_s19, 4  ;;  %p7843_p7 = pnand %p7040_p8, %p48_p5  ;;  %s7847_s2 = int_to_ptr.vmem [resolvable:$true] %s445_s2 }
  0x7b   : > { %s7849_s4 = scalar_lea.sflag [#allocation3], %s434_s17  ;;  %s7479_s5 = scalar_lea.hbm %s7841_s16, 2048 }
  0x7c   : > { %p7480_p12 = scmp.ne.s32.totalorder %s7841_s16, %s7479_s5  ;;  %p7481_p0 = pneg %p7843_p7 }
  0x7d   : > { %s7484_s15 = scalar_lea.hbm %s12982_s0, 4096  ;;  %p7485_p5 = scmp.lt.s32.totalorder %s7841_s16, %s12982_s0 }
  0x7e   : > { %p7482_p13 = pnand %p7481_p0, %p7480_p12  ;;  %p7486_p10 = scmp.lt.s32.totalorder %s7484_s15, %s7479_s5 }
  0x80   : > { %p7483_p2 = pneg %p7482_p13  ;;  %p7487_p8 = por %p7486_p10, %p7485_p5 }
  0x82   : > { %p7488_p4 = pnand %p7487_p8, %p7483_p2 }
  0x84   : > { %7491 = shalt.err (!%p7488_p4)
}
  0x85   : > { %s7492_s17 = scalar_lea.vmem %s7847_s2, 2048  ;;  %s7602_s6 = smov [#allocation2]  }
  0x86   : > { %p7493_p1 = scmp.ne.s32.totalorder %s7847_s2, %s7492_s17  ;;  %s7497_s8 = sshll.u32 %s7602_s6, 4  ;;  %s7498_s8 = int_to_ptr.vmem [resolvable:$false] %s7497_s8 }
  0x87   : > { %s7499_s20 = scalar_lea.vmem %s7498_s8, 4096  ;;  %p7500_p13 = scmp.lt.s32.totalorder %s7847_s2, %s7498_s8 }
  0x88   : > { %p7495_p11 = pnand %p7493_p1, %p7481_p0  ;;  %p7501_p6 = scmp.lt.s32.totalorder %s7499_s20, %s7492_s17 }
  0x8a   : > { %p7496_p12 = pneg %p7495_p11  ;;  %p7502_p9 = por %p7501_p6, %p7500_p13 }
  0x8c   : > { %p7503_p3 = pnand %p7502_p9, %p7496_p12 }
  0x8e   : > { %7506 = shalt.err (!%p7503_p3)
}
  0x8f   : > { %s13629_s5 = smov 8   ;;  %p13630_p1 = scmp.ne.s32.totalorder %s13613_s28, 0 }
  0x90   : > { %7028 = dma.hbm_to_vmem [thread:$0]  (!%p7843_p7), %s7841_s16, 2048, %s7847_s2, %s7849_s4, %s13619_s30, %s13619_s30, %s13629_s5  }
  0x91   : > { %457 = sbr.rel (%p13630_p1) target bundleno = 1871 (0x74f), region = 68 }
  0x96   : > { %s7876_s6 = sand.u32 1, %s7579_s22   ;;  %p13631_p3 = scmp.ne.s32.totalorder %s13625_s26, 0 }
  0x97   : > { %s6141_s8 = sshll.u32 %s7876_s6, 7  ;;  %s460_s12 = scalar_lea.sflag [#allocation3], %s7876_s6 }
  0x98   : > { %s7882_s1 = scalar_lea.vmem [#allocation2], %s6141_s8 }
  0x99   : > { %7550 = dma.done.wait (%p13631_p3), %s460_s12, 2048  }
  0x9a   : > { %7552 = vsyncadd (%p13631_p3), %s460_s12, 4294965248  ;;  %p13632_p4 = scmp.eq.s32.totalorder %s7707_s27, 0 }
  0x9c   : > { %7554 = dma.done.wait (%p13632_p4), [#allocation6], 4096   ;;  %p13633_p9 = pmov %p13632_p4 }
  0x9d   : > { %p13634_p6 = pmov %p13632_p4 }
  0x9e   : > { %7556 = vsyncadd (%p13633_p9), [#allocation6], 4294963200 }
  0x9f   : > { %7558 = dma.done.wait (%p13634_p6), [#allocation9], 1040   ;;  %p13635_p11 = pmov %p13632_p4 }
  0xa0   : > { %p13636_p7 = pmov %p13632_p4 }
  0xa1   : > { %7560 = vsyncadd (%p13635_p11), [#allocation9], 4294966256 }
  0xa2   : > { %7562 = dma.done.wait (%p13636_p7), [#allocation12], 9216   ;;  %p13637_p0 = pmov %p13632_p4 }
  0xa4   : > { %7564 = vsyncadd (%p13637_p0), [#allocation12], 4294958080  ;;  %p13638_p2 = pmov %p13637_p0 }
  0xa5   : > { %p13639_p5 = pmov %p13637_p0 }
  0xa6   : > { %7566 = dma.done.wait (%p13638_p2), [#allocation15], 4096  }
  0xa7   : > { %7568 = vsyncadd (%p13639_p5), [#allocation15], 4294963200  ;;  %v7603_v0 = vmov 16   ;;  %v7906_v1 = vld [vmem:[#allocation5 + $0x48] sm:$0xff]  ;;  %v564_v2 = vld [vmem:[#allocation7 + $0x78] sm:$0xff]  ;;  %v7604_v28 = vmov 17  }
  0xa8   : > { %7112 = vset.pattern.permute.xlu1 %v7603_v0  ;;  %7111 = vset.pattern.permute.xlu0 %v7603_v0  ;;  %v563_v3 = vld [vmem:[#allocation7 + $0x70] sm:$0xff]  ;;  %v562_v5 = vld [vmem:[#allocation7 + $0x68] sm:$0xff]  ;;  %v561_v6 = vld [vmem:[#allocation7 + $0x60] sm:$0xff]  ;;  %v7605_v50 = vmov 18   ;;  %v7606_v51 = vmov 19   ;;  %v13014_v52 = vmov 21  }
  0xa9   : > { %832 = vperm.xlu1 %7112, %v7906_v1   ;;  %6531 = vmatprep.subr.mxu0 %v564_v2  ;;  %v7909_v4 = vld [vmem:[#allocation5 + $0x50] sm:$0xff]  ;;  %v7912_v7 = vld [vmem:[#allocation5 + $0x60] sm:$0xff]  ;;  %v560_v8 = vld [vmem:[#allocation7 + $0x58] sm:$0xff]  ;;  %v13013_v53 = vmov 20   ;;  %s12869_s12 = scalar_lea.vmem [#allocation16], %s6141_s8  ;;  %s6290_s8 = sshll.u32 %s7707_s27, 11 }
  0xaa   : > { %6532 = vmatpush3.msra.mxu0 %v564_v2  ;;  %v533_v9 = vld [vmem:[%s7882_s1] sm:$0xff]  ;;  %v559_v10 = vld [vmem:[#allocation7 + $0x50] sm:$0xff]  ;;  %v7916_v11 = vld [vmem:[#allocation5 + $0x38] sm:$0xff]  ;;  %s14928_s28 = sld [smem:[#allocation301_spill]]  ;;  %s5974_s27 = scalar_lea.sflag [#allocation4], %s7876_s6 }
  0xab   : > { %6533 = vmatprep.subr.mxu0 %v563_v3  ;;  %6563 = vmatprep.mubr.f32.mxu0 %v533_v9  ;;  %v7918_v12 = vld [vmem:[#allocation5 + $0x70] sm:$0xff]  ;;  %v558_v13 = vld [vmem:[#allocation7 + $0x48] sm:$0xff]  ;;  %v7921_v14 = vld [vmem:[#allocation5 + $0x40] sm:$0xff]  ;;  %p14929_p8 = scmp.ne.s32.totalorder %s13626_s18, 0  ;;  %s7618_s16 = smov [#allocation16]  }
  0xac   : > { %6534 = vmatpush3.msra.mxu0 %v563_v3  ;;  %822 = vperm.xlu0 %7111, %v7916_v11   ;;  %v557_v15 = vld [vmem:[#allocation7 + $0x40] sm:$0xff]  ;;  %v7924_v16 = vld [vmem:[#allocation5 + $0x78] sm:$0xff]  ;;  %v555_v18 = vld [vmem:[#allocation7 + $0x30] sm:$0xff]  ;;  %s7511_s15 = sshll.u32 %s7618_s16, 4  ;;  %s7512_s15 = int_to_ptr.vmem [resolvable:$false] %s7511_s15 }
  0xad   : > { %837 = vperm.xlu1 %7112, %v7909_v4   ;;  %6535 = vmatprep.subr.mxu0 %v562_v5  ;;  %v556_v17 = vld [vmem:[#allocation7 + $0x38] sm:$0xff]  ;;  %v7929_v20 = vld [vmem:[#allocation5 + $0x10] sm:$0xff]  ;;  %v554_v21 = vld [vmem:[#allocation7 + $0x28] sm:$0xff]  ;;  %s7513_s25 = scalar_lea.vmem %s7512_s15, 4096 }
  0xae   : > { %6536 = vmatpush3.msra.mxu0 %v562_v5  ;;  %v7927_v19 = vld [vmem:[#allocation5 + $0x58] sm:$0xff]  ;;  %v553_v22 = vld [vmem:[#allocation7 + $0x20] sm:$0xff]  ;;  %v7933_v23 = vld [vmem:[#allocation5 + $0x68] sm:$0xff] }
  0xaf   : > { %6537 = vmatprep.subr.mxu0 %v561_v6  ;;  %v552_v24 = vld [vmem:[#allocation7 + $0x18] sm:$0xff]  ;;  %v551_v25 = vld [vmem:[#allocation7 + $0x10] sm:$0xff]  ;;  %v550_v26 = vld [vmem:[#allocation7 + $0x8] sm:$0xff] }
  0xb0   : > { %6538 = vmatpush3.msra.mxu0 %v561_v6  ;;  %827 = vperm.xlu0 %7111, %v7921_v14   ;;  %v7937_v27 = vld [vmem:[#allocation5] sm:$0xff]  ;;  %v7941_v30 = vld [vmem:[#allocation5 + $0x8] sm:$0xff]  ;;  %v535_v32 = vld [vmem:[%s7882_s1 + $0x10] sm:$0xff]  ;;  %s12934_s30 = scalar_lea.hbm %s14928_s28, %s6290_s8 }
  0xb1   : > { %847 = vperm.xlu1 %7112, %v7912_v7   ;;  %6539 = vmatprep.subr.mxu0 %v560_v8  ;;  %v549_v29 = vld [vmem:[#allocation7] sm:$0xff]  ;;  %v534_v31 = vld [vmem:[%s7882_s1 + $0x8] sm:$0xff]  ;;  %v7947_v33 = vld [vmem:[#allocation5 + $0x18] sm:$0xff] }
  0xb2   : > { %6540 = vmatpush3.msra.mxu0 %v560_v8  ;;  %v536_v34 = vld [vmem:[%s7882_s1 + $0x18] sm:$0xff]  ;;  %v537_v35 = vld [vmem:[%s7882_s1 + $0x20] sm:$0xff]  ;;  %v7955_v37 = vld [vmem:[#allocation5 + $0x28] sm:$0xff] }
  0xb3   : > { %6541 = vmatprep.subr.mxu0 %v559_v10  ;;  %v7953_v36 = vld [vmem:[#allocation5 + $0x20] sm:$0xff]  ;;  %v538_v38 = vld [vmem:[%s7882_s1 + $0x28] sm:$0xff]  ;;  %v539_v39 = vld [vmem:[%s7882_s1 + $0x30] sm:$0xff] }
  0xb4   : > { %6542 = vmatpush3.msra.mxu0 %v559_v10  ;;  %842 = vperm.xlu0 %7111, %v7927_v19   ;;  %v540_v40 = vld [vmem:[%s7882_s1 + $0x38] sm:$0xff]  ;;  %v541_v41 = vld [vmem:[%s7882_s1 + $0x40] sm:$0xff]  ;;  %v542_v42 = vld [vmem:[%s7882_s1 + $0x48] sm:$0xff]  ;;  %v13011_v10 = vmov 0  }
  0xb5   : > { %857 = vperm.xlu1 %7112, %v7918_v12   ;;  %6543 = vmatprep.subr.mxu0 %v558_v13  ;;  %v543_v43 = vld [vmem:[%s7882_s1 + $0x50] sm:$0xff]  ;;  %v544_v44 = vld [vmem:[%s7882_s1 + $0x58] sm:$0xff]  ;;  %v545_v45 = vld [vmem:[%s7882_s1 + $0x60] sm:$0xff] }
  0xb6   : > { %6544 = vmatpush3.msra.mxu0 %v558_v13  ;;  %v7977_v46 = vld [vmem:[#allocation5 + $0x30] sm:$0xff]  ;;  %v546_v47 = vld [vmem:[%s7882_s1 + $0x68] sm:$0xff]  ;;  %v548_v49 = vld [vmem:[%s7882_s1 + $0x78] sm:$0xff] }
  0xb7   : > { %6545 = vmatprep.subr.mxu0 %v557_v15  ;;  %v547_v48 = vld [vmem:[%s7882_s1 + $0x70] sm:$0xff] }
  0xb8   : > { %6546 = vmatpush3.msra.mxu0 %v557_v15  ;;  %852 = vperm.xlu0 %7111, %v7933_v23  }
  0xb9   : > { %862 = vperm.xlu1 %7112, %v7924_v16   ;;  %6547 = vmatprep.subr.mxu0 %v556_v17 }
  0xba   : > { %6548 = vmatpush3.msra.mxu0 %v556_v17 }
  0xbb   : > { %6549 = vmatprep.subr.mxu0 %v555_v18 }
  0xbc   : > { %6550 = vmatpush3.msra.mxu0 %v555_v18  ;;  %787 = vperm.xlu0 %7111, %v7937_v27  }
  0xbd   : > { %797 = vperm.xlu1 %7112, %v7929_v20   ;;  %6551 = vmatprep.subr.mxu0 %v554_v21 }
  0xbe   : > { %6552 = vmatpush3.msra.mxu0 %v554_v21 }
  0xbf   : > { %6553 = vmatprep.subr.mxu0 %v553_v22 }
  0xc0   : > { %6554 = vmatpush3.msra.mxu0 %v553_v22  ;;  %792 = vperm.xlu0 %7111, %v7941_v30  }
  0xc1   : > { %7113 = vset.pattern.permute.xlu1 %v7604_v28  ;;  %6555 = vmatprep.subr.mxu0 %v552_v24 }
  0xc2   : > { %990 = vperm.xlu1 %7113, %v7906_v1   ;;  %6556 = vmatpush3.msra.mxu0 %v552_v24  ;;  %v13009_v24 = vmov 1  }
  0xc3   : > { %6557 = vmatprep.subr.mxu0 %v551_v25 }
  0xc4   : > { %6558 = vmatpush3.msra.mxu0 %v551_v25  ;;  %802 = vperm.xlu0 %7111, %v7947_v33   ;;  %v7215_v25 = vld [vmem:[#allocation10 + $0x38] sm:$0xff]  }
  0xc5   : > { %6559 = vmatprep.subr.mxu0 %v550_v26  ;;  %6587 = vmatprep.subr.bf16.mxu1 %v7215_v25 }
  0xc6   : > { %994 = vperm.xlu1 %7113, %v7909_v4   ;;  %6560 = vmatpush3.msra.mxu0 %v550_v26  ;;  %v7216_v26 = vld [vmem:[#allocation10 + $0x30] sm:$0xff]  }
  0xc7   : > { %6561 = vmatprep.subr.mxu0 %v549_v29  ;;  %6588 = vmatpush3.bf16.msra.mxu1 %v7215_v25  ;;  %v8167_v25 = vld [vmem:[#allocation8] ss:$0 sm:$0xff] }
  0xc8   : > { %6562 = vmatpush3.msra.mxu0 %v549_v29  ;;  %812 = vperm.xlu0 %7111, %v7955_v37  }
  0xc9   : > { %6564 = vmatmul.mubr.f32.vlgmr.msra.gmra.mxu0 %v534_v31  ;;  %6589 = vmatprep.subr.bf16.mxu1 %v7216_v26  ;;  %v7217_v31 = vld [vmem:[#allocation10 + $0x28] sm:$0xff]  }
  0xca   : > { %1002 = vperm.xlu1 %7113, %v7912_v7   ;;  %6566 = vmatprep.mubr.f32.mxu0 %v535_v32 }
  0xcb   : > { %6590 = vmatpush3.bf16.msra.mxu1 %v7216_v26  ;;  %v13007_v26 = vmov 3  }
  0xcc   : > { %7116 = vset.pattern.permute.xlu0 %v7604_v28  ;;  %6591 = vmatprep.subr.bf16.mxu1 %v7217_v31 }
  0xcd   : > { %6567 = vmatmul.mubr.f32.gmra.mxu0 %v536_v34  ;;  %986 = vperm.xlu0 %7116, %v7921_v14  }
  0xce   : > { %7114 = vset.pattern.permute.xlu1 %v7603_v0  ;;  %6569 = vmatprep.mubr.f32.mxu0 %v537_v35  ;;  %v7218_v35 = vld [vmem:[#allocation10 + $0x20] sm:$0xff]  }
  0xcf   : > { %807 = vperm.xlu1 %7114, %v7953_v36   ;;  %6592 = vmatpush3.bf16.msra.mxu1 %v7217_v31 }
  0xd0   : > { %6593 = vmatprep.subr.bf16.mxu1 %v7218_v35 }
  0xd1   : > { %6570 = vmatmul.mubr.f32.gmra.mxu0 %v538_v38  ;;  %998 = vperm.xlu0 %7116, %v7927_v19  }
  0xd2   : > { %6572 = vmatprep.mubr.f32.mxu0 %v539_v39  ;;  %v7219_v39 = vld [vmem:[#allocation10 + $0x18] sm:$0xff]  }
  0xd3   : > { %7115 = vset.pattern.permute.xlu1 %v7604_v28  ;;  %6594 = vmatpush3.bf16.msra.mxu1 %v7218_v35 }
  0xd4   : > { %1006 = vperm.xlu1 %7115, %v7933_v23   ;;  %6595 = vmatprep.subr.bf16.mxu1 %v7219_v39 }
  0xd5   : > { %6573 = vmatmul.mubr.f32.gmra.mxu0 %v540_v40  ;;  %1010 = vperm.xlu0 %7116, %v7918_v12   ;;  %v7220_v40 = vld [vmem:[#allocation10 + $0x10] sm:$0xff]  }
  0xd6   : > { %6575 = vmatprep.mubr.f32.mxu0 %v541_v41  ;;  %v13005_v41 = vmov 2  }
  0xd7   : > { %6596 = vmatpush3.bf16.msra.mxu1 %v7219_v39 }
  0xd8   : > { %954 = vperm.xlu1 %7115, %v7937_v27   ;;  %6597 = vmatprep.subr.bf16.mxu1 %v7220_v40 }
  0xd9   : > { %6576 = vmatmul.mubr.f32.gmra.mxu0 %v542_v42  ;;  %962 = vperm.xlu0 %7116, %v7929_v20  }
  0xda   : > { %6578 = vmatprep.mubr.f32.mxu0 %v543_v43 }
  0xdb   : > { %6598 = vmatpush3.bf16.msra.mxu1 %v7220_v40 }
  0xdc   : > { %1014 = vperm.xlu1 %7115, %v7924_v16  }
  0xdd   : > { %6579 = vmatmul.mubr.f32.gmra.mxu0 %v544_v44  ;;  %970 = vperm.xlu0 %7116, %v7953_v36   ;;  %v7221_v44 = vld [vmem:[#allocation10 + $0x8] sm:$0xff]  }
  0xde   : > { %6581 = vmatprep.mubr.f32.mxu0 %v545_v45  ;;  %6599 = vmatprep.subr.bf16.mxu1 %v7221_v44 }
  0xdf   : > { %6600 = vmatpush3.bf16.msra.mxu1 %v7221_v44 }
  0xe0   : > { %7117 = vset.pattern.permute.xlu1 %v7603_v0 }
  0xe1   : > { %817 = vperm.xlu1 %7117, %v7977_v46   ;;  %6582 = vmatmul.mubr.f32.gmra.mxu0 %v546_v47  ;;  %v7222_v47 = vld [vmem:[#allocation10] sm:$0xff]  }
  0xe2   : > { %6584 = vmatprep.mubr.f32.mxu0 %v547_v48  ;;  %974 = vperm.xlu0 %7116, %v7955_v37  }
  0xe3   : > { %6601 = vmatprep.subr.bf16.mxu1 %v7222_v47 }
  0xe4   : > { %6602 = vmatpush3.bf16.msra.mxu1 %v7222_v47 }
  0xe5   : > { %7118 = vset.pattern.permute.xlu1 %v7604_v28  ;;  %6585 = vmatmul.mubr.f32.gmra.mxu0 %v548_v49 }
  0xe6   : > { %958 = vperm.xlu1 %7118, %v7941_v30   ;;  %7123 = vset.pattern.permute.xlu0 %v7605_v50 }
  0xe7   : > { %1150 = vperm.xlu0 %7123, %v7927_v19  }
  0xea   : > { %7119 = vset.pattern.permute.xlu1 %v7605_v50 }
  0xeb   : > { %1142 = vperm.xlu1 %7119, %v7906_v1   ;;  %1106 = vperm.xlu0 %7123, %v7937_v27  }
  0xef   : > { %1146 = vperm.xlu1 %7119, %v7909_v4   ;;  %1114 = vperm.xlu0 %7123, %v7929_v20  }
  0xf3   : > { %1154 = vperm.xlu1 %7119, %v7912_v7   ;;  %1122 = vperm.xlu0 %7123, %v7953_v36  }
  0xf7   : > { %7120 = vset.pattern.permute.xlu1 %v7604_v28  ;;  %1134 = vperm.xlu0 %7123, %v7916_v11  }
  0xf8   : > { %966 = vperm.xlu1 %7120, %v7947_v33  }
  0xfb   : > { %7138 = vset.pattern.permute.xlu0 %v7606_v51 }
  0xfc   : > { %7121 = vset.pattern.permute.xlu1 %v7605_v50  ;;  %1269 = vperm.xlu0 %7138, %v7927_v19  }
  0xfd   : > { %1158 = vperm.xlu1 %7121, %v7933_v23  }
 0x100   : > { %1225 = vperm.xlu0 %7138, %v7937_v27  }
 0x101   : > { %1162 = vperm.xlu1 %7121, %v7918_v12  }
 0x104   : > { %1233 = vperm.xlu0 %7138, %v7929_v20  }
 0x105   : > { %1166 = vperm.xlu1 %7121, %v7924_v16  }
 0x108   : > { %1245 = vperm.xlu0 %7138, %v7955_v37  }
 0x109   : > { %7122 = vset.pattern.permute.xlu1 %v7606_v51 }
 0x10a   : > { %1265 = vperm.xlu1 %7122, %v7909_v4  }
 0x10c   : > { %1253 = vperm.xlu0 %7138, %v7916_v11  }
 0x10e   : > { %1273 = vperm.xlu1 %7122, %v7912_v7  }
 0x110   : > { %7141 = vset.pattern.permute.xlu0 %v13014_v52 }
 0x111   : > { %1463 = vperm.xlu0 %7141, %v7937_v27  }
 0x112   : > { %1277 = vperm.xlu1 %7122, %v7933_v23  }
 0x115   : > { %1483 = vperm.xlu0 %7141, %v7955_v37  }
 0x116   : > { %7124 = vset.pattern.permute.xlu1 %v7604_v28 }
 0x117   : > { %978 = vperm.xlu1 %7124, %v7977_v46  }
 0x119   : > { %1487 = vperm.xlu0 %7141, %v7977_v46  }
 0x11b   : > { %7125 = vset.pattern.permute.xlu1 %v7605_v50 }
 0x11c   : > { %1110 = vperm.xlu1 %7125, %v7941_v30  }
 0x11d   : > { %7145 = vset.pattern.permute.xlu0 %v13013_v53 }
 0x11e   : > { %1392 = vperm.xlu0 %7145, %v7912_v7  }
 0x120   : > { %7126 = vset.pattern.permute.xlu1 %v7606_v51 }
 0x121   : > { %1281 = vperm.xlu1 %7126, %v7918_v12  }
 0x122   : > { %1348 = vperm.xlu0 %7145, %v7941_v30  }
 0x124   : > { %v8026_v54 = vpop.permute.xlu1 %832 }
 0x125   : > { %1285 = vperm.xlu1 %7126, %v7924_v16  }
 0x126   : > { %1352 = vperm.xlu0 %7145, %v7929_v20  }
 0x127   : > { %v8038_v57 = vpop.permute.xlu0 %822 }
 0x128   : > { %v8030_v55 = vpop.permute.xlu1 %837 }
 0x129   : > { %1229 = vperm.xlu1 %7126, %v7941_v30  }
 0x12a   : > { %1368 = vperm.xlu0 %7145, %v7977_v46  }
 0x12b   : > { %v8044_v59 = vpop.permute.xlu0 %827 }
 0x12c   : > { %v8034_v56 = vpop.permute.xlu1 %847 }
 0x12d   : > { %7127 = vset.pattern.permute.xlu1 %v7604_v28 }
 0x12e   : > { %982 = vperm.xlu1 %7127, %v7916_v11   ;;  %1376 = vperm.xlu0 %7145, %v7921_v14  }
 0x12f   : > { %v8051_v61 = vpop.permute.xlu0 %842 }
 0x130   : > { %v8041_v58 = vpop.permute.xlu1 %857 }
 0x132   : > { %7128 = vset.pattern.permute.xlu1 %v13013_v53  ;;  %1388 = vperm.xlu0 %7145, %v7927_v19  }
 0x133   : > { %1396 = vperm.xlu1 %7128, %v7933_v23   ;;  %v8058_v63 = vpop.permute.xlu0 %852 }
 0x134   : > { %v8048_v60 = vpop.permute.xlu1 %862 }
 0x136   : > { %7149 = vset.pattern.permute.xlu0 %v13014_v52 }
 0x137   : > { %7129 = vset.pattern.permute.xlu1 %v7605_v50  ;;  %1499 = vperm.xlu0 %7149, %v7906_v1   ;;  %v8066_v2 = vpop.permute.xlu0 %787 }
 0x138   : > { %v8054_v62 = vpop.permute.xlu1 %797  ;;  %1118 = vperm.xlu1 %7129, %v7947_v33  }
 0x13b   : > { %1511 = vperm.xlu0 %7149, %v7912_v7   ;;  %v8077_v6 = vpop.permute.xlu0 %792 }
 0x13c   : > { %7130 = vset.pattern.permute.xlu1 %v13013_v53 }
 0x13d   : > { %v8062_v0 = vpop.permute.xlu1 %990  ;;  %1400 = vperm.xlu1 %7130, %v7918_v12  }
 0x13f   : > { %1519 = vperm.xlu0 %7149, %v7918_v12   ;;  %v8083_v9 = vpop.permute.xlu0 %802 }
 0x141   : > { %v8068_v3 = vpop.permute.xlu1 %994  ;;  %1404 = vperm.xlu1 %7130, %v7924_v16  }
 0x143   : > { %7150 = vset.pattern.permute.xlu0 %v13011_v10  ;;  %v8092_v12 = vpop.permute.xlu0 %812 }
 0x144   : > { %2020 = vperm.xlu0 %7150, %v7937_v27  }
 0x145   : > { %v8072_v5 = vpop.permute.xlu1 %1002  ;;  %7131 = vset.pattern.permute.xlu1 %v7606_v51 }
 0x146   : > { %1237 = vperm.xlu1 %7131, %v7947_v33  }
 0x148   : > { %2032 = vperm.xlu0 %7150, %v7947_v33   ;;  %v8101_v17 = vpop.permute.xlu0 %986 }
 0x14a   : > { %v8079_v8 = vpop.permute.xlu1 %807  ;;  %7132 = vset.pattern.permute.xlu1 %v13013_v53 }
 0x14b   : > { %1344 = vperm.xlu1 %7132, %v7937_v27  }
 0x14c   : > { %2036 = vperm.xlu0 %7150, %v7953_v36   ;;  %v8110_v21 = vpop.permute.xlu0 %998 }
 0x14f   : > { %v8087_v13 = vpop.permute.xlu1 %1006  ;;  %7133 = vset.pattern.permute.xlu1 %v7605_v50 }
 0x150   : > { %1126 = vperm.xlu1 %7133, %v7955_v37   ;;  %2052 = vperm.xlu0 %7150, %v7921_v14   ;;  %v8118_v28 = vpop.permute.xlu0 %1010 }
 0x151   : > { %13642 = vst [vmem:[#allocation25_spill] sm:$0xff] %v8118_v28  ;;  %v13660_v28 = vmov 20  }
 0x153   : > { %v8094_v15 = vpop.permute.xlu1 %954 }
 0x154   : > { %1130 = vperm.xlu1 %7133, %v7977_v46   ;;  %2068 = vperm.xlu0 %7150, %v7912_v7   ;;  %v8127_v34 = vpop.permute.xlu0 %962 }
 0x157   : > { %v8098_v16 = vpop.permute.xlu1 %1014 }
 0x158   : > { %13640 = vst [vmem:[#allocation23_spill] sm:$0xff] %v8098_v16  ;;  %7134 = vset.pattern.permute.xlu1 %v13013_v53  ;;  %7187 = vset.pattern.permute.xlu0 %v13009_v24 }
 0x159   : > { %1356 = vperm.xlu1 %7134, %v7947_v33   ;;  %2140 = vperm.xlu0 %7187, %v7941_v30  }
 0x15c   : > { %v8105_v18 = vpop.permute.xlu1 %817 }
 0x15d   : > { %7135 = vset.pattern.permute.xlu1 %v13014_v52  ;;  %2152 = vperm.xlu0 %7187, %v7953_v36  }
 0x15e   : > { %1467 = vperm.xlu1 %7135, %v7941_v30  }
 0x161   : > { %v8112_v22 = vpop.permute.xlu1 %958  ;;  %2168 = vperm.xlu0 %7187, %v7921_v14  }
 0x162   : > { %13641 = vst [vmem:[#allocation24_spill] sm:$0xff] %v8112_v22  ;;  %7136 = vset.pattern.permute.xlu1 %v7606_v51 }
 0x163   : > { %1241 = vperm.xlu1 %7136, %v7953_v36  }
 0x165   : > { %2184 = vperm.xlu0 %7187, %v7912_v7  }
 0x166   : > { %v8120_v29 = vpop.permute.xlu1 %1142 }
 0x167   : > { %7137 = vset.pattern.permute.xlu1 %v13014_v52 }
 0x168   : > { %1471 = vperm.xlu1 %7137, %v7929_v20   ;;  %v8135_v20 = vpop.permute.xlu0 %970 }
 0x169   : > { %7192 = vset.pattern.permute.xlu0 %v13005_v41 }
 0x16a   : > { %v8125_v32 = vpop.permute.xlu1 %1146  ;;  %2285 = vperm.xlu0 %7192, %v7937_v27  }
 0x16c   : > { %1475 = vperm.xlu1 %7137, %v7947_v33   ;;  %v8144_v43 = vpop.permute.xlu0 %974 }
 0x16d   : > { %13644 = vst [vmem:[#allocation27_spill] sm:$0xff] %v8144_v43 }
 0x16e   : > { %v8131_v38 = vpop.permute.xlu1 %1154  ;;  %2297 = vperm.xlu0 %7192, %v7947_v33  }
 0x16f   : > { %13643 = vst [vmem:[#allocation26_spill] sm:$0xff] %v8131_v38 }
 0x170   : > { %7139 = vset.pattern.permute.xlu1 %v7605_v50  ;;  %v750_v50 = vlaneseq }
 0x171   : > { %1138 = vperm.xlu1 %7139, %v7921_v14  }
 0x172   : > { %2301 = vperm.xlu0 %7192, %v7953_v36   ;;  %v8176_v39 = vshrl.u32 %v750_v50, 7 }
 0x173   : > { %v8139_v42 = vpop.permute.xlu1 %966 }
 0x174   : > { %vm752_vm0 = vcmp.lt.s32.totalorder %v8176_v39, 1  ;;  %vm936_vm1 = vcmp.lt.s32.totalorder %v8176_v39, 2  ;;  %vm1088_vm2 = vcmp.lt.s32.totalorder %v8176_v39, 4 }
 0x175   : > { %7140 = vset.pattern.permute.xlu1 %v7606_v51 }
 0x176   : > { %1249 = vperm.xlu1 %7140, %v7977_v46   ;;  %v8154_v46 = vpop.permute.xlu0 %1150  ;;  %2317 = vperm.xlu0 %7192, %v7921_v14  }
 0x177   : > { %13647 = vst [vmem:[#allocation30_spill] sm:$0xff] %v8154_v46 }
 0x178   : > { %v8147_v45 = vpop.permute.xlu1 %1158 }
 0x179   : > { %13645 = vst [vmem:[#allocation28_spill] sm:$0xff] %v8147_v45 }
 0x17a   : > { %7142 = vset.pattern.permute.xlu1 %v13013_v53  ;;  %v8160_v48 = vpop.permute.xlu0 %1106  ;;  %2333 = vperm.xlu0 %7192, %v7912_v7  }
 0x17b   : > { %1360 = vperm.xlu1 %7142, %v7953_v36   ;;  %13649 = vst [vmem:[#allocation32_spill] sm:$0xff] %v8160_v48 }
 0x17c   : > { %v8152_v27 = vpop.permute.xlu1 %1162 }
 0x17d   : > { %13646 = vst [vmem:[#allocation29_spill] sm:$0xff] %v8152_v27 }
 0x17e   : > { %7197 = vset.pattern.permute.xlu0 %v13007_v26 }
 0x17f   : > { %1364 = vperm.xlu1 %7142, %v7955_v37   ;;  %v8171_v37 = vpop.permute.xlu0 %1114  ;;  %2405 = vperm.xlu0 %7197, %v7941_v30  }
 0x180   : > { %v8158_v33 = vpop.permute.xlu1 %1166  ;;  %13651 = vst [vmem:[#allocation34_spill] sm:$0xff] %v8171_v37 }
 0x181   : > { %13648 = vst [vmem:[#allocation31_spill] sm:$0xff] %v8158_v33 }
 0x183   : > { %1372 = vperm.xlu1 %7142, %v7916_v11   ;;  %2417 = vperm.xlu0 %7197, %v7953_v36   ;;  %v8190_v10 = vpop.permute.xlu0 %1122 }
 0x184   : > { %13654 = vst [vmem:[#allocation37_spill] sm:$0xff] %v8190_v10 }
 0x185   : > { %v8164_v49 = vpop.permute.xlu1 %1265 }
 0x186   : > { %13650 = vst [vmem:[#allocation33_spill] sm:$0xff] %v8164_v49 }
 0x187   : > { %7143 = vset.pattern.permute.xlu1 %v13014_v52  ;;  %2433 = vperm.xlu0 %7197, %v7921_v14   ;;  %v8217_v22 = vpop.permute.xlu0 %1134 }
 0x188   : > { %1479 = vperm.xlu1 %7143, %v7953_v36   ;;  %v733_v36 = vld [vmem:[%s12985_s3] sm:$0x1]  ;;  %13656 = vst [vmem:[#allocation39_spill] sm:$0xff] %v8217_v22 }
 0x189   : > { %v8174_v31 = vpop.permute.xlu1 %1273  ;;  %v6565_v35 = vpop.f32.mrf.mxu0 }
 0x18a   : > { %13652 = vst [vmem:[#allocation35_spill] sm:$0xff] %v8174_v31  ;;  %v718_v40 = vmul.f32 %v6565_v35, %v8167_v25 }
 0x18b   : > { %v631_v44 = vpop.f32.mrf.mxu0  ;;  %2449 = vperm.xlu0 %7197, %v7912_v7   ;;  %v919_v7 = vmul.f32 %v733_v36, %v733_v36 }
 0x18c   : > { %v735_v47 = vrot.slane %v718_v40, 7  ;;  %v8180_v41 = vmul.f32 %v8167_v25, %v631_v44  ;;  %7144 = vset.pattern.permute.xlu1 %v7606_v51  ;;  %v8193_v44 = vsub.s32 0, %v8176_v39 }
 0x18d   : > { %1257 = vperm.xlu1 %7144, %v7921_v14   ;;  %v8186_v26 = vpop.permute.xlu1 %1277  ;;  %v6568_v24 = vpop.f32.mrf.mxu0 }
 0x18e   : > { %13653 = vst [vmem:[#allocation36_spill] sm:$0xff] %v8186_v26  ;;  %v13016_v50 = vrot.slane %v8180_v41, 7  ;;  %v720_v35 = vmul.f32 %v6568_v24, %v8167_v25  ;;  %13655 = vst [vmem:[#allocation38_spill] sm:$0xff] %v8193_v44  ;;  %v8210_v27 = vrot.slane %v733_v36, %v8193_v44 }
 0x18f   : > { %v641_v53 = vpop.f32.mrf.mxu0 }
 0x190   : > { %v767_v51 = vsel %vm752_vm0, %v13016_v50, %v735_v47  ;;  %v737_v52 = vrot.slane %v720_v35, 7  ;;  %v719_v37 = vmul.f32 %v8167_v25, %v641_v53 }
 0x191   : > { %1261 = vperm.xlu1 %7144, %v7906_v1   ;;  %v6571_v24 = vpop.f32.mrf.mxu0  ;;  %v866_v43 = vmul.f32 %v8077_v6, %v767_v51  ;;  %v13657_v51 = vmov 21  }
 0x192   : > { %v736_v48 = vrot.slane %v719_v37, 7  ;;  %v722_v33 = vmul.f32 %v6571_v24, %v8167_v25  ;;  %v8206_v26 = vpop.permute.xlu1 %978 }
 0x193   : > { %v651_v45 = vpop.f32.mrf.mxu0 }
 0x194   : > { %v765_v50 = vsel %vm752_vm0, %v736_v48, %v737_v52  ;;  %v766_v53 = vsel %vm752_vm0, %v735_v47, %v736_v48  ;;  %v739_v49 = vrot.slane %v722_v33, 7  ;;  %v721_v31 = vmul.f32 %v8167_v25, %v651_v45 }
 0x195   : > { %v867_v24 = vmul.f32 %v8054_v62, %v766_v53  ;;  %v868_v6 = vmul.f32 %v8083_v9, %v765_v50  ;;  %7146 = vset.pattern.permute.xlu1 %v13657_v51  ;;  %v6574_v16 = vpop.f32.mrf.mxu0  ;;  %v888_v48 = vmul.f32 %v8210_v27, %v866_v43 }
 0x196   : > { %v738_v38 = vrot.slane %v721_v31, 7  ;;  %v8224_v46 = vmul.f32 %v6574_v16, %v8167_v25  ;;  %1491 = vperm.xlu1 %7146, %v7916_v11  }
 0x197   : > { %v889_v45 = vmul.f32 %v8210_v27, %v867_v24  ;;  %v890_v47 = vmul.f32 %v8210_v27, %v868_v6  ;;  %v8230_v22 = vpop.permute.xlu1 %1110  ;;  %v661_v62 = vpop.f32.mrf.mxu0 }
 0x198   : > { %13658 = vst [vmem:[#allocation40_spill] sm:$0xff] %v8230_v22  ;;  %v763_v9 = vsel %vm752_vm0, %v738_v38, %v739_v49  ;;  %v764_v50 = vsel %vm752_vm0, %v737_v52, %v738_v38  ;;  %v741_v16 = vrot.slane %v8224_v46, 7  ;;  %v723_v11 = vmul.f32 %v8167_v25, %v661_v62  ;;  %v8248_v52 = vpop.permute.xlu0 %1269 }
 0x199   : > { %v8238_v53 = vadd.f32 %v889_v45, %v719_v37  ;;  %v8240_v43 = vadd.f32 %v890_v47, %v720_v35  ;;  %v869_v24 = vmul.f32 %v8079_v8, %v764_v50  ;;  %v870_v36 = vmul.f32 %v8092_v12, %v763_v9  ;;  %v6577_v6 = vpop.f32.mrf.mxu0  ;;  %13661 = vst [vmem:[#allocation42_spill] sm:$0xff] %v8248_v52 }
 0x19a   : > { %v740_v22 = vrot.slane %v723_v11, 7  ;;  %v8245_v10 = vmul.f32 %v6577_v6, %v8167_v25  ;;  %7147 = vset.pattern.permute.xlu1 %v13660_v28  ;;  %v8250_v38 = vadd.f32 %v888_v48, %v718_v40  ;;  %v1071_v45 = vmul.f32 %v919_v7, %v919_v7 }
 0x19b   : > { %13659 = vst [vmem:[#allocation41_spill] sm:$0xff] %v8238_v53  ;;  %v891_v37 = vmul.f32 %v8210_v27, %v869_v24  ;;  %v892_v35 = vmul.f32 %v8210_v27, %v870_v36  ;;  %1380 = vperm.xlu1 %7147, %v7906_v1   ;;  %v671_v8 = vpop.f32.mrf.mxu0  ;;  %v922_v12 = vrot.slane %v8238_v53, 6  ;;  %v923_v48 = vrot.slane %v8240_v43, 6 }
 0x19c   : > { %v761_v47 = vsel %vm752_vm0, %v740_v22, %v741_v16  ;;  %v762_v28 = vsel %vm752_vm0, %v739_v49, %v740_v22  ;;  %v725_v62 = vmul.f32 %v8167_v25, %v671_v8  ;;  %v8261_v40 = vpop.permute.xlu1 %1281  ;;  %v1223_v22 = vmul.f32 %v1071_v45, %v1071_v45 }
 0x19d   : > { %13662 = vst [vmem:[#allocation43_spill] sm:$0xff] %v8261_v40  ;;  %v8264_v9 = vadd.f32 %v891_v37, %v721_v31  ;;  %v8266_v50 = vadd.f32 %v892_v35, %v722_v33  ;;  %v6580_v24 = vpop.f32.mrf.mxu0  ;;  %v871_v36 = vmul.f32 %v8105_v18, %v762_v28  ;;  %v872_v6 = vmul.f32 %v8038_v57, %v761_v47  ;;  %v8280_v18 = vpop.permute.xlu0 %1225 }
 0x19e   : > { %v742_v40 = vrot.slane %v725_v62, 7  ;;  %13665 = vst [vmem:[#allocation46_spill] sm:$0xff] %v8280_v18  ;;  %v8282_v57 = vmul.f32 %v1223_v22, %v1223_v22  ;;  %v949_v47 = vsel %vm936_vm1, %v922_v12, %v923_v48  ;;  %v8297_v18 = vrot.slane %v919_v7, %v8193_v44 }
 0x19f   : > { %13663 = vst [vmem:[#allocation44_spill] sm:$0xff] %v8266_v50  ;;  %v924_v49 = vrot.slane %v8264_v9, 6  ;;  %v925_v8 = vrot.slane %v8266_v50, 6  ;;  %1384 = vperm.xlu1 %7147, %v7909_v4   ;;  %v681_v31 = vpop.f32.mrf.mxu0  ;;  %v893_v37 = vmul.f32 %v8210_v27, %v871_v36  ;;  %v894_v35 = vmul.f32 %v8210_v27, %v872_v6 }
 0x1a0   : > { %v8278_v1 = vpop.permute.xlu1 %1285  ;;  %v13667_v4 = vrot.slane %v8245_v10, 7  ;;  %v760_v6 = vsel %vm752_vm0, %v741_v16, %v742_v40  ;;  %v8313_v7 = vrot.slane %v1223_v22, %v8193_v44 }
 0x1a1   : > { %13664 = vst [vmem:[#allocation45_spill] sm:$0xff] %v8278_v1  ;;  %v8288_v28 = vsel %vm936_vm1, %v924_v49, %v925_v8  ;;  %v6583_v33 = vpop.f32.mrf.mxu0  ;;  %v948_v50 = vsel %vm936_vm1, %v923_v48, %v924_v49  ;;  %v8302_v1 = vrot.slane %v1071_v45, %v8193_v44  ;;  %v8307_v53 = vadd.f32 %v893_v37, %v723_v11 }
 0x1a2   : > { %13666 = vst [vmem:[#allocation47_spill] sm:$0xff] %v8288_v28  ;;  %v759_v36 = vsel %vm752_vm0, %v742_v40, %v13667_v4  ;;  %v8305_v28 = vmul.f32 %v6580_v24, %v8167_v25  ;;  %v873_v4 = vmul.f32 %v8044_v59, %v760_v6  ;;  %v13668_v40 = vrot.slane %v8250_v38, 6 }
 0x1a3   : > { %v874_v52 = vmul.f32 %v8026_v54, %v759_v36  ;;  %7148 = vset.pattern.permute.xlu1 %v13657_v51  ;;  %v691_v16 = vpop.f32.mrf.mxu0  ;;  %v1020_v48 = vmul.f32 %v8139_v42, %v949_v47  ;;  %v8323_v11 = vadd.f32 %v894_v35, %v8224_v46  ;;  %v8330_v59 = vrot.slane %v8282_v57, %v8193_v44  ;;  %v8342_v35 = vpop.permute.xlu0 %1233 }
 0x1a4   : > { %v8319_v45 = vsel %vm936_vm1, %v13668_v40, %v922_v12  ;;  %1495 = vperm.xlu1 %7148, %v7921_v14   ;;  %v8326_v54 = vpop.permute.xlu1 %1229  ;;  %v1021_v51 = vmul.f32 %v8135_v20, %v948_v50  ;;  %v13019_v24 = vrot.slane %v8307_v53, 6  ;;  %v895_v12 = vmul.f32 %v8210_v27, %v873_v4  ;;  %13670 = vst [vmem:[#allocation49_spill] sm:$0xff] %v8342_v35  ;;  %v8355_v4 = vld [vmem:[#allocation5 + $0x50] sm:$0xff] }
 0x1a5   : > { %13669 = vst [vmem:[#allocation48_spill] sm:$0xff] %v8326_v54  ;;  %v896_v22 = vmul.f32 %v8210_v27, %v874_v52  ;;  %v6586_v42 = vpop.f32.mrf.mxu0  ;;  %v745_v46 = vrot.slane %v8305_v28, 7  ;;  %v727_v49 = vmul.f32 %v8167_v25, %v681_v31  ;;  %v8339_v14 = vmul.f32 %v6583_v33, %v8167_v25  ;;  %13671 = vst [vmem:[#allocation50_spill] sm:$0xff] %v8355_v4 }
 0x1a6   : > { %v729_v37 = vmul.f32 %v8167_v25, %v691_v16  ;;  %v946_v20 = vsel %vm936_vm1, %v925_v8, %v13019_v24  ;;  %v911_v50 = vadd.f32 %v895_v12, %v725_v62  ;;  %v8350_v47 = vmul.f32 %v6586_v42, %v8167_v25 }
 0x1a7   : > { %v912_v52 = vadd.f32 %v896_v22, %v8245_v10  ;;  %v1042_v31 = vmul.f32 %v8297_v18, %v1020_v48  ;;  %v1023_v33 = vmul.f32 %v8206_v26, %v946_v20  ;;  %v927_v36 = vrot.slane %v8323_v11, 6 }
 0x1a8   : > { %v744_v6 = vrot.slane %v727_v49, 7  ;;  %1503 = vperm.xlu1 %7148, %v8355_v4   ;;  %v928_v16 = vrot.slane %v911_v50, 6  ;;  %v746_v8 = vrot.slane %v729_v37, 7  ;;  %v1043_v22 = vmul.f32 %v8297_v18, %v1021_v51 }
 0x1a9   : > { %v929_v40 = vrot.slane %v912_v52, 6  ;;  %v8359_v12 = vpop.permute.xlu1 %982  ;;  %v1045_v48 = vmul.f32 %v8297_v18, %v1023_v33  ;;  %v13672_v42 = vrot.slane %v8245_v10, 7  ;;  %v749_v33 = vrot.slane %v8350_v47, 7 }
 0x1aa   : > { %v757_v26 = vsel %vm752_vm0, %v744_v6, %v745_v46  ;;  %v944_v62 = vsel %vm936_vm1, %v927_v36, %v928_v16  ;;  %v8387_v54 = vadd.f32 %v1042_v31, %v8240_v43 }
 0x1ab   : > { %v758_v20 = vsel %vm752_vm0, %v13672_v42, %v744_v6  ;;  %v943_v24 = vsel %vm936_vm1, %v928_v16, %v929_v40  ;;  %v8378_v4 = vadd.f32 %v1045_v48, %v8307_v53  ;;  %v1025_v10 = vmul.f32 %v8101_v17, %v944_v62  ;;  %v8383_v42 = vpop.permute.xlu0 %1245 }
 0x1ac   : > { %v875_v51 = vmul.f32 %v8030_v55, %v758_v20  ;;  %v1026_v35 = vmul.f32 %v8062_v0, %v943_v24  ;;  %v876_v6 = vmul.f32 %v8051_v61, %v757_v26  ;;  %1507 = vperm.xlu1 %7148, %v7927_v19   ;;  %v13673_v16 = vrot.slane %v8339_v14, 7  ;;  %v701_v24 = vpop.f32.mrf.mxu0 }
 0x1ad   : > { %v756_v17 = vsel %vm752_vm0, %v745_v46, %v746_v8  ;;  %v8397_v0 = vadd.f32 %v1043_v22, %v8264_v9  ;;  %v1047_v61 = vmul.f32 %v8297_v18, %v1025_v10  ;;  %v13674_v46 = vrot.slane %v8180_v41, 7 }
 0x1ae   : > { %v897_v55 = vmul.f32 %v8210_v27, %v875_v51  ;;  %v755_v48 = vsel %vm752_vm0, %v746_v8, %v13673_v16  ;;  %v1048_v19 = vmul.f32 %v8297_v18, %v1026_v35  ;;  %v898_v43 = vmul.f32 %v8210_v27, %v876_v6  ;;  %v8402_v31 = vpop.permute.xlu1 %1396 }
 0x1af   : > { %v877_v26 = vmul.f32 %v8034_v56, %v756_v17  ;;  %v878_v20 = vmul.f32 %v8058_v63, %v755_v48  ;;  %v768_v9 = vsel %vm752_vm0, %v749_v33, %v13674_v46  ;;  %v8411_v8 = vadd.f32 %v1047_v61, %v911_v50  ;;  %v8442_v61 = vld [vmem:[#allocation5 + $0x78] sm:$0xff] }
 0x1b0   : > { %v913_v62 = vadd.f32 %v897_v55, %v727_v49  ;;  %v8413_v35 = vadd.f32 %v1048_v19, %v912_v52  ;;  %v914_v22 = vadd.f32 %v898_v43, %v8305_v28  ;;  %v865_v51 = vmul.f32 %v8066_v2, %v768_v9  ;;  %1515 = vperm.xlu1 %7148, %v7933_v23   ;;  %v8424_v55 = vpop.permute.xlu0 %1253 }
 0x1b1   : > { %v899_v56 = vmul.f32 %v8210_v27, %v877_v26  ;;  %v900_v63 = vmul.f32 %v8210_v27, %v878_v20  ;;  %v731_v10 = vmul.f32 %v8167_v25, %v701_v24  ;;  %v1019_v6 = vmul.f32 %v8127_v34, %v8319_v45 }
 0x1b2   : > { %v930_v49 = vrot.slane %v913_v62, 6  ;;  %v931_v50 = vrot.slane %v914_v22, 6  ;;  %v887_v52 = vmul.f32 %v8210_v27, %v865_v51  ;;  %v8428_v2 = vmul.f32 %v8282_v57, %v8282_v57 }
 0x1b3   : > { %v915_v28 = vadd.f32 %v899_v56, %v729_v37  ;;  %v8433_v16 = vadd.f32 %v900_v63, %v8339_v14  ;;  %v748_v25 = vrot.slane %v731_v10, 7  ;;  %v8435_v48 = vpop.permute.xlu1 %1118  ;;  %v13023_v34 = vrot.slane %v8397_v0, 4 }
 0x1b4   : > { %v942_v23 = vsel %vm936_vm1, %v929_v40, %v930_v49  ;;  %v13024_v45 = vrot.slane %v8387_v54, 4  ;;  %v941_v17 = vsel %vm936_vm1, %v930_v49, %v931_v50  ;;  %1523 = vperm.xlu1 %7148, %v8442_v61   ;;  %v13022_v37 = vrot.slane %v8411_v8, 4  ;;  %v8473_v63 = vpop.permute.xlu0 %1463 }
 0x1b5   : > { %v1027_v57 = vmul.f32 %v8068_v3, %v942_v23  ;;  %v1081_v40 = vrot.slane %v8413_v35, 4  ;;  %v932_v19 = vrot.slane %v915_v28, 6  ;;  %v8448_v43 = vadd.f32 %v887_v52, %v8180_v41 }
 0x1b6   : > { %v1028_v24 = vmul.f32 %v8110_v21, %v941_v17  ;;  %v753_v20 = vsel %vm752_vm0, %v748_v25, %v749_v33  ;;  %v13675_v3 = vrot.slane %v8339_v14, 7  ;;  %v933_v9 = vrot.slane %v8433_v16, 6 }
 0x1b7   : > { %v1049_v26 = vmul.f32 %v8297_v18, %v1027_v57  ;;  %v940_v51 = vsel %vm936_vm1, %v931_v50, %v932_v19  ;;  %v880_v49 = vmul.f32 %v8048_v60, %v753_v20  ;;  %v8464_v21 = vmul.f32 %v8297_v18, %v1019_v6 }
 0x1b8   : > { %v754_v46 = vsel %vm752_vm0, %v13675_v3, %v748_v25  ;;  %v1100_v14 = vsel %vm1088_vm2, %v13024_v45, %v13023_v34  ;;  %v1029_v56 = vmul.f32 %v8072_v5, %v940_v51  ;;  %v13676_v50 = vmov 0  }
 0x1b9   : > { %v879_v41 = vmul.f32 %v8041_v58, %v754_v46  ;;  %v1065_v33 = vadd.f32 %v1049_v26, %v913_v62  ;;  %7151 = vset.pattern.permute.xlu1 %v13676_v50  ;;  %v8476_v58 = vpop.permute.xlu1 %1400  ;;  %v1095_v60 = vsel %vm1088_vm2, %v13022_v37, %v1081_v40  ;;  %v902_v52 = vmul.f32 %v8210_v27, %v880_v49  ;;  %v8518_v49 = vpop.permute.xlu0 %1483 }
 0x1ba   : > { %v13677_v62 = vrot.slane %v8307_v53, 6  ;;  %2024 = vperm.xlu1 %7151, %v7941_v30   ;;  %v1051_v25 = vmul.f32 %v8297_v18, %v1029_v56  ;;  %v1050_v57 = vmul.f32 %v8297_v18, %v1028_v24  ;;  %v939_v26 = vsel %vm936_vm1, %v932_v19, %v933_v9 }
 0x1bb   : > { %v901_v6 = vmul.f32 %v8210_v27, %v879_v41  ;;  %v1082_v23 = vrot.slane %v1065_v33, 4  ;;  %v920_v27 = vrot.slane %v8448_v43, 6  ;;  %v8498_v53 = vadd.f32 %v902_v52, %v8350_v47  ;;  %v8510_v41 = vld [vmem:[#allocation5 + $0x10] sm:$0xff] }
 0x1bc   : > { %v945_v5 = vsel %vm936_vm1, %v13677_v62, %v927_v36  ;;  %v8502_v30 = vadd.f32 %v1051_v25, %v915_v28  ;;  %v1066_v46 = vadd.f32 %v1050_v57, %v914_v22  ;;  %v1178_v24 = vmul.f32 %v8120_v29, %v1095_v60  ;;  %v13679_v52 = vld [vmem:[#allocation25_spill] sm:$0xff] }
 0x1bd   : > { %v1024_v17 = vmul.f32 %v8359_v12, %v945_v5  ;;  %v917_v20 = vadd.f32 %v901_v6, %v731_v10  ;;  %v1094_v36 = vsel %vm1088_vm2, %v1081_v40, %v1082_v23  ;;  %v8505_v12 = vpop.permute.xlu1 %1404  ;;  %v935_v10 = vrot.slane %v8498_v53, 6  ;;  %v13680_v25 = vld [vmem:[#allocation37_spill] sm:$0xff] }
 0x1be   : > { %v1179_v19 = vmul.f32 %v8125_v32, %v1094_v36  ;;  %2028 = vperm.xlu1 %7151, %v8510_v41   ;;  %v1030_v47 = vmul.f32 %v8087_v13, %v939_v26  ;;  %v1084_v28 = vrot.slane %v8502_v30, 4  ;;  %v1083_v22 = vrot.slane %v1066_v46, 4  ;;  %v13681_v26 = vld [vmem:[#allocation30_spill] sm:$0xff] }
 0x1bf   : > { %v1046_v3 = vmul.f32 %v8297_v18, %v1024_v17  ;;  %v934_v51 = vrot.slane %v917_v20, 6  ;;  %v13678_v32 = vrot.slane %v8250_v38, 6  ;;  %v952_v13 = vsel %vm936_vm1, %v935_v10, %v920_v27 }
 0x1c0   : > { %v1201_v29 = vmul.f32 %v8302_v1, %v1179_v19  ;;  %v1017_v6 = vmul.f32 %v8094_v15, %v952_v13  ;;  %v1093_v5 = vsel %vm1088_vm2, %v1082_v23, %v1083_v22  ;;  %v1173_v17 = vmul.f32 %v13680_v25, %v1100_v14  ;;  %v13684_v14 = vld [vmem:[#allocation23_spill] sm:$0xff] }
 0x1c1   : > { %v8516_v40 = vadd.f32 %v1046_v3, %v8323_v11  ;;  %v951_v56 = vsel %vm936_vm1, %v920_v27, %v13678_v32  ;;  %v938_v60 = vsel %vm936_vm1, %v933_v9, %v934_v51  ;;  %v937_v11 = vsel %vm936_vm1, %v934_v51, %v935_v10  ;;  %v8540_v27 = vpop.permute.xlu1 %1237  ;;  %v13683_v51 = vld [vmem:[#allocation26_spill] sm:$0xff] }
 0x1c2   : > { %v1031_v62 = vmul.f32 %v13679_v52, %v938_v60  ;;  %v1217_v57 = vadd.f32 %v1201_v29, %v1065_v33  ;;  %v1180_v36 = vmul.f32 %v13681_v26, %v1093_v5  ;;  %v1092_v9 = vsel %vm1088_vm2, %v1083_v22, %v1084_v28  ;;  %v8546_v32 = vld [vmem:[#allocation5] sm:$0xff]  ;;  %v13685_v60 = vld [vmem:[#allocation24_spill] sm:$0xff] }
 0x1c3   : > { %v13682_v3 = vmov 1   ;;  %v1039_v19 = vmul.f32 %v8297_v18, %v1017_v6  ;;  %v1181_v10 = vmul.f32 %v13683_v51, %v1092_v9  ;;  %v1052_v23 = vmul.f32 %v8297_v18, %v1030_v47  ;;  %v13686_v6 = vld [vmem:[#allocation42_spill] sm:$0xff]  ;;  %v13689_v51 = vld [vmem:[#allocation33_spill] sm:$0xff] }
 0x1c4   : > { %7152 = vset.pattern.permute.xlu1 %v13682_v3  ;;  %v1053_v15 = vmul.f32 %v8297_v18, %v1031_v62  ;;  %v1032_v33 = vmul.f32 %v13684_v14, %v937_v11  ;;  %v1202_v22 = vmul.f32 %v8302_v1, %v1180_v36  ;;  %v1200_v29 = vmul.f32 %v8302_v1, %v1178_v24  ;;  %v8554_v62 = vpop.permute.xlu0 %1487 }
 0x1c5   : > { %2136 = vperm.xlu1 %7152, %v8546_v32   ;;  %v1018_v13 = vmul.f32 %v13685_v60, %v951_v56  ;;  %v1299_v5 = vmul.f32 %v13686_v6, %v1217_v57  ;;  %v1068_v25 = vadd.f32 %v1052_v23, %v8433_v16  ;;  %v8558_v47 = vadd.f32 %v1039_v19, %v8448_v43  ;;  %v13687_v43 = vld [vmem:[#allocation41_spill] sm:$0xff]  ;;  %v13690_v60 = vld [vmem:[#allocation28_spill] sm:$0xff] }
 0x1c6   : > { %v1069_v52 = vadd.f32 %v1053_v15, %v917_v20  ;;  %v1218_v26 = vadd.f32 %v1202_v22, %v1066_v46  ;;  %v1203_v9 = vmul.f32 %v8302_v1, %v1181_v10  ;;  %v8562_v11 = vadd.f32 %v1200_v29, %v8413_v35  ;;  %v8567_v15 = vpop.permute.xlu1 %1344  ;;  %v13688_v35 = vld [vmem:[#allocation35_spill] sm:$0xff] }
 0x1c7   : > { %v1040_v24 = vmul.f32 %v8297_v18, %v1018_v13  ;;  %v1195_v56 = vmul.f32 %v8302_v1, %v1173_v17  ;;  %v1085_v36 = vrot.slane %v1068_v25, 4  ;;  %v8571_v16 = vrot.slane %v8428_v2, %v8193_v44 }
 0x1c8   : > { %v1086_v20 = vrot.slane %v1069_v52, 4  ;;  %v8575_v46 = vadd.f32 %v8464_v21, %v13687_v43  ;;  %v1300_v19 = vmul.f32 %v13688_v35, %v1218_v26  ;;  %v1298_v10 = vmul.f32 %v13689_v51, %v8562_v11  ;;  %v13691_v43 = vld [vmem:[#allocation29_spill] sm:$0xff] }
 0x1c9   : > { %2144 = vperm.xlu1 %7152, %v8510_v41   ;;  %v8581_v17 = vadd.f32 %v1040_v24, %v8250_v38  ;;  %v1091_v23 = vsel %vm1088_vm2, %v1084_v28, %v1085_v36  ;;  %v1072_v14 = vrot.slane %v8558_v47, 4  ;;  %v1054_v22 = vmul.f32 %v8297_v18, %v1032_v33  ;;  %v1393_v24 = vpop.permute.xlu0 %1392  ;;  %v8599_v51 = vld [vmem:[#allocation5 + $0x18] sm:$0xff]  ;;  %v13692_v33 = vld [vmem:[#allocation47_spill] sm:$0xff] }
 0x1ca   : > { %v1090_v2 = vsel %vm1088_vm2, %v1085_v36, %v1086_v20  ;;  %v1321_v21 = vmul.f32 %v8313_v7, %v1299_v5  ;;  %v1219_v29 = vadd.f32 %v1203_v9, %v8502_v30  ;;  %v1182_v13 = vmul.f32 %v13690_v60, %v1091_v23  ;;  %v13693_v30 = vld [vmem:[#allocation27_spill] sm:$0xff] }
 0x1cb   : > { %v1320_v6 = vmul.f32 %v8313_v7, %v1298_v10  ;;  %v8594_v38 = vadd.f32 %v1195_v56, %v8397_v0  ;;  %v1073_v28 = vrot.slane %v8581_v17, 4  ;;  %v1183_v35 = vmul.f32 %v13691_v43, %v1090_v2  ;;  %v8608_v23 = vpop.permute.xlu1 %1126 }
 0x1cc   : > { %v1070_v36 = vadd.f32 %v1054_v22, %v8498_v53  ;;  %v1022_v5 = vmul.f32 %v13693_v30, %v13692_v33  ;;  %v1322_v9 = vmul.f32 %v8313_v7, %v1300_v19  ;;  %v1204_v10 = vmul.f32 %v8302_v1, %v1182_v13  ;;  %v13696_v33 = vld [vmem:[#allocation36_spill] sm:$0xff] }
 0x1cd   : > { %2148 = vperm.xlu1 %7152, %v8599_v51   ;;  %v8606_v56 = vadd.f32 %v1320_v6, %v1217_v57  ;;  %v1074_v60 = vrot.slane %v8575_v46, 4  ;;  %v1103_v53 = vsel %vm1088_vm2, %v1072_v14, %v1073_v28  ;;  %v1205_v2 = vmul.f32 %v8302_v1, %v1183_v35  ;;  %v13698_v35 = vld [vmem:[#allocation40_spill] sm:$0xff] }
 0x1ce   : > { %v1087_v22 = vrot.slane %v1070_v36, 4  ;;  %v8614_v43 = vadd.f32 %v1321_v21, %v1218_v26  ;;  %v1220_v37 = vadd.f32 %v1204_v10, %v1068_v25  ;;  %v1301_v30 = vmul.f32 %v13696_v33, %v1219_v29  ;;  %v8629_v10 = vld [vmem:[#allocation5 + $0x8] sm:$0xff]  ;;  %v13701_v33 = vld [vmem:[#allocation45_spill] sm:$0xff] }
 0x1cf   : > { %13694 = vst [vmem:[#allocation25_spill] sm:$0xff] %v8606_v56  ;;  %v1419_v19 = vmul.f32 %v1393_v24, %v8606_v56  ;;  %v1293_v57 = vmul.f32 %v8383_v42, %v8594_v38  ;;  %v1221_v13 = vadd.f32 %v1205_v2, %v1069_v52  ;;  %v13697_v45 = vmov 2   ;;  %v1131_v42 = vpop.permute.xlu1 %1130 }
 0x1d0   : > { %13695 = vst [vmem:[#allocation37_spill] sm:$0xff] %v8614_v43  ;;  %v1089_v6 = vsel %vm1088_vm2, %v1086_v20, %v1087_v22  ;;  %v1104_v34 = vsel %vm1088_vm2, %v1087_v22, %v1072_v14  ;;  %v1338_v21 = vadd.f32 %v1322_v9, %v1219_v29  ;;  %v1102_v25 = vsel %vm1088_vm2, %v1073_v28, %v1074_v60  ;;  %v13699_v20 = vld [vmem:[#allocation43_spill] sm:$0xff] }
 0x1d1   : > { %7153 = vset.pattern.permute.xlu1 %v13697_v45  ;;  %v1170_v24 = vmul.f32 %v13698_v35, %v1103_v53  ;;  %v1441_v52 = vmul.f32 %v8330_v59, %v1419_v19  ;;  %v1302_v2 = vmul.f32 %v13699_v20, %v1220_v37  ;;  %v13700_v14 = vld [vmem:[#allocation31_spill] sm:$0xff]  ;;  %v1303_v44 = vmul.f32 %v13701_v33, %v1221_v13  ;;  %v13703_v35 = vld [vmem:[#allocation32_spill] sm:$0xff]  ;;  %v13704_v33 = vld [vmem:[#allocation34_spill] sm:$0xff] }
 0x1d2   : > { %2289 = vperm.xlu1 %7153, %v8629_v10   ;;  %v1184_v22 = vmul.f32 %v13700_v14, %v1089_v6  ;;  %v1420_v29 = vmul.f32 %v8402_v31, %v8614_v43  ;;  %v13702_v28 = vrot.slane %v8387_v54, 4  ;;  %v1323_v53 = vmul.f32 %v8313_v7, %v1301_v30 }
 0x1d3   : > { %v1169_v26 = vmul.f32 %v13703_v35, %v1104_v34  ;;  %v8645_v19 = vmul.f32 %v8313_v7, %v1293_v57  ;;  %v1324_v20 = vmul.f32 %v8313_v7, %v1302_v2  ;;  %v1325_v14 = vmul.f32 %v8313_v7, %v1303_v44 }
 0x1d4   : > { %v1101_v9 = vsel %vm1088_vm2, %v1074_v60, %v13702_v28  ;;  %v1206_v6 = vmul.f32 %v8302_v1, %v1184_v22  ;;  %v1171_v31 = vmul.f32 %v13704_v33, %v1102_v25  ;;  %v1192_v43 = vmul.f32 %v8302_v1, %v1170_v24  ;;  %v1357_v22 = vpop.permute.xlu1 %1356  ;;  %v13705_v24 = vld [vmem:[#allocation44_spill] sm:$0xff] }
 0x1d5   : > { %v1191_v56 = vmul.f32 %v8302_v1, %v1169_v26  ;;  %v1044_v60 = vmul.f32 %v8297_v18, %v1022_v5  ;;  %v1172_v34 = vmul.f32 %v8435_v48, %v1101_v9  ;;  %v8656_v30 = vadd.f32 %v1441_v52, %v1338_v21  ;;  %v1349_v5 = vpop.permute.xlu0 %1348  ;;  %v13706_v52 = vld [vmem:[#allocation46_spill] sm:$0xff] }
 0x1d6   : > { %2293 = vperm.xlu1 %7153, %v8510_v41   ;;  %v8658_v57 = vadd.f32 %v1324_v20, %v1221_v13  ;;  %v1222_v2 = vadd.f32 %v1206_v6, %v1070_v36  ;;  %v1442_v44 = vmul.f32 %v8330_v59, %v1420_v29  ;;  %v1339_v28 = vadd.f32 %v1323_v53, %v1220_v37  ;;  %v13707_v37 = vld [vmem:[#allocation48_spill] sm:$0xff] }
 0x1d7   : > { %v1207_v25 = vadd.f32 %v1191_v56, %v8558_v47  ;;  %v1060_v35 = vadd.f32 %v1044_v60, %v13705_v24  ;;  %v1421_v26 = vmul.f32 %v8476_v58, %v1338_v21  ;;  %v1193_v36 = vmul.f32 %v8302_v1, %v1171_v31 }
 0x1d8   : > { %v1407_v18 = vmul.f32 %v8567_v15, %v8658_v57  ;;  %v8666_v48 = vadd.f32 %v1325_v14, %v1222_v2  ;;  %v1288_v13 = vmul.f32 %v13706_v52, %v1222_v2  ;;  %v1208_v9 = vadd.f32 %v1192_v43, %v8581_v17 }
 0x1d9   : > { %v1077_v29 = vrot.slane %v1060_v35, 4  ;;  %v1289_v53 = vmul.f32 %v13707_v37, %v1207_v25  ;;  %v13708_v47 = vmov 3   ;;  %v1526_v21 = vmul.f32 %v8473_v63, %v8656_v30  ;;  %v1468_v33 = vpop.permute.xlu1 %1467 }
 0x1da   : > { %7154 = vset.pattern.permute.xlu1 %v13708_v47  ;;  %v1429_v56 = vmul.f32 %v8330_v59, %v1407_v18  ;;  %v1408_v58 = vmul.f32 %v1349_v5, %v8666_v48  ;;  %v1310_v15 = vmul.f32 %v8313_v7, %v1288_v13  ;;  %v13709_v20 = vrot.slane %v8397_v0, 4  ;;  %v1353_v13 = vpop.permute.xlu0 %1352 }
 0x1db   : > { %2401 = vperm.xlu1 %7154, %v8546_v32   ;;  %v13710_v43 = vrot.slane %v8378_v4, 4  ;;  %v1311_v14 = vmul.f32 %v8313_v7, %v1289_v53  ;;  %v8688_v31 = vadd.f32 %v1442_v44, %v1339_v28  ;;  %v1422_v0 = vmul.f32 %v8505_v12, %v1339_v28 }
 0x1dc   : > { %v1099_v17 = vsel %vm1088_vm2, %v13709_v20, %v1077_v29  ;;  %v1430_v60 = vmul.f32 %v8330_v59, %v1408_v58  ;;  %v1326_v2 = vadd.f32 %v1310_v15, %v1207_v25  ;;  %v1209_v18 = vadd.f32 %v1193_v36, %v8575_v46 }
 0x1dd   : > { %v1098_v6 = vsel %vm1088_vm2, %v1077_v29, %v13710_v43  ;;  %v1174_v63 = vmul.f32 %v8608_v23, %v1099_v17  ;;  %v1327_v5 = vadd.f32 %v1311_v14, %v1208_v9  ;;  %v1527_v52 = vmul.f32 %v1468_v33, %v8688_v31  ;;  %v13711_v23 = vld [vmem:[#allocation49_spill] sm:$0xff] }
 0x1de   : > { %v1175_v24 = vmul.f32 %v1131_v42, %v1098_v6  ;;  %v8698_v44 = vadd.f32 %v1429_v56, %v1326_v2  ;;  %v1548_v25 = vmul.f32 %v8571_v16, %v1526_v21  ;;  %v1290_v42 = vmul.f32 %v13711_v23, %v1208_v9  ;;  %v1242_v53 = vpop.permute.xlu1 %1241 }
 0x1df   : > { %v1196_v29 = vmul.f32 %v8302_v1, %v1174_v63  ;;  %2409 = vperm.xlu1 %7154, %v8510_v41   ;;  %v1549_v12 = vmul.f32 %v8571_v16, %v1527_v52  ;;  %v8703_v28 = vadd.f32 %v1430_v60, %v1327_v5  ;;  %v1079_v46 = vrot.slane %v8516_v40, 4 }
 0x1e0   : > { %v1197_v37 = vmul.f32 %v8302_v1, %v1175_v24  ;;  %v1443_v36 = vmul.f32 %v8330_v59, %v1421_v26  ;;  %v1564_v58 = vadd.f32 %v1548_v25, %v8698_v44  ;;  %v1194_v21 = vmul.f32 %v8302_v1, %v1172_v34 }
 0x1e1   : > { %v8708_v15 = vadd.f32 %v1196_v29, %v1060_v35  ;;  %v1291_v9 = vmul.f32 %v8540_v27, %v1209_v18  ;;  %v1409_v20 = vmul.f32 %v1353_v13, %v1326_v2  ;;  %v1565_v17 = vadd.f32 %v1549_v12, %v8703_v28  ;;  %v13714_v2 = vld [vmem:[#allocation39_spill] sm:$0xff] }
 0x1e2   : > { %v8711_v56 = vadd.f32 %v1197_v37, %v8378_v4  ;;  %v1444_v43 = vmul.f32 %v8330_v59, %v1422_v0  ;;  %v13712_v26 = vrot.slane %v8411_v8, 4  ;;  %v1312_v34 = vmul.f32 %v8313_v7, %v1290_v42  ;;  %v8745_v37 = vld [vmem:[#allocation5 + $0x28] sm:$0xff] }
 0x1e3   : > { %2413 = vperm.xlu1 %7154, %v8599_v51   ;;  %v8724_v6 = vadd.f32 %v8645_v19, %v8708_v15  ;;  %vm1580_vm3 = vcmp.gt.f32.partialorder %v1564_v58, 0.1  ;;  %vm1581_vm4 = vcmp.gt.f32.partialorder %v1565_v17, 0.1  ;;  %v13713_v27 = vrot.slane %v8378_v4, 4  ;;  %v1472_v13 = vpop.permute.xlu1 %1471 }
 0x1e4   : > { %v1096_v35 = vsel %vm1088_vm2, %v1079_v46, %v13712_v26  ;;  %v1410_v33 = vmul.f32 %v1357_v22, %v1327_v5  ;;  %vm6159_vm5 = vmpackc.low %vm1581_vm4, %vm1580_vm3  ;;  %v8732_v60 = vadd.f32 %v1443_v36, %v8658_v57  ;;  %v1295_v19 = vmul.f32 %v8424_v55, %v8711_v56 }
 0x1e5   : > { %v1097_v14 = vsel %vm1088_vm2, %v13713_v27, %v1079_v46  ;;  %v1313_v24 = vmul.f32 %v8313_v7, %v1291_v9  ;;  %v1431_v0 = vmul.f32 %v8330_v59, %v1409_v20  ;;  %v1210_v52 = vadd.f32 %v1194_v21, %v8387_v54  ;;  %v1369_v27 = vpop.permute.xlu0 %1368 }
 0x1e6   : > { %v1176_v63 = vmul.f32 %v13714_v2, %v1097_v14  ;;  %v13029_v4 = vmov 1.0|1.0   ;;  %v1528_v22 = vmul.f32 %v1472_v13, %v8732_v60  ;;  %v1317_v5 = vmul.f32 %v8313_v7, %v1295_v19  ;;  %v8786_v19 = vld [vmem:[#allocation5 + $0x38] sm:$0xff]  ;;  %v8792_v13 = vld [vmem:[#allocation5 + $0x48] sm:$0xff] }
 0x1e7   : > { %6603 = vmatprep.mubr.msk.bf16.mxu1 %vm6159_vm5, %v13029_v4  ;;  %7155 = vset.pattern.permute.xlu1 %v13676_v50  ;;  %v1328_v29 = vadd.f32 %v1312_v34, %v1209_v18  ;;  %v1292_v55 = vmul.f32 %v1242_v53, %v1210_v52  ;;  %v13031_v25 = vmov 8   ;;  %v1432_v54 = vmul.f32 %v8330_v59, %v1410_v33  ;;  %v1476_v18 = vpop.permute.xlu1 %1475  ;;  %v8777_v33 = vld [vmem:[#allocation5 + $0x30] sm:$0xff] }
 0x1e8   : > { %v1198_v57 = vmul.f32 %v8302_v1, %v1176_v63  ;;  %2040 = vperm.xlu1 %7155, %v8745_v37   ;;  %7202 = vset.pattern.permute.xlu0 %v13031_v25  ;;  %v1550_v23 = vmul.f32 %v8571_v16, %v1528_v22  ;;  %v8752_v42 = vadd.f32 %v1444_v43, %v8666_v48  ;;  %v13035_v9 = vmov 5   ;;  %v13715_v22 = vld [vmem:[#allocation50_spill] sm:$0xff] }
 0x1e9   : > { %2869 = vperm.xlu0 %7202, %v8629_v10   ;;  %v8758_v46 = vadd.f32 %v1431_v0, %v1328_v29  ;;  %v1329_v36 = vadd.f32 %v1313_v24, %v1210_v52  ;;  %v1314_v21 = vmul.f32 %v8313_v7, %v1292_v55 }
 0x1ea   : > { %v8755_v12 = vadd.f32 %v1198_v57, %v8516_v40  ;;  %v1529_v53 = vmul.f32 %v1476_v18, %v8752_v42  ;;  %v1531_v18 = vmul.f32 %v8518_v49, %v8703_v28 }
 0x1eb   : > { %v8768_v40 = vadd.f32 %v1432_v54, %v1329_v36  ;;  %v1566_v20 = vadd.f32 %v1550_v23, %v8758_v46  ;;  %v1330_v34 = vadd.f32 %v1314_v21, %v8594_v38 }
 0x1ec   : > { %v8762_v58 = vadd.f32 %v1317_v5, %v8755_v12  ;;  %7156 = vset.pattern.permute.xlu1 %v13035_v9  ;;  %v1551_v48 = vmul.f32 %v8571_v16, %v1529_v53  ;;  %v1139_v17 = vpop.permute.xlu1 %1138  ;;  %v13046_v53 = vmov 6   ;;  %v1553_v28 = vmul.f32 %v8571_v16, %v1531_v18 }
 0x1ed   : > { %2517 = vperm.xlu1 %7156, %v8546_v32   ;;  %2873 = vperm.xlu0 %7202, %v8510_v41   ;;  %v1177_v26 = vmul.f32 %v1139_v17, %v1096_v35  ;;  %vm1582_vm6 = vcmp.gt.f32.partialorder %v1566_v20, 0.1  ;;  %v1413_v38 = vmul.f32 %v1369_v27, %v1330_v34 }
 0x1ee   : > { %v1567_v43 = vadd.f32 %v1551_v48, %v8768_v40 }
 0x1ef   : > { %v1199_v14 = vmul.f32 %v8302_v1, %v1177_v26  ;;  %v1435_v24 = vmul.f32 %v8330_v59, %v1413_v38 }
 0x1f0   : > { %vm1583_vm7 = vcmp.gt.f32.partialorder %v1567_v43, 0.1 }
 0x1f1   : > { %7157 = vset.pattern.permute.xlu1 %v13676_v50  ;;  %2885 = vperm.xlu0 %7202, %v8745_v37   ;;  %vm6161_vm8 = vmpackc.low %vm1583_vm7, %vm1582_vm6  ;;  %v1250_v2 = vpop.permute.xlu1 %1249  ;;  %v8782_v35 = vadd.f32 %v1199_v14, %v8411_v8 }
 0x1f2   : > { %2044 = vperm.xlu1 %7157, %v8777_v33   ;;  %6604 = vmatmul.mubr.msk.bf16.vlgmr.msra.gmra.mxu1 %vm6161_vm8, %v13029_v4  ;;  %v1294_v63 = vmul.f32 %v1250_v2, %v8708_v15 }
 0x1f4   : > { %v1316_v1 = vmul.f32 %v8313_v7, %v1294_v63 }
 0x1f5   : > { %2889 = vperm.xlu0 %7202, %v8777_v33  }
 0x1f6   : > { %2048 = vperm.xlu1 %7157, %v8786_v19   ;;  %v1361_v0 = vpop.permute.xlu1 %1360  ;;  %v1332_v52 = vadd.f32 %v1316_v1, %v8711_v56  ;;  %v1377_v56 = vpop.permute.xlu0 %1376 }
 0x1f7   : > { %v1411_v5 = vmul.f32 %v1361_v0, %v1328_v29 }
 0x1f8   : > { %v8796_v8 = vadd.f32 %v1435_v24, %v1332_v52  ;;  %v1415_v2 = vmul.f32 %v1377_v56, %v1332_v52 }
 0x1f9   : > { %2901 = vperm.xlu0 %7202, %v8792_v13   ;;  %v1433_v29 = vmul.f32 %v8330_v59, %v1411_v5 }
 0x1fa   : > { %7158 = vset.pattern.permute.xlu1 %v13035_v9  ;;  %v1365_v15 = vpop.permute.xlu1 %1364  ;;  %v8817_v17 = vpop.permute.xlu0 %1388  ;;  %v1437_v1 = vmul.f32 %v8330_v59, %v1415_v2 }
 0x1fb   : > { %2529 = vperm.xlu1 %7158, %v8599_v51   ;;  %v1412_v57 = vmul.f32 %v1365_v15, %v1329_v36  ;;  %v8821_v43 = vadd.f32 %v1433_v29, %v1330_v34 }
 0x1fd   : > { %2905 = vperm.xlu0 %7202, %v13715_v22   ;;  %v1434_v55 = vmul.f32 %v8330_v59, %v1412_v57 }
 0x1fe   : > { %v1373_v54 = vpop.permute.xlu1 %1372 }
 0x1ff   : > { %7159 = vset.pattern.permute.xlu1 %v13682_v3  ;;  %v1414_v23 = vmul.f32 %v1373_v54, %v8724_v6  ;;  %v1450_v21 = vadd.f32 %v1434_v55, %v8724_v6 }
 0x200   : > { %2156 = vperm.xlu1 %7159, %v8745_v37  }
 0x201   : > { %7206 = vset.pattern.permute.xlu0 %v13035_v9  ;;  %v1436_v36 = vmul.f32 %v8330_v59, %v1414_v23  ;;  %v1569_v6 = vadd.f32 %v1553_v28, %v1450_v21  ;;  %v13033_v28 = vmov 7  }
 0x202   : > { %2521 = vperm.xlu0 %7206, %v8629_v10  }
 0x203   : > { %v1480_v48 = vpop.permute.xlu1 %1479  ;;  %v8814_v20 = vadd.f32 %v1436_v36, %v8762_v58  ;;  %vm1585_vm10 = vcmp.gt.f32.partialorder %v1569_v6, 0.1  ;;  %v1811_v6 = vld [vmem:[#allocation11 + $0x1c0] sm:$0xff] }
 0x204   : > { %7160 = vset.pattern.permute.xlu1 %v13046_v53  ;;  %v1530_v49 = vmul.f32 %v1480_v48, %v8698_v44  ;;  %v1500_v44 = vpop.permute.xlu0 %1499  ;;  %v3074_v48 = vld [vmem:[#allocation11 + $0x1e8] sm:$0xff] }
 0x205   : > { %2633 = vperm.xlu1 %7160, %v8546_v32   ;;  %v1535_v36 = vmul.f32 %v1500_v44, %v1450_v21  ;;  %6675 = vmatprep.subr.mxu1 %v3074_v48 }
 0x206   : > { %2525 = vperm.xlu0 %7206, %v8510_v41   ;;  %v1552_v26 = vmul.f32 %v8571_v16, %v1530_v49  ;;  %v8858_v49 = vld [vmem:[#allocation5 + $0x60] sm:$0xff]  ;;  %6676 = vmatpush3.msra.mxu1 %v3074_v48 }
 0x207   : > { %v1557_v21 = vmul.f32 %v8571_v16, %v1535_v36  ;;  %v1805_v36 = vld [vmem:[#allocation11 + $0x100] sm:$0xff] }
 0x208   : > { %v1258_v27 = vpop.permute.xlu1 %1257  ;;  %v1568_v14 = vadd.f32 %v1552_v26, %v8821_v43  ;;  %v1512_v0 = vpop.permute.xlu0 %1511 }
 0x209   : > { %7161 = vset.pattern.permute.xlu1 %v13682_v3  ;;  %v1296_v38 = vmul.f32 %v1258_v27, %v8755_v12  ;;  %v1532_v12 = vmul.f32 %v8554_v62, %v8758_v46  ;;  %v3073_v27 = vld [vmem:[#allocation11 + $0x1c8] sm:$0xff] }
 0x20a   : > { %2160 = vperm.xlu1 %7161, %v8777_v33   ;;  %2537 = vperm.xlu0 %7206, %v8745_v37   ;;  %vm1584_vm9 = vcmp.gt.f32.partialorder %v1568_v14, 0.1  ;;  %v3072_v14 = vld [vmem:[#allocation11 + $0x1a8] sm:$0xff] }
 0x20b   : > { %v1318_v34 = vmul.f32 %v8313_v7, %v1296_v38  ;;  %vm6163_vm11 = vmpackc.low %vm1585_vm10, %vm1584_vm9  ;;  %v1554_v55 = vmul.f32 %v8571_v16, %v1532_v12  ;;  %6677 = vmatprep.subr.mxu1 %v3073_v27 }
 0x20c   : > { %v1262_v63 = vpop.permute.xlu1 %1261  ;;  %6607 = vmatprep.mubr.msk.bf16.mxu1 %vm6163_vm11, %v13029_v4  ;;  %6678 = vmatpush3.msra.mxu1 %v3073_v27 }
 0x20d   : > { %v1334_v24 = vadd.f32 %v1318_v34, %v8782_v35  ;;  %v1297_v15 = vmul.f32 %v1262_v63, %v8782_v35  ;;  %v1570_v54 = vadd.f32 %v1554_v55, %v8796_v8  ;;  %6679 = vmatprep.subr.mxu1 %v3072_v14  ;;  %v1809_v34 = vld [vmem:[#allocation11 + $0x180] sm:$0xff]  ;;  %v3071_v63 = vld [vmem:[#allocation11 + $0x188] sm:$0xff] }
 0x20e   : > { %2164 = vperm.xlu1 %7161, %v8786_v19   ;;  %2541 = vperm.xlu0 %7206, %v8777_v33  }
 0x20f   : > { %v8838_v52 = vadd.f32 %v1437_v1, %v1334_v24  ;;  %v1319_v23 = vmul.f32 %v8313_v7, %v1297_v15  ;;  %vm1586_vm12 = vcmp.gt.f32.partialorder %v1570_v54, 0.1  ;;  %6680 = vmatpush3.msra.mxu1 %v3072_v14 }
 0x210   : > { %6681 = vmatprep.subr.mxu1 %v3071_v63 }
 0x211   : > { %v1538_v57 = vmul.f32 %v1512_v0, %v8838_v52  ;;  %v1492_v5 = vpop.permute.xlu1 %1491  ;;  %v1335_v7 = vadd.f32 %v1319_v23, %v8562_v11  ;;  %v1810_v11 = vld [vmem:[#allocation11 + $0x1a0] sm:$0xff]  ;;  %v3070_v0 = vld [vmem:[#allocation11 + $0x168] sm:$0xff]  ;;  %6682 = vmatpush3.msra.mxu1 %v3071_v63 }
 0x212   : > { %7162 = vset.pattern.permute.xlu1 %v13046_v53  ;;  %2553 = vperm.xlu0 %7206, %v8792_v13   ;;  %v1533_v56 = vmul.f32 %v1492_v5, %v8768_v40  ;;  %v1806_v23 = vld [vmem:[#allocation11 + $0x120] sm:$0xff] }
 0x213   : > { %2645 = vperm.xlu1 %7162, %v8599_v51   ;;  %v1560_v62 = vmul.f32 %v8571_v16, %v1538_v57  ;;  %v1418_v12 = vmul.f32 %v8817_v17, %v1335_v7  ;;  %v1807_v57 = vld [vmem:[#allocation11 + $0x140] sm:$0xff]  ;;  %6683 = vmatprep.subr.mxu1 %v3070_v0 }
 0x214   : > { %v1555_v46 = vmul.f32 %v8571_v16, %v1533_v56  ;;  %6684 = vmatpush3.msra.mxu1 %v3070_v0  ;;  %v1802_v63 = vld [vmem:[#allocation11 + $0xa0] sm:$0xff] }
 0x215   : > { %v8854_v35 = vadd.f32 %v1560_v62, %v8656_v30  ;;  %v1440_v17 = vmul.f32 %v8330_v59, %v1418_v12  ;;  %v13716_v62 = vld [vmem:[#allocation25_spill] sm:$0xff] }
 0x216   : > { %2557 = vperm.xlu0 %7206, %v13715_v22   ;;  %v1381_v40 = vpop.permute.xlu1 %1380  ;;  %v1571_v18 = vadd.f32 %v1555_v46, %v8814_v20  ;;  %v1812_v22 = vld [vmem:[#allocation11 + $0x1e0] sm:$0xff] }
 0x217   : > { %7163 = vset.pattern.permute.xlu1 %v13697_v45  ;;  %v1416_v29 = vmul.f32 %v1381_v40, %v8762_v58  ;;  %6619 = vmatprep.subr.mxu0 %v1812_v22  ;;  %v3068_v40 = vld [vmem:[#allocation11 + $0x128] sm:$0xff]  ;;  %vm1592_vm6 = vcmp.gt.f32.partialorder %v8854_v35, 0.1  ;;  %v1799_v35 = vld [vmem:[#allocation11 + $0x40] sm:$0xff] }
 0x218   : > { %2305 = vperm.xlu1 %7163, %v8745_v37   ;;  %vm1587_vm13 = vcmp.gt.f32.partialorder %v1571_v18, 0.1  ;;  %6620 = vmatpush3.msra.mxu0 %v1812_v22  ;;  %v1520_v18 = vpop.permute.xlu0 %1519 }
 0x219   : > { %v1438_v30 = vmul.f32 %v8330_v59, %v1416_v29  ;;  %vm6165_vm14 = vmpackc.low %vm1587_vm13, %vm1586_vm12  ;;  %6621 = vmatprep.subr.mxu0 %v1811_v6  ;;  %v3067_v29 = vld [vmem:[#allocation11 + $0x108] sm:$0xff]  ;;  %vm2267_vm12 = vcmp.lt.s32.totalorder %v8176_v39, 7 }
 0x21a   : > { %2565 = vperm.xlu0 %7206, %v8858_v49   ;;  %v1385_v58 = vpop.permute.xlu1 %1384  ;;  %6608 = vmatmul.mubr.msk.bf16.gmra.mxu1 %vm6165_vm14, %v13029_v4 }
 0x21b   : > { %v8867_v26 = vadd.f32 %v1438_v30, %v1335_v7  ;;  %6622 = vmatpush3.msra.mxu0 %v1811_v6  ;;  %v1417_v38 = vmul.f32 %v1385_v58, %v1334_v24  ;;  %v13717_v7 = vld [vmem:[#allocation37_spill] sm:$0xff] }
 0x21c   : > { %7164 = vset.pattern.permute.xlu1 %v13033_v28  ;;  %6623 = vmatprep.subr.mxu0 %v1810_v11  ;;  %v1456_v30 = vadd.f32 %v1440_v17, %v13717_v7 }
 0x21d   : > { %2749 = vperm.xlu1 %7164, %v8546_v32   ;;  %v1573_v2 = vadd.f32 %v1557_v21, %v8867_v26  ;;  %6624 = vmatpush3.msra.mxu0 %v1810_v11  ;;  %v1439_v24 = vmul.f32 %v8330_v59, %v1417_v38  ;;  %v3066_v21 = vld [vmem:[#allocation11 + $0xe8] sm:$0xff]  ;;  %v1803_v11 = vld [vmem:[#allocation11 + $0xc0] sm:$0xff] }
 0x21e   : > { %2577 = vperm.xlu0 %7206, %v8442_v61   ;;  %v1808_v61 = vld [vmem:[#allocation11 + $0x160] sm:$0xff]  ;;  %6625 = vmatprep.subr.mxu0 %v1809_v34  ;;  %v3065_v38 = vld [vmem:[#allocation11 + $0xc8] sm:$0xff] }
 0x21f   : > { %v1496_v44 = vpop.permute.xlu1 %1495  ;;  %6626 = vmatpush3.msra.mxu0 %v1809_v34  ;;  %v1455_v46 = vadd.f32 %v1439_v24, %v13716_v62  ;;  %vm1589_vm1 = vcmp.gt.f32.partialorder %v1573_v2, 0.1 }
 0x220   : > { %v1534_v1 = vmul.f32 %v1496_v44, %v8821_v43  ;;  %6627 = vmatprep.subr.mxu0 %v1808_v61  ;;  %v3069_v43 = vld [vmem:[#allocation11 + $0x148] sm:$0xff] }
 0x221   : > { %7165 = vset.pattern.permute.xlu1 %v13697_v45  ;;  %6628 = vmatpush3.msra.mxu0 %v1808_v61  ;;  %v1540_v22 = vmul.f32 %v1520_v18, %v1455_v46 }
 0x222   : > { %2309 = vperm.xlu1 %7165, %v8777_v33   ;;  %v1556_v15 = vmul.f32 %v8571_v16, %v1534_v1  ;;  %6629 = vmatprep.subr.mxu0 %v1807_v57  ;;  %v3064_v1 = vld [vmem:[#allocation11 + $0xa8] sm:$0xff] }
 0x223   : > { %v1504_v5 = vpop.permute.xlu1 %1503  ;;  %6685 = vmatprep.subr.mxu1 %v3069_v43  ;;  %6630 = vmatpush3.msra.mxu0 %v1807_v57  ;;  %v1562_v14 = vmul.f32 %v8571_v16, %v1540_v22  ;;  %v1798_v57 = vld [vmem:[#allocation11 + $0x20] sm:$0xff]  ;;  %v8967_v22 = vpop.permute.xlu0 %2020 }
 0x224   : > { %v1536_v56 = vmul.f32 %v1504_v5, %v8796_v8  ;;  %v1572_v55 = vadd.f32 %v1556_v15, %v8838_v52  ;;  %6686 = vmatpush3.msra.mxu1 %v3069_v43  ;;  %6631 = vmatprep.subr.mxu0 %v1806_v23  ;;  %v3061_v15 = vld [vmem:[#allocation11 + $0x48] sm:$0xff]  ;;  %13730 = vst [vmem:[#allocation36_spill] sm:$0xff] %v8967_v22 }
 0x225   : > { %6687 = vmatprep.subr.mxu1 %v3068_v40  ;;  %6632 = vmatpush3.msra.mxu0 %v1806_v23  ;;  %v1578_v61 = vadd.f32 %v1562_v14, %v8732_v60  ;;  %v3063_v60 = vld [vmem:[#allocation11 + $0x88] sm:$0xff] }
 0x226   : > { %2313 = vperm.xlu1 %7165, %v8786_v19   ;;  %v1558_v54 = vmul.f32 %v8571_v16, %v1536_v56  ;;  %vm1588_vm15 = vcmp.gt.f32.partialorder %v1572_v55, 0.1  ;;  %6688 = vmatpush3.msra.mxu1 %v3068_v40  ;;  %v3060_v5 = vld [vmem:[#allocation11 + $0x28] sm:$0xff]  ;;  %v1797_v56 = vld [vmem:[#allocation11] sm:$0xff]  ;;  %v8938_v40 = vld [vmem:[#allocation5 + $0x58] sm:$0xff] }
 0x227   : > { %v1508_v8 = vpop.permute.xlu1 %1507  ;;  %vm6167_vm2 = vmpackc.low %vm1589_vm1, %vm1588_vm15  ;;  %6633 = vmatprep.subr.mxu0 %v1805_v36  ;;  %6689 = vmatprep.subr.mxu1 %v3067_v29  ;;  %vm1594_vm9 = vcmp.gt.f32.partialorder %v1578_v61, 0.1  ;;  %v3059_v55 = vld [vmem:[#allocation11 + $0x8] sm:$0xff]  ;;  %v8977_v7 = vpop.permute.xlu0 %2032 }
 0x228   : > { %v1537_v59 = vmul.f32 %v1508_v8, %v8814_v20  ;;  %6611 = vmatprep.mubr.msk.bf16.mxu1 %vm6167_vm2, %v13029_v4  ;;  %v1574_v52 = vadd.f32 %v1558_v54, %v1455_v46  ;;  %v1804_v20 = vld [vmem:[#allocation11 + $0xe0] sm:$0xff]  ;;  %6634 = vmatpush3.msra.mxu0 %v1805_v36  ;;  %v8934_v23 = vld [vmem:[#allocation5 + $0x50] sm:$0xff]  ;;  %13733 = vst [vmem:[#allocation31_spill] sm:$0xff] %v8977_v7 }
 0x229   : > { %6690 = vmatpush3.msra.mxu1 %v3067_v29  ;;  %6635 = vmatprep.subr.mxu0 %v1804_v20 }
 0x22a   : > { %7166 = vset.pattern.permute.xlu1 %v13033_v28  ;;  %v1559_v48 = vmul.f32 %v8571_v16, %v1537_v59  ;;  %vm1590_vm3 = vcmp.gt.f32.partialorder %v1574_v52, 0.1  ;;  %6691 = vmatprep.subr.mxu1 %v3066_v21  ;;  %v8952_v52 = vld [vmem:[#allocation5 + $0x68] sm:$0xff] }
 0x22b   : > { %2761 = vperm.xlu1 %7166, %v8599_v51   ;;  %v1516_v58 = vpop.permute.xlu1 %1515  ;;  %6636 = vmatpush3.msra.mxu0 %v1804_v20  ;;  %v8997_v20 = vld [vmem:[#allocation5 + $0x78] sm:$0xff] }
 0x22c   : > { %v1539_v6 = vmul.f32 %v1516_v58, %v8867_v26  ;;  %v1575_v27 = vadd.f32 %v1559_v48, %v1456_v30  ;;  %6692 = vmatpush3.msra.mxu1 %v3066_v21  ;;  %6637 = vmatprep.subr.mxu0 %v1803_v11 }
 0x22d   : > { %6693 = vmatprep.subr.mxu1 %v3065_v38  ;;  %6638 = vmatpush3.msra.mxu0 %v1803_v11 }
 0x22e   : > { %v1561_v2 = vmul.f32 %v8571_v16, %v1539_v6  ;;  %vm1591_vm4 = vcmp.gt.f32.partialorder %v1575_v27, 0.1  ;;  %6694 = vmatpush3.msra.mxu1 %v3065_v38  ;;  %6639 = vmatprep.subr.mxu0 %v1802_v63 }
 0x22f   : > { %7167 = vset.pattern.permute.xlu1 %v13708_v47  ;;  %v1524_v44 = vpop.permute.xlu1 %1523  ;;  %vm6169_vm5 = vmpackc.low %vm1591_vm4, %vm1590_vm3  ;;  %6695 = vmatprep.subr.mxu1 %v3064_v1 }
 0x230   : > { %2421 = vperm.xlu1 %7167, %v8745_v37   ;;  %v1541_v26 = vmul.f32 %v1524_v44, %v1456_v30  ;;  %6612 = vmatmul.mubr.msk.bf16.gmra.mxu1 %vm6169_vm5, %v13029_v4  ;;  %v1577_v34 = vadd.f32 %v1561_v2, %v8688_v31  ;;  %v1801_v31 = vld [vmem:[#allocation11 + $0x80] sm:$0xff] }
 0x231   : > { %6640 = vmatpush3.msra.mxu0 %v1802_v63  ;;  %6696 = vmatpush3.msra.mxu1 %v3064_v1 }
 0x232   : > { %v1563_v12 = vmul.f32 %v8571_v16, %v1541_v26  ;;  %vm1593_vm7 = vcmp.gt.f32.partialorder %v1577_v34, 0.1  ;;  %6641 = vmatprep.subr.mxu0 %v1801_v31  ;;  %6697 = vmatprep.subr.mxu1 %v3063_v60  ;;  %v3062_v16 = vld [vmem:[#allocation11 + $0x68] sm:$0xff] }
 0x233   : > { %vm6171_vm8 = vmpackc.low %vm1593_vm7, %vm1592_vm6  ;;  %6642 = vmatpush3.msra.mxu0 %v1801_v31  ;;  %6698 = vmatpush3.msra.mxu1 %v3063_v60 }
 0x234   : > { %7168 = vset.pattern.permute.xlu1 %v13031_v25  ;;  %6615 = vmatprep.mubr.msk.bf16.mxu1 %vm6171_vm8, %v13029_v4  ;;  %v1579_v0 = vadd.f32 %v1563_v12, %v8752_v42 }
 0x235   : > { %2865 = vperm.xlu1 %7168, %v8546_v32   ;;  %v8903_v24 = vpop.permute.xlu1 %2024  ;;  %v1800_v32 = vld [vmem:[#allocation11 + $0x60] sm:$0xff]  ;;  %6699 = vmatprep.subr.mxu1 %v3062_v16 }
 0x236   : > { %13718 = vst [vmem:[#allocation30_spill] sm:$0xff] %v8903_v24  ;;  %vm1595_vm10 = vcmp.gt.f32.partialorder %v1579_v0, 0.1  ;;  %6643 = vmatprep.subr.mxu0 %v1800_v32  ;;  %6700 = vmatpush3.msra.mxu1 %v3062_v16  ;;  %v9051_v0 = vld [vmem:[#allocation5 + $0x40] sm:$0xff]  ;;  %v9370_v24 = vsub.s32 5, %v8176_v39 }
 0x237   : > { %vm6173_vm11 = vmpackc.low %vm1595_vm10, %vm1594_vm9  ;;  %6644 = vmatpush3.msra.mxu0 %v1800_v32  ;;  %6701 = vmatprep.subr.mxu1 %v3061_v15  ;;  %v9059_v32 = vld [vmem:[#allocation5 + $0x70] sm:$0xff] }
 0x238   : > { %6616 = vmatmul.mubr.msk.bf16.gmra.mxu1 %vm6173_vm11, %v13029_v4  ;;  %6645 = vmatprep.subr.mxu0 %v1799_v35  ;;  %13861 = vst [vmem:[#allocation163_spill] sm:$0xff] %v9370_v24 }
 0x239   : > { %7169 = vset.pattern.permute.xlu1 %v13708_v47  ;;  %v8908_v42 = vpop.permute.xlu1 %2028  ;;  %6646 = vmatpush3.msra.mxu0 %v1799_v35 }
 0x23a   : > { %2425 = vperm.xlu1 %7169, %v8777_v33   ;;  %13719 = vst [vmem:[#allocation26_spill] sm:$0xff] %v8908_v42  ;;  %6702 = vmatpush3.msra.mxu1 %v3061_v15 }
 0x23b   : > { %6647 = vmatprep.subr.mxu0 %v1798_v57  ;;  %6703 = vmatprep.subr.mxu1 %v3060_v5 }
 0x23c   : > { %6648 = vmatpush3.msra.mxu0 %v1798_v57  ;;  %6704 = vmatpush3.msra.mxu1 %v3060_v5  ;;  %v7273_v5 = vld [vmem:[%s7882_s1] sm:$0xff] }
 0x23d   : > { %6649 = vmatprep.subr.mxu0 %v1797_v56  ;;  %6705 = vmatprep.subr.mxu1 %v3059_v55 }
 0x23e   : > { %2429 = vperm.xlu1 %7169, %v8786_v19   ;;  %6650 = vmatpush3.msra.mxu0 %v1797_v56 }
 0x23f   : > { %6706 = vmatpush3.msra.mxu1 %v3059_v55  ;;  %7209 = vset.pattern.permute.xlu0 %v13046_v53 }
 0x240   : > { %v8911_v43 = vpop.permute.xlu1 %2136  ;;  %2637 = vperm.xlu0 %7209, %v8629_v10  }
 0x241   : > { %13720 = vst [vmem:[#allocation23_spill] sm:$0xff] %v8911_v43 }
 0x242   : > { %7170 = vset.pattern.permute.xlu1 %v13031_v25 }
 0x243   : > { %2877 = vperm.xlu1 %7170, %v8599_v51   ;;  %v8925_v51 = vld [vmem:[#allocation5 + $0x20] sm:$0xff] }
 0x244   : > { %v8915_v17 = vpop.permute.xlu1 %2144  ;;  %2641 = vperm.xlu0 %7209, %v8510_v41  }
 0x245   : > { %13721 = vst [vmem:[#allocation24_spill] sm:$0xff] %v8915_v17 }
 0x247   : > { %7171 = vset.pattern.permute.xlu1 %v13676_v50 }
 0x248   : > { %2056 = vperm.xlu1 %7171, %v8792_v13   ;;  %v8921_v62 = vpop.permute.xlu1 %2148  ;;  %2653 = vperm.xlu0 %7209, %v8745_v37  }
 0x249   : > { %13722 = vst [vmem:[#allocation42_spill] sm:$0xff] %v8921_v62 }
 0x24c   : > { %7172 = vset.pattern.permute.xlu1 %v13035_v9  ;;  %2657 = vperm.xlu0 %7209, %v8777_v33  }
 0x24d   : > { %2533 = vperm.xlu1 %7172, %v8925_v51   ;;  %v8928_v46 = vpop.permute.xlu1 %2289 }
 0x24e   : > { %13723 = vst [vmem:[#allocation41_spill] sm:$0xff] %v8928_v46 }
 0x250   : > { %2669 = vperm.xlu0 %7209, %v8792_v13  }
 0x251   : > { %7173 = vset.pattern.permute.xlu1 %v13676_v50  ;;  %v8932_v54 = vpop.permute.xlu1 %2293 }
 0x252   : > { %13724 = vst [vmem:[#allocation35_spill] sm:$0xff] %v8932_v54  ;;  %2060 = vperm.xlu1 %7173, %v8934_v23  }
 0x254   : > { %2673 = vperm.xlu0 %7209, %v8934_v23  }
 0x256   : > { %2064 = vperm.xlu1 %7173, %v8938_v40   ;;  %v8941_v18 = vpop.permute.xlu1 %2401 }
 0x257   : > { %13725 = vst [vmem:[#allocation33_spill] sm:$0xff] %v8941_v18 }
 0x258   : > { %2685 = vperm.xlu0 %7209, %v8952_v52  }
 0x25a   : > { %7174 = vset.pattern.permute.xlu1 %v13035_v9  ;;  %v8945_v8 = vpop.permute.xlu1 %2409 }
 0x25b   : > { %13726 = vst [vmem:[#allocation28_spill] sm:$0xff] %v8945_v8  ;;  %2545 = vperm.xlu1 %7174, %v8786_v19  }
 0x25c   : > { %7211 = vset.pattern.permute.xlu0 %v13033_v28 }
 0x25d   : > { %2753 = vperm.xlu0 %7211, %v8629_v10  }
 0x25e   : > { %v8949_v59 = vpop.permute.xlu1 %2413 }
 0x25f   : > { %13727 = vst [vmem:[#allocation29_spill] sm:$0xff] %v8949_v59  ;;  %7175 = vset.pattern.permute.xlu1 %v13682_v3 }
 0x260   : > { %2172 = vperm.xlu1 %7175, %v8792_v13  }
 0x261   : > { %2757 = vperm.xlu0 %7211, %v8510_v41  }
 0x263   : > { %v8956_v36 = vpop.permute.xlu1 %2040 }
 0x264   : > { %13728 = vst [vmem:[#allocation47_spill] sm:$0xff] %v8956_v36  ;;  %7176 = vset.pattern.permute.xlu1 %v13046_v53 }
 0x265   : > { %2649 = vperm.xlu1 %7176, %v8925_v51   ;;  %2769 = vperm.xlu0 %7211, %v8745_v37   ;;  %v8985_v37 = vpop.permute.xlu0 %2036 }
 0x266   : > { %13735 = vst [vmem:[#allocation32_spill] sm:$0xff] %v8985_v37 }
 0x268   : > { %v8962_v29 = vpop.permute.xlu1 %2517 }
 0x269   : > { %13729 = vst [vmem:[#allocation27_spill] sm:$0xff] %v8962_v29  ;;  %7177 = vset.pattern.permute.xlu1 %v13682_v3  ;;  %2773 = vperm.xlu0 %7211, %v8777_v33   ;;  %v8993_v30 = vpop.permute.xlu0 %2052 }
 0x26a   : > { %2176 = vperm.xlu1 %7177, %v8934_v23   ;;  %13737 = vst [vmem:[#allocation44_spill] sm:$0xff] %v8993_v30 }
 0x26d   : > { %v8970_v48 = vpop.permute.xlu1 %2044  ;;  %2785 = vperm.xlu0 %7211, %v8792_v13   ;;  %v9002_v21 = vpop.permute.xlu0 %2068 }
 0x26e   : > { %13731 = vst [vmem:[#allocation40_spill] sm:$0xff] %v8970_v48  ;;  %2180 = vperm.xlu1 %7177, %v8938_v40   ;;  %13739 = vst [vmem:[#allocation48_spill] sm:$0xff] %v9002_v21 }
 0x271   : > { %v8974_v10 = vpop.permute.xlu1 %2048  ;;  %2789 = vperm.xlu0 %7211, %v8934_v23   ;;  %v9012_v11 = vpop.permute.xlu0 %2140 }
 0x272   : > { %13732 = vst [vmem:[#allocation43_spill] sm:$0xff] %v8974_v10  ;;  %7178 = vset.pattern.permute.xlu1 %v13046_v53  ;;  %13742 = vst [vmem:[#allocation50_spill] sm:$0xff] %v9012_v11 }
 0x273   : > { %2661 = vperm.xlu1 %7178, %v8786_v19  }
 0x275   : > { %2797 = vperm.xlu0 %7211, %v8858_v49   ;;  %v9019_v2 = vpop.permute.xlu0 %2152 }
 0x276   : > { %v8981_v41 = vpop.permute.xlu1 %2529  ;;  %13744 = vst [vmem:[#allocation37_spill] sm:$0xff] %v9019_v2 }
 0x277   : > { %13734 = vst [vmem:[#allocation45_spill] sm:$0xff] %v8981_v41  ;;  %7179 = vset.pattern.permute.xlu1 %v13697_v45 }
 0x278   : > { %2321 = vperm.xlu1 %7179, %v8792_v13  }
 0x279   : > { %2809 = vperm.xlu0 %7211, %v8997_v20   ;;  %v9025_v44 = vpop.permute.xlu0 %2168 }
 0x27a   : > { %13746 = vst [vmem:[#allocation52_spill] sm:$0xff] %v9025_v44  ;;  %v7230_v44 = vld [vmem:[#allocation14 + $0x20] sm:$0xff]  }
 0x27b   : > { %v8988_v33 = vpop.permute.xlu1 %2156 }
 0x27c   : > { %13736 = vst [vmem:[#allocation34_spill] sm:$0xff] %v8988_v33  ;;  %7180 = vset.pattern.permute.xlu1 %v13033_v28 }
 0x27d   : > { %2765 = vperm.xlu1 %7180, %v8925_v51   ;;  %7214 = vset.pattern.permute.xlu0 %v13031_v25  ;;  %v9031_v34 = vpop.permute.xlu0 %2184 }
 0x27e   : > { %2917 = vperm.xlu0 %7214, %v8952_v52   ;;  %13748 = vst [vmem:[#allocation54_spill] sm:$0xff] %v9031_v34 }
 0x280   : > { %v8995_v58 = vpop.permute.xlu1 %2633 }
 0x281   : > { %13738 = vst [vmem:[#allocation46_spill] sm:$0xff] %v8995_v58  ;;  %7181 = vset.pattern.permute.xlu1 %v13697_v45  ;;  %v9039_v1 = vpop.permute.xlu0 %2285 }
 0x282   : > { %2325 = vperm.xlu1 %7181, %v8934_v23   ;;  %13751 = vst [vmem:[#allocation57_spill] sm:$0xff] %v9039_v1 }
 0x285   : > { %v9005_v6 = vpop.permute.xlu1 %2160  ;;  %v9046_v12 = vpop.permute.xlu0 %2297 }
 0x286   : > { %13740 = vst [vmem:[#allocation49_spill] sm:$0xff] %v9005_v6  ;;  %2329 = vperm.xlu1 %7181, %v8938_v40   ;;  %13753 = vst [vmem:[#allocation59_spill] sm:$0xff] %v9046_v12 }
 0x289   : > { %v9009_v27 = vpop.permute.xlu1 %2164  ;;  %v9054_v60 = vpop.permute.xlu0 %2301 }
 0x28a   : > { %13741 = vst [vmem:[#allocation39_spill] sm:$0xff] %v9009_v27  ;;  %7182 = vset.pattern.permute.xlu1 %v13033_v28  ;;  %13755 = vst [vmem:[#allocation61_spill] sm:$0xff] %v9054_v60  ;;  %v7276_v28 = vld [vmem:[%s7882_s1 + $0x18] sm:$0xff] }
 0x28b   : > { %2777 = vperm.xlu1 %7182, %v8786_v19  }
 0x28d   : > { %v9062_v35 = vpop.permute.xlu0 %2317 }
 0x28e   : > { %v9015_v14 = vpop.permute.xlu1 %2645  ;;  %13757 = vst [vmem:[#allocation63_spill] sm:$0xff] %v9062_v35 }
 0x28f   : > { %13743 = vst [vmem:[#allocation25_spill] sm:$0xff] %v9015_v14  ;;  %7183 = vset.pattern.permute.xlu1 %v13708_v47 }
 0x290   : > { %2437 = vperm.xlu1 %7183, %v8792_v13  }
 0x293   : > { %v9021_v38 = vpop.permute.xlu1 %2305 }
 0x294   : > { %13745 = vst [vmem:[#allocation51_spill] sm:$0xff] %v9021_v38  ;;  %7184 = vset.pattern.permute.xlu1 %v13031_v25 }
 0x295   : > { %2881 = vperm.xlu1 %7184, %v8925_v51  }
 0x298   : > { %v9027_v26 = vpop.permute.xlu1 %2749 }
 0x299   : > { %13747 = vst [vmem:[#allocation53_spill] sm:$0xff] %v9027_v26  ;;  %7185 = vset.pattern.permute.xlu1 %v13708_v47 }
 0x29a   : > { %2441 = vperm.xlu1 %7185, %v8934_v23   ;;  %v7274_v23 = vld [vmem:[%s7882_s1 + $0x8] sm:$0xff] }
 0x29d   : > { %v9033_v63 = vpop.permute.xlu1 %2309 }
 0x29e   : > { %13749 = vst [vmem:[#allocation55_spill] sm:$0xff] %v9033_v63  ;;  %2445 = vperm.xlu1 %7185, %v8938_v40  }
 0x2a1   : > { %v9036_v13 = vpop.permute.xlu1 %2313 }
 0x2a2   : > { %13750 = vst [vmem:[#allocation56_spill] sm:$0xff] %v9036_v13  ;;  %7186 = vset.pattern.permute.xlu1 %v13031_v25  ;;  %v9078_v25 = vpop.permute.xlu0 %2333 }
 0x2a3   : > { %2893 = vperm.xlu1 %7186, %v8786_v19   ;;  %13762 = vst [vmem:[#allocation68_spill] sm:$0xff] %v9078_v25 }
 0x2a6   : > { %v9042_v61 = vpop.permute.xlu1 %2761 }
 0x2a7   : > { %13752 = vst [vmem:[#allocation58_spill] sm:$0xff] %v9042_v61  ;;  %7188 = vset.pattern.permute.xlu1 %v13676_v50 }
 0x2a8   : > { %2072 = vperm.xlu1 %7188, %v8952_v52  }
 0x2ab   : > { %v9048_v31 = vpop.permute.xlu1 %2421 }
 0x2ac   : > { %13754 = vst [vmem:[#allocation60_spill] sm:$0xff] %v9048_v31  ;;  %7189 = vset.pattern.permute.xlu1 %v13035_v9 }
 0x2ad   : > { %2549 = vperm.xlu1 %7189, %v9051_v0  }
 0x2b0   : > { %v9056_v19 = vpop.permute.xlu1 %2865 }
 0x2b1   : > { %13756 = vst [vmem:[#allocation62_spill] sm:$0xff] %v9056_v19  ;;  %7190 = vset.pattern.permute.xlu1 %v13676_v50 }
 0x2b2   : > { %2076 = vperm.xlu1 %7190, %v9059_v32   ;;  %v6605_v16 = vpop.f32.mrf.mxu1 }
 0x2b4   : > { %v1718_v15 = vpop.f32.mrf.mxu1 }
 0x2b5   : > { %v9064_v57 = vpop.permute.xlu1 %2425  ;;  %v9067_v56 = vadd.f32 %v7273_v5, %v1718_v15  ;;  %v7275_v15 = vld [vmem:[%s7882_s1 + $0x10] sm:$0xff] }
 0x2b6   : > { %13758 = vst [vmem:[#allocation64_spill] sm:$0xff] %v9064_v57  ;;  %2080 = vperm.xlu1 %7190, %v8997_v20   ;;  %v6606_v55 = vpop.f32.mrf.mxu1  ;;  %v9081_v5 = vadd.f32 %v7275_v15, %v6605_v16  ;;  %v9096_v16 = vpop.permute.xlu0 %2405  ;;  %v7277_v57 = vld [vmem:[%s7882_s1 + $0x20] sm:$0xff] }
 0x2b7   : > { %13759 = vst [vmem:[#allocation65_spill] sm:$0xff] %v9067_v56  ;;  %6651 = vmatprep.mubr.f32.mxu0 %v9067_v56  ;;  %6707 = vmatprep.mubr.f32.mxu1 %v9067_v56  ;;  %13766 = vst [vmem:[#allocation72_spill] sm:$0xff] %v9096_v16 }
 0x2b8   : > { %v1721_v50 = vpop.f32.mrf.mxu1  ;;  %13763 = vst [vmem:[#allocation69_spill] sm:$0xff] %v9081_v5 }
 0x2b9   : > { %v9072_v51 = vpop.permute.xlu1 %2429  ;;  %v9075_v4 = vadd.f32 %v7274_v23, %v1721_v50  ;;  %v9089_v50 = vadd.f32 %v7276_v28, %v6606_v55 }
 0x2ba   : > { %13760 = vst [vmem:[#allocation66_spill] sm:$0xff] %v9072_v51  ;;  %7191 = vset.pattern.permute.xlu1 %v13035_v9  ;;  %v9103_v28 = vpop.permute.xlu0 %2417 }
 0x2bb   : > { %13761 = vst [vmem:[#allocation67_spill] sm:$0xff] %v9075_v4  ;;  %2561 = vperm.xlu1 %7191, %v8938_v40   ;;  %6652 = vmatmul.mubr.f32.vlgmr.msra.gmra.mxu0 %v9075_v4  ;;  %13764 = vst [vmem:[#allocation70_spill] sm:$0xff] %v9089_v50 }
 0x2bc   : > { %6708 = vmatmul.mubr.f32.vlgmr.msra.gmra.mxu1 %v9075_v4  ;;  %6654 = vmatprep.mubr.f32.mxu0 %v9081_v5  ;;  %13768 = vst [vmem:[#allocation74_spill] sm:$0xff] %v9103_v28  ;;  %v7278_v28 = vld [vmem:[%s7882_s1 + $0x28] sm:$0xff] }
 0x2bd   : > { %6710 = vmatprep.mubr.f32.mxu1 %v9081_v5 }
 0x2be   : > { %v9091_v23 = vpop.permute.xlu1 %2877  ;;  %v9109_v9 = vpop.permute.xlu0 %2433 }
 0x2bf   : > { %13765 = vst [vmem:[#allocation71_spill] sm:$0xff] %v9091_v23  ;;  %7193 = vset.pattern.permute.xlu1 %v13682_v3  ;;  %6655 = vmatmul.mubr.f32.gmra.mxu0 %v9089_v50  ;;  %13770 = vst [vmem:[#allocation76_spill] sm:$0xff] %v9109_v9  ;;  %v13777_v9 = vmov 7   ;;  %v7282_v23 = vld [vmem:[%s7882_s1 + $0x48] sm:$0xff] }
 0x2c0   : > { %2188 = vperm.xlu1 %7193, %v8952_v52   ;;  %6711 = vmatmul.mubr.f32.gmra.mxu1 %v9089_v50 }
 0x2c2   : > { %v9117_v4 = vpop.permute.xlu0 %2449 }
 0x2c3   : > { %v9099_v15 = vpop.permute.xlu1 %2056  ;;  %13773 = vst [vmem:[#allocation79_spill] sm:$0xff] %v9117_v4 }
 0x2c4   : > { %13767 = vst [vmem:[#allocation73_spill] sm:$0xff] %v9099_v15  ;;  %7194 = vset.pattern.permute.xlu1 %v13046_v53 }
 0x2c5   : > { %2665 = vperm.xlu1 %7194, %v9051_v0  }
 0x2c8   : > { %v9105_v55 = vpop.permute.xlu1 %2533 }
 0x2c9   : > { %13769 = vst [vmem:[#allocation75_spill] sm:$0xff] %v9105_v55  ;;  %7195 = vset.pattern.permute.xlu1 %v13682_v3  ;;  %v9124_v3 = vpop.permute.xlu0 %2869 }
 0x2ca   : > { %2192 = vperm.xlu1 %7195, %v9059_v32   ;;  %13775 = vst [vmem:[#allocation81_spill] sm:$0xff] %v9124_v3 }
 0x2cd   : > { %v9111_v5 = vpop.permute.xlu1 %2060  ;;  %v9130_v4 = vpop.permute.xlu0 %2873 }
 0x2ce   : > { %13771 = vst [vmem:[#allocation77_spill] sm:$0xff] %v9111_v5  ;;  %2196 = vperm.xlu1 %7195, %v8997_v20   ;;  %13778 = vst [vmem:[#allocation83_spill] sm:$0xff] %v9130_v4 }
 0x2d1   : > { %v9114_v50 = vpop.permute.xlu1 %2064  ;;  %v9144_v63 = vpop.permute.xlu0 %2885 }
 0x2d2   : > { %13772 = vst [vmem:[#allocation78_spill] sm:$0xff] %v9114_v50  ;;  %7196 = vset.pattern.permute.xlu1 %v13046_v53  ;;  %13782 = vst [vmem:[#allocation87_spill] sm:$0xff] %v9144_v63 }
 0x2d3   : > { %2677 = vperm.xlu1 %7196, %v8938_v40  }
 0x2d6   : > { %v9120_v56 = vpop.permute.xlu1 %2545 }
 0x2d7   : > { %13774 = vst [vmem:[#allocation80_spill] sm:$0xff] %v9120_v56  ;;  %7198 = vset.pattern.permute.xlu1 %v13697_v45 }
 0x2d8   : > { %2337 = vperm.xlu1 %7198, %v8952_v52  }
 0x2da   : > { %v6609_v53 = vpop.f32.mrf.mxu1 }
 0x2db   : > { %v9126_v25 = vpop.permute.xlu1 %2172 }
 0x2dc   : > { %13776 = vst [vmem:[#allocation82_spill] sm:$0xff] %v9126_v25  ;;  %7199 = vset.pattern.permute.xlu1 %v13777_v9  ;;  %v1734_v51 = vpop.f32.mrf.mxu1  ;;  %v7227_v25 = vld [vmem:[#allocation14 + $0x68] sm:$0xff]  }
 0x2dd   : > { %2781 = vperm.xlu1 %7199, %v9051_v0   ;;  %v9133_v56 = vadd.f32 %v7277_v57, %v1734_v51  ;;  %v7279_v57 = vld [vmem:[%s7882_s1 + $0x30] sm:$0xff] }
 0x2de   : > { %v6610_v55 = vpop.f32.mrf.mxu1  ;;  %v9147_v51 = vadd.f32 %v7279_v57, %v6609_v53  ;;  %v9163_v53 = vpop.permute.xlu0 %2889 }
 0x2df   : > { %13779 = vst [vmem:[#allocation84_spill] sm:$0xff] %v9133_v56  ;;  %6657 = vmatprep.mubr.f32.mxu0 %v9133_v56  ;;  %6713 = vmatprep.mubr.f32.mxu1 %v9133_v56  ;;  %13787 = vst [vmem:[#allocation92_spill] sm:$0xff] %v9163_v53 }
 0x2e0   : > { %v9135_v35 = vpop.permute.xlu1 %2649  ;;  %v1737_v31 = vpop.f32.mrf.mxu1  ;;  %13783 = vst [vmem:[#allocation88_spill] sm:$0xff] %v9147_v51 }
 0x2e1   : > { %13780 = vst [vmem:[#allocation85_spill] sm:$0xff] %v9135_v35  ;;  %7200 = vset.pattern.permute.xlu1 %v13697_v45  ;;  %v9142_v13 = vadd.f32 %v7278_v28, %v1737_v31  ;;  %v7280_v45 = vld [vmem:[%s7882_s1 + $0x38] sm:$0xff] }
 0x2e2   : > { %2341 = vperm.xlu1 %7200, %v9059_v32   ;;  %v9156_v56 = vadd.f32 %v7280_v45, %v6610_v55  ;;  %v9171_v55 = vpop.permute.xlu0 %2901 }
 0x2e3   : > { %13781 = vst [vmem:[#allocation86_spill] sm:$0xff] %v9142_v13  ;;  %6658 = vmatmul.mubr.f32.gmra.mxu0 %v9142_v13  ;;  %6714 = vmatmul.mubr.f32.gmra.mxu1 %v9142_v13  ;;  %13789 = vst [vmem:[#allocation94_spill] sm:$0xff] %v9171_v55  ;;  %v7281_v13 = vld [vmem:[%s7882_s1 + $0x40] sm:$0xff] }
 0x2e4   : > { %6660 = vmatprep.mubr.f32.mxu0 %v9147_v51  ;;  %13785 = vst [vmem:[#allocation90_spill] sm:$0xff] %v9156_v56  ;;  %6716 = vmatprep.mubr.f32.mxu1 %v9147_v51  ;;  %v13791_v51 = vmov 8  }
 0x2e5   : > { %v9149_v35 = vpop.permute.xlu1 %2176 }
 0x2e6   : > { %13784 = vst [vmem:[#allocation89_spill] sm:$0xff] %v9149_v35  ;;  %2345 = vperm.xlu1 %7200, %v8997_v20   ;;  %v7228_v35 = vld [vmem:[#allocation14 + $0x28] sm:$0xff]  }
 0x2e7   : > { %6661 = vmatmul.mubr.f32.gmra.mxu0 %v9156_v56  ;;  %6717 = vmatmul.mubr.f32.gmra.mxu1 %v9156_v56 }
 0x2e9   : > { %v9159_v31 = vpop.permute.xlu1 %2180 }
 0x2ea   : > { %13786 = vst [vmem:[#allocation91_spill] sm:$0xff] %v9159_v31  ;;  %7201 = vset.pattern.permute.xlu1 %v13777_v9  ;;  %v13865_v31 = vld [vmem:[#allocation38_spill] sm:$0xff] }
 0x2eb   : > { %2793 = vperm.xlu1 %7201, %v8938_v40  }
 0x2ee   : > { %v9167_v28 = vpop.permute.xlu1 %2661 }
 0x2ef   : > { %13788 = vst [vmem:[#allocation93_spill] sm:$0xff] %v9167_v28  ;;  %7203 = vset.pattern.permute.xlu1 %v13708_v47  ;;  %v9180_v28 = vpop.permute.xlu0 %2905 }
 0x2f0   : > { %2453 = vperm.xlu1 %7203, %v8952_v52   ;;  %v6613_v57 = vpop.f32.mrf.mxu1  ;;  %13793 = vst [vmem:[#allocation97_spill] sm:$0xff] %v9180_v28 }
 0x2f2   : > { %v1750_v56 = vpop.f32.mrf.mxu1 }
 0x2f3   : > { %v9173_v45 = vpop.permute.xlu1 %2321  ;;  %v9178_v53 = vadd.f32 %v7281_v13, %v1750_v56  ;;  %v7283_v13 = vld [vmem:[%s7882_s1 + $0x50] sm:$0xff] }
 0x2f4   : > { %13790 = vst [vmem:[#allocation95_spill] sm:$0xff] %v9173_v45  ;;  %7204 = vset.pattern.permute.xlu1 %v13791_v51  ;;  %v6614_v63 = vpop.f32.mrf.mxu1  ;;  %v9192_v56 = vadd.f32 %v7283_v13, %v6613_v57  ;;  %v7285_v57 = vld [vmem:[%s7882_s1 + $0x60] sm:$0xff] }
 0x2f5   : > { %2897 = vperm.xlu1 %7204, %v9051_v0   ;;  %13792 = vst [vmem:[#allocation96_spill] sm:$0xff] %v9178_v53  ;;  %6663 = vmatprep.mubr.f32.mxu0 %v9178_v53 }
 0x2f6   : > { %6719 = vmatprep.mubr.f32.mxu1 %v9178_v53  ;;  %v1753_v45 = vpop.f32.mrf.mxu1  ;;  %13796 = vst [vmem:[#allocation100_spill] sm:$0xff] %v9192_v56  ;;  %v9196_v53 = vpop.permute.xlu0 %2521 }
 0x2f7   : > { %v9188_v0 = vadd.f32 %v7282_v23, %v1753_v45  ;;  %13797 = vst [vmem:[#allocation101_spill] sm:$0xff] %v9196_v53  ;;  %v7284_v23 = vld [vmem:[%s7882_s1 + $0x58] sm:$0xff] }
 0x2f8   : > { %v9184_v55 = vpop.permute.xlu1 %2765  ;;  %v6617_v28 = vpop.f32.mrf.mxu1  ;;  %v9203_v45 = vadd.f32 %v7284_v23, %v6614_v63  ;;  %v7286_v63 = vld [vmem:[%s7882_s1 + $0x68] sm:$0xff] }
 0x2f9   : > { %13794 = vst [vmem:[#allocation98_spill] sm:$0xff] %v9184_v55  ;;  %7205 = vset.pattern.permute.xlu1 %v13708_v47  ;;  %13795 = vst [vmem:[#allocation99_spill] sm:$0xff] %v9188_v0  ;;  %6664 = vmatmul.mubr.f32.gmra.mxu0 %v9188_v0 }
 0x2fa   : > { %2457 = vperm.xlu1 %7205, %v9059_v32   ;;  %6720 = vmatmul.mubr.f32.gmra.mxu1 %v9188_v0  ;;  %v1766_v55 = vpop.f32.mrf.mxu1  ;;  %13799 = vst [vmem:[#allocation103_spill] sm:$0xff] %v9203_v45 }
 0x2fb   : > { %6666 = vmatprep.mubr.f32.mxu0 %v9192_v56  ;;  %6722 = vmatprep.mubr.f32.mxu1 %v9192_v56  ;;  %v9206_v13 = vadd.f32 %v7285_v57, %v1766_v55  ;;  %v7287_v55 = vld [vmem:[%s7882_s1 + $0x70] sm:$0xff] }
 0x2fc   : > { %v6618_v0 = vpop.f32.mrf.mxu1  ;;  %v9220_v57 = vadd.f32 %v7287_v55, %v6617_v28 }
 0x2fd   : > { %v9200_v47 = vpop.permute.xlu1 %2325  ;;  %13800 = vst [vmem:[#allocation104_spill] sm:$0xff] %v9206_v13  ;;  %6667 = vmatmul.mubr.f32.gmra.mxu0 %v9203_v45 }
 0x2fe   : > { %13798 = vst [vmem:[#allocation102_spill] sm:$0xff] %v9200_v47  ;;  %2461 = vperm.xlu1 %7205, %v8997_v20   ;;  %6723 = vmatmul.mubr.f32.gmra.mxu1 %v9203_v45  ;;  %v1769_v4 = vpop.f32.mrf.mxu1  ;;  %13803 = vst [vmem:[#allocation107_spill] sm:$0xff] %v9220_v57  ;;  %v9223_v47 = vpop.permute.xlu0 %2525  ;;  %v13807_v45 = vmov 5  }
 0x2ff   : > { %6669 = vmatprep.mubr.f32.mxu0 %v9206_v13  ;;  %6725 = vmatprep.mubr.f32.mxu1 %v9206_v13  ;;  %v9216_v23 = vadd.f32 %v7286_v63, %v1769_v4  ;;  %13804 = vst [vmem:[#allocation108_spill] sm:$0xff] %v9223_v47  ;;  %v7288_v13 = vld [vmem:[%s7882_s1 + $0x78] sm:$0xff]  ;;  %s5987_s1 = sshll.u32 %s12869_s12, 4  ;;  %s12936_s1 = int_to_ptr.vmem [resolvable:$true] %s5987_s1 }
 0x300   : > { %v9230_v4 = vadd.f32 %v7288_v13, %v6618_v0  ;;  %v13811_v0 = vmov 6   ;;  %s7507_s26 = scalar_lea.vmem %s12936_s1, 2048  ;;  %p7514_p1 = scmp.lt.s32.totalorder %s12936_s1, %s7512_s15 }
 0x301   : > { %v9213_v56 = vpop.permute.xlu1 %2329  ;;  %13802 = vst [vmem:[#allocation106_spill] sm:$0xff] %v9216_v23  ;;  %6670 = vmatmul.mubr.f32.gmra.mxu0 %v9216_v23  ;;  %p7508_p10 = scmp.ne.s32.totalorder %s12936_s1, %s7507_s26  ;;  %p7515_p3 = scmp.lt.s32.totalorder %s7513_s25, %s7507_s26 }
 0x302   : > { %13801 = vst [vmem:[#allocation105_spill] sm:$0xff] %v9213_v56  ;;  %7207 = vset.pattern.permute.xlu1 %v13791_v51  ;;  %6726 = vmatmul.mubr.f32.gmra.mxu1 %v9216_v23  ;;  %13805 = vst [vmem:[#allocation109_spill] sm:$0xff] %v9230_v4 }
 0x303   : > { %2909 = vperm.xlu1 %7207, %v8938_v40   ;;  %6672 = vmatprep.mubr.f32.mxu0 %v9220_v57  ;;  %v9238_v40 = vpop.permute.xlu0 %2537  ;;  %p7509_p12 = pnand %p7508_p10, %p14929_p8  ;;  %p7516_p4 = por %p7515_p3, %p7514_p1 }
 0x304   : > { %6728 = vmatprep.mubr.f32.mxu1 %v9220_v57  ;;  %13808 = vst [vmem:[#allocation111_spill] sm:$0xff] %v9238_v40 }
 0x305   : > { %6673 = vmatmul.mubr.f32.gmra.mxu0 %v9230_v4  ;;  %p7510_p13 = pneg %p7509_p12 }
 0x306   : > { %v9232_v63 = vpop.permute.xlu1 %2777  ;;  %6729 = vmatmul.mubr.f32.gmra.mxu1 %v9230_v4 }
 0x307   : > { %13806 = vst [vmem:[#allocation110_spill] sm:$0xff] %v9232_v63  ;;  %7208 = vset.pattern.permute.xlu1 %v13807_v45  ;;  %v9243_v55 = vpop.permute.xlu0 %2541  ;;  %p7517_p9 = pnand %p7516_p4, %p7510_p13 }
 0x308   : > { %2569 = vperm.xlu1 %7208, %v8952_v52   ;;  %13810 = vst [vmem:[#allocation113_spill] sm:$0xff] %v9243_v55 }
 0x30b   : > { %v9240_v28 = vpop.permute.xlu1 %2437  ;;  %v9252_v57 = vpop.permute.xlu0 %2553 }
 0x30c   : > { %13809 = vst [vmem:[#allocation112_spill] sm:$0xff] %v9240_v28  ;;  %2573 = vperm.xlu1 %7208, %v9059_v32   ;;  %13814 = vst [vmem:[#allocation116_spill] sm:$0xff] %v9252_v57 }
 0x30f   : > { %v9257_v23 = vpop.permute.xlu0 %2557 }
 0x310   : > { %7210 = vset.pattern.permute.xlu1 %v13811_v0  ;;  %v9246_v13 = vpop.permute.xlu1 %2881  ;;  %13816 = vst [vmem:[#allocation118_spill] sm:$0xff] %v9257_v23 }
 0x311   : > { %13812 = vst [vmem:[#allocation114_spill] sm:$0xff] %v9246_v13  ;;  %2681 = vperm.xlu1 %7210, %v8858_v49  }
 0x313   : > { %v9263_v28 = vpop.permute.xlu0 %2565 }
 0x314   : > { %13818 = vst [vmem:[#allocation120_spill] sm:$0xff] %v9263_v28 }
 0x315   : > { %2689 = vperm.xlu1 %7210, %v9059_v32   ;;  %v9250_v45 = vpop.permute.xlu1 %2441 }
 0x316   : > { %13813 = vst [vmem:[#allocation115_spill] sm:$0xff] %v9250_v45 }
 0x317   : > { %v9270_v45 = vpop.permute.xlu0 %2577 }
 0x318   : > { %13820 = vst [vmem:[#allocation122_spill] sm:$0xff] %v9270_v45 }
 0x319   : > { %2693 = vperm.xlu1 %7210, %v8997_v20   ;;  %v9255_v4 = vpop.permute.xlu1 %2445 }
 0x31a   : > { %13815 = vst [vmem:[#allocation117_spill] sm:$0xff] %v9255_v4 }
 0x31d   : > { %7212 = vset.pattern.permute.xlu1 %v13777_v9 }
 0x31e   : > { %2801 = vperm.xlu1 %7212, %v8952_v52   ;;  %v9261_v0 = vpop.permute.xlu1 %2893  ;;  %v9277_v52 = vpop.permute.xlu0 %2637 }
 0x31f   : > { %13817 = vst [vmem:[#allocation119_spill] sm:$0xff] %v9261_v0  ;;  %13823 = vst [vmem:[#allocation125_spill] sm:$0xff] %v9277_v52 }
 0x322   : > { %2805 = vperm.xlu1 %7212, %v9059_v32   ;;  %v9282_v23 = vpop.permute.xlu0 %2641 }
 0x323   : > { %v9266_v56 = vpop.permute.xlu1 %2072  ;;  %13825 = vst [vmem:[#allocation127_spill] sm:$0xff] %v9282_v23 }
 0x324   : > { %13819 = vst [vmem:[#allocation121_spill] sm:$0xff] %v9266_v56 }
 0x326   : > { %7213 = vset.pattern.permute.xlu1 %v13791_v51  ;;  %v9286_v51 = vpop.permute.xlu0 %2653 }
 0x327   : > { %2913 = vperm.xlu1 %7213, %v8858_v49   ;;  %13827 = vst [vmem:[#allocation129_spill] sm:$0xff] %v9286_v51 }
 0x328   : > { %v9272_v4 = vpop.permute.xlu1 %2549 }
 0x329   : > { %13821 = vst [vmem:[#allocation123_spill] sm:$0xff] %v9272_v4 }
 0x32a   : > { %v9290_v45 = vpop.permute.xlu0 %2657 }
 0x32b   : > { %2921 = vperm.xlu1 %7213, %v9059_v32   ;;  %13829 = vst [vmem:[#allocation131_spill] sm:$0xff] %v9290_v45 }
 0x32d   : > { %v9275_v9 = vpop.permute.xlu1 %2076 }
 0x32e   : > { %13822 = vst [vmem:[#allocation124_spill] sm:$0xff] %v9275_v9  ;;  %v9296_v63 = vpop.permute.xlu0 %2669 }
 0x32f   : > { %2925 = vperm.xlu1 %7213, %v8997_v20   ;;  %13832 = vst [vmem:[#allocation134_spill] sm:$0xff] %v9296_v63 }
 0x331   : > { %v9280_v28 = vpop.permute.xlu1 %2080 }
 0x332   : > { %13824 = vst [vmem:[#allocation126_spill] sm:$0xff] %v9280_v28  ;;  %v9300_v20 = vpop.permute.xlu0 %2673 }
 0x333   : > { %13834 = vst [vmem:[#allocation136_spill] sm:$0xff] %v9300_v20 }
 0x336   : > { %v9284_v57 = vpop.permute.xlu1 %2561  ;;  %v9304_v55 = vpop.permute.xlu0 %2685 }
 0x337   : > { %13826 = vst [vmem:[#allocation128_spill] sm:$0xff] %v9284_v57  ;;  %13836 = vst [vmem:[#allocation138_spill] sm:$0xff] %v9304_v55  ;;  %v7224_v55 = vld [vmem:[#allocation14 + $0x38] sm:$0xff]  }
 0x338   : > { %6763 = vmatprep.subr.bf16.mxu1 %v7224_v55 }
 0x339   : > { %6764 = vmatpush3.bf16.msra.mxu1 %v7224_v55  ;;  %v1965_v55 = vld [vmem:[#allocation13] sm:$0xff] }
 0x33a   : > { %v9308_v51 = vpop.permute.xlu0 %2753  ;;  %v9391_v5 = vrot.slane %v1965_v55, %v13865_v31  ;;  %v9413_v27 = vrot.slane %v1965_v55, %v9370_v24 }
 0x33b   : > { %v9288_v49 = vpop.permute.xlu1 %2188  ;;  %13838 = vst [vmem:[#allocation140_spill] sm:$0xff] %v9308_v51 }
 0x33c   : > { %13828 = vst [vmem:[#allocation130_spill] sm:$0xff] %v9288_v49 }
 0x340   : > { %v9292_v0 = vpop.permute.xlu1 %2665 }
 0x341   : > { %13830 = vst [vmem:[#allocation132_spill] sm:$0xff] %v9292_v0  ;;  %v9314_v0 = vpop.permute.xlu0 %2757 }
 0x342   : > { %13841 = vst [vmem:[#allocation143_spill] sm:$0xff] %v9314_v0 }
 0x345   : > { %v9294_v32 = vpop.permute.xlu1 %2192  ;;  %v9318_v63 = vpop.permute.xlu0 %2769 }
 0x346   : > { %13831 = vst [vmem:[#allocation133_spill] sm:$0xff] %v9294_v32  ;;  %13843 = vst [vmem:[#allocation145_spill] sm:$0xff] %v9318_v63 }
 0x349   : > { %v9298_v4 = vpop.permute.xlu1 %2196  ;;  %v9322_v20 = vpop.permute.xlu0 %2773 }
 0x34a   : > { %13833 = vst [vmem:[#allocation135_spill] sm:$0xff] %v9298_v4  ;;  %13845 = vst [vmem:[#allocation147_spill] sm:$0xff] %v9322_v20 }
 0x34e   : > { %v9302_v13 = vpop.permute.xlu1 %2677 }
 0x34f   : > { %13835 = vst [vmem:[#allocation137_spill] sm:$0xff] %v9302_v13  ;;  %v7223_v13 = vld [vmem:[#allocation14 + $0x78] sm:$0xff]  }
 0x350   : > { %6731 = vmatprep.subr.bf16.mxu0 %v7223_v13 }
 0x351   : > { %6732 = vmatpush3.bf16.msra.mxu0 %v7223_v13  ;;  %v9338_v13 = vsub.s32 1, %v8176_v39 }
 0x353   : > { %v9306_v57 = vpop.permute.xlu1 %2337  ;;  %13852 = vst [vmem:[#allocation154_spill] sm:$0xff] %v9338_v13  ;;  %v9367_v4 = vrot.slane %v1965_v55, %v9338_v13 }
 0x354   : > { %13837 = vst [vmem:[#allocation139_spill] sm:$0xff] %v9306_v57  ;;  %v9326_v57 = vpop.permute.xlu0 %2785 }
 0x355   : > { %13847 = vst [vmem:[#allocation149_spill] sm:$0xff] %v9326_v57  ;;  %v9341_v57 = vsub.s32 7, %v8176_v39 }
 0x357   : > { %13853 = vst [vmem:[#allocation155_spill] sm:$0xff] %v9341_v57  ;;  %v9379_v21 = vrot.slane %v1965_v55, %v9341_v57 }
 0x358   : > { %v9310_v40 = vpop.permute.xlu1 %2781 }
 0x359   : > { %13839 = vst [vmem:[#allocation141_spill] sm:$0xff] %v9310_v40  ;;  %13863 = vst [vmem:[#allocation165_spill] sm:$0xff] %v9379_v21 }
 0x35d   : > { %v9312_v45 = vpop.permute.xlu1 %2341 }
 0x35e   : > { %13840 = vst [vmem:[#allocation142_spill] sm:$0xff] %v9312_v45  ;;  %v7225_v45 = vld [vmem:[#allocation14 + $0x70] sm:$0xff]  }
 0x35f   : > { %6733 = vmatprep.subr.bf16.mxu0 %v7225_v45 }
 0x360   : > { %6734 = vmatpush3.bf16.msra.mxu0 %v7225_v45  ;;  %v9353_v45 = vld [vmem:[%s12989_s7 + $0x1] ss:$0 sm:$0xff] }
 0x361   : > { %v9316_v18 = vpop.permute.xlu1 %2345  ;;  %13856 = vst [vmem:[#allocation158_spill] sm:$0xff] %v9353_v45  ;;  %6735 = vmatprep.subr.bf16.mxu0 %v7227_v25 }
 0x362   : > { %13842 = vst [vmem:[#allocation144_spill] sm:$0xff] %v9316_v18  ;;  %v7226_v18 = vld [vmem:[#allocation14 + $0x30] sm:$0xff]  }
 0x363   : > { %6765 = vmatprep.subr.bf16.mxu1 %v7226_v18 }
 0x364   : > { %6766 = vmatpush3.bf16.msra.mxu1 %v7226_v18  ;;  %v9348_v18 = vld [vmem:[%s12989_s7] ss:$0 sm:$0xff]  ;;  %6736 = vmatpush3.bf16.msra.mxu0 %v7227_v25 }
 0x365   : > { %13855 = vst [vmem:[#allocation157_spill] sm:$0xff] %v9348_v18  ;;  %6767 = vmatprep.subr.bf16.mxu1 %v7228_v35  ;;  %v7231_v25 = vld [vmem:[#allocation14 + $0x58] sm:$0xff]  }
 0x366   : > { %v9320_v1 = vpop.permute.xlu1 %2793 }
 0x367   : > { %13844 = vst [vmem:[#allocation146_spill] sm:$0xff] %v9320_v1  ;;  %v9330_v1 = vpop.permute.xlu0 %2789 }
 0x368   : > { %13849 = vst [vmem:[#allocation151_spill] sm:$0xff] %v9330_v1  ;;  %v9356_v1 = vsub.s32 3, %v8176_v39  ;;  %6768 = vmatpush3.bf16.msra.mxu1 %v7228_v35  ;;  %v7232_v35 = vld [vmem:[#allocation14 + $0x18] sm:$0xff]  }
 0x369   : > { %6769 = vmatprep.subr.bf16.mxu1 %v7230_v44 }
 0x36a   : > { %13857 = vst [vmem:[#allocation159_spill] sm:$0xff] %v9356_v1  ;;  %v9397_v15 = vrot.slane %v1965_v55, %v9356_v1 }
 0x36b   : > { %v9324_v28 = vpop.permute.xlu1 %2453  ;;  %v9361_v22 = vpop.permute.xlu0 %2797 }
 0x36c   : > { %13846 = vst [vmem:[#allocation148_spill] sm:$0xff] %v9324_v28  ;;  %v9335_v28 = vsub.s32 4, %v8176_v39  ;;  %13859 = vst [vmem:[#allocation161_spill] sm:$0xff] %v9361_v22  ;;  %6770 = vmatpush3.bf16.msra.mxu1 %v7230_v44 }
 0x36d   : > { %6771 = vmatprep.subr.bf16.mxu1 %v7232_v35 }
 0x36e   : > { %13851 = vst [vmem:[#allocation153_spill] sm:$0xff] %v9335_v28 }
 0x36f   : > { %v9443_v61 = vpop.permute.xlu0 %2809 }
 0x370   : > { %v9328_v40 = vpop.permute.xlu1 %2897  ;;  %13871 = vst [vmem:[#allocation172_spill] sm:$0xff] %v9443_v61  ;;  %6772 = vmatpush3.bf16.msra.mxu1 %v7232_v35 }
 0x371   : > { %13848 = vst [vmem:[#allocation150_spill] sm:$0xff] %v9328_v40  ;;  %v3227_v40 = vld [vmem:[#allocation13 + $0x8] sm:$0xff] }
 0x372   : > { %v9373_v56 = vrot.slane %v3227_v40, %v9335_v28  ;;  %v9376_v49 = vrot.slane %v3227_v40, %v9338_v13  ;;  %v9382_v22 = vrot.slane %v3227_v40, %v9341_v57  ;;  %v9400_v57 = vrot.slane %v3227_v40, %v13865_v31 }
 0x373   : > { %v9419_v31 = vrot.slane %v3227_v40, %v9370_v24 }
 0x374   : > { %13862 = vst [vmem:[#allocation164_spill] sm:$0xff] %v9373_v56  ;;  %13864 = vst [vmem:[#allocation166_spill] sm:$0xff] %v9382_v22 }
 0x375   : > { %v9332_v20 = vpop.permute.xlu1 %2457 }
 0x376   : > { %13850 = vst [vmem:[#allocation152_spill] sm:$0xff] %v9332_v20  ;;  %v9359_v20 = vsub.s32 2, %v8176_v39 }
 0x378   : > { %13858 = vst [vmem:[#allocation160_spill] sm:$0xff] %v9359_v20  ;;  %v9416_v48 = vrot.slane %v3227_v40, %v9359_v20 }
 0x379   : > { %v9343_v63 = vpop.permute.xlu1 %2461 }
 0x37a   : > { %13854 = vst [vmem:[#allocation156_spill] sm:$0xff] %v9343_v63  ;;  %v9364_v63 = vrot.slane %v1965_v55, %v9335_v28  ;;  %v9394_v28 = vsub.s32 6, %v8176_v39 }
 0x37b   : > { %v6653_v43 = vpop.f32.mrf.mxu0 }
 0x37c   : > { %13860 = vst [vmem:[#allocation162_spill] sm:$0xff] %v9364_v63  ;;  %v6709_v9 = vpop.f32.mrf.mxu1  ;;  %v9385_v32 = vadd.f32 %v6653_v43, %v9348_v18  ;;  %13866 = vst [vmem:[#allocation167_spill] sm:$0xff] %v9394_v28  ;;  %v9403_v43 = vrot.slane %v3227_v40, %v9356_v1  ;;  %v7229_v1 = vld [vmem:[#allocation14 + $0x60] sm:$0xff]   ;;  %v9434_v60 = vrot.slane %v3227_v40, %v9394_v28 }
 0x37d   : > { %v9388_v50 = vadd.f32 %v6709_v9, %v9353_v45  ;;  %v1886_v13 = vpop.f32.mrf.mxu0  ;;  %v9406_v9 = vrot.slane %v1965_v55, %v9359_v20  ;;  %6737 = vmatprep.subr.bf16.mxu0 %v7229_v1 }
 0x37e   : > { %v3148_v34 = vpop.f32.mrf.mxu1  ;;  %v2201_v30 = vmul.f32 %v8915_v17, %v9385_v32  ;;  %v9410_v10 = vpop.permute.xlu1 %2909  ;;  %v9424_v14 = vadd.f32 %v9348_v18, %v1886_v13  ;;  %v9431_v20 = vmul.f32 %v9364_v63, %v9385_v32  ;;  %13869 = vst [vmem:[#allocation170_spill] sm:$0xff] %v9434_v60  ;;  %6738 = vmatpush3.bf16.msra.mxu0 %v7229_v1 }
 0x37f   : > { %13867 = vst [vmem:[#allocation168_spill] sm:$0xff] %v9410_v10  ;;  %v3335_v41 = vmul.f32 %v9388_v50, %v8915_v17  ;;  %v9427_v38 = vadd.f32 %v9353_v45, %v3148_v34  ;;  %v6656_v10 = vpop.f32.mrf.mxu0  ;;  %v9437_v17 = vrot.slane %v1965_v55, %v9394_v28  ;;  %v9453_v55 = vmul.f32 %v9373_v56, %v9388_v50 }
 0x380   : > { %13868 = vst [vmem:[#allocation169_spill] sm:$0xff] %v9431_v20  ;;  %v6712_v24 = vpop.f32.mrf.mxu1  ;;  %v2200_v36 = vmul.f32 %v9012_v11, %v9424_v14  ;;  %v9446_v20 = vadd.f32 %v6656_v10, %v9348_v18  ;;  %v9449_v40 = vmul.f32 %v9367_v4, %v2201_v30  ;;  %v9464_v33 = vmul.f32 %v9364_v63, %v9424_v14 }
 0x381   : > { %13870 = vst [vmem:[#allocation171_spill] sm:$0xff] %v9437_v17  ;;  %13872 = vst [vmem:[#allocation173_spill] sm:$0xff] %v9453_v55  ;;  %v9460_v10 = vmul.f32 %v9376_v49, %v3335_v41  ;;  %v13875_v30 = vrot.slane %v9385_v32, 7  ;;  %v13876_v6 = vrot.slane %v9424_v14, 7  ;;  %v3334_v13 = vmul.f32 %v9427_v38, %v9012_v11  ;;  %v1896_v34 = vpop.f32.mrf.mxu0  ;;  %6739 = vmatprep.subr.bf16.mxu0 %v7231_v25 }
 0x382   : > { %13874 = vst [vmem:[#allocation175_spill] sm:$0xff] %v9464_v33  ;;  %v9478_v41 = vmul.f32 %v9373_v56, %v9427_v38  ;;  %v3640_v33 = vmul.f32 %v9427_v38, %v9443_v61  ;;  %v3158_v17 = vpop.f32.mrf.mxu1  ;;  %v2814_v11 = vmul.f32 %v9314_v0, %v9446_v20  ;;  %v13881_v19 = vrot.slane %v9388_v50, 7  ;;  %6740 = vmatpush3.bf16.msra.mxu0 %v7231_v25 }
 0x383   : > { %v9457_v28 = vpop.permute.xlu1 %2569  ;;  %v9472_v55 = vsel %vm752_vm0, %v13876_v6, %v13875_v30  ;;  %v9488_v6 = vmul.f32 %v9367_v4, %v2200_v36  ;;  %v2203_v30 = vmul.f32 %v9019_v2, %v9446_v20  ;;  %v13882_v1 = vrot.slane %v9427_v38, 7 }
 0x384   : > { %13873 = vst [vmem:[#allocation174_spill] sm:$0xff] %v9457_v28  ;;  %13877 = vst [vmem:[#allocation176_spill] sm:$0xff] %v9472_v55  ;;  %v9482_v28 = vmul.f32 %v9443_v61, %v9424_v14  ;;  %v7234_v61 = vld [vmem:[#allocation14 + $0x10] sm:$0xff]   ;;  %v9504_v44 = vadd.f32 %v6712_v24, %v9353_v45  ;;  %v9507_v3 = vadd.f32 %v9348_v18, %v1896_v34  ;;  %v7235_v18 = vld [vmem:[#allocation14 + $0x48] sm:$0xff]  }
 0x385   : > { %13878 = vst [vmem:[#allocation177_spill] sm:$0xff] %v9478_v41  ;;  %13880 = vst [vmem:[#allocation179_spill] sm:$0xff] %v9488_v6  ;;  %v9501_v36 = vsel %vm752_vm0, %v13882_v1, %v13881_v19  ;;  %v2085_v41 = vmul.f32 %v8908_v42, %v9472_v55  ;;  %v9514_v51 = vmul.f32 %v9376_v49, %v3334_v13  ;;  %6773 = vmatprep.subr.bf16.mxu1 %v7234_v61 }
 0x386   : > { %13879 = vst [vmem:[#allocation178_spill] sm:$0xff] %v9482_v28  ;;  %v7233_v28 = vld [vmem:[#allocation14 + $0x50] sm:$0xff]   ;;  %v1974_v60 = vmul.f32 %v9364_v63, %v9446_v20  ;;  %v9520_v1 = vadd.f32 %v9353_v45, %v3158_v17  ;;  %v9523_v24 = vmul.f32 %v9382_v22, %v3640_v33  ;;  %v9526_v34 = vmul.f32 %v9367_v4, %v2203_v30 }
 0x387   : > { %v9511_v6 = vpop.permute.xlu1 %2573  ;;  %13884 = vst [vmem:[#allocation181_spill] sm:$0xff] %v9514_v51  ;;  %v1973_v13 = vmul.f32 %v9364_v63, %v9507_v3  ;;  %v1989_v17 = vrot.slane %v9507_v3, 7  ;;  %v2105_v33 = vmul.f32 %v9391_v5, %v2085_v41  ;;  %v3283_v30 = vmul.f32 %v9501_v36, %v8908_v42  ;;  %6741 = vmatprep.subr.bf16.mxu0 %v7233_v28 }
 0x388   : > { %13883 = vst [vmem:[#allocation180_spill] sm:$0xff] %v9511_v6  ;;  %13885 = vst [vmem:[#allocation182_spill] sm:$0xff] %v9523_v24  ;;  %v9530_v6 = vmul.f32 %v9379_v21, %v2814_v11  ;;  %v3236_v11 = vmul.f32 %v9373_v56, %v9504_v44  ;;  %v3337_v25 = vmul.f32 %v9504_v44, %v9019_v2  ;;  %v7236_v24 = vld [vmem:[#allocation14 + $0x8] sm:$0xff]   ;;  %v13888_v41 = vrot.slane %v9446_v20, 7 }
 0x389   : > { %13886 = vst [vmem:[#allocation183_spill] sm:$0xff] %v9526_v34  ;;  %v3627_v35 = vmul.f32 %v9504_v44, %v9314_v0  ;;  %v2202_v2 = vmul.f32 %v8921_v62, %v9507_v3  ;;  %v3235_v0 = vmul.f32 %v9373_v56, %v9520_v1  ;;  %v2121_v45 = vadd.f32 %v2105_v33, %v1973_v13  ;;  %v7237_v13 = vld [vmem:[#allocation14 + $0x40] sm:$0xff]  }
 0x38a   : > { %13887 = vst [vmem:[#allocation184_spill] sm:$0xff] %v9530_v6  ;;  %v2015_v42 = vsel %vm752_vm0, %v1989_v17, %v13888_v41  ;;  %v13889_v6 = vrot.slane %v9385_v32, 7  ;;  %6742 = vmatpush3.bf16.msra.mxu0 %v7233_v28  ;;  %v3251_v21 = vrot.slane %v9520_v1, 7  ;;  %v3303_v56 = vmul.f32 %v9400_v57, %v3283_v30  ;;  %6774 = vmatpush3.bf16.msra.mxu1 %v7234_v61 }
 0x38b   : > { %6743 = vmatprep.subr.bf16.mxu0 %v7235_v18  ;;  %v9572_v19 = vmul.f32 %v9376_v49, %v3337_v25  ;;  %v3336_v28 = vmul.f32 %v9520_v1, %v8921_v62  ;;  %6775 = vmatprep.subr.bf16.mxu1 %v7236_v24  ;;  %v9579_v33 = vmul.f32 %v9382_v22, %v3627_v35  ;;  %v13894_v61 = vrot.slane %v9388_v50, 7 }
 0x38c   : > { %v9554_v51 = vsel %vm752_vm0, %v13889_v6, %v1989_v17  ;;  %v9560_v34 = vpop.permute.xlu1 %2681  ;;  %v2467_v17 = vmul.f32 %v8949_v59, %v2015_v42  ;;  %v3319_v25 = vadd.f32 %v3303_v56, %v3235_v0  ;;  %v9589_v55 = vadd.f32 %v9449_v40, %v2121_v45 }
 0x38d   : > { %13890 = vst [vmem:[#allocation185_spill] sm:$0xff] %v9554_v51  ;;  %13891 = vst [vmem:[#allocation186_spill] sm:$0xff] %v9560_v34  ;;  %v2086_v41 = vmul.f32 %v8977_v7, %v9554_v51  ;;  %v2466_v6 = vmul.f32 %v8945_v8, %v9554_v51  ;;  %v2222_v51 = vmul.f32 %v9367_v4, %v2202_v2  ;;  %v13896_v62 = vrot.slane %v9504_v44, 7 }
 0x38e   : > { %13892 = vst [vmem:[#allocation187_spill] sm:$0xff] %v9572_v19  ;;  %13893 = vst [vmem:[#allocation188_spill] sm:$0xff] %v9579_v33  ;;  %v3278_v30 = vsel %vm752_vm0, %v13894_v61, %v3251_v21  ;;  %6744 = vmatpush3.bf16.msra.mxu0 %v7235_v18  ;;  %v9600_v56 = vmul.f32 %v9397_v15, %v2467_v17  ;;  %v9603_v0 = vmul.f32 %v9282_v23, %v2015_v42 }
 0x38f   : > { %v2106_v63 = vmul.f32 %v9391_v5, %v2086_v41  ;;  %v7238_v41 = vld [vmem:[#allocation14] sm:$0xff]   ;;  %v3277_v35 = vsel %vm752_vm0, %v3251_v21, %v13896_v62  ;;  %v3284_v2 = vmul.f32 %v3278_v30, %v8977_v7  ;;  %v9597_v33 = vmul.f32 %v9397_v15, %v2466_v6  ;;  %6776 = vmatpush3.bf16.msra.mxu1 %v7236_v24 }
 0x390   : > { %v9586_v19 = vpop.permute.xlu1 %2689  ;;  %v3356_v45 = vmul.f32 %v9376_v49, %v3336_v28  ;;  %v3371_v62 = vadd.f32 %v9460_v10, %v3319_v25  ;;  %v3471_v21 = vmul.f32 %v3278_v30, %v8945_v8  ;;  %6745 = vmatprep.subr.bf16.mxu0 %v7237_v13  ;;  %v3472_v18 = vmul.f32 %v3277_v35, %v8949_v59  ;;  %v4113_v28 = vld [vmem:[#allocation11 + $0x1f0] sm:$0xff] }
 0x391   : > { %13895 = vst [vmem:[#allocation189_spill] sm:$0xff] %v9586_v19  ;;  %v2122_v34 = vadd.f32 %v2106_v63, %v1974_v60  ;;  %v3387_v60 = vrot.slane %v9520_v1, 1  ;;  %v3304_v63 = vmul.f32 %v9400_v57, %v3284_v2  ;;  %v9612_v40 = vmul.f32 %v3277_v35, %v9282_v23  ;;  %6777 = vmatprep.subr.bf16.mxu1 %v7238_v41 }
 0x392   : > { %v13898_v17 = vrot.slane %v9385_v32, 1  ;;  %v13899_v24 = vrot.slane %v9424_v14, 1  ;;  %v13219_v10 = vrot.slane %v9427_v38, 1  ;;  %v2087_v23 = vmul.f32 %v8985_v37, %v2015_v42  ;;  %6746 = vmatpush3.bf16.msra.mxu0 %v7237_v13 }
 0x393   : > { %v9625_v25 = vadd.f32 %v2222_v51, %v2122_v34  ;;  %v3320_v2 = vadd.f32 %v3304_v63, %v3236_v11  ;;  %v3285_v59 = vmul.f32 %v3277_v35, %v8985_v37  ;;  %v13900_v7 = vrot.slane %v9388_v50, 1  ;;  %6778 = vmatpush3.bf16.msra.mxu1 %v7238_v41  ;;  %6795 = vmatprep.subr.mxu0 %v4113_v28 }
 0x394   : > { %v9614_v6 = vpop.permute.xlu1 %2693  ;;  %v9622_v61 = vsel %vm2267_vm12, %v13899_v24, %v13898_v17  ;;  %v13901_v51 = vrot.slane %v9504_v44, 1  ;;  %v3491_v13 = vmul.f32 %v9403_v43, %v3471_v21  ;;  %v3470_v41 = vmul.f32 %v9501_v36, %v9096_v16 }
 0x395   : > { %13897 = vst [vmem:[#allocation190_spill] sm:$0xff] %v9614_v6  ;;  %v2349_v8 = vmul.f32 %v8928_v46, %v9622_v61  ;;  %v9637_v17 = vsel %vm2267_vm12, %v13219_v10, %v13900_v7  ;;  %v13902_v34 = vmov %v13900_v7  ;;  %v2580_v35 = vmul.f32 %v8962_v29, %v9622_v61 }
 0x396   : > { %v3413_v42 = vsel %vm2267_vm12, %v3387_v60, %v13901_v51  ;;  %v3414_v11 = vsel %vm2267_vm12, %v13902_v34, %v3387_v60  ;;  %v3418_v7 = vmul.f32 %v9637_v17, %v8928_v46  ;;  %v9655_v63 = vmul.f32 %v9403_v43, %v3472_v18 }
 0x397   : > { %v3521_v24 = vmul.f32 %v9637_v17, %v8962_v29  ;;  %v3419_v60 = vmul.f32 %v3414_v11, %v8932_v54  ;;  %v3420_v21 = vmul.f32 %v3413_v42, %v9046_v12  ;;  %v9664_v34 = vmul.f32 %v9391_v5, %v2087_v23 }
 0x398   : > { %v3522_v10 = vmul.f32 %v3414_v11, %v9196_v53  ;;  %v3523_v37 = vmul.f32 %v3413_v42, %v9223_v47  ;;  %v3573_v18 = vmul.f32 %v9501_v36, %v8995_v58  ;;  %v3372_v28 = vadd.f32 %v3356_v45, %v3320_v2 }
 0x399   : > { %v9661_v51 = vpop.permute.xlu1 %2801  ;;  %v9671_v46 = vmul.f32 %v9400_v57, %v3285_v59  ;;  %v9674_v29 = vmul.f32 %v9406_v9, %v2349_v8  ;;  %v3439_v6 = vmul.f32 %v9416_v48, %v3419_v60  ;;  %v9678_v19 = vmul.f32 %v9413_v27, %v2580_v35 }
 0x39a   : > { %13903 = vst [vmem:[#allocation191_spill] sm:$0xff] %v9661_v51  ;;  %v9681_v23 = vmul.f32 %v9416_v48, %v3418_v7  ;;  %v9684_v51 = vmul.f32 %v9403_v43, %v3470_v41  ;;  %v3574_v36 = vmul.f32 %v3278_v30, %v9277_v52  ;;  %v9688_v45 = vmul.f32 %v9419_v31, %v3521_v24  ;;  %v13911_v41 = vld [vmem:[#allocation170_spill] sm:$0xff] }
 0x39b   : > { %13904 = vst [vmem:[#allocation192_spill] sm:$0xff] %v9674_v29  ;;  %13905 = vst [vmem:[#allocation193_spill] sm:$0xff] %v9678_v19  ;;  %v3440_v59 = vmul.f32 %v9416_v48, %v3420_v21  ;;  %v9692_v8 = vmul.f32 %v9419_v31, %v3522_v10  ;;  %v3625_v2 = vmul.f32 %v9388_v50, %v9027_v26  ;;  %v13913_v30 = vrot.slane %v9446_v20, 1  ;;  %v13915_v10 = vld [vmem:[#allocation140_spill] sm:$0xff] }
 0x39c   : > { %13906 = vst [vmem:[#allocation194_spill] sm:$0xff] %v9681_v23  ;;  %13907 = vst [vmem:[#allocation195_spill] sm:$0xff] %v9684_v51  ;;  %v3455_v7 = vadd.f32 %v3439_v6, %v3371_v62  ;;  %v3543_v60 = vmul.f32 %v9419_v31, %v3523_v37  ;;  %v9700_v19 = vmul.f32 %v13911_v41, %v3573_v18  ;;  %v13914_v24 = vrot.slane %v9507_v3, 1  ;;  %v9718_v18 = vld [vmem:[#allocation13 + $0x28] ss:$0 sm:$0xff] }
 0x39d   : > { %13908 = vst [vmem:[#allocation196_spill] sm:$0xff] %v9688_v45  ;;  %13909 = vst [vmem:[#allocation197_spill] sm:$0xff] %v9692_v8  ;;  %v9696_v35 = vpop.permute.xlu1 %2805  ;;  %v3626_v8 = vmul.f32 %v9520_v1, %v13915_v10  ;;  %v13916_v45 = vld [vmem:[#allocation62_spill] sm:$0xff]  ;;  %v13918_v62 = vrot.slane %v9385_v32, 1  ;;  %v9721_v29 = vmul.f32 %v13911_v41, %v3574_v36  ;;  %v13921_v23 = vld [vmem:[#allocation176_spill] sm:$0xff] }
 0x39e   : > { %13910 = vst [vmem:[#allocation198_spill] sm:$0xff] %v9696_v35  ;;  %13912 = vst [vmem:[#allocation199_spill] sm:$0xff] %v9700_v19  ;;  %v2280_v21 = vsel %vm2267_vm12, %v13914_v24, %v13913_v30  ;;  %v3677_v50 = vmul.f32 %v3414_v11, %v13916_v45  ;;  %v13917_v35 = vmov %v13914_v24  ;;  %v3456_v19 = vadd.f32 %v3440_v59, %v3372_v28  ;;  %v13919_v30 = vld [vmem:[#allocation81_spill] sm:$0xff] }
 0x39f   : > { %v2281_v37 = vsel %vm2267_vm12, %v13918_v62, %v13917_v35  ;;  %v2351_v6 = vmul.f32 %v9046_v12, %v2280_v21  ;;  %v3678_v24 = vmul.f32 %v3413_v42, %v13919_v30  ;;  %v9726_v11 = vmul.f32 %v9382_v22, %v3625_v2  ;;  %v13922_v42 = vld [vmem:[#allocation185_spill] sm:$0xff] }
 0x3a0   : > { %v2350_v1 = vmul.f32 %v8932_v54, %v2281_v37  ;;  %v2465_v35 = vmul.f32 %v9096_v16, %v13921_v23  ;;  %v2581_v62 = vmul.f32 %v9196_v53, %v2281_v37  ;;  %v2582_v28 = vmul.f32 %v9223_v47, %v2280_v21 }
 0x3a1   : > { %13920 = vst [vmem:[#allocation200_spill] sm:$0xff] %v9726_v11  ;;  %v2371_v51 = vmul.f32 %v9406_v9, %v2351_v6  ;;  %v2696_v36 = vmul.f32 %v8995_v58, %v13921_v23  ;;  %v2697_v59 = vmul.f32 %v9277_v52, %v13922_v42  ;;  %v9741_v2 = vmul.f32 %v9382_v22, %v3626_v8  ;;  %v9756_v8 = vld [vmem:[#allocation13 + $0x20] ss:$0 sm:$0xff] }
 0x3a2   : > { %v2370_v12 = vmul.f32 %v9406_v9, %v2350_v1  ;;  %v9738_v54 = vpop.permute.xlu1 %2913  ;;  %v9744_v6 = vmul.f32 %v9718_v18, %v3677_v50  ;;  %v2812_v53 = vmul.f32 %v9027_v26, %v9385_v32  ;;  %v2813_v1 = vmul.f32 %v13915_v10, %v9507_v3  ;;  %v13928_v10 = vld [vmem:[#allocation171_spill] sm:$0xff] }
 0x3a3   : > { %13923 = vst [vmem:[#allocation176_spill] sm:$0xff] %v9738_v54  ;;  %13924 = vst [vmem:[#allocation185_spill] sm:$0xff] %v9741_v2  ;;  %v9751_v47 = vmul.f32 %v9718_v18, %v3678_v24  ;;  %v2387_v42 = vadd.f32 %v2371_v51, %v9625_v25  ;;  %v2928_v52 = vmul.f32 %v13916_v45, %v2281_v37  ;;  %v6659_v51 = vpop.f32.mrf.mxu0  ;;  %v13932_v37 = vld [vmem:[#allocation165_spill] sm:$0xff]  ;;  %v13960_v2 = vrot.slane %v9446_v20, 1 }
 0x3a4   : > { %13925 = vst [vmem:[#allocation201_spill] sm:$0xff] %v9744_v6  ;;  %v2386_v23 = vadd.f32 %v2370_v12, %v9589_v55  ;;  %v9759_v50 = vmul.f32 %v9397_v15, %v2465_v35  ;;  %v9762_v58 = vmul.f32 %v9413_v27, %v2581_v62  ;;  %v2929_v32 = vmul.f32 %v13919_v30, %v2280_v21  ;;  %v13935_v21 = vld [vmem:[#allocation157_spill] sm:$0xff] }
 0x3a5   : > { %13926 = vst [vmem:[#allocation202_spill] sm:$0xff] %v9751_v47  ;;  %v3507_v3 = vadd.f32 %v3491_v13, %v3455_v7  ;;  %v2602_v24 = vmul.f32 %v9413_v27, %v2582_v28  ;;  %v9767_v16 = vmul.f32 %v13928_v10, %v2696_v36  ;;  %v9770_v12 = vmul.f32 %v13928_v10, %v2697_v59  ;;  %v6715_v36 = vpop.f32.mrf.mxu1  ;;  %v1906_v30 = vpop.f32.mrf.mxu0 }
 0x3a6   : > { %13927 = vst [vmem:[#allocation203_spill] sm:$0xff] %v9762_v58  ;;  %v2502_v55 = vadd.f32 %v9597_v33, %v2386_v23  ;;  %v9773_v25 = vpop.permute.xlu1 %2921  ;;  %v9776_v35 = vmul.f32 %v13932_v37, %v2812_v53  ;;  %v9779_v62 = vmul.f32 %v13932_v37, %v2813_v1  ;;  %v9782_v13 = vadd.f32 %v9655_v63, %v3456_v19  ;;  %v13939_v23 = vld [vmem:[#allocation158_spill] sm:$0xff] }
 0x3a7   : > { %13929 = vst [vmem:[#allocation204_spill] sm:$0xff] %v9767_v16  ;;  %13930 = vst [vmem:[#allocation205_spill] sm:$0xff] %v9770_v12  ;;  %v3559_v7 = vadd.f32 %v3543_v60, %v3507_v3  ;;  %v9785_v28 = vadd.f32 %v6659_v51, %v13935_v21  ;;  %v9788_v59 = vmul.f32 %v9756_v8, %v2928_v52  ;;  %v13944_v52 = vld [vmem:[#allocation162_spill] sm:$0xff]  ;;  %v3168_v51 = vpop.f32.mrf.mxu1  ;;  %v13957_v16 = vld [vmem:[#allocation47_spill] sm:$0xff] }
 0x3a8   : > { %13931 = vst [vmem:[#allocation206_spill] sm:$0xff] %v9773_v25  ;;  %13933 = vst [vmem:[#allocation207_spill] sm:$0xff] %v9776_v35  ;;  %v3595_v33 = vmul.f32 %v13911_v41, %v9612_v40  ;;  %v9793_v53 = vadd.f32 %v9600_v56, %v2387_v42  ;;  %v9796_v1 = vadd.f32 %v6715_v36, %v13939_v23  ;;  %v13945_v56 = vld [vmem:[#allocation49_spill] sm:$0xff]  ;;  %v6662_v25 = vpop.f32.mrf.mxu0  ;;  %v13951_v35 = vld [vmem:[#allocation58_spill] sm:$0xff] }
 0x3a9   : > { %13934 = vst [vmem:[#allocation208_spill] sm:$0xff] %v9779_v62  ;;  %13936 = vst [vmem:[#allocation157_spill] sm:$0xff] %v9785_v28  ;;  %v9799_v19 = vmul.f32 %v9756_v8, %v2929_v32  ;;  %v9801_v63 = vadd.f32 %v2602_v24, %v2502_v55  ;;  %v9805_v60 = vmul.f32 %v13928_v10, %v9603_v0  ;;  %v13946_v24 = vld [vmem:[#allocation164_spill] sm:$0xff]  ;;  %v6718_v32 = vpop.f32.mrf.mxu1 }
 0x3aa   : > { %13937 = vst [vmem:[#allocation209_spill] sm:$0xff] %v9788_v59  ;;  %13938 = vst [vmem:[#allocation210_spill] sm:$0xff] %v9793_v53  ;;  %v1976_v3 = vmul.f32 %v13944_v52, %v9785_v28  ;;  %v2205_v42 = vmul.f32 %v13945_v56, %v9785_v28  ;;  %v9812_v36 = vadd.f32 %v3595_v33, %v3559_v7  ;;  %v9820_v26 = vpop.permute.xlu1 %2925 }
 0x3ab   : > { %13940 = vst [vmem:[#allocation158_spill] sm:$0xff] %v9796_v1  ;;  %13941 = vst [vmem:[#allocation211_spill] sm:$0xff] %v9799_v19  ;;  %v3238_v55 = vmul.f32 %v13946_v24, %v9796_v1  ;;  %v3339_v0 = vmul.f32 %v9796_v1, %v13945_v56  ;;  %v1907_v7 = vadd.f32 %v13935_v21, %v1906_v30  ;;  %v13950_v30 = vld [vmem:[#allocation34_spill] sm:$0xff] }
 0x3ac   : > { %13942 = vst [vmem:[#allocation212_spill] sm:$0xff] %v9801_v63  ;;  %13943 = vst [vmem:[#allocation213_spill] sm:$0xff] %v9805_v60  ;;  %v9823_v40 = vmul.f32 %v9367_v4, %v2205_v42  ;;  %v3169_v33 = vadd.f32 %v13939_v23, %v3168_v51  ;;  %v9833_v45 = vmul.f32 %v9820_v26, %v9622_v61  ;;  %v13958_v63 = vrot.slane %v9785_v28, 1 }
 0x3ad   : > { %13947 = vst [vmem:[#allocation162_spill] sm:$0xff] %v9820_v26  ;;  %v9829_v19 = vmul.f32 %v9376_v49, %v3339_v0  ;;  %v3692_v56 = vmul.f32 %v9637_v17, %v9820_v26  ;;  %v9838_v42 = vadd.f32 %v6662_v25, %v13935_v21  ;;  %v1975_v54 = vmul.f32 %v13944_v52, %v1907_v7 }
 0x3ae   : > { %13948 = vst [vmem:[#allocation164_spill] sm:$0xff] %v9833_v45  ;;  %v1991_v59 = vrot.slane %v1907_v7, 7  ;;  %v2204_v62 = vmul.f32 %v13950_v30, %v1907_v7  ;;  %v2255_v51 = vrot.slane %v1907_v7, 1  ;;  %v2815_v47 = vmul.f32 %v13951_v35, %v1907_v7 }
 0x3af   : > { %13949 = vst [vmem:[#allocation214_spill] sm:$0xff] %v9838_v42  ;;  %v3237_v0 = vmul.f32 %v13946_v24, %v3169_v33  ;;  %v3253_v6 = vrot.slane %v3169_v33, 7  ;;  %v9845_v61 = vadd.f32 %v6718_v32, %v13939_v23  ;;  %v13953_v45 = vrot.slane %v9785_v28, 7 }
 0x3b0   : > { %v13955_v25 = vrot.slane %v9446_v20, 7  ;;  %v2123_v7 = vadd.f32 %v9664_v34, %v1975_v54  ;;  %v3338_v12 = vmul.f32 %v3169_v33, %v13950_v30  ;;  %v2224_v60 = vmul.f32 %v9367_v4, %v2204_v62  ;;  %v13962_v54 = vld [vmem:[#allocation183_spill] sm:$0xff] }
 0x3b1   : > { %13952 = vst [vmem:[#allocation215_spill] sm:$0xff] %v9845_v61  ;;  %v9851_v17 = vsel %vm752_vm0, %v1991_v59, %v13953_v45  ;;  %v9868_v45 = vsel %vm2267_vm12, %v2255_v51, %v13958_v63  ;;  %v13966_v62 = vld [vmem:[#allocation51_spill] sm:$0xff]  ;;  %v13968_v63 = vld [vmem:[#allocation25_spill] sm:$0xff] }
 0x3b2   : > { %13954 = vst [vmem:[#allocation216_spill] sm:$0xff] %v9851_v17  ;;  %v9857_v26 = vsel %vm752_vm0, %v13955_v25, %v1991_v59  ;;  %13959 = vst [vmem:[#allocation218_spill] sm:$0xff] %v9868_v45  ;;  %v9874_v59 = vsel %vm2267_vm12, %v13960_v2, %v2255_v51  ;;  %v9877_v34 = vadd.f32 %v13962_v54, %v2123_v7  ;;  %v13964_v25 = vld [vmem:[#allocation61_spill] sm:$0xff]  ;;  %v13972_v54 = vrot.slane %v9504_v44, 7 }
 0x3b3   : > { %13956 = vst [vmem:[#allocation217_spill] sm:$0xff] %v9857_v26  ;;  %v2088_v32 = vmul.f32 %v13957_v16, %v9857_v26  ;;  %13961 = vst [vmem:[#allocation219_spill] sm:$0xff] %v9874_v59  ;;  %v9881_v30 = vmul.f32 %v13964_v25, %v9874_v59  ;;  %v9885_v11 = vmul.f32 %v13966_v62, %v9868_v45  ;;  %v13970_v2 = vld [vmem:[#allocation45_spill] sm:$0xff]  ;;  %v3389_v45 = vrot.slane %v3169_v33, 1 }
 0x3b4   : > { %13963 = vst [vmem:[#allocation183_spill] sm:$0xff] %v9877_v34  ;;  %v9889_v10 = vmul.f32 %v13968_v63, %v9857_v26  ;;  %v9894_v51 = vmul.f32 %v13970_v2, %v9874_v59  ;;  %v9897_v7 = vmul.f32 %v13932_v37, %v2815_v47  ;;  %v9903_v34 = vsel %vm752_vm0, %v13972_v54, %v3253_v6 }
 0x3b5   : > { %13965 = vst [vmem:[#allocation220_spill] sm:$0xff] %v9881_v30  ;;  %13967 = vst [vmem:[#allocation221_spill] sm:$0xff] %v9885_v11  ;;  %v2108_v20 = vmul.f32 %v9391_v5, %v2088_v32  ;;  %v13974_v11 = vrot.slane %v9796_v1, 7  ;;  %v3286_v32 = vmul.f32 %v9903_v34, %v13957_v16  ;;  %v3321_v30 = vadd.f32 %v9671_v46, %v3237_v0 }
 0x3b6   : > { %13969 = vst [vmem:[#allocation222_spill] sm:$0xff] %v9889_v10  ;;  %13971 = vst [vmem:[#allocation223_spill] sm:$0xff] %v9897_v7  ;;  %v3358_v37 = vmul.f32 %v9376_v49, %v3338_v12  ;;  %v3576_v59 = vmul.f32 %v9903_v34, %v13968_v63  ;;  %v3628_v54 = vmul.f32 %v3169_v33, %v13951_v35  ;;  %v13976_v10 = vld [vmem:[#allocation187_spill] sm:$0xff]  ;;  %v13979_v46 = vrot.slane %v9504_v44, 1  ;;  %v13987_v63 = vld [vmem:[#allocation40_spill] sm:$0xff] }
 0x3b7   : > { %13973 = vst [vmem:[#allocation224_spill] sm:$0xff] %v9903_v34  ;;  %v9909_v26 = vsel %vm752_vm0, %v3253_v6, %v13974_v11  ;;  %v2124_v47 = vadd.f32 %v2108_v20, %v1976_v3  ;;  %v3306_v7 = vmul.f32 %v9400_v57, %v3286_v32  ;;  %v9920_v58 = vadd.f32 %v13976_v10, %v3321_v30  ;;  %v1916_v20 = vpop.f32.mrf.mxu0  ;;  %v3178_v32 = vpop.f32.mrf.mxu1 }
 0x3b8   : > { %13975 = vst [vmem:[#allocation225_spill] sm:$0xff] %v9909_v26  ;;  %v13978_v11 = vrot.slane %v9796_v1, 1  ;;  %v9932_v12 = vsel %vm2267_vm12, %v13979_v46, %v3389_v45  ;;  %v9947_v44 = vmul.f32 %v9382_v22, %v3628_v54  ;;  %v9975_v16 = vadd.f32 %v13939_v23, %v3178_v32 }
 0x3b9   : > { %13977 = vst [vmem:[#allocation187_spill] sm:$0xff] %v9920_v58  ;;  %v9934_v3 = vadd.f32 %v2224_v60, %v2124_v47  ;;  %v9938_v33 = vmul.f32 %v9932_v12, %v13964_v25  ;;  %v3524_v30 = vmul.f32 %v9932_v12, %v13970_v2  ;;  %v3322_v0 = vadd.f32 %v3306_v7, %v3238_v55  ;;  %v6665_v35 = vpop.f32.mrf.mxu0 }
 0x3ba   : > { %v9926_v6 = vsel %vm2267_vm12, %v3389_v45, %v13978_v11  ;;  %v9950_v45 = vmul.f32 %v9718_v18, %v3692_v56  ;;  %v1978_v60 = vmul.f32 %v13944_v52, %v9838_v42  ;;  %v13984_v11 = vld [vmem:[#allocation52_spill] sm:$0xff]  ;;  %v3240_v55 = vmul.f32 %v13946_v24, %v9845_v61  ;;  %13988 = vst [vmem:[#allocation232_spill] sm:$0xff] %v9975_v16 }
 0x3bb   : > { %13980 = vst [vmem:[#allocation226_spill] sm:$0xff] %v9934_v3  ;;  %13981 = vst [vmem:[#allocation227_spill] sm:$0xff] %v9938_v33  ;;  %v9942_v10 = vmul.f32 %v9926_v6, %v13966_v62  ;;  %v2207_v46 = vmul.f32 %v13984_v11, %v9838_v42  ;;  %v9960_v7 = vadd.f32 %v3358_v37, %v3322_v0  ;;  %v13990_v3 = vrot.slane %v9838_v42, 7 }
 0x3bc   : > { %13983 = vst [vmem:[#allocation229_spill] sm:$0xff] %v9950_v45  ;;  %v3341_v54 = vmul.f32 %v9845_v61, %v13984_v11  ;;  %v9970_v47 = vadd.f32 %v13935_v21, %v1916_v20  ;;  %v2089_v25 = vmul.f32 %v13987_v63, %v9851_v17  ;;  %v3287_v0 = vmul.f32 %v9909_v26, %v13987_v63  ;;  %v13989_v11 = vld [vmem:[#allocation39_spill] sm:$0xff] }
 0x3bd   : > { %13982 = vst [vmem:[#allocation228_spill] sm:$0xff] %v9942_v10  ;;  %13985 = vst [vmem:[#allocation230_spill] sm:$0xff] %v9960_v7  ;;  %v9967_v62 = vmul.f32 %v9367_v4, %v2207_v46  ;;  %v9983_v2 = vmul.f32 %v9419_v31, %v3524_v30  ;;  %v9986_v46 = vmul.f32 %v13911_v41, %v3576_v59  ;;  %v3255_v63 = vrot.slane %v9975_v16, 7  ;;  %v6721_v41 = vpop.f32.mrf.mxu1  ;;  %v13994_v26 = vld [vmem:[#allocation43_spill] sm:$0xff] }
 0x3be   : > { %13986 = vst [vmem:[#allocation231_spill] sm:$0xff] %v9970_v47  ;;  %v9978_v37 = vmul.f32 %v9376_v49, %v3341_v54  ;;  %v1977_v20 = vmul.f32 %v13944_v52, %v9970_v47  ;;  %v1993_v56 = vrot.slane %v9970_v47, 7  ;;  %v2109_v32 = vmul.f32 %v9391_v5, %v2089_v25 }
 0x3bf   : > { %v2206_v54 = vmul.f32 %v13989_v11, %v9970_v47  ;;  %v3239_v30 = vmul.f32 %v13946_v24, %v9975_v16  ;;  %v3307_v59 = vmul.f32 %v9400_v57, %v3287_v0  ;;  %v13992_v25 = vrot.slane %v9785_v28, 7 }
 0x3c0   : > { %v10003_v17 = vsel %vm752_vm0, %v1993_v56, %v13990_v3  ;;  %v2125_v45 = vadd.f32 %v2109_v32, %v1977_v20  ;;  %v13995_v0 = vrot.slane %v9845_v61, 7  ;;  %v13997_v3 = vrot.slane %v9796_v1, 7  ;;  %v1926_v20 = vpop.f32.mrf.mxu0 }
 0x3c1   : > { %13991 = vst [vmem:[#allocation233_spill] sm:$0xff] %v10003_v17  ;;  %v10009_v22 = vsel %vm752_vm0, %v13992_v25, %v1993_v56  ;;  %v2226_v47 = vmul.f32 %v9367_v4, %v2206_v54  ;;  %v3323_v56 = vadd.f32 %v3307_v59, %v3239_v30  ;;  %v3340_v25 = vmul.f32 %v9975_v16, %v13989_v11  ;;  %v3188_v11 = vpop.f32.mrf.mxu1 }
 0x3c2   : > { %13993 = vst [vmem:[#allocation234_spill] sm:$0xff] %v10009_v22  ;;  %v2090_v34 = vmul.f32 %v13994_v26, %v10009_v22  ;;  %v10018_v7 = vsel %vm752_vm0, %v3255_v63, %v13995_v0  ;;  %v10024_v28 = vsel %vm752_vm0, %v13997_v3, %v3255_v63  ;;  %v10027_v32 = vadd.f32 %v9823_v40, %v2125_v45  ;;  %v14004_v3 = vld [vmem:[#allocation44_spill] sm:$0xff] }
 0x3c3   : > { %13996 = vst [vmem:[#allocation235_spill] sm:$0xff] %v10018_v7  ;;  %13998 = vst [vmem:[#allocation236_spill] sm:$0xff] %v10024_v28  ;;  %v3288_v54 = vmul.f32 %v10024_v28, %v13994_v26  ;;  %v10036_v58 = vadd.f32 %v9829_v19, %v3323_v56  ;;  %v10039_v63 = vadd.f32 %v6665_v35, %v13935_v21  ;;  %v14005_v56 = vld [vmem:[#allocation89_spill] sm:$0xff]  ;;  %v6724_v28 = vpop.f32.mrf.mxu1 }
 0x3c4   : > { %13999 = vst [vmem:[#allocation237_spill] sm:$0xff] %v10027_v32  ;;  %v2110_v22 = vmul.f32 %v9391_v5, %v2090_v34  ;;  %v10042_v30 = vadd.f32 %v6721_v41, %v13939_v23  ;;  %v3360_v45 = vmul.f32 %v9376_v49, %v3340_v25  ;;  %v10047_v59 = vadd.f32 %v13935_v21, %v1926_v20  ;;  %v6668_v20 = vpop.f32.mrf.mxu0 }
 0x3c5   : > { %14000 = vst [vmem:[#allocation238_spill] sm:$0xff] %v10036_v58  ;;  %14001 = vst [vmem:[#allocation239_spill] sm:$0xff] %v10039_v63  ;;  %v3308_v40 = vmul.f32 %v9400_v57, %v3288_v54  ;;  %v2091_v0 = vmul.f32 %v14004_v3, %v10003_v17  ;;  %v1980_v19 = vmul.f32 %v13944_v52, %v10039_v63 }
 0x3c6   : > { %14002 = vst [vmem:[#allocation240_spill] sm:$0xff] %v10042_v30  ;;  %14003 = vst [vmem:[#allocation241_spill] sm:$0xff] %v10047_v59  ;;  %v2126_v34 = vadd.f32 %v2110_v22, %v1978_v60  ;;  %v2209_v41 = vmul.f32 %v14005_v56, %v10039_v63  ;;  %v3242_v25 = vmul.f32 %v13946_v24, %v10042_v30 }
 0x3c7   : > { %v3324_v26 = vadd.f32 %v3308_v40, %v3240_v55  ;;  %v3343_v60 = vmul.f32 %v10042_v30, %v14005_v56  ;;  %v1979_v55 = vmul.f32 %v13944_v52, %v10047_v59  ;;  %v1995_v40 = vrot.slane %v10047_v59, 7  ;;  %v14014_v56 = vld [vmem:[#allocation73_spill] sm:$0xff] }
 0x3c8   : > { %v10060_v32 = vadd.f32 %v2226_v47, %v2126_v34  ;;  %v10063_v22 = vmul.f32 %v9367_v4, %v2209_v41  ;;  %v2111_v54 = vmul.f32 %v9391_v5, %v2091_v0  ;;  %v14008_v34 = vld [vmem:[#allocation82_spill] sm:$0xff]  ;;  %v10081_v35 = vadd.f32 %v13939_v23, %v3188_v11 }
 0x3c9   : > { %v10068_v17 = vadd.f32 %v3360_v45, %v3324_v26  ;;  %v10075_v47 = vmul.f32 %v9376_v49, %v3343_v60  ;;  %v2208_v41 = vmul.f32 %v14008_v34, %v10047_v59  ;;  %v14010_v26 = vrot.slane %v10039_v63, 7 }
 0x3ca   : > { %14006 = vst [vmem:[#allocation242_spill] sm:$0xff] %v10060_v32  ;;  %14009 = vst [vmem:[#allocation244_spill] sm:$0xff] %v10081_v35  ;;  %v14012_v0 = vrot.slane %v9838_v42, 7  ;;  %v2127_v32 = vadd.f32 %v2111_v54, %v1979_v55  ;;  %v3241_v58 = vmul.f32 %v13946_v24, %v10081_v35  ;;  %v3342_v54 = vmul.f32 %v10081_v35, %v14008_v34 }
 0x3cb   : > { %14007 = vst [vmem:[#allocation243_spill] sm:$0xff] %v10068_v17  ;;  %v10087_v45 = vsel %vm752_vm0, %v1995_v40, %v14010_v26  ;;  %v3289_v17 = vmul.f32 %v10018_v7, %v14004_v3  ;;  %v2228_v59 = vmul.f32 %v9367_v4, %v2208_v41  ;;  %v3257_v26 = vrot.slane %v10081_v35, 7 }
 0x3cc   : > { %14011 = vst [vmem:[#allocation245_spill] sm:$0xff] %v10087_v45  ;;  %v10093_v60 = vsel %vm752_vm0, %v14012_v0, %v1995_v40  ;;  %v10104_v42 = vadd.f32 %v9967_v62, %v2127_v32  ;;  %v1936_v0 = vpop.f32.mrf.mxu0  ;;  %v14016_v41 = vrot.slane %v10042_v30, 7  ;;  %v14018_v7 = vrot.slane %v9845_v61, 7 }
 0x3cd   : > { %14013 = vst [vmem:[#allocation246_spill] sm:$0xff] %v10093_v60  ;;  %v2092_v11 = vmul.f32 %v14014_v56, %v10093_v60  ;;  %v3309_v40 = vmul.f32 %v9400_v57, %v3289_v17  ;;  %v10124_v17 = vadd.f32 %v6668_v20, %v13935_v21  ;;  %v10130_v34 = vadd.f32 %v6724_v28, %v13939_v23 }
 0x3ce   : > { %14015 = vst [vmem:[#allocation247_spill] sm:$0xff] %v10104_v42  ;;  %v10115_v60 = vsel %vm752_vm0, %v3257_v26, %v14016_v41  ;;  %v10121_v62 = vsel %vm752_vm0, %v14018_v7, %v3257_v26  ;;  %v14022_v7 = vld [vmem:[#allocation54_spill] sm:$0xff] }
 0x3cf   : > { %v2112_v3 = vmul.f32 %v9391_v5, %v2092_v11  ;;  %14017 = vst [vmem:[#allocation248_spill] sm:$0xff] %v10115_v60  ;;  %14019 = vst [vmem:[#allocation249_spill] sm:$0xff] %v10121_v62  ;;  %v3290_v32 = vmul.f32 %v10121_v62, %v14014_v56  ;;  %v3325_v55 = vadd.f32 %v3309_v40, %v3241_v58  ;;  %v3198_v40 = vpop.f32.mrf.mxu1  ;;  %v14026_v58 = vld [vmem:[#allocation77_spill] sm:$0xff]  ;;  %v14036_v33 = vrot.slane %v10130_v34, 7 }
 0x3d0   : > { %14020 = vst [vmem:[#allocation250_spill] sm:$0xff] %v10124_v17  ;;  %v3362_v11 = vmul.f32 %v9376_v49, %v3342_v54  ;;  %14021 = vst [vmem:[#allocation251_spill] sm:$0xff] %v10130_v34  ;;  %v1982_v42 = vmul.f32 %v13944_v52, %v10124_v17  ;;  %v2211_v26 = vmul.f32 %v14022_v7, %v10124_v17 }
 0x3d1   : > { %v2128_v41 = vadd.f32 %v2112_v3, %v1980_v19  ;;  %v3310_v20 = vmul.f32 %v9400_v57, %v3290_v32  ;;  %v10139_v10 = vadd.f32 %v9978_v37, %v3325_v55  ;;  %v3244_v28 = vmul.f32 %v13946_v24, %v10130_v34  ;;  %v6671_v3 = vpop.f32.mrf.mxu0 }
 0x3d2   : > { %v10147_v54 = vmul.f32 %v9367_v4, %v2211_v26  ;;  %v3345_v32 = vmul.f32 %v10130_v34, %v14022_v7  ;;  %v10154_v55 = vadd.f32 %v13935_v21, %v1936_v0  ;;  %v3291_v26 = vmul.f32 %v10115_v60, %v14026_v58 }
 0x3d3   : > { %14023 = vst [vmem:[#allocation252_spill] sm:$0xff] %v10139_v10  ;;  %v10144_v19 = vadd.f32 %v2228_v59, %v2128_v41  ;;  %v3326_v56 = vadd.f32 %v3310_v20, %v3242_v25  ;;  %v2093_v10 = vmul.f32 %v14026_v58, %v10087_v45  ;;  %v10162_v41 = vadd.f32 %v13939_v23, %v3198_v40  ;;  %v6727_v45 = vpop.f32.mrf.mxu1 }
 0x3d4   : > { %14025 = vst [vmem:[#allocation254_spill] sm:$0xff] %v10154_v55  ;;  %v10159_v59 = vmul.f32 %v9376_v49, %v3345_v32  ;;  %v10167_v35 = vadd.f32 %v6671_v3, %v13935_v21  ;;  %v1981_v0 = vmul.f32 %v13944_v52, %v10154_v55  ;;  %v1997_v20 = vrot.slane %v10154_v55, 7  ;;  %v14030_v32 = vld [vmem:[#allocation91_spill] sm:$0xff] }
 0x3d5   : > { %14024 = vst [vmem:[#allocation253_spill] sm:$0xff] %v10144_v19  ;;  %14027 = vst [vmem:[#allocation255_spill] sm:$0xff] %v10162_v41  ;;  %v10169_v25 = vadd.f32 %v3362_v11, %v3326_v56  ;;  %v2113_v37 = vmul.f32 %v9391_v5, %v2093_v10  ;;  %v2210_v7 = vmul.f32 %v14030_v32, %v10154_v55  ;;  %v3259_v3 = vrot.slane %v10162_v41, 7  ;;  %v14035_v55 = vld [vmem:[#allocation78_spill] sm:$0xff] }
 0x3d6   : > { %14028 = vst [vmem:[#allocation256_spill] sm:$0xff] %v10167_v35  ;;  %v3243_v58 = vmul.f32 %v13946_v24, %v10162_v41  ;;  %v14031_v56 = vrot.slane %v10124_v17, 7  ;;  %v14033_v19 = vrot.slane %v10039_v63, 7  ;;  %v3311_v40 = vmul.f32 %v9400_v57, %v3291_v26 }
 0x3d7   : > { %14029 = vst [vmem:[#allocation257_spill] sm:$0xff] %v10169_v25  ;;  %v2129_v60 = vadd.f32 %v2113_v37, %v1981_v0  ;;  %v2230_v62 = vmul.f32 %v9367_v4, %v2210_v7  ;;  %v14038_v63 = vrot.slane %v10042_v30, 7  ;;  %v3344_v7 = vmul.f32 %v10162_v41, %v14030_v32 }
 0x3d8   : > { %v10185_v11 = vsel %vm752_vm0, %v1997_v20, %v14031_v56  ;;  %v10191_v10 = vsel %vm752_vm0, %v14033_v19, %v1997_v20  ;;  %v10201_v56 = vsel %vm752_vm0, %v3259_v3, %v14036_v33  ;;  %v3327_v0 = vadd.f32 %v3311_v40, %v3243_v58  ;;  %v1946_v20 = vpop.f32.mrf.mxu0  ;;  %v14042_v40 = vld [vmem:[#allocation133_spill] sm:$0xff] }
 0x3d9   : > { %14032 = vst [vmem:[#allocation258_spill] sm:$0xff] %v10185_v11  ;;  %14034 = vst [vmem:[#allocation259_spill] sm:$0xff] %v10191_v10  ;;  %v2094_v25 = vmul.f32 %v14035_v55, %v10191_v10  ;;  %v10207_v19 = vsel %vm752_vm0, %v14038_v63, %v3259_v3  ;;  %v10210_v37 = vadd.f32 %v10063_v22, %v2129_v60  ;;  %v3208_v3 = vpop.f32.mrf.mxu1 }
 0x3da   : > { %14037 = vst [vmem:[#allocation260_spill] sm:$0xff] %v10201_v56  ;;  %14039 = vst [vmem:[#allocation261_spill] sm:$0xff] %v10207_v19  ;;  %v3292_v26 = vmul.f32 %v10207_v19, %v14035_v55  ;;  %v1984_v30 = vmul.f32 %v13944_v52, %v10167_v35  ;;  %v3364_v60 = vmul.f32 %v9376_v49, %v3344_v7  ;;  %v14045_v7 = vld [vmem:[#allocation48_spill] sm:$0xff] }
 0x3db   : > { %14040 = vst [vmem:[#allocation262_spill] sm:$0xff] %v10210_v37  ;;  %v2114_v33 = vmul.f32 %v9391_v5, %v2094_v25  ;;  %v10224_v58 = vadd.f32 %v10075_v47, %v3327_v0  ;;  %v2213_v55 = vmul.f32 %v14042_v40, %v10167_v35  ;;  %v10230_v10 = vadd.f32 %v6727_v45, %v13939_v23  ;;  %v14049_v25 = vld [vmem:[#allocation130_spill] sm:$0xff]  ;;  %v6730_v19 = vpop.f32.mrf.mxu1 }
 0x3dc   : > { %v3312_v22 = vmul.f32 %v9400_v57, %v3292_v26  ;;  %v10233_v37 = vadd.f32 %v13935_v21, %v1946_v20  ;;  %v2095_v47 = vmul.f32 %v14045_v7, %v10185_v11  ;;  %v10241_v0 = vadd.f32 %v13939_v23, %v3208_v3 }
 0x3dd   : > { %14041 = vst [vmem:[#allocation263_spill] sm:$0xff] %v10224_v58  ;;  %v2130_v32 = vadd.f32 %v2114_v33, %v1982_v42  ;;  %14043 = vst [vmem:[#allocation264_spill] sm:$0xff] %v10230_v10  ;;  %v10236_v26 = vmul.f32 %v9367_v4, %v2213_v55  ;;  %v3246_v42 = vmul.f32 %v13946_v24, %v10230_v10  ;;  %v14052_v55 = vrot.slane %v10124_v17, 7 }
 0x3de   : > { %14044 = vst [vmem:[#allocation265_spill] sm:$0xff] %v10233_v37  ;;  %v3328_v63 = vadd.f32 %v3312_v22, %v3244_v28  ;;  %14046 = vst [vmem:[#allocation266_spill] sm:$0xff] %v10241_v0  ;;  %v3347_v20 = vmul.f32 %v10230_v10, %v14042_v40  ;;  %v6674_v28 = vpop.f32.mrf.mxu0  ;;  %v1983_v22 = vmul.f32 %v13944_v52, %v10233_v37  ;;  %v1999_v3 = vrot.slane %v10233_v37, 7 }
 0x3df   : > { %v10243_v58 = vadd.f32 %v2230_v62, %v2130_v32  ;;  %v2115_v32 = vmul.f32 %v9391_v5, %v2095_v47  ;;  %v2212_v45 = vmul.f32 %v14049_v25, %v10233_v37  ;;  %v3245_v47 = vmul.f32 %v13946_v24, %v10241_v0 }
 0x3e0   : > { %v10250_v33 = vadd.f32 %v3364_v60, %v3328_v63  ;;  %v10257_v62 = vmul.f32 %v9376_v49, %v3347_v20  ;;  %v14050_v63 = vrot.slane %v10167_v35, 7  ;;  %v10273_v11 = vsel %vm752_vm0, %v14052_v55, %v1999_v3  ;;  %v1956_v17 = vpop.f32.mrf.mxu0 }
 0x3e1   : > { %14047 = vst [vmem:[#allocation267_spill] sm:$0xff] %v10243_v58  ;;  %14053 = vst [vmem:[#allocation270_spill] sm:$0xff] %v10273_v11  ;;  %v3261_v20 = vrot.slane %v10241_v0, 7  ;;  %v14054_v58 = vld [vmem:[#allocation121_spill] sm:$0xff]  ;;  %v2131_v37 = vadd.f32 %v2115_v32, %v1983_v22  ;;  %v14055_v41 = vrot.slane %v10230_v10, 7  ;;  %v10313_v22 = vadd.f32 %v13935_v21, %v1956_v17 }
 0x3e2   : > { %14048 = vst [vmem:[#allocation268_spill] sm:$0xff] %v10250_v33  ;;  %v10267_v60 = vsel %vm752_vm0, %v1999_v3, %v14050_v63  ;;  %v2096_v40 = vmul.f32 %v14054_v58, %v10273_v11  ;;  %v2232_v33 = vmul.f32 %v9367_v4, %v2212_v45  ;;  %v3293_v63 = vmul.f32 %v10201_v56, %v14045_v7 }
 0x3e3   : > { %14051 = vst [vmem:[#allocation269_spill] sm:$0xff] %v10267_v60  ;;  %v10287_v55 = vsel %vm752_vm0, %v3261_v20, %v14055_v41  ;;  %v14057_v3 = vrot.slane %v10130_v34, 7  ;;  %v3346_v45 = vmul.f32 %v10241_v0, %v14049_v25  ;;  %v10300_v7 = vadd.f32 %v10147_v54, %v2131_v37  ;;  %14062 = vst [vmem:[#allocation276_spill] sm:$0xff] %v10313_v22  ;;  %v14063_v25 = vld [vmem:[#allocation124_spill] sm:$0xff] }
 0x3e4   : > { %14056 = vst [vmem:[#allocation271_spill] sm:$0xff] %v10287_v55  ;;  %v2116_v32 = vmul.f32 %v9391_v5, %v2096_v40  ;;  %v3313_v11 = vmul.f32 %v9400_v57, %v3293_v63 }
 0x3e5   : > { %v10293_v1 = vsel %vm752_vm0, %v14057_v3, %v3261_v20  ;;  %14059 = vst [vmem:[#allocation273_spill] sm:$0xff] %v10300_v7  ;;  %v3366_v56 = vmul.f32 %v9376_v49, %v3346_v45  ;;  %v10307_v20 = vadd.f32 %v6674_v28, %v13935_v21  ;;  %v10310_v3 = vadd.f32 %v6730_v19, %v13939_v23  ;;  %v14064_v28 = vld [vmem:[#allocation23_spill] sm:$0xff] }
 0x3e6   : > { %14058 = vst [vmem:[#allocation272_spill] sm:$0xff] %v10293_v1  ;;  %v3294_v41 = vmul.f32 %v10293_v1, %v14054_v58  ;;  %v2132_v40 = vadd.f32 %v2116_v32, %v1984_v30  ;;  %v3329_v37 = vadd.f32 %v3313_v11, %v3245_v47  ;;  %v2097_v58 = vmul.f32 %v14063_v25, %v10267_v60 }
 0x3e7   : > { %14060 = vst [vmem:[#allocation274_spill] sm:$0xff] %v10307_v20  ;;  %14061 = vst [vmem:[#allocation275_spill] sm:$0xff] %v10310_v3  ;;  %v1986_v63 = vmul.f32 %v13944_v52, %v10307_v20  ;;  %v2002_v45 = vrot.slane %v10307_v20, 7  ;;  %v2199_v7 = vmul.f32 %v14064_v28, %v10307_v20  ;;  %v10325_v23 = vmul.f32 %v13946_v24, %v10310_v3 }
 0x3e8   : > { %v3314_v54 = vmul.f32 %v9400_v57, %v3294_v41  ;;  %v10327_v21 = vadd.f32 %v2232_v33, %v2132_v40  ;;  %v10330_v17 = vadd.f32 %v10159_v59, %v3329_v37  ;;  %v3264_v11 = vrot.slane %v10310_v3, 7  ;;  %v3218_v33 = vpop.f32.mrf.mxu1  ;;  %v14070_v40 = vld [vmem:[#allocation30_spill] sm:$0xff] }
 0x3e9   : > { %v14067_v19 = vrot.slane %v9424_v14, 7  ;;  %v10340_v32 = vmul.f32 %v9367_v4, %v2199_v7  ;;  %v3333_v41 = vmul.f32 %v10310_v3, %v14064_v28  ;;  %v14071_v37 = vrot.slane %v9427_v38, 7 }
 0x3ea   : > { %14065 = vst [vmem:[#allocation277_spill] sm:$0xff] %v10327_v21  ;;  %v3330_v30 = vadd.f32 %v3314_v54, %v3246_v42  ;;  %14066 = vst [vmem:[#allocation278_spill] sm:$0xff] %v10330_v17  ;;  %v1985_v42 = vmul.f32 %v13944_v52, %v10313_v22  ;;  %v2001_v7 = vrot.slane %v10313_v22, 7  ;;  %v2117_v52 = vmul.f32 %v9391_v5, %v2097_v58  ;;  %v7289_v58 = vld [vmem:[%s12989_s7 + $0x1] ss:$0 sm:$0xff] }
 0x3eb   : > { %v10337_v47 = vsel %vm752_vm0, %v2002_v45, %v14067_v19  ;;  %v10354_v19 = vsel %vm752_vm0, %v3264_v11, %v14071_v37  ;;  %v10360_v60 = vmul.f32 %v9376_v49, %v3333_v41  ;;  %v10381_v41 = vadd.f32 %v7289_v58, %v3218_v33 }
 0x3ec   : > { %14068 = vst [vmem:[#allocation279_spill] sm:$0xff] %v10337_v47  ;;  %v10346_v59 = vadd.f32 %v3366_v56, %v3330_v30  ;;  %v2084_v54 = vmul.f32 %v14070_v40, %v10337_v47  ;;  %14072 = vst [vmem:[#allocation281_spill] sm:$0xff] %v10354_v19  ;;  %v3282_v28 = vmul.f32 %v10354_v19, %v14070_v40  ;;  %v14073_v56 = vld [vmem:[#allocation135_spill] sm:$0xff] }
 0x3ed   : > { %v2214_v30 = vmul.f32 %v14073_v56, %v10313_v22  ;;  %v10370_v37 = vsel %vm752_vm0, %v2001_v7, %v2002_v45  ;;  %14077 = vst [vmem:[#allocation284_spill] sm:$0xff] %v10381_v41  ;;  %v14079_v45 = vld [vmem:[#allocation126_spill] sm:$0xff]  ;;  %v2133_v34 = vadd.f32 %v2117_v52, %v1985_v42  ;;  %v3295_v33 = vmul.f32 %v10287_v55, %v14063_v25 }
 0x3ee   : > { %14069 = vst [vmem:[#allocation280_spill] sm:$0xff] %v10346_v59  ;;  %v10366_v21 = vmul.f32 %v9391_v5, %v2084_v54  ;;  %14074 = vst [vmem:[#allocation282_spill] sm:$0xff] %v10370_v37  ;;  %v14075_v59 = vrot.slane %v10167_v35, 7  ;;  %v10384_v17 = vmul.f32 %v9400_v57, %v3282_v28  ;;  %v14078_v54 = vld [vmem:[#allocation36_spill] sm:$0xff]  ;;  %v3348_v61 = vmul.f32 %v10381_v41, %v14073_v56 }
 0x3ef   : > { %v2083_v1 = vmul.f32 %v14078_v54, %v10370_v37  ;;  %v2234_v16 = vmul.f32 %v9367_v4, %v2214_v30  ;;  %v2249_v58 = vadd.f32 %v10236_v26, %v2133_v34  ;;  %v2265_v30 = vrot.slane %v10313_v22, 1  ;;  %v10430_v22 = vpop.permute.xlu0 %2917 }
 0x3f0   : > { %v10376_v40 = vsel %vm752_vm0, %v14075_v59, %v2001_v7  ;;  %v3247_v59 = vmul.f32 %v13946_v24, %v10381_v41  ;;  %v3263_v7 = vrot.slane %v10381_v41, 7  ;;  %v14081_v24 = vrot.slane %v10230_v10, 7  ;;  %14086 = vst [vmem:[#allocation288_spill] sm:$0xff] %v10430_v22 }
 0x3f1   : > { %14076 = vst [vmem:[#allocation283_spill] sm:$0xff] %v10376_v40  ;;  %v2098_v0 = vmul.f32 %v14079_v45, %v10376_v40  ;;  %v10397_v28 = vmul.f32 %v9391_v5, %v2083_v1  ;;  %v3315_v1 = vmul.f32 %v9400_v57, %v3295_v33  ;;  %v3368_v26 = vmul.f32 %v9376_v49, %v3348_v61  ;;  %v14085_v33 = vld [vmem:[#allocation152_spill] sm:$0xff]  ;;  %v14087_v49 = vld [vmem:[#allocation142_spill] sm:$0xff] }
 0x3f2   : > { %v10405_v4 = vsel %vm752_vm0, %v3263_v7, %v3264_v11  ;;  %v10411_v52 = vsel %vm752_vm0, %v14081_v24, %v3263_v7  ;;  %v2266_v56 = vrot.slane %v10307_v20, 1  ;;  %v14083_v25 = vrot.slane %v10167_v35, 1 }
 0x3f3   : > { %v2118_v42 = vmul.f32 %v9391_v5, %v2098_v0  ;;  %14080 = vst [vmem:[#allocation285_spill] sm:$0xff] %v10405_v4  ;;  %14082 = vst [vmem:[#allocation286_spill] sm:$0xff] %v10411_v52  ;;  %v3281_v34 = vmul.f32 %v10405_v4, %v14078_v54  ;;  %v3296_v5 = vmul.f32 %v10411_v52, %v14079_v45  ;;  %v3400_v35 = vrot.slane %v10310_v3, 1 }
 0x3f4   : > { %v3331_v11 = vadd.f32 %v3315_v1, %v3247_v59  ;;  %v10425_v7 = vsel %vm2267_vm12, %v14083_v25, %v2265_v30  ;;  %v2478_v24 = vmul.f32 %v14085_v33, %v10376_v40  ;;  %v2268_v25 = vsel %vm2267_vm12, %v2265_v30, %v2266_v56  ;;  %v14092_v40 = vld [vmem:[#allocation144_spill] sm:$0xff] }
 0x3f5   : > { %v2134_v0 = vadd.f32 %v2118_v42, %v1986_v63  ;;  %14084 = vst [vmem:[#allocation287_spill] sm:$0xff] %v10425_v7  ;;  %v3301_v54 = vmul.f32 %v9400_v57, %v3281_v34  ;;  %v2362_v61 = vmul.f32 %v14087_v49, %v10425_v7  ;;  %v14088_v63 = vld [vmem:[#allocation156_spill] sm:$0xff]  ;;  %v14089_v1 = vrot.slane %v9424_v14, 1 }
 0x3f6   : > { %v2479_v59 = vmul.f32 %v14088_v63, %v10370_v37  ;;  %v3383_v42 = vadd.f32 %v10257_v62, %v3331_v11  ;;  %v2498_v34 = vmul.f32 %v9397_v15, %v2478_v24  ;;  %v2363_v7 = vmul.f32 %v14092_v40, %v2268_v25  ;;  %v14093_v11 = vld [vmem:[#allocation180_spill] sm:$0xff] }
 0x3f7   : > { %v2250_v45 = vadd.f32 %v2234_v16, %v2134_v0  ;;  %v10443_v20 = vsel %vm2267_vm12, %v2266_v56, %v14089_v1  ;;  %v14091_v16 = vld [vmem:[#allocation57_spill] sm:$0xff]  ;;  %v2382_v37 = vmul.f32 %v9406_v9, %v2362_v61  ;;  %v2594_v55 = vmul.f32 %v14093_v11, %v2268_v25 }
 0x3f8   : > { %14090 = vst [vmem:[#allocation289_spill] sm:$0xff] %v10443_v20  ;;  %v2348_v0 = vmul.f32 %v14091_v16, %v10443_v20  ;;  %v2499_v62 = vmul.f32 %v9397_v15, %v2479_v59  ;;  %v2941_v30 = vmul.f32 %v10430_v22, %v2268_v25  ;;  %v3316_v14 = vmul.f32 %v9400_v57, %v3296_v5 }
 0x3f9   : > { %v3399_v56 = vrot.slane %v10381_v41, 1  ;;  %v2383_v1 = vmul.f32 %v9406_v9, %v2363_v7  ;;  %v2398_v24 = vadd.f32 %v2382_v37, %v2249_v58  ;;  %v3483_v20 = vmul.f32 %v10411_v52, %v14085_v33  ;;  %v14181_v41 = vld [vmem:[#allocation217_spill] sm:$0xff]  ;;  %v14182_v52 = vld [vmem:[#allocation216_spill] sm:$0xff] }
 0x3fa   : > { %v2614_v61 = vmul.f32 %v9413_v27, %v2594_v55  ;;  %v10461_v59 = vmul.f32 %v9756_v8, %v2941_v30  ;;  %v3332_v53 = vadd.f32 %v3316_v14, %v10325_v23  ;;  %v14095_v25 = vrot.slane %v10230_v10, 1 }
 0x3fb   : > { %v2399_v5 = vadd.f32 %v2383_v1, %v2250_v45  ;;  %v2514_v37 = vadd.f32 %v2498_v34, %v2398_v24  ;;  %v3401_v58 = vsel %vm2267_vm12, %v3399_v56, %v3400_v35  ;;  %v14097_v7 = vrot.slane %v9427_v38, 1 }
 0x3fc   : > { %14094 = vst [vmem:[#allocation290_spill] sm:$0xff] %v10461_v59  ;;  %v10468_v57 = vsel %vm2267_vm12, %v14095_v25, %v3399_v56  ;;  %v3384_v30 = vadd.f32 %v3368_v26, %v3332_v53  ;;  %v3432_v25 = vmul.f32 %v3401_v58, %v14092_v40  ;;  %v3484_v38 = vmul.f32 %v10405_v4, %v14088_v63 }
 0x3fd   : > { %14096 = vst [vmem:[#allocation291_spill] sm:$0xff] %v10468_v57  ;;  %v10476_v55 = vsel %vm2267_vm12, %v3400_v35, %v14097_v7  ;;  %v3431_v14 = vmul.f32 %v10468_v57, %v14087_v49  ;;  %v10483_v45 = vadd.f32 %v2499_v62, %v2399_v5  ;;  %v10485_v34 = vadd.f32 %v2614_v61, %v2514_v37  ;;  %v14101_v7 = vld [vmem:[#allocation177_spill] sm:$0xff]  ;;  %v14164_v49 = vld [vmem:[#allocation236_spill] sm:$0xff]  ;;  %v14215_v57 = vld [vmem:[#allocation242_spill] sm:$0xff] }
 0x3fe   : > { %14098 = vst [vmem:[#allocation292_spill] sm:$0xff] %v10476_v55  ;;  %v3417_v23 = vmul.f32 %v10476_v55, %v14091_v16  ;;  %v3503_v56 = vmul.f32 %v9403_v43, %v3483_v20  ;;  %v3452_v53 = vmul.f32 %v9416_v48, %v3432_v25  ;;  %v3535_v26 = vmul.f32 %v3401_v58, %v14093_v11  ;;  %v14102_v5 = vld [vmem:[#allocation173_spill] sm:$0xff]  ;;  %v14166_v16 = vld [vmem:[#allocation98_spill] sm:$0xff] }
 0x3ff   : > { %14099 = vst [vmem:[#allocation293_spill] sm:$0xff] %v10483_v45  ;;  %14100 = vst [vmem:[#allocation294_spill] sm:$0xff] %v10485_v34  ;;  %v3451_v35 = vmul.f32 %v9416_v48, %v3431_v14  ;;  %v3690_v1 = vmul.f32 %v3401_v58, %v10430_v22  ;;  %v3504_v24 = vmul.f32 %v9403_v43, %v3484_v38  ;;  %v14104_v11 = vld [vmem:[#allocation181_spill] sm:$0xff] }
 0x400   : > { %v3317_v62 = vadd.f32 %v3301_v54, %v14101_v7  ;;  %v3318_v61 = vadd.f32 %v10384_v17, %v14102_v5  ;;  %v3437_v37 = vmul.f32 %v9416_v48, %v3417_v23  ;;  %v3468_v33 = vadd.f32 %v3452_v53, %v3384_v30  ;;  %v14105_v22 = vld [vmem:[#allocation33_spill] sm:$0xff]  ;;  %v14106_v54 = vld [vmem:[#allocation175_spill] sm:$0xff]  ;;  %v14109_v53 = vld [vmem:[#allocation194_spill] sm:$0xff] }
 0x401   : > { %v3467_v63 = vadd.f32 %v3451_v35, %v3383_v42  ;;  %v3555_v20 = vmul.f32 %v9419_v31, %v3535_v26  ;;  %v10501_v14 = vmul.f32 %v9718_v18, %v3690_v1  ;;  %v3469_v38 = vmul.f32 %v10354_v19, %v14105_v22  ;;  %v14108_v42 = vld [vmem:[#allocation169_spill] sm:$0xff] }
 0x402   : > { %v3369_v25 = vadd.f32 %v10360_v60, %v3317_v62  ;;  %v3370_v58 = vadd.f32 %v14104_v11, %v3318_v61  ;;  %v2119_v7 = vadd.f32 %v10397_v28, %v14106_v54  ;;  %v10509_v5 = vadd.f32 %v3504_v24, %v3468_v33  ;;  %v14111_v62 = vld [vmem:[#allocation179_spill] sm:$0xff]  ;;  %v14113_v24 = vld [vmem:[#allocation188_spill] sm:$0xff]  ;;  %v14167_v34 = vld [vmem:[#allocation145_spill] sm:$0xff] }
 0x403   : > { %14103 = vst [vmem:[#allocation177_spill] sm:$0xff] %v10501_v14  ;;  %v3519_v17 = vadd.f32 %v3503_v56, %v3467_v63  ;;  %v2120_v30 = vadd.f32 %v10366_v21, %v14108_v42  ;;  %v2368_v23 = vmul.f32 %v9406_v9, %v2348_v0  ;;  %v3489_v60 = vmul.f32 %v9403_v43, %v3469_v38  ;;  %v14112_v63 = vld [vmem:[#allocation195_spill] sm:$0xff]  ;;  %v14117_v42 = vld [vmem:[#allocation197_spill] sm:$0xff] }
 0x404   : > { %14107 = vst [vmem:[#allocation173_spill] sm:$0xff] %v10509_v5  ;;  %v3453_v35 = vadd.f32 %v3437_v37, %v3369_v25  ;;  %v3454_v26 = vadd.f32 %v14109_v53, %v3370_v58  ;;  %v2235_v11 = vadd.f32 %v10340_v32, %v2119_v7  ;;  %v2464_v28 = vmul.f32 %v14105_v22, %v10337_v47  ;;  %v14114_v25 = vld [vmem:[#allocation192_spill] sm:$0xff]  ;;  %v14115_v38 = vld [vmem:[#allocation83_spill] sm:$0xff]  ;;  %v14169_v47 = vld [vmem:[#allocation166_spill] sm:$0xff] }
 0x405   : > { %v10517_v1 = vadd.f32 %v3555_v20, %v3519_v17  ;;  %v2236_v61 = vadd.f32 %v14111_v62, %v2120_v30  ;;  %v3560_v33 = vadd.f32 %v9983_v2, %v9782_v13  ;;  %v3663_v37 = vadd.f32 %v14113_v24, %v9812_v36  ;;  %v14116_v7 = vld [vmem:[#allocation196_spill] sm:$0xff]  ;;  %v14118_v2 = vld [vmem:[#allocation71_spill] sm:$0xff]  ;;  %v14171_v5 = vld [vmem:[#allocation214_spill] sm:$0xff] }
 0x406   : > { %v3505_v21 = vadd.f32 %v3489_v60, %v3453_v35  ;;  %v3506_v0 = vadd.f32 %v14112_v63, %v3454_v26  ;;  %v2384_v56 = vadd.f32 %v2368_v23, %v2235_v11  ;;  %v2484_v32 = vmul.f32 %v9397_v15, %v2464_v28  ;;  %v14119_v26 = vld [vmem:[#allocation199_spill] sm:$0xff]  ;;  %v10546_v11 = vld [vmem:[%s12991_s9 + $0x1] ss:$0 sm:$0xff]  ;;  %v14121_v28 = vld [vmem:[#allocation193_spill] sm:$0xff] }
 0x407   : > { %14110 = vst [vmem:[#allocation181_spill] sm:$0xff] %v10517_v1  ;;  %v2385_v58 = vadd.f32 %v14114_v25, %v2236_v61  ;;  %v3612_v20 = vadd.f32 %v9986_v46, %v3560_v33  ;;  %v3679_v54 = vmul.f32 %v9932_v12, %v14115_v38  ;;  %v3680_v30 = vmul.f32 %v9926_v6, %v14118_v2  ;;  %v14120_v61 = vld [vmem:[#allocation210_spill] sm:$0xff]  ;;  %v14125_v24 = vld [vmem:[#allocation200_spill] sm:$0xff]  ;;  %v14170_v1 = vld [vmem:[#allocation87_spill] sm:$0xff] }
 0x408   : > { %v3557_v17 = vadd.f32 %v14116_v7, %v3505_v21  ;;  %v3558_v13 = vadd.f32 %v14117_v42, %v3506_v0  ;;  %v2603_v23 = vmul.f32 %v9413_v27, %v9894_v51  ;;  %v2500_v36 = vadd.f32 %v2484_v32, %v2384_v56  ;;  %v14123_v63 = vld [vmem:[#allocation222_spill] sm:$0xff]  ;;  %v14124_v0 = vld [vmem:[#allocation171_spill] sm:$0xff]  ;;  %v14130_v42 = vld [vmem:[#allocation205_spill] sm:$0xff] }
 0x409   : > { %v2501_v35 = vadd.f32 %v9759_v50, %v2385_v58  ;;  %v3664_v53 = vadd.f32 %v9947_v44, %v3612_v20  ;;  %v3699_v46 = vmul.f32 %v9718_v18, %v3679_v54  ;;  %v3700_v62 = vmul.f32 %v9718_v18, %v3680_v30  ;;  %v14122_v50 = vld [vmem:[#allocation203_spill] sm:$0xff]  ;;  %v14127_v20 = vld [vmem:[#allocation212_spill] sm:$0xff]  ;;  %v14128_v54 = vld [vmem:[#allocation213_spill] sm:$0xff] }
 0x40a   : > { %v3609_v60 = vadd.f32 %v14119_v26, %v3557_v17  ;;  %v3610_v12 = vadd.f32 %v9721_v29, %v3558_v13  ;;  %v2619_v51 = vadd.f32 %v2603_v23, %v14120_v61  ;;  %v2616_v33 = vadd.f32 %v14121_v28, %v2500_v36  ;;  %v14126_v29 = vld [vmem:[#allocation185_spill] sm:$0xff]  ;;  %v14129_v17 = vld [vmem:[#allocation204_spill] sm:$0xff] }
 0x40b   : > { %v2617_v21 = vadd.f32 %v14122_v50, %v2501_v35  ;;  %v3715_v44 = vadd.f32 %v3699_v46, %v3663_v37  ;;  %v2719_v56 = vmul.f32 %v14124_v0, %v14123_v63  ;;  %v3716_v32 = vadd.f32 %v3700_v62, %v3664_v53  ;;  %v14131_v36 = vld [vmem:[#allocation201_spill] sm:$0xff]  ;;  %v14132_v35 = vld [vmem:[#allocation202_spill] sm:$0xff]  ;;  %v14135_v62 = vld [vmem:[#allocation208_spill] sm:$0xff] }
 0x40c   : > { %v3661_v25 = vadd.f32 %v14125_v24, %v3609_v60  ;;  %v3662_v58 = vadd.f32 %v14126_v29, %v3610_v12  ;;  %v2734_v7 = vadd.f32 %v14128_v54, %v14127_v20  ;;  %v2732_v18 = vadd.f32 %v14129_v17, %v2616_v33  ;;  %v14133_v60 = vld [vmem:[#allocation184_spill] sm:$0xff]  ;;  %v14134_v12 = vld [vmem:[#allocation207_spill] sm:$0xff] }
 0x40d   : > { %v2733_v13 = vadd.f32 %v14130_v42, %v2617_v21  ;;  %v3738_v30 = vadd.f32 %v10546_v11, %v3715_v44  ;;  %v2735_v23 = vadd.f32 %v2719_v56, %v2619_v51  ;;  %v3739_v26 = vadd.f32 %v10546_v11, %v3716_v32  ;;  %v14136_v50 = vld [vmem:[#allocation223_spill] sm:$0xff]  ;;  %v14138_v56 = vld [vmem:[#allocation209_spill] sm:$0xff]  ;;  %v10585_v42 = vld [vmem:[%s12991_s9] ss:$0 sm:$0xff] }
 0x40e   : > { %v3713_v37 = vadd.f32 %v14131_v36, %v3661_v25  ;;  %v3714_v46 = vadd.f32 %v14132_v35, %v3662_v58  ;;  %v2850_v61 = vadd.f32 %v14133_v60, %v2734_v7  ;;  %v2848_v53 = vadd.f32 %v14134_v12, %v2732_v18  ;;  %v14137_v51 = vld [vmem:[#allocation219_spill] sm:$0xff]  ;;  %v14140_v58 = vld [vmem:[#allocation218_spill] sm:$0xff]  ;;  %v14143_v7 = vld [vmem:[#allocation232_spill] sm:$0xff] }
 0x40f   : > { %v2849_v28 = vadd.f32 %v14135_v62, %v2733_v13  ;;  %vm3754_vm13 = vcmp.gt.f32.partialorder %v3738_v30, 0.0  ;;  %v2851_v33 = vadd.f32 %v14136_v50, %v2735_v23  ;;  %vm3755_vm14 = vcmp.gt.f32.partialorder %v3739_v26, 0.0  ;;  %v14139_v25 = vld [vmem:[#allocation211_spill] sm:$0xff]  ;;  %v14146_v36 = vld [vmem:[#allocation158_spill] sm:$0xff]  ;;  %v4112_v30 = vld [vmem:[#allocation11 + $0x1d0] sm:$0xff] }
 0x410   : > { %v3736_v21 = vadd.f32 %v10546_v11, %v3713_v37  ;;  %v3737_v44 = vadd.f32 %v10546_v11, %v3714_v46  ;;  %v2930_v63 = vmul.f32 %v14115_v38, %v14137_v51  ;;  %v2964_v24 = vadd.f32 %v14138_v56, %v2848_v53  ;;  %v14141_v20 = vld [vmem:[#allocation215_spill] sm:$0xff]  ;;  %vm6191_vm3 = vmpackc.low %vm3755_vm14, %vm3754_vm13  ;;  %v14152_v56 = vld [vmem:[#allocation228_spill] sm:$0xff] }
 0x411   : > { %v2965_v29 = vadd.f32 %v14139_v25, %v2849_v28  ;;  %v2931_v32 = vmul.f32 %v14118_v2, %v14140_v58  ;;  %v14142_v54 = vrot.slane %v14141_v20, 1  ;;  %v14144_v17 = vrot.slane %v14143_v7, 1  ;;  %v14148_v53 = vld [vmem:[#allocation55_spill] sm:$0xff]  ;;  %v14165_v38 = vld [vmem:[#allocation170_spill] sm:$0xff] }
 0x412   : > { %vm3752_vm15 = vcmp.gt.f32.partialorder %v3736_v21, 0.0  ;;  %vm3753_vm1 = vcmp.gt.f32.partialorder %v3737_v44, 0.0  ;;  %v2950_v13 = vmul.f32 %v9756_v8, %v2930_v63  ;;  %v14147_v37 = vrot.slane %v14146_v36, 1  ;;  %v14150_v21 = vld [vmem:[#allocation56_spill] sm:$0xff]  ;;  %v14151_v51 = vld [vmem:[#allocation227_spill] sm:$0xff] }
 0x413   : > { %v3409_v18 = vsel %vm2267_vm12, %v14144_v17, %v14142_v54  ;;  %v14145_v23 = vmov %v14144_v17  ;;  %vm6189_vm2 = vmpackc.low %vm3753_vm1, %vm3752_vm15  ;;  %v2987_v46 = vadd.f32 %v10585_v42, %v2964_v24  ;;  %v2988_v60 = vadd.f32 %v10585_v42, %v2965_v29  ;;  %v14154_v17 = vld [vmem:[#allocation230_spill] sm:$0xff] }
 0x414   : > { %v3410_v35 = vsel %vm2267_vm12, %v14147_v37, %v14145_v23  ;;  %v2951_v12 = vmul.f32 %v9756_v8, %v2931_v32  ;;  %v14149_v28 = vmov 1.0|1.0   ;;  %v2966_v50 = vadd.f32 %v2950_v13, %v2850_v61  ;;  %v7290_v61 = vld [vmem:[#allocation11 + $0x1f0] sm:$0xff]  ;;  %v14153_v32 = vld [vmem:[#allocation187_spill] sm:$0xff]  ;;  %v14155_v23 = vld [vmem:[#allocation74_spill] sm:$0xff] }
 0x415   : > { %v3423_v62 = vmul.f32 %v3410_v35, %v14148_v53  ;;  %6747 = vmatprep.mubr.msk.bf16.mxu0 %vm6189_vm2, %v14149_v28  ;;  %v3424_v44 = vmul.f32 %v3409_v18, %v14150_v21  ;;  %v3441_v63 = vmul.f32 %v9416_v48, %v14151_v51  ;;  %v3442_v24 = vmul.f32 %v9416_v48, %v14152_v56  ;;  %v14156_v37 = vld [vmem:[#allocation224_spill] sm:$0xff]  ;;  %v4111_v56 = vld [vmem:[#allocation11 + $0x1b0] sm:$0xff] }
 0x416   : > { %vm3003_vm4 = vcmp.gt.f32.partialorder %v2987_v46, 0.0  ;;  %vm3004_vm5 = vcmp.gt.f32.partialorder %v2988_v60, 0.0  ;;  %6748 = vmatmul.mubr.msk.bf16.vlgmr.msra.gmra.mxu0 %vm6191_vm3, %v14149_v28  ;;  %v2967_v8 = vadd.f32 %v2951_v12, %v2851_v33  ;;  %v2989_v26 = vadd.f32 %v10585_v42, %v2966_v50  ;;  %v14157_v60 = vld [vmem:[#allocation60_spill] sm:$0xff]  ;;  %v14158_v12 = vld [vmem:[#allocation225_spill] sm:$0xff]  ;;  %v14159_v50 = vld [vmem:[#allocation75_spill] sm:$0xff] }
 0x417   : > { %v10608_v25 = vmul.f32 %v9416_v48, %v3423_v62  ;;  %vm6213_vm6 = vmpackc.low %vm3004_vm5, %vm3003_vm4  ;;  %6796 = vmatpush3.msra.mxu0 %v7290_v61  ;;  %v10612_v29 = vmul.f32 %v9416_v48, %v3424_v44  ;;  %v3457_v54 = vadd.f32 %v3441_v63, %v14153_v32  ;;  %v3458_v13 = vadd.f32 %v3442_v24, %v14154_v17  ;;  %v14160_v44 = vld [vmem:[#allocation111_spill] sm:$0xff]  ;;  %v14161_v63 = vld [vmem:[#allocation113_spill] sm:$0xff] }
 0x418   : > { %6779 = vmatprep.mubr.msk.bf16.mxu1 %vm6213_vm6, %v14149_v28  ;;  %v2990_v33 = vadd.f32 %v10585_v42, %v2967_v8  ;;  %v3473_v46 = vmul.f32 %v14156_v37, %v14155_v23  ;;  %v3474_v62 = vmul.f32 %v14158_v12, %v14157_v60  ;;  %v3525_v51 = vmul.f32 %v9926_v6, %v14159_v50  ;;  %v14162_v24 = vld [vmem:[#allocation85_spill] sm:$0xff] }
 0x419   : > { %vm3005_vm7 = vcmp.gt.f32.partialorder %v2989_v26, 0.0  ;;  %v3526_v61 = vmul.f32 %v3410_v35, %v14160_v44  ;;  %v10626_v32 = vmul.f32 %v3409_v18, %v14161_v63  ;;  %v3577_v17 = vmul.f32 %v14158_v12, %v14162_v24  ;;  %6797 = vmatprep.subr.mxu0 %v4112_v30  ;;  %v14163_v26 = vld [vmem:[#allocation129_spill] sm:$0xff] }
 0x41a   : > { %vm3006_vm8 = vcmp.gt.f32.partialorder %v2990_v33, 0.0  ;;  %v3493_v8 = vmul.f32 %v9403_v43, %v3473_v46  ;;  %v3494_v37 = vmul.f32 %v9403_v43, %v3474_v62  ;;  %v3545_v40 = vmul.f32 %v9419_v31, %v3525_v51  ;;  %6798 = vmatpush3.msra.mxu0 %v4112_v30  ;;  %v4110_v33 = vld [vmem:[#allocation11 + $0x190] sm:$0xff]  ;;  %v14168_v51 = vld [vmem:[#allocation114_spill] sm:$0xff] }
 0x41b   : > { %vm6215_vm9 = vmpackc.low %vm3006_vm8, %vm3005_vm7  ;;  %v3546_v6 = vmul.f32 %v9419_v31, %v3526_v61  ;;  %v3578_v2 = vmul.f32 %v14164_v49, %v14163_v26  ;;  %v3597_v22 = vmul.f32 %v14165_v38, %v3577_v17  ;;  %v3629_v12 = vmul.f32 %v14146_v36, %v14166_v16  ;;  %6799 = vmatprep.subr.mxu0 %v4111_v56  ;;  %v14173_v36 = vld [vmem:[#allocation231_spill] sm:$0xff] }
 0x41c   : > { %6780 = vmatmul.mubr.msk.bf16.vlgmr.msra.gmra.mxu1 %vm6215_vm9, %v14149_v28  ;;  %v3509_v46 = vadd.f32 %v3493_v8, %v3457_v54  ;;  %v3510_v62 = vadd.f32 %v3494_v37, %v3458_v13  ;;  %v3630_v30 = vmul.f32 %v14143_v7, %v14167_v34  ;;  %v3681_v45 = vmul.f32 %v3410_v35, %v14168_v51  ;;  %v4109_v54 = vld [vmem:[#allocation11 + $0x170] sm:$0xff]  ;;  %v10655_v8 = vld [vmem:[#allocation13 + $0x28] ss:$0 sm:$0xff] }
 0x41d   : > { %v3598_v61 = vmul.f32 %v14165_v38, %v3578_v2  ;;  %v3649_v59 = vmul.f32 %v14169_v47, %v3629_v12  ;;  %v3682_v17 = vmul.f32 %v3409_v18, %v14170_v1  ;;  %v14172_v3 = vrot.slane %v14171_v5, 1  ;;  %6800 = vmatpush3.msra.mxu0 %v4111_v56  ;;  %v14176_v12 = vld [vmem:[#allocation157_spill] sm:$0xff] }
 0x41e   : > { %v14174_v19 = vrot.slane %v14173_v36, 1  ;;  %v3561_v13 = vadd.f32 %v3545_v40, %v3509_v46  ;;  %v3562_v7 = vadd.f32 %v3546_v6, %v3510_v62  ;;  %v3650_v35 = vmul.f32 %v14169_v47, %v3630_v30  ;;  %6801 = vmatprep.subr.mxu0 %v4110_v33  ;;  %v4108_v6 = vld [vmem:[#allocation11 + $0x150] sm:$0xff] }
 0x41f   : > { %v3701_v2 = vmul.f32 %v10655_v8, %v3681_v45  ;;  %v3702_v18 = vmul.f32 %v10655_v8, %v3682_v17  ;;  %v14177_v55 = vrot.slane %v14176_v12, 1  ;;  %6802 = vmatpush3.msra.mxu0 %v4110_v33  ;;  %v14179_v30 = vld [vmem:[#allocation221_spill] sm:$0xff]  ;;  %v2469_v33 = vmul.f32 %v14157_v60, %v14182_v52 }
 0x420   : > { %v10652_v4 = vsel %vm2267_vm12, %v14174_v19, %v14172_v3  ;;  %v14175_v37 = vmov %v14174_v19  ;;  %v14178_v19 = vld [vmem:[#allocation220_spill] sm:$0xff]  ;;  %v3613_v46 = vadd.f32 %v3597_v22, %v3561_v13  ;;  %v3614_v45 = vadd.f32 %v3598_v61, %v3562_v7  ;;  %6803 = vmatprep.subr.mxu0 %v4109_v54  ;;  %v4107_v22 = vld [vmem:[#allocation11 + $0x130] sm:$0xff] }
 0x421   : > { %v2277_v3 = vsel %vm2267_vm12, %v14177_v55, %v14175_v37  ;;  %v2355_v40 = vmul.f32 %v14150_v21, %v10652_v4  ;;  %v2372_v56 = vmul.f32 %v9406_v9, %v14178_v19  ;;  %v2373_v17 = vmul.f32 %v9406_v9, %v14179_v30  ;;  %v14180_v55 = vld [vmem:[#allocation183_spill] sm:$0xff]  ;;  %6804 = vmatpush3.msra.mxu0 %v4109_v54  ;;  %v14183_v19 = vld [vmem:[#allocation226_spill] sm:$0xff]  ;;  %v4106_v54 = vld [vmem:[#allocation11 + $0x110] sm:$0xff] }
 0x422   : > { %v2354_v62 = vmul.f32 %v14148_v53, %v2277_v3  ;;  %v2468_v21 = vmul.f32 %v14155_v23, %v14181_v41  ;;  %v3665_v61 = vadd.f32 %v3649_v59, %v3613_v46  ;;  %v3666_v13 = vadd.f32 %v3650_v35, %v3614_v45  ;;  %6805 = vmatprep.subr.mxu0 %v4108_v6 }
 0x423   : > { %v10673_v14 = vmul.f32 %v9406_v9, %v2355_v40  ;;  %v2388_v37 = vadd.f32 %v2372_v56, %v14180_v55  ;;  %v2389_v30 = vadd.f32 %v2373_v17, %v14183_v19  ;;  %v2489_v56 = vmul.f32 %v9397_v15, %v2469_v33  ;;  %6806 = vmatpush3.msra.mxu0 %v4108_v6  ;;  %v4105_v17 = vld [vmem:[#allocation11 + $0xf0] sm:$0xff] }
 0x424   : > { %v10681_v7 = vmul.f32 %v9406_v9, %v2354_v62  ;;  %v2488_v40 = vmul.f32 %v9397_v15, %v2468_v21  ;;  %v2584_v41 = vmul.f32 %v14159_v50, %v14140_v58  ;;  %v2585_v55 = vmul.f32 %v14160_v44, %v2277_v3  ;;  %6807 = vmatprep.subr.mxu0 %v4107_v22  ;;  %v14204_v44 = vld [vmem:[#allocation147_spill] sm:$0xff]  ;;  %v4099_v50 = vld [vmem:[#allocation11 + $0x30] sm:$0xff] }
 0x425   : > { %v3717_v60 = vadd.f32 %v3701_v2, %v3665_v61  ;;  %v3718_v59 = vadd.f32 %v3702_v18, %v3666_v13  ;;  %v10691_v35 = vmul.f32 %v14161_v63, %v10652_v4  ;;  %v2700_v46 = vmul.f32 %v14162_v24, %v14182_v52  ;;  %6808 = vmatpush3.msra.mxu0 %v4107_v22  ;;  %v14184_v18 = vld [vmem:[#allocation234_spill] sm:$0xff]  ;;  %v14203_v24 = vld [vmem:[#allocation249_spill] sm:$0xff] }
 0x426   : > { %v2504_v21 = vadd.f32 %v2488_v40, %v2388_v37  ;;  %v2505_v45 = vadd.f32 %v2489_v56, %v2389_v30  ;;  %v2604_v62 = vmul.f32 %v9413_v27, %v2584_v41  ;;  %v2605_v58 = vmul.f32 %v9413_v27, %v2585_v55  ;;  %6809 = vmatprep.subr.mxu0 %v4106_v54  ;;  %v4104_v30 = vld [vmem:[#allocation11 + $0xd0] sm:$0xff] }
 0x427   : > { %v3740_v6 = vadd.f32 %v10546_v11, %v3717_v60  ;;  %v3741_v2 = vadd.f32 %v10546_v11, %v3718_v59  ;;  %v2701_v33 = vmul.f32 %v14163_v26, %v14184_v18  ;;  %v2720_v61 = vmul.f32 %v14124_v0, %v2700_v46  ;;  %6810 = vmatpush3.msra.mxu0 %v4106_v54  ;;  %v14185_v56 = vld [vmem:[#allocation165_spill] sm:$0xff]  ;;  %v10713_v54 = vld [vmem:[#allocation13 + $0x20] ss:$0 sm:$0xff] }
 0x428   : > { %v2620_v52 = vadd.f32 %v2604_v62, %v2504_v21  ;;  %v2621_v13 = vadd.f32 %v2605_v58, %v2505_v45  ;;  %v2816_v37 = vmul.f32 %v14166_v16, %v14176_v12  ;;  %v2817_v19 = vmul.f32 %v14167_v34, %v14173_v36  ;;  %6811 = vmatprep.subr.mxu0 %v4105_v17  ;;  %v14188_v21 = vld [vmem:[#allocation244_spill] sm:$0xff]  ;;  %v14200_v34 = vld [vmem:[#allocation123_spill] sm:$0xff]  ;;  %v14202_v26 = vld [vmem:[#allocation93_spill] sm:$0xff] }
 0x429   : > { %vm3756_vm10 = vcmp.gt.f32.partialorder %v3740_v6, 0.0  ;;  %vm3757_vm11 = vcmp.gt.f32.partialorder %v3741_v2, 0.0  ;;  %v2721_v60 = vmul.f32 %v14124_v0, %v2701_v33  ;;  %v2932_v22 = vmul.f32 %v14168_v51, %v2277_v3  ;;  %6812 = vmatpush3.msra.mxu0 %v4105_v17  ;;  %v14186_v3 = vld [vmem:[#allocation240_spill] sm:$0xff]  ;;  %v4103_v17 = vld [vmem:[#allocation11 + $0xb0] sm:$0xff] }
 0x42a   : > { %vm6193_vm13 = vmpackc.low %vm3757_vm11, %vm3756_vm10  ;;  %v2736_v40 = vadd.f32 %v2720_v61, %v2620_v52  ;;  %v2836_v41 = vmul.f32 %v14185_v56, %v2816_v37  ;;  %v2837_v55 = vmul.f32 %v14185_v56, %v2817_v19  ;;  %v2933_v12 = vmul.f32 %v14170_v1, %v10652_v4  ;;  %v14192_v61 = vld [vmem:[#allocation63_spill] sm:$0xff]  ;;  %6813 = vmatprep.subr.mxu0 %v4104_v30  ;;  %v14196_v1 = vld [vmem:[#allocation64_spill] sm:$0xff] }
 0x42b   : > { %6751 = vmatprep.mubr.msk.bf16.mxu0 %vm6193_vm13, %v14149_v28  ;;  %v2737_v36 = vadd.f32 %v2721_v60, %v2621_v13  ;;  %v2952_v59 = vmul.f32 %v10713_v54, %v2932_v22  ;;  %v14187_v46 = vrot.slane %v14186_v3, 1  ;;  %v14189_v45 = vrot.slane %v14188_v21, 1  ;;  %v14193_v13 = vld [vmem:[#allocation95_spill] sm:$0xff]  ;;  %v14194_v60 = vld [vmem:[#allocation238_spill] sm:$0xff]  ;;  %6814 = vmatpush3.msra.mxu0 %v4104_v30  ;;  %v4101_v30 = vld [vmem:[#allocation11 + $0x70] sm:$0xff] }
 0x42c   : > { %v14191_v6 = vrot.slane %v14141_v20, 1  ;;  %v2852_v2 = vadd.f32 %v2836_v41, %v2736_v40  ;;  %v2953_v33 = vmul.f32 %v10713_v54, %v2933_v12  ;;  %v3459_v22 = vadd.f32 %v10608_v25, %v14194_v60  ;;  %6815 = vmatprep.subr.mxu0 %v4103_v17  ;;  %v4100_v63 = vld [vmem:[#allocation11 + $0x50] sm:$0xff] }
 0x42d   : > { %v3407_v62 = vsel %vm2267_vm12, %v14189_v45, %v14187_v46  ;;  %v14190_v58 = vmov %v14189_v45  ;;  %v2853_v19 = vadd.f32 %v2837_v55, %v2737_v36  ;;  %v14195_v46 = vld [vmem:[#allocation243_spill] sm:$0xff]  ;;  %v3475_v51 = vmul.f32 %v14164_v49, %v14196_v1  ;;  %6816 = vmatpush3.msra.mxu0 %v4103_v17 }
 0x42e   : > { %v3408_v4 = vsel %vm2267_vm12, %v14191_v6, %v14190_v58  ;;  %v3426_v37 = vmul.f32 %v3407_v62, %v14193_v13  ;;  %v3460_v45 = vadd.f32 %v10612_v29, %v14195_v46  ;;  %v4102_v58 = vld [vmem:[#allocation11 + $0x90] sm:$0xff]  ;;  %v2968_v40 = vadd.f32 %v2952_v59, %v2852_v2  ;;  %v14197_v6 = vld [vmem:[#allocation66_spill] sm:$0xff]  ;;  %v14198_v55 = vld [vmem:[#allocation235_spill] sm:$0xff] }
 0x42f   : > { %v3425_v52 = vmul.f32 %v3408_v4, %v14192_v61  ;;  %v3476_v36 = vmul.f32 %v14198_v55, %v14197_v6  ;;  %v2969_v25 = vadd.f32 %v2953_v33, %v2853_v19  ;;  %v3495_v60 = vmul.f32 %v9403_v43, %v3475_v51  ;;  %v14199_v29 = vld [vmem:[#allocation80_spill] sm:$0xff]  ;;  %6817 = vmatprep.subr.mxu0 %v4102_v58 }
 0x430   : > { %v10741_v12 = vmul.f32 %v9416_v48, %v3426_v37  ;;  %v3528_v46 = vmul.f32 %v3408_v4, %v14199_v29  ;;  %v10748_v49 = vmul.f32 %v3407_v62, %v14200_v34  ;;  %v2991_v59 = vadd.f32 %v10585_v42, %v2968_v40  ;;  %v14201_v37 = vld [vmem:[#allocation131_spill] sm:$0xff]  ;;  %6818 = vmatpush3.msra.mxu0 %v4102_v58 }
 0x431   : > { %v10738_v41 = vmul.f32 %v9416_v48, %v3425_v52  ;;  %v3496_v2 = vmul.f32 %v9403_v43, %v3476_v36  ;;  %v3547_v52 = vmul.f32 %v9419_v31, %v10626_v32  ;;  %v3579_v16 = vmul.f32 %v14198_v55, %v14201_v37  ;;  %6819 = vmatprep.subr.mxu0 %v4101_v30 }
 0x432   : > { %v2992_v51 = vadd.f32 %v10585_v42, %v2969_v25  ;;  %v3511_v33 = vadd.f32 %v3495_v60, %v3459_v22  ;;  %v3548_v19 = vmul.f32 %v9419_v31, %v3528_v46  ;;  %v3580_v17 = vmul.f32 %v14203_v24, %v14202_v26  ;;  %v14205_v22 = vld [vmem:[#allocation110_spill] sm:$0xff]  ;;  %6820 = vmatpush3.msra.mxu0 %v4101_v30 }
 0x433   : > { %vm3007_vm14 = vcmp.gt.f32.partialorder %v2991_v59, 0.0  ;;  %v3512_v40 = vadd.f32 %v3496_v2, %v3460_v45  ;;  %v3599_v36 = vmul.f32 %v14165_v38, %v3579_v16  ;;  %v3631_v32 = vmul.f32 %v14141_v20, %v14204_v44  ;;  %v14206_v59 = vld [vmem:[#allocation92_spill] sm:$0xff]  ;;  %v14207_v2 = vld [vmem:[#allocation119_spill] sm:$0xff]  ;;  %6821 = vmatprep.subr.mxu0 %v4100_v63 }
 0x434   : > { %vm3008_vm15 = vcmp.gt.f32.partialorder %v2992_v51, 0.0  ;;  %v3563_v55 = vadd.f32 %v3547_v52, %v3511_v33  ;;  %v3600_v25 = vmul.f32 %v14165_v38, %v3580_v17  ;;  %v3632_v60 = vmul.f32 %v14188_v21, %v14205_v22  ;;  %v14208_v51 = vld [vmem:[#allocation239_spill] sm:$0xff]  ;;  %v14210_v17 = vld [vmem:[#allocation241_spill] sm:$0xff]  ;;  %6822 = vmatpush3.msra.mxu0 %v4100_v63 }
 0x435   : > { %vm6217_vm1 = vmpackc.low %vm3008_vm15, %vm3007_vm14  ;;  %v3564_v46 = vadd.f32 %v3548_v19, %v3512_v40  ;;  %v3651_v58 = vmul.f32 %v14169_v47, %v3631_v32  ;;  %v3683_v45 = vmul.f32 %v3408_v4, %v14206_v59  ;;  %v3684_v16 = vmul.f32 %v3407_v62, %v14207_v2  ;;  %6823 = vmatprep.subr.mxu0 %v4099_v50 }
 0x436   : > { %6783 = vmatprep.mubr.msk.bf16.mxu1 %vm6217_vm1, %v14149_v28  ;;  %v3615_v20 = vadd.f32 %v3599_v36, %v3563_v55  ;;  %v3652_v52 = vmul.f32 %v14169_v47, %v3632_v60  ;;  %v14209_v33 = vrot.slane %v14208_v51, 1  ;;  %v14211_v21 = vrot.slane %v14210_v17, 1  ;;  %v4098_v60 = vld [vmem:[#allocation11 + $0x10] sm:$0xff]  ;;  %6824 = vmatpush3.msra.mxu0 %v4099_v50 }
 0x437   : > { %v14213_v4 = vrot.slane %v14171_v5, 1  ;;  %v3616_v40 = vadd.f32 %v3600_v25, %v3564_v46  ;;  %v3703_v32 = vmul.f32 %v10655_v8, %v3683_v45  ;;  %v3704_v36 = vmul.f32 %v10655_v8, %v3684_v16  ;;  %v14216_v45 = vld [vmem:[#allocation233_spill] sm:$0xff]  ;;  %6825 = vmatprep.subr.mxu0 %v4098_v60 }
 0x438   : > { %v2274_v30 = vsel %vm2267_vm12, %v14211_v21, %v14209_v33  ;;  %v14212_v19 = vmov %v14211_v21  ;;  %v3667_v23 = vadd.f32 %v3651_v58, %v3615_v20  ;;  %v14214_v33 = vld [vmem:[#allocation237_spill] sm:$0xff]  ;;  %v2391_v10 = vadd.f32 %v10673_v14, %v14215_v57  ;;  %v10798_v58 = vld [vmem:[#allocation11 + $0x1f8] sm:$0xff]  ;;  %6826 = vmatpush3.msra.mxu0 %v4098_v60 }
 0x439   : > { %v2275_v62 = vsel %vm2267_vm12, %v14213_v4, %v14212_v19  ;;  %v2357_v53 = vmul.f32 %v14193_v13, %v2274_v30  ;;  %v2390_v21 = vadd.f32 %v10681_v7, %v14214_v33  ;;  %v3668_v19 = vadd.f32 %v3652_v52, %v3616_v40  ;;  %v14217_v40 = vld [vmem:[#allocation246_spill] sm:$0xff]  ;;  %6883 = vmatprep.subr.mxu0 %v10798_v58 }
 0x43a   : > { %v2356_v55 = vmul.f32 %v14192_v61, %v2275_v62  ;;  %v2470_v46 = vmul.f32 %v14196_v1, %v14184_v18  ;;  %v2471_v63 = vmul.f32 %v14197_v6, %v14216_v45  ;;  %v3719_v16 = vadd.f32 %v3703_v32, %v3667_v23  ;;  %v14238_v1 = vld [vmem:[#allocation150_spill] sm:$0xff] }
 0x43b   : > { %v10801_v7 = vmul.f32 %v9406_v9, %v2357_v53  ;;  %v2587_v57 = vmul.f32 %v14199_v29, %v2275_v62  ;;  %v10805_v14 = vmul.f32 %v14200_v34, %v2274_v30  ;;  %v3720_v20 = vadd.f32 %v3704_v36, %v3668_v19 }
 0x43c   : > { %v10792_v25 = vmul.f32 %v9406_v9, %v2356_v55  ;;  %v2490_v52 = vmul.f32 %v9397_v15, %v2470_v46  ;;  %v2491_v18 = vmul.f32 %v9397_v15, %v2471_v63  ;;  %v2606_v50 = vmul.f32 %v9413_v27, %v10691_v35 }
 0x43d   : > { %v3742_v23 = vadd.f32 %v10546_v11, %v3719_v16  ;;  %v2607_v53 = vmul.f32 %v9413_v27, %v2587_v57  ;;  %v2702_v4 = vmul.f32 %v14201_v37, %v14216_v45  ;;  %v2703_v32 = vmul.f32 %v14202_v26, %v14217_v40  ;;  %v14218_v57 = vld [vmem:[#allocation251_spill] sm:$0xff]  ;;  %v14236_v26 = vld [vmem:[#allocation141_spill] sm:$0xff] }
 0x43e   : > { %v3743_v36 = vadd.f32 %v10546_v11, %v3720_v20  ;;  %v2506_v55 = vadd.f32 %v2490_v52, %v2390_v21  ;;  %v2507_v33 = vadd.f32 %v2491_v18, %v2391_v10  ;;  %v2818_v35 = vmul.f32 %v14204_v44, %v14171_v5  ;;  %v14220_v52 = vld [vmem:[#allocation255_spill] sm:$0xff] }
 0x43f   : > { %vm3758_vm2 = vcmp.gt.f32.partialorder %v3742_v23, 0.0  ;;  %v2722_v60 = vmul.f32 %v14124_v0, %v2702_v4  ;;  %v2723_v19 = vmul.f32 %v14124_v0, %v2703_v32  ;;  %v2819_v46 = vmul.f32 %v14205_v22, %v14210_v17  ;;  %v14224_v32 = vld [vmem:[#allocation105_spill] sm:$0xff]  ;;  %v14231_v22 = vld [vmem:[#allocation116_spill] sm:$0xff] }
 0x440   : > { %vm3759_vm3 = vcmp.gt.f32.partialorder %v3743_v36, 0.0  ;;  %v2622_v45 = vadd.f32 %v2606_v50, %v2506_v55  ;;  %v2623_v63 = vadd.f32 %v2607_v53, %v2507_v33  ;;  %v2838_v16 = vmul.f32 %v14185_v56, %v2818_v35  ;;  %v14225_v33 = vld [vmem:[#allocation102_spill] sm:$0xff] }
 0x441   : > { %vm6195_vm4 = vmpackc.low %vm3759_vm3, %vm3758_vm2  ;;  %v2839_v21 = vmul.f32 %v14185_v56, %v2819_v46  ;;  %v2934_v10 = vmul.f32 %v14206_v59, %v2275_v62  ;;  %v2935_v5 = vmul.f32 %v14207_v2, %v2274_v30  ;;  %v14219_v20 = vrot.slane %v14218_v57, 1  ;;  %v14226_v46 = vld [vmem:[#allocation252_spill] sm:$0xff] }
 0x442   : > { %v14221_v18 = vrot.slane %v14220_v52, 1  ;;  %6752 = vmatmul.mubr.msk.bf16.gmra.mxu0 %vm6195_vm4, %v14149_v28  ;;  %v2738_v17 = vadd.f32 %v2722_v60, %v2622_v45  ;;  %v2739_v50 = vadd.f32 %v2723_v19, %v2623_v63  ;;  %v14223_v4 = vrot.slane %v14186_v3, 1  ;;  %v14227_v63 = vld [vmem:[#allocation257_spill] sm:$0xff]  ;;  %v14230_v2 = vld [vmem:[#allocation248_spill] sm:$0xff] }
 0x443   : > { %v2954_v36 = vmul.f32 %v10713_v54, %v2934_v10  ;;  %v2955_v55 = vmul.f32 %v10713_v54, %v2935_v5  ;;  %v14229_v5 = vld [vmem:[#allocation112_spill] sm:$0xff]  ;;  %v3633_v37 = vmul.f32 %v14186_v3, %v14236_v26 }
 0x444   : > { %v3405_v23 = vsel %vm2267_vm12, %v14221_v18, %v14219_v20  ;;  %v14222_v53 = vmov %v14221_v18  ;;  %v3461_v20 = vadd.f32 %v10738_v41, %v14226_v46  ;;  %v2854_v60 = vadd.f32 %v2838_v16, %v2738_v17 }
 0x445   : > { %v3406_v62 = vsel %vm2267_vm12, %v14223_v4, %v14222_v53  ;;  %v3428_v30 = vmul.f32 %v3405_v23, %v14224_v32  ;;  %v2855_v19 = vadd.f32 %v2839_v21, %v2739_v50  ;;  %v3462_v18 = vadd.f32 %v10741_v12, %v14227_v63  ;;  %v14228_v4 = vld [vmem:[#allocation76_spill] sm:$0xff]  ;;  %v14232_v21 = vld [vmem:[#allocation118_spill] sm:$0xff] }
 0x446   : > { %v3427_v35 = vmul.f32 %v3406_v62, %v14225_v33  ;;  %v3477_v10 = vmul.f32 %v14203_v24, %v14228_v4  ;;  %v3478_v59 = vmul.f32 %v14230_v2, %v14229_v5  ;;  %v3530_v44 = vmul.f32 %v3406_v62, %v14231_v22  ;;  %v14233_v24 = vld [vmem:[#allocation132_spill] sm:$0xff] }
 0x447   : > { %v10849_v45 = vmul.f32 %v9416_v48, %v3428_v30  ;;  %v2970_v41 = vadd.f32 %v2954_v36, %v2854_v60  ;;  %v2971_v16 = vadd.f32 %v2955_v55, %v2855_v19  ;;  %v10862_v17 = vmul.f32 %v3405_v23, %v14232_v21  ;;  %v14234_v55 = vld [vmem:[#allocation134_spill] sm:$0xff]  ;;  %v14235_v60 = vld [vmem:[#allocation261_spill] sm:$0xff] }
 0x448   : > { %v10854_v53 = vmul.f32 %v9416_v48, %v3427_v35  ;;  %v3549_v50 = vmul.f32 %v9419_v31, %v10748_v49  ;;  %v3497_v12 = vmul.f32 %v9403_v43, %v3477_v10  ;;  %v3498_v30 = vmul.f32 %v9403_v43, %v3478_v59  ;;  %v14237_v59 = vld [vmem:[#allocation149_spill] sm:$0xff] }
 0x449   : > { %v3550_v35 = vmul.f32 %v9419_v31, %v3530_v44  ;;  %v3581_v46 = vmul.f32 %v14230_v2, %v14233_v24  ;;  %v2993_v63 = vadd.f32 %v10585_v42, %v2970_v41  ;;  %v2994_v36 = vadd.f32 %v10585_v42, %v2971_v16 }
 0x44a   : > { %v3582_v19 = vmul.f32 %v14235_v60, %v14234_v55  ;;  %v3513_v49 = vadd.f32 %v3497_v12, %v3461_v20  ;;  %v3514_v34 = vadd.f32 %v3498_v30, %v3462_v18  ;;  %v3634_v44 = vmul.f32 %v14220_v52, %v14237_v59  ;;  %v14239_v20 = vld [vmem:[#allocation94_spill] sm:$0xff] }
 0x44b   : > { %v3601_v10 = vmul.f32 %v14165_v38, %v3581_v46  ;;  %vm3009_vm5 = vcmp.gt.f32.partialorder %v2993_v63, 0.0  ;;  %vm3010_vm6 = vcmp.gt.f32.partialorder %v2994_v36, 0.0  ;;  %v3653_v41 = vmul.f32 %v14169_v47, %v3633_v37  ;;  %v14240_v12 = vld [vmem:[#allocation250_spill] sm:$0xff] }
 0x44c   : > { %v3602_v2 = vmul.f32 %v14165_v38, %v3582_v19  ;;  %vm6219_vm7 = vmpackc.low %vm3010_vm6, %vm3009_vm5  ;;  %v3565_v16 = vadd.f32 %v3549_v50, %v3513_v49  ;;  %v3566_v29 = vadd.f32 %v3550_v35, %v3514_v34  ;;  %v3654_v6 = vmul.f32 %v14169_v47, %v3634_v44  ;;  %v14242_v52 = vld [vmem:[#allocation254_spill] sm:$0xff]  ;;  %v14246_v35 = vld [vmem:[#allocation247_spill] sm:$0xff] }
 0x44d   : > { %v3685_v3 = vmul.f32 %v3406_v62, %v14238_v1  ;;  %6784 = vmatmul.mubr.msk.bf16.gmra.mxu1 %vm6219_vm7, %v14149_v28  ;;  %v3686_v18 = vmul.f32 %v3405_v23, %v14239_v20  ;;  %v14241_v30 = vrot.slane %v14240_v12, 1  ;;  %v14243_v46 = vrot.slane %v14242_v52, 1 }
 0x44e   : > { %v14245_v50 = vrot.slane %v14208_v51, 1  ;;  %v2392_v62 = vadd.f32 %v10792_v25, %v14246_v35  ;;  %v3617_v36 = vadd.f32 %v3601_v10, %v3565_v16  ;;  %v3618_v19 = vadd.f32 %v3602_v2, %v3566_v29  ;;  %v14248_v29 = vld [vmem:[#allocation245_spill] sm:$0xff] }
 0x44f   : > { %v2272_v63 = vsel %vm2267_vm12, %v14243_v46, %v14241_v30  ;;  %v14244_v37 = vmov %v14243_v46  ;;  %v3705_v23 = vmul.f32 %v10655_v8, %v3685_v3  ;;  %v3706_v44 = vmul.f32 %v10655_v8, %v3686_v18  ;;  %v14247_v46 = vld [vmem:[#allocation253_spill] sm:$0xff] }
 0x450   : > { %v2273_v34 = vsel %vm2267_vm12, %v14245_v50, %v14244_v37  ;;  %v2359_v30 = vmul.f32 %v14224_v32, %v2272_v63  ;;  %v2393_v13 = vadd.f32 %v10801_v7, %v14247_v46  ;;  %v2472_v61 = vmul.f32 %v14228_v4, %v14217_v40 }
 0x451   : > { %v2358_v49 = vmul.f32 %v14225_v33, %v2273_v34  ;;  %v3669_v37 = vadd.f32 %v3653_v41, %v3617_v36  ;;  %v3670_v50 = vadd.f32 %v3654_v6, %v3618_v19  ;;  %v2473_v10 = vmul.f32 %v14229_v5, %v14248_v29 }
 0x452   : > { %v10914_v2 = vmul.f32 %v9406_v9, %v2359_v30  ;;  %v2492_v16 = vmul.f32 %v9397_v15, %v2472_v61  ;;  %v2589_v3 = vmul.f32 %v14231_v22, %v2273_v34  ;;  %v10919_v7 = vmul.f32 %v14232_v21, %v2272_v63  ;;  %v14278_v22 = vld [vmem:[#allocation262_spill] sm:$0xff] }
 0x453   : > { %v10909_v25 = vmul.f32 %v9406_v9, %v2358_v49  ;;  %v3721_v18 = vadd.f32 %v3705_v23, %v3669_v37  ;;  %v3722_v40 = vadd.f32 %v3706_v44, %v3670_v50  ;;  %v2493_v6 = vmul.f32 %v9397_v15, %v2473_v10  ;;  %v14249_v49 = vld [vmem:[#allocation259_spill] sm:$0xff] }
 0x454   : > { %v2608_v41 = vmul.f32 %v9413_v27, %v10805_v14  ;;  %v2508_v35 = vadd.f32 %v2492_v16, %v2392_v62  ;;  %v2609_v36 = vmul.f32 %v9413_v27, %v2589_v3  ;;  %v2704_v19 = vmul.f32 %v14233_v24, %v14248_v29 }
 0x455   : > { %v2705_v61 = vmul.f32 %v14234_v55, %v14249_v49  ;;  %v3744_v30 = vadd.f32 %v10546_v11, %v3721_v18  ;;  %v3745_v46 = vadd.f32 %v10546_v11, %v3722_v40  ;;  %v2509_v23 = vadd.f32 %v2493_v6, %v2393_v13  ;;  %v14250_v40 = vld [vmem:[#allocation264_spill] sm:$0xff]  ;;  %v14268_v55 = vld [vmem:[#allocation151_spill] sm:$0xff] }
 0x456   : > { %v2820_v44 = vmul.f32 %v14236_v26, %v14208_v51  ;;  %v2624_v37 = vadd.f32 %v2608_v41, %v2508_v35  ;;  %v2724_v14 = vmul.f32 %v14124_v0, %v2704_v19  ;;  %v2821_v50 = vmul.f32 %v14237_v59, %v14242_v52  ;;  %v14252_v41 = vld [vmem:[#allocation266_spill] sm:$0xff] }
 0x457   : > { %v2725_v62 = vmul.f32 %v14124_v0, %v2705_v61  ;;  %vm3760_vm8 = vcmp.gt.f32.partialorder %v3744_v30, 0.0  ;;  %vm3761_vm9 = vcmp.gt.f32.partialorder %v3745_v46, 0.0  ;;  %v2625_v29 = vadd.f32 %v2609_v36, %v2509_v23 }
 0x458   : > { %v2840_v10 = vmul.f32 %v14185_v56, %v2820_v44  ;;  %vm6197_vm10 = vmpackc.low %vm3761_vm9, %vm3760_vm8  ;;  %v2740_v16 = vadd.f32 %v2724_v14, %v2624_v37  ;;  %v2841_v13 = vmul.f32 %v14185_v56, %v2821_v50  ;;  %v2936_v3 = vmul.f32 %v14238_v1, %v2273_v34  ;;  %v14256_v34 = vld [vmem:[#allocation263_spill] sm:$0xff]  ;;  %v14257_v44 = vld [vmem:[#allocation68_spill] sm:$0xff] }
 0x459   : > { %v2937_v51 = vmul.f32 %v14239_v20, %v2272_v63  ;;  %6755 = vmatprep.mubr.msk.bf16.mxu0 %vm6197_vm10, %v14149_v28  ;;  %v2741_v18 = vadd.f32 %v2725_v62, %v2625_v29  ;;  %v14251_v6 = vrot.slane %v14250_v40, 1  ;;  %v14253_v52 = vrot.slane %v14252_v41, 1  ;;  %v14258_v62 = vld [vmem:[#allocation139_spill] sm:$0xff]  ;;  %v14259_v29 = vld [vmem:[#allocation268_spill] sm:$0xff] }
 0x45a   : > { %v14255_v19 = vrot.slane %v14218_v57, 1  ;;  %v3463_v63 = vadd.f32 %v10854_v53, %v14256_v34  ;;  %v2856_v30 = vadd.f32 %v2840_v10, %v2740_v16  ;;  %v2956_v46 = vmul.f32 %v10713_v54, %v2936_v3  ;;  %v14261_v53 = vld [vmem:[#allocation117_spill] sm:$0xff]  ;;  %v14262_v10 = vld [vmem:[#allocation260_spill] sm:$0xff] }
 0x45b   : > { %v3403_v35 = vsel %vm2267_vm12, %v14253_v52, %v14251_v6  ;;  %v14254_v36 = vmov %v14253_v52  ;;  %v2957_v23 = vmul.f32 %v10713_v54, %v2937_v51  ;;  %v2857_v14 = vadd.f32 %v2841_v13, %v2741_v18  ;;  %v14260_v52 = vld [vmem:[#allocation115_spill] sm:$0xff]  ;;  %v14263_v3 = vld [vmem:[#allocation128_spill] sm:$0xff] }
 0x45c   : > { %v3404_v61 = vsel %vm2267_vm12, %v14255_v19, %v14254_v36  ;;  %v3430_v50 = vmul.f32 %v3403_v35, %v14258_v62  ;;  %v3464_v6 = vadd.f32 %v10849_v45, %v14259_v29  ;;  %v3479_v20 = vmul.f32 %v14235_v60, %v14260_v52  ;;  %v14264_v1 = vld [vmem:[#allocation120_spill] sm:$0xff] }
 0x45d   : > { %v3429_v37 = vmul.f32 %v3404_v61, %v14257_v44  ;;  %v2972_v36 = vadd.f32 %v2956_v46, %v2856_v30  ;;  %v3480_v16 = vmul.f32 %v14262_v10, %v14261_v53  ;;  %v3532_v51 = vmul.f32 %v3404_v61, %v14263_v3 }
 0x45e   : > { %v2973_v34 = vadd.f32 %v2957_v23, %v2857_v14  ;;  %v10971_v13 = vmul.f32 %v9416_v48, %v3430_v50  ;;  %v3499_v18 = vmul.f32 %v9403_v43, %v3479_v20  ;;  %v10975_v45 = vmul.f32 %v3403_v35, %v14264_v1  ;;  %v14265_v14 = vld [vmem:[#allocation136_spill] sm:$0xff]  ;;  %v14266_v50 = vld [vmem:[#allocation137_spill] sm:$0xff] }
 0x45f   : > { %v10965_v19 = vmul.f32 %v9416_v48, %v3429_v37  ;;  %v2995_v60 = vadd.f32 %v10585_v42, %v2972_v36  ;;  %v3500_v30 = vmul.f32 %v9403_v43, %v3480_v16  ;;  %v3551_v46 = vmul.f32 %v9419_v31, %v10862_v17  ;;  %v14267_v20 = vld [vmem:[#allocation272_spill] sm:$0xff]  ;;  %v14269_v16 = vld [vmem:[#allocation146_spill] sm:$0xff] }
 0x460   : > { %v3552_v37 = vmul.f32 %v9419_v31, %v3532_v51  ;;  %v2996_v29 = vadd.f32 %v10585_v42, %v2973_v34  ;;  %v3515_v23 = vadd.f32 %v3499_v18, %v3463_v63  ;;  %v3583_v48 = vmul.f32 %v14262_v10, %v14265_v14 }
 0x461   : > { %v3584_v59 = vmul.f32 %v14267_v20, %v14266_v50  ;;  %vm3011_vm11 = vcmp.gt.f32.partialorder %v2995_v60, 0.0  ;;  %v3516_v26 = vadd.f32 %v3500_v30, %v3464_v6  ;;  %v3635_v36 = vmul.f32 %v14218_v57, %v14268_v55  ;;  %v14270_v60 = vld [vmem:[#allocation97_spill] sm:$0xff]  ;;  %v14271_v30 = vld [vmem:[#allocation168_spill] sm:$0xff] }
 0x462   : > { %v3636_v24 = vmul.f32 %v14252_v41, %v14269_v16  ;;  %vm3012_vm13 = vcmp.gt.f32.partialorder %v2996_v29, 0.0  ;;  %v3567_v17 = vadd.f32 %v3551_v46, %v3515_v23  ;;  %v3603_v51 = vmul.f32 %v14165_v38, %v3583_v48  ;;  %v14272_v41 = vld [vmem:[#allocation256_spill] sm:$0xff]  ;;  %v14274_v46 = vld [vmem:[#allocation265_spill] sm:$0xff] }
 0x463   : > { %v3604_v63 = vmul.f32 %v14165_v38, %v3584_v59  ;;  %vm6221_vm14 = vmpackc.low %vm3012_vm13, %vm3011_vm11  ;;  %v3568_v34 = vadd.f32 %v3552_v37, %v3516_v26  ;;  %v3655_v10 = vmul.f32 %v14169_v47, %v3635_v36  ;;  %v3687_v6 = vmul.f32 %v3404_v61, %v14270_v60 }
 0x464   : > { %v3656_v18 = vmul.f32 %v14169_v47, %v3636_v24  ;;  %6787 = vmatprep.mubr.msk.bf16.mxu1 %vm6221_vm14, %v14149_v28  ;;  %v3619_v57 = vadd.f32 %v3603_v51, %v3567_v17  ;;  %v3688_v21 = vmul.f32 %v3403_v35, %v14271_v30  ;;  %v14273_v29 = vrot.slane %v14272_v41, 1 }
 0x465   : > { %v14275_v23 = vrot.slane %v14274_v46, 1  ;;  %v14277_v37 = vrot.slane %v14240_v12, 1  ;;  %v3620_v61 = vadd.f32 %v3604_v63, %v3568_v34  ;;  %v3707_v48 = vmul.f32 %v10655_v8, %v3687_v6 }
 0x466   : > { %v3671_v17 = vadd.f32 %v3655_v10, %v3619_v57  ;;  %v3708_v51 = vmul.f32 %v10655_v8, %v3688_v21  ;;  %v2474_v34 = vmul.f32 %v14260_v52, %v14249_v49  ;;  %v14280_v10 = vld [vmem:[#allocation258_spill] sm:$0xff] }
 0x467   : > { %v2270_v59 = vsel %vm2267_vm12, %v14275_v23, %v14273_v29  ;;  %v14276_v26 = vmov %v14275_v23  ;;  %v2394_v29 = vadd.f32 %v10909_v25, %v14278_v22  ;;  %v14279_v23 = vld [vmem:[#allocation267_spill] sm:$0xff]  ;;  %v3672_v4 = vadd.f32 %v3656_v18, %v3620_v61  ;;  %v14281_v61 = vld [vmem:[#allocation270_spill] sm:$0xff] }
 0x468   : > { %v2271_v24 = vsel %vm2267_vm12, %v14277_v37, %v14276_v26  ;;  %v2361_v35 = vmul.f32 %v14258_v62, %v2270_v59  ;;  %v2395_v5 = vadd.f32 %v10914_v2, %v14279_v23  ;;  %v3723_v6 = vadd.f32 %v3707_v48, %v3671_v17  ;;  %v14408_v62 = vld [vmem:[#allocation127_spill] sm:$0xff] }
 0x469   : > { %v2360_v36 = vmul.f32 %v14257_v44, %v2271_v24  ;;  %v2475_v21 = vmul.f32 %v14261_v53, %v14280_v10  ;;  %v2591_v57 = vmul.f32 %v14263_v3, %v2271_v24  ;;  %v11030_v22 = vmul.f32 %v14264_v1, %v2270_v59  ;;  %v14406_v3 = vld [vmem:[#allocation28_spill] sm:$0xff]  ;;  %v14407_v53 = vld [vmem:[#allocation29_spill] sm:$0xff] }
 0x46a   : > { %v11022_v63 = vmul.f32 %v9406_v9, %v2361_v35  ;;  %v3724_v25 = vadd.f32 %v3708_v51, %v3672_v4  ;;  %v2494_v2 = vmul.f32 %v9397_v15, %v2474_v34  ;;  %v2610_v18 = vmul.f32 %v9413_v27, %v10919_v7 }
 0x46b   : > { %v11019_v32 = vmul.f32 %v9406_v9, %v2360_v36  ;;  %v2706_v9 = vmul.f32 %v14265_v14, %v14280_v10  ;;  %v3746_v49 = vadd.f32 %v10546_v11, %v3723_v6  ;;  %v2495_v26 = vmul.f32 %v9397_v15, %v2475_v21 }
 0x46c   : > { %v2611_v37 = vmul.f32 %v9413_v27, %v2591_v57  ;;  %v2707_v48 = vmul.f32 %v14266_v50, %v14281_v61  ;;  %v3747_v36 = vadd.f32 %v10546_v11, %v3724_v25  ;;  %v2510_v4 = vadd.f32 %v2494_v2, %v2394_v29  ;;  %v14283_v2 = vld [vmem:[#allocation280_spill] sm:$0xff] }
 0x46d   : > { %v2726_v35 = vmul.f32 %v14124_v0, %v2706_v9  ;;  %v2822_v7 = vmul.f32 %v14268_v55, %v14240_v12  ;;  %vm3762_vm15 = vcmp.gt.f32.partialorder %v3746_v49, 0.0  ;;  %v2511_v17 = vadd.f32 %v2495_v26, %v2395_v5  ;;  %v14282_v12 = vld [vmem:[#allocation278_spill] sm:$0xff]  ;;  %v14284_v9 = vld [vmem:[#allocation79_spill] sm:$0xff] }
 0x46e   : > { %v2727_v51 = vmul.f32 %v14124_v0, %v2707_v48  ;;  %v2823_v23 = vmul.f32 %v14269_v16, %v14274_v46  ;;  %vm3763_vm1 = vcmp.gt.f32.partialorder %v3747_v36, 0.0  ;;  %v2626_v34 = vadd.f32 %v2610_v18, %v2510_v4  ;;  %v14286_v48 = vld [vmem:[#allocation271_spill] sm:$0xff]  ;;  %v14287_v36 = vld [vmem:[#allocation174_spill] sm:$0xff]  ;;  %v14403_v16 = vld [vmem:[#allocation49_spill] sm:$0xff] }
 0x46f   : > { %v2842_v6 = vmul.f32 %v14185_v56, %v2822_v7  ;;  %v2938_v10 = vmul.f32 %v14270_v60, %v2271_v24  ;;  %vm6199_vm2 = vmpackc.low %vm3763_vm1, %vm3762_vm15  ;;  %v2627_v29 = vadd.f32 %v2611_v37, %v2511_v17  ;;  %v2939_v57 = vmul.f32 %v14271_v30, %v2270_v59  ;;  %v14285_v37 = vld [vmem:[#allocation148_spill] sm:$0xff]  ;;  %v14288_v4 = vld [vmem:[#allocation291_spill] sm:$0xff] }
 0x470   : > { %v2843_v21 = vmul.f32 %v14185_v56, %v2823_v23  ;;  %v3465_v5 = vadd.f32 %v10965_v19, %v14282_v12  ;;  %6756 = vmatmul.mubr.msk.bf16.gmra.mxu0 %vm6199_vm2, %v14149_v28  ;;  %v2742_v25 = vadd.f32 %v2726_v35, %v2626_v34  ;;  %v3466_v18 = vadd.f32 %v10971_v13, %v14283_v2  ;;  %v14289_v23 = vld [vmem:[#allocation186_spill] sm:$0xff] }
 0x471   : > { %v2958_v46 = vmul.f32 %v10713_v54, %v2938_v10  ;;  %v3481_v24 = vmul.f32 %v14267_v20, %v14284_v9  ;;  %v2743_v49 = vadd.f32 %v2727_v51, %v2627_v29  ;;  %v2959_v26 = vmul.f32 %v10713_v54, %v2939_v57  ;;  %v14290_v10 = vld [vmem:[#allocation138_spill] sm:$0xff] }
 0x472   : > { %v3482_v59 = vmul.f32 %v14286_v48, %v14285_v37  ;;  %v3534_v19 = vmul.f32 %v14288_v4, %v14287_v36  ;;  %v2858_v7 = vadd.f32 %v2842_v6, %v2742_v25  ;;  %v3553_v17 = vmul.f32 %v9419_v31, %v10975_v45  ;;  %v14291_v29 = vld [vmem:[#allocation286_spill] sm:$0xff]  ;;  %v14292_v25 = vld [vmem:[#allocation161_spill] sm:$0xff] }
 0x473   : > { %v3501_v35 = vmul.f32 %v9403_v43, %v3481_v24  ;;  %v3585_v13 = vmul.f32 %v14286_v48, %v14289_v23  ;;  %v2859_v34 = vadd.f32 %v2843_v21, %v2743_v49  ;;  %v3586_v57 = vmul.f32 %v14291_v29, %v14290_v10  ;;  %v14293_v48 = vld [vmem:[#allocation191_spill] sm:$0xff]  ;;  %v14294_v21 = vld [vmem:[#allocation284_spill] sm:$0xff] }
 0x474   : > { %v3502_v20 = vmul.f32 %v9403_v43, %v3482_v59  ;;  %v3554_v51 = vmul.f32 %v9419_v31, %v3534_v19  ;;  %v2974_v12 = vadd.f32 %v2958_v46, %v2858_v7  ;;  %v3637_v24 = vmul.f32 %v14250_v40, %v14292_v25  ;;  %v14295_v29 = vld [vmem:[#allocation176_spill] sm:$0xff] }
 0x475   : > { %v3517_v2 = vadd.f32 %v3501_v35, %v3465_v5  ;;  %v3605_v6 = vmul.f32 %v14165_v38, %v3585_v13  ;;  %v2975_v30 = vadd.f32 %v2959_v26, %v2859_v34  ;;  %v3606_v60 = vmul.f32 %v14165_v38, %v3586_v57  ;;  %v14296_v26 = vld [vmem:[#allocation273_spill] sm:$0xff] }
 0x476   : > { %v3518_v45 = vadd.f32 %v3502_v20, %v3466_v18  ;;  %v3638_v49 = vmul.f32 %v14294_v21, %v14293_v48  ;;  %v2997_v43 = vadd.f32 %v10585_v42, %v2974_v12  ;;  %v3657_v19 = vmul.f32 %v14169_v47, %v3637_v24  ;;  %v14297_v34 = vld [vmem:[#allocation277_spill] sm:$0xff]  ;;  %v14299_v12 = vld [vmem:[#allocation287_spill] sm:$0xff] }
 0x477   : > { %v3569_v59 = vadd.f32 %v3553_v17, %v3517_v2  ;;  %v3689_v5 = vmul.f32 %v14288_v4, %v14295_v29  ;;  %v2998_v46 = vadd.f32 %v10585_v42, %v2975_v30  ;;  %v2396_v18 = vadd.f32 %v11019_v32, %v14296_v26  ;;  %v14298_v57 = vld [vmem:[#allocation269_spill] sm:$0xff]  ;;  %v14300_v24 = vld [vmem:[#allocation283_spill] sm:$0xff] }
 0x478   : > { %v3570_v7 = vadd.f32 %v3554_v51, %v3518_v45  ;;  %v3658_v40 = vmul.f32 %v14169_v47, %v3638_v49  ;;  %vm3013_vm3 = vcmp.gt.f32.partialorder %v2997_v43, 0.0  ;;  %v2397_v17 = vadd.f32 %v11022_v63, %v14297_v34 }
 0x479   : > { %v3621_v35 = vadd.f32 %v3605_v6, %v3569_v59  ;;  %v3709_v13 = vmul.f32 %v10655_v8, %v3689_v5  ;;  %vm3014_vm4 = vcmp.gt.f32.partialorder %v2998_v46, 0.0  ;;  %v2476_v4 = vmul.f32 %v14284_v9, %v14281_v61  ;;  %v14301_v59 = vld [vmem:[#allocation177_spill] sm:$0xff] }
 0x47a   : > { %v3622_v20 = vadd.f32 %v3606_v60, %v3570_v7  ;;  %v2477_v30 = vmul.f32 %v14285_v37, %v14298_v57  ;;  %vm6223_vm5 = vmpackc.low %vm3014_vm4, %vm3013_vm3  ;;  %v2593_v32 = vmul.f32 %v14287_v36, %v14299_v12  ;;  %v2612_v2 = vmul.f32 %v9413_v27, %v11030_v22  ;;  %v14402_v36 = vld [vmem:[#allocation42_spill] sm:$0xff]  ;;  %v14405_v37 = vld [vmem:[#allocation31_spill] sm:$0xff] }
 0x47b   : > { %v3673_v51 = vadd.f32 %v3657_v19, %v3621_v35  ;;  %v2708_v6 = vmul.f32 %v14289_v23, %v14298_v57  ;;  %6788 = vmatmul.mubr.msk.bf16.gmra.mxu1 %vm6223_vm5, %v14149_v28  ;;  %v2496_v63 = vmul.f32 %v9397_v15, %v2476_v4  ;;  %v2709_v45 = vmul.f32 %v14290_v10, %v14300_v24  ;;  %v14303_v4 = vld [vmem:[#allocation122_spill] sm:$0xff]  ;;  %v14304_v57 = vld [vmem:[#allocation292_spill] sm:$0xff]  ;;  %v14400_v10 = vld [vmem:[#allocation27_spill] sm:$0xff] }
 0x47c   : > { %v3674_v60 = vadd.f32 %v3658_v40, %v3622_v20  ;;  %v2497_v61 = vmul.f32 %v9397_v15, %v2477_v30  ;;  %v2613_v49 = vmul.f32 %v9413_v27, %v2593_v32  ;;  %v2824_v22 = vmul.f32 %v14292_v25, %v14272_v41  ;;  %v14302_v15 = vld [vmem:[#allocation276_spill] sm:$0xff]  ;;  %v14306_v32 = vld [vmem:[#allocation285_spill] sm:$0xff] }
 0x47d   : > { %v3725_v21 = vadd.f32 %v3709_v13, %v3673_v51  ;;  %v2728_v43 = vmul.f32 %v14124_v0, %v2708_v6  ;;  %v2512_v5 = vadd.f32 %v2496_v63, %v2396_v18  ;;  %v2729_v7 = vmul.f32 %v14124_v0, %v2709_v45  ;;  %v14305_v51 = vld [vmem:[#allocation189_spill] sm:$0xff]  ;;  %v14309_v45 = vld [vmem:[#allocation198_spill] sm:$0xff] }
 0x47e   : > { %v3726_v19 = vadd.f32 %v14301_v59, %v3674_v60  ;;  %v2513_v46 = vadd.f32 %v2497_v61, %v2397_v17  ;;  %v2825_v26 = vmul.f32 %v14293_v48, %v14302_v15  ;;  %v2844_v35 = vmul.f32 %v14185_v56, %v2824_v22  ;;  %v14311_v22 = vld [vmem:[#allocation206_spill] sm:$0xff]  ;;  %v14314_v15 = vld [vmem:[#allocation181_spill] sm:$0xff]  ;;  %v14398_v48 = vld [vmem:[#allocation72_spill] sm:$0xff] }
 0x47f   : > { %v3748_v40 = vadd.f32 %v10546_v11, %v3725_v21  ;;  %v2940_v13 = vmul.f32 %v14295_v29, %v14299_v12  ;;  %v2628_v20 = vadd.f32 %v2612_v2, %v2512_v5  ;;  %v3536_v18 = vmul.f32 %v14304_v57, %v14303_v4  ;;  %v14308_v2 = vld [vmem:[#allocation281_spill] sm:$0xff]  ;;  %v14310_v21 = vld [vmem:[#allocation275_spill] sm:$0xff] }
 0x480   : > { %v3749_v34 = vadd.f32 %v10546_v11, %v3726_v19  ;;  %v2629_v41 = vadd.f32 %v2613_v49, %v2513_v46  ;;  %v2845_v17 = vmul.f32 %v14185_v56, %v2825_v26  ;;  %v3587_v6 = vmul.f32 %v14306_v32, %v14305_v51  ;;  %v14307_v11 = vld [vmem:[#allocation190_spill] sm:$0xff] }
 0x481   : > { %vm3764_vm6 = vcmp.gt.f32.partialorder %v3748_v40, 0.0  ;;  %v2960_v30 = vmul.f32 %v10713_v54, %v2940_v13  ;;  %v2744_v60 = vadd.f32 %v2728_v43, %v2628_v20  ;;  %v3556_v12 = vmul.f32 %v9419_v31, %v3536_v18  ;;  %v14312_v43 = vld [vmem:[#allocation173_spill] sm:$0xff] }
 0x482   : > { %vm3765_vm7 = vcmp.gt.f32.partialorder %v3749_v34, 0.0  ;;  %v2745_v63 = vadd.f32 %v2729_v7, %v2629_v41  ;;  %v3588_v61 = vmul.f32 %v14308_v2, %v14307_v11  ;;  %v3607_v24 = vmul.f32 %v14165_v38, %v3587_v6  ;;  %v14313_v7 = vld [vmem:[#allocation289_spill] sm:$0xff]  ;;  %v14315_v41 = vld [vmem:[#allocation290_spill] sm:$0xff] }
 0x483   : > { %vm6201_vm8 = vmpackc.low %vm3765_vm7, %vm3764_vm6  ;;  %v3639_v49 = vmul.f32 %v14310_v21, %v14309_v45  ;;  %v3691_v59 = vmul.f32 %v14304_v57, %v14311_v22  ;;  %v2860_v19 = vadd.f32 %v2844_v35, %v2744_v60  ;;  %v3572_v46 = vadd.f32 %v3556_v12, %v14312_v43  ;;  %v14316_v35 = vld [vmem:[#allocation282_spill] sm:$0xff]  ;;  %v14317_v60 = vld [vmem:[#allocation279_spill] sm:$0xff] }
 0x484   : > { %6759 = vmatprep.mubr.msk.bf16.mxu0 %vm6201_vm8, %v14149_v28  ;;  %v2861_v5 = vadd.f32 %v2845_v17, %v2745_v63  ;;  %v2595_v31 = vmul.f32 %v14303_v4, %v14313_v7  ;;  %v3608_v40 = vmul.f32 %v14165_v38, %v3588_v61  ;;  %v3623_v26 = vadd.f32 %v3607_v24, %v14314_v15  ;;  %v14318_v38 = vld [vmem:[#allocation274_spill] sm:$0xff] }
 0x485   : > { %v3659_v13 = vmul.f32 %v14169_v47, %v3639_v49  ;;  %v3711_v34 = vmul.f32 %v10655_v8, %v3691_v59  ;;  %v2976_v20 = vadd.f32 %v2960_v30, %v2860_v19  ;;  %v2710_v17 = vmul.f32 %v14305_v51, %v14316_v35  ;;  %v14319_v30 = vld [vmem:[#allocation293_spill] sm:$0xff]  ;;  %v14321_v19 = vld [vmem:[#allocation294_spill] sm:$0xff] }
 0x486   : > { %v2977_v57 = vadd.f32 %v14315_v41, %v2861_v5  ;;  %v2615_v18 = vmul.f32 %v9413_v27, %v2595_v31  ;;  %v3624_v32 = vadd.f32 %v3608_v40, %v3572_v46  ;;  %v2711_v63 = vmul.f32 %v14307_v11, %v14317_v60  ;;  %v14320_v27 = vld [vmem:[#allocation182_spill] sm:$0xff]  ;;  %v14323_v31 = vld [vmem:[#allocation229_spill] sm:$0xff]  ;;  %v14326_v60 = vld [vmem:[#allocation67_spill] sm:$0xff] }
 0x487   : > { %v3675_v6 = vadd.f32 %v3659_v13, %v3623_v26  ;;  %v2826_v12 = vmul.f32 %v14309_v45, %v14318_v38  ;;  %v2999_v47 = vadd.f32 %v10585_v42, %v2976_v20  ;;  %v2730_v61 = vmul.f32 %v14124_v0, %v2710_v17  ;;  %v14322_v46 = vld [vmem:[#allocation178_spill] sm:$0xff]  ;;  %v14324_v20 = vld [vmem:[#allocation164_spill] sm:$0xff]  ;;  %v14392_v45 = vld [vmem:[#allocation41_spill] sm:$0xff] }
 0x488   : > { %v3000_v8 = vadd.f32 %v10585_v42, %v2977_v57  ;;  %v2631_v2 = vadd.f32 %v2615_v18, %v14319_v30  ;;  %v3676_v24 = vadd.f32 %v14320_v27, %v3624_v32  ;;  %v2731_v49 = vmul.f32 %v14124_v0, %v2711_v63  ;;  %v7293_v15 = vld [vmem:[%s12991_s9 + $0x1] ss:$0 sm:$0xff]  ;;  %v7294_v35 = vld [vmem:[%s12991_s9] ss:$0 sm:$0xff]  ;;  %v14327_v63 = vld [vmem:[#allocation69_spill] sm:$0xff] }
 0x489   : > { %v3727_v21 = vadd.f32 %v3711_v34, %v3675_v6  ;;  %v2846_v59 = vmul.f32 %v14185_v56, %v2826_v12  ;;  %vm3015_vm9 = vcmp.gt.f32.partialorder %v2999_v47, 0.0  ;;  %v2746_v5 = vadd.f32 %v2730_v61, %v14321_v19  ;;  %v14325_v6 = vld [vmem:[#allocation65_spill] sm:$0xff]  ;;  %v5021_v38 = vld [vmem:[#allocation11 + $0x1b8] sm:$0xff] }
 0x48a   : > { %vm3016_vm10 = vcmp.gt.f32.partialorder %v3000_v8, 0.0  ;;  %v2942_v43 = vmul.f32 %v14311_v22, %v14313_v7  ;;  %v2847_v42 = vmul.f32 %v14185_v56, %v14322_v46  ;;  %v3728_v40 = vadd.f32 %v14323_v31, %v3676_v24  ;;  %v5020_v12 = vld [vmem:[#allocation11 + $0x198] sm:$0xff]  ;;  %v14329_v8 = vld [vmem:[#allocation84_spill] sm:$0xff]  ;;  %v14336_v31 = vld [vmem:[#allocation103_spill] sm:$0xff] }
 0x48b   : > { %vm6225_vm11 = vmpackc.low %vm3016_vm10, %vm3015_vm9  ;;  %v3750_v0 = vadd.f32 %v7293_v15, %v3727_v21  ;;  %v2747_v26 = vadd.f32 %v2731_v49, %v2631_v2  ;;  %v2862_v13 = vadd.f32 %v2846_v59, %v2746_v5  ;;  %v2963_v7 = vmul.f32 %v10713_v54, %v14324_v20  ;;  %v14328_v47 = vld [vmem:[#allocation70_spill] sm:$0xff]  ;;  %v14333_v49 = vld [vmem:[#allocation96_spill] sm:$0xff] }
 0x48c   : > { %6791 = vmatprep.mubr.msk.bf16.mxu1 %vm6225_vm11, %v14149_v28  ;;  %v2962_v34 = vmul.f32 %v10713_v54, %v2942_v43  ;;  %v3751_v41 = vadd.f32 %v7293_v15, %v3728_v40  ;;  %v5022_v54 = vld [vmem:[#allocation11 + $0x1d8] sm:$0xff]  ;;  %v14334_v5 = vld [vmem:[#allocation99_spill] sm:$0xff]  ;;  %v14335_v43 = vld [vmem:[#allocation100_spill] sm:$0xff] }
 0x48d   : > { %v2863_v57 = vadd.f32 %v2847_v42, %v2747_v26  ;;  %vm3766_vm13 = vcmp.gt.f32.partialorder %v3750_v0, 0.0  ;;  %v5019_v30 = vld [vmem:[#allocation11 + $0x178] sm:$0xff]  ;;  %v14337_v40 = vld [vmem:[#allocation104_spill] sm:$0xff] }
 0x48e   : > { %v2978_v56 = vadd.f32 %v2962_v34, %v2862_v13  ;;  %vm3767_vm14 = vcmp.gt.f32.partialorder %v3751_v41, 0.0  ;;  %v5018_v2 = vld [vmem:[#allocation11 + $0x158] sm:$0xff]  ;;  %v14339_v13 = vld [vmem:[#allocation107_spill] sm:$0xff] }
 0x48f   : > { %v2979_v18 = vadd.f32 %v2963_v7, %v2863_v57  ;;  %vm6203_vm15 = vmpackc.low %vm3767_vm14, %vm3766_vm13  ;;  %v14330_v61 = vld [vmem:[#allocation86_spill] sm:$0xff]  ;;  %v14340_v7 = vld [vmem:[#allocation109_spill] sm:$0xff] }
 0x490   : > { %v3001_v17 = vadd.f32 %v7294_v35, %v2978_v56  ;;  %6760 = vmatmul.mubr.msk.bf16.gmra.mxu0 %vm6203_vm15, %v14149_v28  ;;  %v5017_v27 = vld [vmem:[#allocation11 + $0x138] sm:$0xff] }
 0x491   : > { %v3002_v32 = vadd.f32 %v7294_v35, %v2979_v18  ;;  %6827 = vmatprep.mubr.f32.mxu0 %v14325_v6  ;;  %v5016_v24 = vld [vmem:[#allocation11 + $0x118] sm:$0xff] }
 0x492   : > { %vm3017_vm1 = vcmp.gt.f32.partialorder %v3001_v17, 0.0  ;;  %v14332_v21 = vld [vmem:[#allocation90_spill] sm:$0xff] }
 0x493   : > { %vm3018_vm2 = vcmp.gt.f32.partialorder %v3002_v32, 0.0  ;;  %v5015_v59 = vld [vmem:[#allocation11 + $0xf8] sm:$0xff] }
 0x494   : > { %vm6227_vm3 = vmpackc.low %vm3018_vm2, %vm3017_vm1  ;;  %v5014_v19 = vld [vmem:[#allocation11 + $0xd8] sm:$0xff] }
 0x495   : > { %6792 = vmatmul.mubr.msk.bf16.gmra.mxu1 %vm6227_vm3, %v14149_v28  ;;  %v5013_v46 = vld [vmem:[#allocation11 + $0xb8] sm:$0xff] }
 0x496   : > { %v5012_v42 = vld [vmem:[#allocation11 + $0x98] sm:$0xff] }
 0x497   : > { %v5011_v15 = vld [vmem:[#allocation11 + $0x78] sm:$0xff] }
 0x498   : > { %6828 = vmatmul.mubr.f32.vlgmr.msra.gmra.mxu0 %v14326_v60  ;;  %v5010_v0 = vld [vmem:[#allocation11 + $0x58] sm:$0xff] }
 0x499   : > { %6884 = vmatpush3.msra.mxu0 %v10798_v58  ;;  %6830 = vmatprep.mubr.f32.mxu0 %v14327_v63  ;;  %v14331_v58 = vld [vmem:[#allocation88_spill] sm:$0xff]  ;;  %v14338_v26 = vld [vmem:[#allocation106_spill] sm:$0xff] }
 0x49a   : > { %6885 = vmatprep.subr.mxu0 %v5022_v54  ;;  %v5009_v34 = vld [vmem:[#allocation11 + $0x38] sm:$0xff] }
 0x49b   : > { %6886 = vmatpush3.msra.mxu0 %v5022_v54  ;;  %v5008_v20 = vld [vmem:[#allocation11 + $0x18] sm:$0xff] }
 0x49c   : > { %6887 = vmatprep.subr.mxu0 %v5021_v38  ;;  %6831 = vmatmul.mubr.f32.gmra.mxu0 %v14328_v47  ;;  %v14395_v51 = vld [vmem:[#allocation26_spill] sm:$0xff] }
 0x49d   : > { %6888 = vmatpush3.msra.mxu0 %v5021_v38  ;;  %6833 = vmatprep.mubr.f32.mxu0 %v14329_v8  ;;  %v7239_v38 = vld [vmem:[#allocation14 + $0xb8] sm:$0xff]  }
 0x49e   : > { %6889 = vmatprep.subr.mxu0 %v5020_v12  ;;  %6851 = vmatprep.subr.bf16.mxu1 %v7239_v38 }
 0x49f   : > { %6890 = vmatpush3.msra.mxu0 %v5020_v12  ;;  %6852 = vmatpush3.bf16.msra.mxu1 %v7239_v38  ;;  %v7242_v38 = vld [vmem:[#allocation14 + $0xa0] sm:$0xff]  }
 0x4a0   : > { %6891 = vmatprep.subr.mxu0 %v5019_v30  ;;  %6834 = vmatmul.mubr.f32.gmra.mxu0 %v14330_v61 }
 0x4a1   : > { %6892 = vmatpush3.msra.mxu0 %v5019_v30  ;;  %6836 = vmatprep.mubr.f32.mxu0 %v14331_v58 }
 0x4a2   : > { %6893 = vmatprep.subr.mxu0 %v5018_v2 }
 0x4a3   : > { %6894 = vmatpush3.msra.mxu0 %v5018_v2  ;;  %v7240_v2 = vld [vmem:[#allocation14 + $0xb0] sm:$0xff]  }
 0x4a4   : > { %6895 = vmatprep.subr.mxu0 %v5017_v27  ;;  %6837 = vmatmul.mubr.f32.gmra.mxu0 %v14332_v21 }
 0x4a5   : > { %6896 = vmatpush3.msra.mxu0 %v5017_v27  ;;  %6839 = vmatprep.mubr.f32.mxu0 %v14333_v49 }
 0x4a6   : > { %6897 = vmatprep.subr.mxu0 %v5016_v24  ;;  %6853 = vmatprep.subr.bf16.mxu1 %v7240_v2 }
 0x4a7   : > { %6898 = vmatpush3.msra.mxu0 %v5016_v24  ;;  %6854 = vmatpush3.bf16.msra.mxu1 %v7240_v2 }
 0x4a8   : > { %6899 = vmatprep.subr.mxu0 %v5015_v59  ;;  %6840 = vmatmul.mubr.f32.gmra.mxu0 %v14334_v5 }
 0x4a9   : > { %6900 = vmatpush3.msra.mxu0 %v5015_v59  ;;  %6842 = vmatprep.mubr.f32.mxu0 %v14335_v43 }
 0x4aa   : > { %6901 = vmatprep.subr.mxu0 %v5014_v19 }
 0x4ab   : > { %6902 = vmatpush3.msra.mxu0 %v5014_v19  ;;  %v7241_v19 = vld [vmem:[#allocation14 + $0xa8] sm:$0xff]  }
 0x4ac   : > { %6903 = vmatprep.subr.mxu0 %v5013_v46  ;;  %6843 = vmatmul.mubr.f32.gmra.mxu0 %v14336_v31 }
 0x4ad   : > { %6904 = vmatpush3.msra.mxu0 %v5013_v46  ;;  %6845 = vmatprep.mubr.f32.mxu0 %v14337_v40 }
 0x4ae   : > { %6905 = vmatprep.subr.mxu0 %v5012_v42  ;;  %6855 = vmatprep.subr.bf16.mxu1 %v7241_v19 }
 0x4af   : > { %6906 = vmatpush3.msra.mxu0 %v5012_v42  ;;  %6856 = vmatpush3.bf16.msra.mxu1 %v7241_v19 }
 0x4b0   : > { %6907 = vmatprep.subr.mxu0 %v5011_v15  ;;  %6846 = vmatmul.mubr.f32.gmra.mxu0 %v14338_v26 }
 0x4b1   : > { %6908 = vmatpush3.msra.mxu0 %v5011_v15  ;;  %6848 = vmatprep.mubr.f32.mxu0 %v14339_v13 }
 0x4b2   : > { %6909 = vmatprep.subr.mxu0 %v5010_v0  ;;  %6857 = vmatprep.subr.bf16.mxu1 %v7242_v38 }
 0x4b3   : > { %6910 = vmatpush3.msra.mxu0 %v5010_v0  ;;  %6858 = vmatpush3.bf16.msra.mxu1 %v7242_v38 }
 0x4b4   : > { %6911 = vmatprep.subr.mxu0 %v5009_v34  ;;  %6849 = vmatmul.mubr.f32.gmra.mxu0 %v14340_v7 }
 0x4b5   : > { %6912 = vmatpush3.msra.mxu0 %v5009_v34  ;;  %6915 = vmatprep.mubr.f32.mxu0 %v14325_v6 }
 0x4b6   : > { %6913 = vmatprep.subr.mxu0 %v5008_v20 }
 0x4b7   : > { %6914 = vmatpush3.msra.mxu0 %v5008_v20 }
 0x4b8   : > { %6916 = vmatmul.mubr.f32.vlgmr.msra.gmra.mxu0 %v14326_v60  ;;  %v14372_v60 = vld [vmem:[#allocation160_spill] sm:$0xff] }
 0x4b9   : > { %6918 = vmatprep.mubr.f32.mxu0 %v14327_v63 }
 0x4bc   : > { %6919 = vmatmul.mubr.f32.gmra.mxu0 %v14328_v47 }
 0x4bd   : > { %6921 = vmatprep.mubr.f32.mxu0 %v14329_v8 }
 0x4c0   : > { %6922 = vmatmul.mubr.f32.gmra.mxu0 %v14330_v61 }
 0x4c1   : > { %6924 = vmatprep.mubr.f32.mxu0 %v14331_v58 }
 0x4c4   : > { %6925 = vmatmul.mubr.f32.gmra.mxu0 %v14332_v21  ;;  %v14366_v21 = vld [vmem:[#allocation38_spill] sm:$0xff] }
 0x4c5   : > { %6927 = vmatprep.mubr.f32.mxu0 %v14333_v49 }
 0x4c8   : > { %6928 = vmatmul.mubr.f32.gmra.mxu0 %v14334_v5 }
 0x4c9   : > { %6930 = vmatprep.mubr.f32.mxu0 %v14335_v43 }
 0x4cc   : > { %6931 = vmatmul.mubr.f32.gmra.mxu0 %v14336_v31 }
 0x4cd   : > { %6933 = vmatprep.mubr.f32.mxu0 %v14337_v40 }
 0x4d0   : > { %6934 = vmatmul.mubr.f32.gmra.mxu0 %v14338_v26 }
 0x4d1   : > { %6936 = vmatprep.mubr.f32.mxu0 %v14339_v13 }
 0x4d4   : > { %6937 = vmatmul.mubr.f32.gmra.mxu0 %v14340_v7 }
 0x4d6   : > { %v11208_v41 = vpop.f32.mrf.mxu0 }
 0x4d7   : > { %14341 = vst [vmem:[#allocation175_spill] sm:$0xff] %v11208_v41 }
 0x4d8   : > { %v11210_v57 = vpop.f32.mrf.mxu0 }
 0x4d9   : > { %14342 = vst [vmem:[#allocation169_spill] sm:$0xff] %v11210_v57 }
 0x4da   : > { %v11214_v18 = vpop.f32.mrf.mxu0 }
 0x4db   : > { %14344 = vst [vmem:[#allocation179_spill] sm:$0xff] %v11214_v18  ;;  %v14381_v18 = vld [vmem:[#allocation53_spill] sm:$0xff] }
 0x4dc   : > { %v11212_v56 = vpop.f32.mrf.mxu1  ;;  %v11218_v17 = vpop.f32.mrf.mxu0 }
 0x4dd   : > { %14343 = vst [vmem:[#allocation194_spill] sm:$0xff] %v11212_v56  ;;  %14346 = vst [vmem:[#allocation188_spill] sm:$0xff] %v11218_v17  ;;  %v14384_v56 = vld [vmem:[#allocation50_spill] sm:$0xff] }
 0x4de   : > { %v11216_v35 = vpop.f32.mrf.mxu1 }
 0x4df   : > { %14345 = vst [vmem:[#allocation195_spill] sm:$0xff] %v11216_v35 }
 0x4e0   : > { %v11220_v32 = vpop.f32.mrf.mxu1 }
 0x4e1   : > { %14347 = vst [vmem:[#allocation192_spill] sm:$0xff] %v11220_v32 }
 0x4e2   : > { %v11222_v12 = vpop.f32.mrf.mxu1 }
 0x4e3   : > { %14348 = vst [vmem:[#allocation196_spill] sm:$0xff] %v11222_v12  ;;  %v14378_v12 = vld [vmem:[#allocation167_spill] sm:$0xff] }
 0x502   : > { %v6753_v54 = vpop.f32.mrf.mxu0 }
 0x504   : > { %v3906_v30 = vpop.f32.mrf.mxu0 }
 0x506   : > { %v6754_v24 = vpop.f32.mrf.mxu0 }
 0x508   : > { %v3909_v0 = vpop.f32.mrf.mxu0 }
 0x50d   : > { %v6785_v27 = vpop.f32.mrf.mxu1 }
 0x50e   : > { %v11224_v59 = vadd.f32 %v6785_v27, %v6753_v54  ;;  %v7243_v54 = vld [vmem:[#allocation14 + $0x98] sm:$0xff]   ;;  %v7244_v27 = vld [vmem:[#allocation14 + $0x90] sm:$0xff]  }
 0x50f   : > { %v4051_v46 = vpop.f32.mrf.mxu1  ;;  %6859 = vmatprep.subr.bf16.mxu1 %v7243_v54 }
 0x510   : > { %14349 = vst [vmem:[#allocation197_spill] sm:$0xff] %v11224_v59  ;;  %v11226_v42 = vadd.f32 %v4051_v46, %v3906_v30  ;;  %6860 = vmatpush3.bf16.msra.mxu1 %v7243_v54  ;;  %v7245_v30 = vld [vmem:[#allocation14 + $0x88] sm:$0xff]   ;;  %v7246_v46 = vld [vmem:[#allocation14 + $0x80] sm:$0xff]  }
 0x511   : > { %v6786_v15 = vpop.f32.mrf.mxu1  ;;  %6861 = vmatprep.subr.bf16.mxu1 %v7244_v27 }
 0x512   : > { %14350 = vst [vmem:[#allocation199_spill] sm:$0xff] %v11226_v42  ;;  %v11228_v34 = vadd.f32 %v6786_v15, %v6754_v24 }
 0x513   : > { %v4054_v20 = vpop.f32.mrf.mxu1 }
 0x514   : > { %14351 = vst [vmem:[#allocation210_spill] sm:$0xff] %v11228_v34  ;;  %v11230_v26 = vadd.f32 %v4054_v20, %v3909_v0  ;;  %6862 = vmatpush3.bf16.msra.mxu1 %v7244_v27 }
 0x515   : > { %6863 = vmatprep.subr.bf16.mxu1 %v7245_v30 }
 0x516   : > { %14352 = vst [vmem:[#allocation193_spill] sm:$0xff] %v11230_v26 }
 0x518   : > { %6864 = vmatpush3.bf16.msra.mxu1 %v7245_v30  ;;  %v7247_v30 = vld [vmem:[#allocation14 + $0xf8] sm:$0xff]  }
 0x519   : > { %6865 = vmatprep.subr.bf16.mxu1 %v7246_v46 }
 0x51c   : > { %6866 = vmatpush3.bf16.msra.mxu1 %v7246_v46 }
 0x51d   : > { %6939 = vmatprep.subr.bf16.mxu1 %v7247_v30 }
 0x530   : > { %v6757_v2 = vpop.f32.mrf.mxu0 }
 0x532   : > { %v3922_v24 = vpop.f32.mrf.mxu0 }
 0x534   : > { %v6758_v15 = vpop.f32.mrf.mxu0 }
 0x536   : > { %v3925_v54 = vpop.f32.mrf.mxu0 }
 0x53b   : > { %v6789_v19 = vpop.f32.mrf.mxu1 }
 0x53c   : > { %v11232_v0 = vadd.f32 %v6789_v19, %v6757_v2  ;;  %v4266_v2 = vld [vmem:[#allocation13 + $0x10] sm:$0xff] }
 0x53d   : > { %v4067_v20 = vpop.f32.mrf.mxu1  ;;  %v11289_v47 = vrot.slane %v4266_v2, %v14372_v60  ;;  %v11303_v17 = vrot.slane %v4266_v2, %v14378_v12  ;;  %v14391_v60 = vld [vmem:[#allocation143_spill] sm:$0xff] }
 0x53e   : > { %14353 = vst [vmem:[#allocation203_spill] sm:$0xff] %v11232_v0  ;;  %v11234_v38 = vadd.f32 %v4067_v20, %v3922_v24 }
 0x53f   : > { %v6790_v7 = vpop.f32.mrf.mxu1  ;;  %14373 = vst [vmem:[#allocation208_spill] sm:$0xff] %v11289_v47  ;;  %14379 = vst [vmem:[#allocation211_spill] sm:$0xff] %v11303_v17  ;;  %v14413_v17 = vld [vmem:[#allocation32_spill] sm:$0xff] }
 0x540   : > { %14354 = vst [vmem:[#allocation222_spill] sm:$0xff] %v11234_v38  ;;  %v11236_v40 = vadd.f32 %v6790_v7, %v6758_v15  ;;  %v11247_v7 = vld [vmem:[%s12989_s7 + $0x2] ss:$0 sm:$0xff]  ;;  %v5176_v15 = vld [vmem:[#allocation13 + $0x18] sm:$0xff] }
 0x541   : > { %v4070_v27 = vpop.f32.mrf.mxu1 }
 0x542   : > { %14355 = vst [vmem:[#allocation171_spill] sm:$0xff] %v11236_v40  ;;  %v11238_v13 = vadd.f32 %v4070_v27, %v3925_v54  ;;  %v14360_v27 = vld [vmem:[#allocation153_spill] sm:$0xff] }
 0x543   : > { %v11252_v30 = vrot.slane %v4266_v2, %v14360_v27  ;;  %v11272_v58 = vrot.slane %v5176_v15, %v14360_v27  ;;  %v14374_v27 = vld [vmem:[#allocation163_spill] sm:$0xff] }
 0x544   : > { %14356 = vst [vmem:[#allocation200_spill] sm:$0xff] %v11238_v13  ;;  %v14361_v13 = vld [vmem:[#allocation154_spill] sm:$0xff]  ;;  %v11292_v6 = vrot.slane %v4266_v2, %v14374_v27 }
 0x545   : > { %v11275_v34 = vrot.slane %v5176_v15, %v14361_v13 }
 0x546   : > { %14375 = vst [vmem:[#allocation223_spill] sm:$0xff] %v11292_v6 }
 0x550   : > { %v6761_v5 = vpop.f32.mrf.mxu0 }
 0x552   : > { %v3938_v31 = vpop.f32.mrf.mxu0 }
 0x554   : > { %v6762_v46 = vpop.f32.mrf.mxu0 }
 0x555   : > { %v6793_v49 = vpop.f32.mrf.mxu1 }
 0x556   : > { %v11240_v43 = vadd.f32 %v6793_v49, %v6761_v5  ;;  %v11242_v0 = vpop.f32.mrf.mxu0  ;;  %v11255_v49 = vrot.slane %v4266_v2, %v14361_v13  ;;  %v14362_v5 = vld [vmem:[#allocation155_spill] sm:$0xff] }
 0x557   : > { %v4083_v19 = vpop.f32.mrf.mxu1  ;;  %14358 = vst [vmem:[#allocation212_spill] sm:$0xff] %v11242_v0  ;;  %v11258_v40 = vrot.slane %v4266_v2, %v14362_v5  ;;  %v11278_v42 = vrot.slane %v5176_v15, %v14362_v5 }
 0x558   : > { %14357 = vst [vmem:[#allocation185_spill] sm:$0xff] %v11240_v43  ;;  %v11249_v24 = vadd.f32 %v4083_v19, %v3938_v31  ;;  %v6829_v54 = vpop.f32.mrf.mxu0  ;;  %v11266_v31 = vrot.slane %v4266_v2, %v14366_v21  ;;  %v14367_v19 = vld [vmem:[#allocation159_spill] sm:$0xff] }
 0x559   : > { %v6794_v20 = vpop.f32.mrf.mxu1  ;;  %14363 = vst [vmem:[#allocation204_spill] sm:$0xff] %v11258_v40  ;;  %v11263_v61 = vadd.f32 %v6829_v54, %v11247_v7  ;;  %v11269_v8 = vrot.slane %v4266_v2, %v14367_v19  ;;  %14369 = vst [vmem:[#allocation184_spill] sm:$0xff] %v11278_v42  ;;  %v11286_v59 = vrot.slane %v5176_v15, %v14367_v19 }
 0x55a   : > { %14359 = vst [vmem:[#allocation213_spill] sm:$0xff] %v11249_v24  ;;  %v11260_v38 = vadd.f32 %v6794_v20, %v6762_v46  ;;  %v4187_v26 = vpop.f32.mrf.mxu0  ;;  %v11281_v46 = vrot.slane %v5176_v15, %v14366_v21  ;;  %v14370_v20 = vld [vmem:[#allocation24_spill] sm:$0xff] }
 0x55b   : > { %14365 = vst [vmem:[#allocation201_spill] sm:$0xff] %v11263_v61  ;;  %14368 = vst [vmem:[#allocation202_spill] sm:$0xff] %v11269_v8  ;;  %v4374_v54 = vmul.f32 %v11263_v61, %v14370_v20  ;;  %v11296_v13 = vmul.f32 %v11252_v30, %v11263_v61  ;;  %v4289_v5 = vrot.slane %v11263_v61, 7  ;;  %v11300_v21 = vadd.f32 %v11247_v7, %v4187_v26 }
 0x55c   : > { %14364 = vst [vmem:[#allocation205_spill] sm:$0xff] %v11260_v38  ;;  %14371 = vst [vmem:[#allocation207_spill] sm:$0xff] %v11286_v59  ;;  %v6832_v63 = vpop.f32.mrf.mxu0  ;;  %v11312_v35 = vmul.f32 %v11263_v61, %v14381_v18  ;;  %v14385_v38 = vld [vmem:[#allocation37_spill] sm:$0xff] }
 0x55d   : > { %14376 = vst [vmem:[#allocation219_spill] sm:$0xff] %v11296_v13  ;;  %14377 = vst [vmem:[#allocation209_spill] sm:$0xff] %v11300_v21  ;;  %v4394_v15 = vmul.f32 %v11255_v49, %v4374_v54  ;;  %v11308_v32 = vadd.f32 %v6832_v63, %v11247_v7  ;;  %v11316_v57 = vmul.f32 %v11252_v30, %v11300_v21  ;;  %v13451_v26 = vrot.slane %v11300_v21, 7  ;;  %v14449_v13 = vld [vmem:[#allocation82_spill] sm:$0xff] }
 0x55e   : > { %14382 = vst [vmem:[#allocation215_spill] sm:$0xff] %v11312_v35  ;;  %v4373_v2 = vmul.f32 %v11300_v21, %v14384_v56  ;;  %v4197_v41 = vpop.f32.mrf.mxu0  ;;  %v14388_v54 = vrot.slane %v11263_v61, 1  ;;  %v14389_v12 = vrot.slane %v11300_v21, 1 }
 0x55f   : > { %14380 = vst [vmem:[#allocation218_spill] sm:$0xff] %v11308_v32  ;;  %14383 = vst [vmem:[#allocation232_spill] sm:$0xff] %v11316_v57  ;;  %v4275_v63 = vmul.f32 %v11252_v30, %v11308_v32  ;;  %v4291_v19 = vrot.slane %v11308_v32, 7  ;;  %v4376_v0 = vmul.f32 %v11308_v32, %v14385_v38  ;;  %v11332_v43 = vsel %vm752_vm0, %v13451_v26, %v4289_v5 }
 0x560   : > { %14386 = vst [vmem:[#allocation158_spill] sm:$0xff] %v11332_v43  ;;  %v11335_v18 = vmul.f32 %v11255_v49, %v4373_v2  ;;  %v11343_v27 = vsel %vm2267_vm12, %v14389_v12, %v14388_v54  ;;  %v4666_v24 = vmul.f32 %v11308_v32, %v14391_v60  ;;  %v6835_v22 = vpop.f32.mrf.mxu0  ;;  %v11353_v2 = vadd.f32 %v11247_v7, %v4197_v41 }
 0x561   : > { %14390 = vst [vmem:[#allocation228_spill] sm:$0xff] %v11343_v27  ;;  %v11349_v11 = vmul.f32 %v11343_v27, %v14392_v45  ;;  %v4396_v26 = vmul.f32 %v11255_v49, %v4376_v0  ;;  %v4322_v4 = vmul.f32 %v11332_v43, %v14395_v51  ;;  %v11361_v12 = vadd.f32 %v6835_v22, %v11247_v7 }
 0x562   : > { %14387 = vst [vmem:[#allocation227_spill] sm:$0xff] %v11335_v18  ;;  %14394 = vst [vmem:[#allocation230_spill] sm:$0xff] %v11353_v2  ;;  %v11358_v29 = vmul.f32 %v11258_v40, %v4666_v24  ;;  %v4207_v54 = vpop.f32.mrf.mxu0  ;;  %v11365_v25 = vmul.f32 %v11332_v43, %v14398_v48  ;;  %v11369_v0 = vmul.f32 %v11343_v27, %v14400_v10  ;;  %v4290_v23 = vrot.slane %v11353_v2, 7 }
 0x563   : > { %14393 = vst [vmem:[#allocation187_spill] sm:$0xff] %v11349_v11  ;;  %14397 = vst [vmem:[#allocation225_spill] sm:$0xff] %v11361_v12  ;;  %v4274_v41 = vmul.f32 %v11252_v30, %v11353_v2  ;;  %v4342_v24 = vmul.f32 %v11266_v31, %v4322_v4  ;;  %v4375_v22 = vmul.f32 %v11353_v2, %v14402_v36  ;;  %v14436_v11 = vld [vmem:[#allocation52_spill] sm:$0xff]  ;;  %v14444_v47 = vrot.slane %v11361_v12, 7 }
 0x564   : > { %14396 = vst [vmem:[#allocation224_spill] sm:$0xff] %v11358_v29  ;;  %14399 = vst [vmem:[#allocation236_spill] sm:$0xff] %v11365_v25  ;;  %v4277_v48 = vmul.f32 %v11252_v30, %v11361_v12  ;;  %v4378_v10 = vmul.f32 %v11361_v12, %v14403_v16  ;;  %v6838_v27 = vpop.f32.mrf.mxu0  ;;  %v4316_v55 = vsel %vm752_vm0, %v4290_v23, %v4291_v19  ;;  %v14428_v25 = vld [vmem:[#allocation51_spill] sm:$0xff] }
 0x565   : > { %14401 = vst [vmem:[#allocation170_spill] sm:$0xff] %v11369_v0  ;;  %v11387_v4 = vsel %vm752_vm0, %v4289_v5, %v4290_v23  ;;  %v4358_v50 = vadd.f32 %v4342_v24, %v4274_v41  ;;  %v4395_v14 = vmul.f32 %v11255_v49, %v4375_v22  ;;  %v4511_v52 = vmul.f32 %v4316_v55, %v14407_v53 }
 0x566   : > { %14404 = vst [vmem:[#allocation166_spill] sm:$0xff] %v11387_v4  ;;  %v4323_v1 = vmul.f32 %v11387_v4, %v14405_v37  ;;  %v4510_v9 = vmul.f32 %v11387_v4, %v14406_v3  ;;  %v11396_v44 = vmul.f32 %v4316_v55, %v14408_v62  ;;  %v4217_v33 = vpop.f32.mrf.mxu0  ;;  %v11401_v23 = vmul.f32 %v11255_v49, %v4378_v10  ;;  %v14414_v10 = vld [vmem:[#allocation34_spill] sm:$0xff] }
 0x567   : > { %v11398_v28 = vadd.f32 %v4394_v15, %v4358_v50  ;;  %v4208_v41 = vadd.f32 %v11247_v7, %v4207_v54  ;;  %v11410_v29 = vmul.f32 %v11269_v8, %v4511_v52  ;;  %v14417_v52 = vrot.slane %v11361_v12, 7 }
 0x568   : > { %14409 = vst [vmem:[#allocation214_spill] sm:$0xff] %v11396_v44  ;;  %v4343_v24 = vmul.f32 %v11266_v31, %v4323_v1  ;;  %v11407_v22 = vmul.f32 %v11269_v8, %v4510_v9  ;;  %v4324_v44 = vmul.f32 %v4316_v55, %v14413_v17  ;;  %v6841_v35 = vpop.f32.mrf.mxu0  ;;  %v11418_v9 = vadd.f32 %v6838_v27, %v11247_v7 }
 0x569   : > { %14410 = vst [vmem:[#allocation231_spill] sm:$0xff] %v11398_v28  ;;  %14412 = vst [vmem:[#allocation220_spill] sm:$0xff] %v11410_v29  ;;  %v4276_v50 = vmul.f32 %v11252_v30, %v4208_v41  ;;  %v4292_v15 = vrot.slane %v4208_v41, 7  ;;  %v4377_v4 = vmul.f32 %v4208_v41, %v14414_v10  ;;  %v4428_v43 = vrot.slane %v4208_v41, 1  ;;  %v14415_v28 = vld [vmem:[#allocation58_spill] sm:$0xff] }
 0x56a   : > { %14411 = vst [vmem:[#allocation157_spill] sm:$0xff] %v11407_v22  ;;  %v4359_v5 = vadd.f32 %v4343_v24, %v4275_v63  ;;  %v4344_v54 = vmul.f32 %v11266_v31, %v4324_v44  ;;  %v4667_v1 = vmul.f32 %v4208_v41, %v14415_v28  ;;  %14416 = vst [vmem:[#allocation221_spill] sm:$0xff] %v11418_v9  ;;  %v4227_v22 = vpop.f32.mrf.mxu0  ;;  %v14420_v44 = vrot.slane %v11361_v12, 1  ;;  %v14423_v24 = vld [vmem:[#allocation47_spill] sm:$0xff] }
 0x56b   : > { %v11424_v55 = vsel %vm752_vm0, %v4292_v15, %v14417_v52  ;;  %v11428_v29 = vsel %vm752_vm0, %v4291_v19, %v4292_v15  ;;  %v4397_v63 = vmul.f32 %v11255_v49, %v4377_v4  ;;  %v14424_v52 = vrot.slane %v11308_v32, 1  ;;  %v14426_v4 = vld [vmem:[#allocation61_spill] sm:$0xff] }
 0x56c   : > { %14418 = vst [vmem:[#allocation183_spill] sm:$0xff] %v11424_v55  ;;  %14419 = vst [vmem:[#allocation217_spill] sm:$0xff] %v11428_v29  ;;  %v11435_v41 = vsel %vm2267_vm12, %v4428_v43, %v14420_v44  ;;  %v11437_v27 = vadd.f32 %v4395_v14, %v4359_v5  ;;  %v4325_v6 = vmul.f32 %v11428_v29, %v14423_v24  ;;  %v6844_v15 = vpop.f32.mrf.mxu0  ;;  %v14430_v14 = vld [vmem:[#allocation45_spill] sm:$0xff] }
 0x56d   : > { %14421 = vst [vmem:[#allocation216_spill] sm:$0xff] %v11435_v41  ;;  %v4360_v0 = vadd.f32 %v4344_v54, %v4276_v50  ;;  %v11445_v19 = vsel %vm2267_vm12, %v14424_v52, %v4428_v43  ;;  %v11453_v44 = vmul.f32 %v11435_v41, %v14428_v25  ;;  %v14432_v50 = vld [vmem:[#allocation25_spill] sm:$0xff] }
 0x56e   : > { %14422 = vst [vmem:[#allocation226_spill] sm:$0xff] %v11437_v27  ;;  %14425 = vst [vmem:[#allocation234_spill] sm:$0xff] %v11445_v19  ;;  %v11449_v8 = vmul.f32 %v11445_v19, %v14426_v4  ;;  %v11457_v5 = vmul.f32 %v11445_v19, %v14430_v14  ;;  %v11461_v54 = vmul.f32 %v11428_v29, %v14432_v50  ;;  %v4237_v41 = vpop.f32.mrf.mxu0 }
 0x56f   : > { %14429 = vst [vmem:[#allocation240_spill] sm:$0xff] %v11453_v44  ;;  %v4345_v43 = vmul.f32 %v11266_v31, %v4325_v6  ;;  %v11464_v52 = vadd.f32 %v4396_v26, %v4360_v0  ;;  %v11467_v27 = vmul.f32 %v11258_v40, %v4667_v1  ;;  %v4295_v44 = vrot.slane %v11418_v9, 7  ;;  %v14438_v26 = vld [vmem:[#allocation40_spill] sm:$0xff] }
 0x570   : > { %14427 = vst [vmem:[#allocation165_spill] sm:$0xff] %v11449_v8  ;;  %14431 = vst [vmem:[#allocation244_spill] sm:$0xff] %v11457_v5  ;;  %v4279_v8 = vmul.f32 %v11252_v30, %v11418_v9  ;;  %v4380_v19 = vmul.f32 %v11418_v9, %v14436_v11  ;;  %v11476_v29 = vadd.f32 %v11247_v7, %v4217_v33  ;;  %v14441_v33 = vld [vmem:[#allocation39_spill] sm:$0xff] }
 0x571   : > { %14433 = vst [vmem:[#allocation238_spill] sm:$0xff] %v11461_v54  ;;  %14434 = vst [vmem:[#allocation243_spill] sm:$0xff] %v11464_v52  ;;  %v4361_v6 = vadd.f32 %v4345_v43, %v4277_v48  ;;  %v4326_v0 = vmul.f32 %v11424_v55, %v14438_v26  ;;  %v11481_v1 = vadd.f32 %v6841_v35, %v11247_v7 }
 0x572   : > { %14435 = vst [vmem:[#allocation235_spill] sm:$0xff] %v11467_v27  ;;  %14437 = vst [vmem:[#allocation249_spill] sm:$0xff] %v11476_v29  ;;  %v11484_v52 = vadd.f32 %v11247_v7, %v4227_v22  ;;  %v6847_v27 = vpop.f32.mrf.mxu0  ;;  %v4400_v54 = vmul.f32 %v11255_v49, %v4380_v19  ;;  %v4278_v40 = vmul.f32 %v11252_v30, %v11476_v29  ;;  %v4294_v5 = vrot.slane %v11476_v29, 7 }
 0x573   : > { %14439 = vst [vmem:[#allocation239_spill] sm:$0xff] %v11481_v1  ;;  %v4379_v48 = vmul.f32 %v11476_v29, %v14441_v33  ;;  %v11492_v43 = vadd.f32 %v4397_v63, %v4361_v6  ;;  %v4346_v55 = vmul.f32 %v11266_v31, %v4326_v0  ;;  %v4281_v22 = vmul.f32 %v11252_v30, %v11481_v1  ;;  %v14446_v0 = vld [vmem:[#allocation43_spill] sm:$0xff]  ;;  %v14447_v29 = vld [vmem:[#allocation89_spill] sm:$0xff] }
 0x574   : > { %14440 = vst [vmem:[#allocation241_spill] sm:$0xff] %v11484_v52  ;;  %v4247_v9 = vpop.f32.mrf.mxu0  ;;  %v11500_v19 = vsel %vm752_vm0, %v4294_v5, %v4295_v44  ;;  %v11506_v61 = vsel %vm752_vm0, %v14444_v47, %v4294_v5  ;;  %v4297_v6 = vrot.slane %v11481_v1, 7  ;;  %v4382_v2 = vmul.f32 %v11481_v1, %v14447_v29  ;;  %v14448_v5 = vld [vmem:[#allocation44_spill] sm:$0xff] }
 0x575   : > { %14442 = vst [vmem:[#allocation237_spill] sm:$0xff] %v11492_v43  ;;  %14443 = vst [vmem:[#allocation242_spill] sm:$0xff] %v11500_v19  ;;  %v4399_v63 = vmul.f32 %v11255_v49, %v4379_v48  ;;  %v4327_v35 = vmul.f32 %v11506_v61, %v14446_v0  ;;  %v4362_v43 = vadd.f32 %v4346_v55, %v4278_v40  ;;  %v4296_v47 = vrot.slane %v11484_v52, 7  ;;  %v14456_v0 = vld [vmem:[#allocation77_spill] sm:$0xff] }
 0x576   : > { %14445 = vst [vmem:[#allocation233_spill] sm:$0xff] %v11506_v61  ;;  %v6850_v18 = vpop.f32.mrf.mxu0  ;;  %v4280_v12 = vmul.f32 %v11252_v30, %v11484_v52  ;;  %v4328_v48 = vmul.f32 %v11500_v19, %v14448_v5  ;;  %v4381_v57 = vmul.f32 %v11484_v52, %v14449_v13  ;;  %v4402_v55 = vmul.f32 %v11255_v49, %v4382_v2 }
 0x577   : > { %v4347_v61 = vmul.f32 %v11266_v31, %v4327_v35  ;;  %v11524_v40 = vadd.f32 %v11401_v23, %v4362_v43  ;;  %v11530_v29 = vsel %vm752_vm0, %v4296_v47, %v4297_v6  ;;  %v11534_v19 = vsel %vm752_vm0, %v4295_v44, %v4296_v47  ;;  %v14453_v23 = vld [vmem:[#allocation73_spill] sm:$0xff] }
 0x578   : > { %v4257_v1 = vpop.f32.mrf.mxu0  ;;  %14451 = vst [vmem:[#allocation251_spill] sm:$0xff] %v11530_v29  ;;  %14452 = vst [vmem:[#allocation255_spill] sm:$0xff] %v11534_v19  ;;  %v4348_v13 = vmul.f32 %v11266_v31, %v4328_v48  ;;  %v4401_v35 = vmul.f32 %v11255_v49, %v4381_v57  ;;  %v4329_v43 = vmul.f32 %v11534_v19, %v14453_v23  ;;  %v14462_v19 = vld [vmem:[#allocation91_spill] sm:$0xff] }
 0x579   : > { %14450 = vst [vmem:[#allocation246_spill] sm:$0xff] %v11524_v40  ;;  %v4363_v5 = vadd.f32 %v4347_v61, %v4279_v8  ;;  %v11541_v2 = vadd.f32 %v6844_v15, %v11247_v7  ;;  %v11544_v32 = vadd.f32 %v11247_v7, %v4237_v41  ;;  %v4330_v44 = vmul.f32 %v11530_v29, %v14456_v0 }
 0x57a   : > { %v11546_v40 = vpop.f32.mrf.mxu0  ;;  %v4364_v52 = vadd.f32 %v4348_v13, %v4280_v12  ;;  %v11551_v47 = vadd.f32 %v6847_v27, %v11247_v7  ;;  %v11554_v8 = vadd.f32 %v11247_v7, %v4247_v9  ;;  %v4349_v57 = vmul.f32 %v11266_v31, %v4329_v43  ;;  %v14461_v13 = vld [vmem:[#allocation54_spill] sm:$0xff] }
 0x57b   : > { %14454 = vst [vmem:[#allocation252_spill] sm:$0xff] %v11541_v2  ;;  %14455 = vst [vmem:[#allocation257_spill] sm:$0xff] %v11544_v32  ;;  %v11556_v61 = vadd.f32 %v4399_v63, %v4363_v5  ;;  %v4283_v41 = vmul.f32 %v11252_v30, %v11541_v2  ;;  %v4299_v15 = vrot.slane %v11541_v2, 7  ;;  %v4384_v12 = vmul.f32 %v11541_v2, %v14461_v13 }
 0x57c   : > { %14457 = vst [vmem:[#allocation248_spill] sm:$0xff] %v11551_v47  ;;  %14458 = vst [vmem:[#allocation261_spill] sm:$0xff] %v11554_v8  ;;  %v11562_v48 = vadd.f32 %v4400_v54, %v4364_v52  ;;  %v4282_v9 = vmul.f32 %v11252_v30, %v11544_v32  ;;  %v11569_v29 = vpop.f32.mrf.mxu0  ;;  %v4365_v63 = vadd.f32 %v4349_v57, %v4281_v22  ;;  %v4298_v5 = vrot.slane %v11544_v32, 7 }
 0x57d   : > { %14459 = vst [vmem:[#allocation250_spill] sm:$0xff] %v11556_v61  ;;  %v4350_v43 = vmul.f32 %v11266_v31, %v4330_v44  ;;  %v4383_v61 = vmul.f32 %v11544_v32, %v14462_v19  ;;  %v4404_v54 = vmul.f32 %v11255_v49, %v4384_v12  ;;  %v4285_v27 = vmul.f32 %v11252_v30, %v11551_v47  ;;  %v14466_v19 = vld [vmem:[#allocation78_spill] sm:$0xff]  ;;  %v14467_v32 = vld [vmem:[#allocation133_spill] sm:$0xff] }
 0x57e   : > { %14460 = vst [vmem:[#allocation254_spill] sm:$0xff] %v11562_v48  ;;  %v4301_v48 = vrot.slane %v11551_v47, 7  ;;  %v11580_v2 = vadd.f32 %v4401_v35, %v4365_v63  ;;  %v11584_v22 = vsel %vm752_vm0, %v4298_v5, %v4299_v15  ;;  %v11588_v44 = vsel %vm752_vm0, %v4297_v6, %v4298_v5  ;;  %v6920_v63 = vpop.f32.mrf.mxu0  ;;  %v14469_v5 = vld [vmem:[#allocation48_spill] sm:$0xff] }
 0x57f   : > { %14464 = vst [vmem:[#allocation253_spill] sm:$0xff] %v11584_v22  ;;  %14465 = vst [vmem:[#allocation245_spill] sm:$0xff] %v11588_v44  ;;  %v4366_v57 = vadd.f32 %v4350_v43, %v4282_v9  ;;  %v4331_v12 = vmul.f32 %v11588_v44, %v14466_v19  ;;  %v4403_v52 = vmul.f32 %v11255_v49, %v4383_v61  ;;  %v4300_v6 = vrot.slane %v11554_v8, 7  ;;  %v14470_v44 = vld [vmem:[#allocation130_spill] sm:$0xff] }
 0x580   : > { %14463 = vst [vmem:[#allocation247_spill] sm:$0xff] %v11580_v2  ;;  %v4386_v0 = vmul.f32 %v11551_v47, %v14467_v32  ;;  %v4284_v13 = vmul.f32 %v11252_v30, %v11554_v8  ;;  %v4332_v9 = vmul.f32 %v11584_v22, %v14469_v5  ;;  %v4385_v32 = vmul.f32 %v11554_v8, %v14470_v44  ;;  %v5107_v8 = vpop.f32.mrf.mxu0 }
 0x581   : > { %v11596_v2 = vadd.f32 %v4402_v55, %v4366_v57  ;;  %v4351_v43 = vmul.f32 %v11266_v31, %v4331_v12  ;;  %v11610_v55 = vsel %vm752_vm0, %v4300_v6, %v4301_v48  ;;  %v11614_v57 = vsel %vm752_vm0, %v4299_v15, %v4300_v6 }
 0x582   : > { %v4406_v61 = vmul.f32 %v11255_v49, %v4386_v0  ;;  %14471 = vst [vmem:[#allocation264_spill] sm:$0xff] %v11610_v55  ;;  %14472 = vst [vmem:[#allocation266_spill] sm:$0xff] %v11614_v57  ;;  %v11618_v22 = vadd.f32 %v6850_v18, %v11247_v7  ;;  %v14474_v0 = vld [vmem:[#allocation121_spill] sm:$0xff]  ;;  %v4405_v44 = vmul.f32 %v11255_v49, %v4385_v32 }
 0x583   : > { %14468 = vst [vmem:[#allocation259_spill] sm:$0xff] %v11596_v2  ;;  %v4352_v2 = vmul.f32 %v11266_v31, %v4332_v9  ;;  %v4367_v12 = vadd.f32 %v4351_v43, %v4283_v41  ;;  %v4333_v47 = vmul.f32 %v11614_v57, %v14474_v0  ;;  %v11624_v35 = vadd.f32 %v11247_v7, %v4257_v1  ;;  %v14475_v9 = vld [vmem:[#allocation23_spill] sm:$0xff] }
 0x584   : > { %14473 = vst [vmem:[#allocation263_spill] sm:$0xff] %v11618_v22  ;;  %v4287_v15 = vmul.f32 %v11252_v30, %v11618_v22  ;;  %v4303_v6 = vrot.slane %v11618_v22, 7  ;;  %v4372_v18 = vmul.f32 %v11618_v22, %v14475_v9  ;;  %v14478_v1 = vrot.slane %v11300_v21, 7 }
 0x585   : > { %v4368_v5 = vadd.f32 %v4352_v2, %v4284_v13  ;;  %v11631_v19 = vadd.f32 %v4403_v52, %v4367_v12  ;;  %v4353_v41 = vmul.f32 %v11266_v31, %v4333_v47  ;;  %v4286_v32 = vmul.f32 %v11252_v30, %v11624_v35  ;;  %v14479_v47 = vld [vmem:[#allocation30_spill] sm:$0xff] }
 0x586   : > { %v11643_v2 = vsel %vm752_vm0, %v4303_v6, %v14478_v1  ;;  %v11646_v13 = vmul.f32 %v11255_v49, %v4372_v18  ;;  %v4302_v52 = vrot.slane %v11624_v35, 7  ;;  %v14480_v57 = vrot.slane %v11300_v21, 1  ;;  %v11664_v18 = vld [vmem:[%s12989_s7 + $0x3] ss:$0 sm:$0xff] }
 0x587   : > { %14476 = vst [vmem:[#allocation268_spill] sm:$0xff] %v11631_v19  ;;  %v11637_v7 = vadd.f32 %v4404_v54, %v4368_v5  ;;  %v4369_v12 = vadd.f32 %v4353_v41, %v4285_v27  ;;  %v4321_v43 = vmul.f32 %v11643_v2, %v14479_v47  ;;  %v14481_v30 = vrot.slane %v11618_v22, 1  ;;  %v14483_v5 = vld [vmem:[#allocation124_spill] sm:$0xff]  ;;  %v6923_v27 = vpop.f32.mrf.mxu0  ;;  %v14484_v41 = vld [vmem:[#allocation57_spill] sm:$0xff] }
 0x588   : > { %v4334_v1 = vmul.f32 %v11610_v55, %v14483_v5  ;;  %v11672_v21 = vsel %vm752_vm0, %v4302_v52, %v4303_v6  ;;  %v14488_v5 = vld [vmem:[#allocation36_spill] sm:$0xff] }
 0x589   : > { %14477 = vst [vmem:[#allocation260_spill] sm:$0xff] %v11637_v7  ;;  %v11657_v54 = vsel %vm2267_vm12, %v14481_v30, %v14480_v57  ;;  %14485 = vst [vmem:[#allocation256_spill] sm:$0xff] %v11672_v21  ;;  %v11676_v57 = vsel %vm752_vm0, %v4301_v48, %v4302_v52  ;;  %v14487_v30 = vld [vmem:[#allocation135_spill] sm:$0xff]  ;;  %v11680_v22 = vadd.f32 %v4405_v44, %v4369_v12 }
 0x58a   : > { %14482 = vst [vmem:[#allocation272_spill] sm:$0xff] %v11657_v54  ;;  %v11668_v7 = vmul.f32 %v11657_v54, %v14484_v41  ;;  %14486 = vst [vmem:[#allocation265_spill] sm:$0xff] %v11676_v57  ;;  %v4387_v55 = vmul.f32 %v11624_v35, %v14487_v30  ;;  %v11683_v19 = vmul.f32 %v11266_v31, %v4321_v43  ;;  %v14489_v41 = vld [vmem:[#allocation126_spill] sm:$0xff] }
 0x58b   : > { %v4320_v54 = vmul.f32 %v11672_v21, %v14488_v5  ;;  %v4335_v47 = vmul.f32 %v11676_v57, %v14489_v41  ;;  %v4354_v6 = vmul.f32 %v11266_v31, %v4334_v1  ;;  %v11694_v52 = vadd.f32 %v11546_v40, %v11664_v18  ;;  %v5117_v1 = vpop.f32.mrf.mxu0 }
 0x58c   : > { %v4407_v9 = vmul.f32 %v11255_v49, %v4387_v55  ;;  %v11702_v12 = vadd.f32 %v11664_v18, %v11569_v29  ;;  %v11705_v21 = vadd.f32 %v6920_v63, %v11664_v18 }
 0x58d   : > { %14490 = vst [vmem:[#allocation262_spill] sm:$0xff] %v11694_v52  ;;  %v11697_v44 = vmul.f32 %v11266_v31, %v4320_v54  ;;  %v4355_v43 = vmul.f32 %v11266_v31, %v4335_v47  ;;  %v4370_v49 = vadd.f32 %v4354_v6, %v4286_v32  ;;  %v11709_v55 = vmul.f32 %v11272_v58, %v11694_v52 }
 0x58e   : > { %14491 = vst [vmem:[#allocation267_spill] sm:$0xff] %v11702_v12  ;;  %v5199_v40 = vrot.slane %v11694_v52, 7  ;;  %v5284_v54 = vmul.f32 %v11694_v52, %v14370_v20  ;;  %v13538_v31 = vrot.slane %v11694_v52, 1  ;;  %v11717_v29 = vmul.f32 %v11272_v58, %v11702_v12 }
 0x58f   : > { %14492 = vst [vmem:[#allocation258_spill] sm:$0xff] %v11709_v55  ;;  %v4371_v48 = vadd.f32 %v4355_v43, %v4287_v15  ;;  %v13537_v63 = vrot.slane %v11702_v12, 7  ;;  %v11720_v47 = vadd.f32 %v4406_v61, %v4370_v49  ;;  %v5283_v6 = vmul.f32 %v11702_v12, %v14384_v56  ;;  %v6926_v43 = vpop.f32.mrf.mxu0 }
 0x590   : > { %14493 = vst [vmem:[#allocation270_spill] sm:$0xff] %v11717_v29  ;;  %v5304_v32 = vmul.f32 %v11275_v34, %v5284_v54  ;;  %v13539_v55 = vrot.slane %v11702_v12, 1  ;;  %v5185_v15 = vmul.f32 %v11272_v58, %v11705_v21  ;;  %v5201_v61 = vrot.slane %v11705_v21, 7 }
 0x591   : > { %v11726_v57 = vadd.f32 %v4407_v9, %v4371_v48  ;;  %v11732_v20 = vsel %vm752_vm0, %v13537_v63, %v5199_v40  ;;  %v11738_v49 = vmul.f32 %v11275_v34, %v5283_v6  ;;  %v5286_v9 = vmul.f32 %v11705_v21, %v14385_v38 }
 0x592   : > { %14494 = vst [vmem:[#allocation278_spill] sm:$0xff] %v11732_v20  ;;  %v11746_v56 = vsel %vm2267_vm12, %v13539_v55, %v13538_v31  ;;  %v5576_v6 = vmul.f32 %v11705_v21, %v14391_v60  ;;  %v11758_v63 = vadd.f32 %v11664_v18, %v5107_v8  ;;  %v11764_v55 = vadd.f32 %v6923_v27, %v11664_v18 }
 0x593   : > { %14495 = vst [vmem:[#allocation280_spill] sm:$0xff] %v11738_v49  ;;  %14496 = vst [vmem:[#allocation271_spill] sm:$0xff] %v11746_v56  ;;  %v11753_v54 = vmul.f32 %v11746_v56, %v14392_v45  ;;  %v5232_v49 = vmul.f32 %v11732_v20, %v14395_v51  ;;  %v5306_v31 = vmul.f32 %v11275_v34, %v5286_v9 }
 0x594   : > { %14498 = vst [vmem:[#allocation286_spill] sm:$0xff] %v11758_v63  ;;  %14499 = vst [vmem:[#allocation284_spill] sm:$0xff] %v11764_v55  ;;  %v5118_v38 = vadd.f32 %v11664_v18, %v5117_v1  ;;  %v11768_v48 = vadd.f32 %v6926_v43, %v11664_v18  ;;  %v11771_v45 = vmul.f32 %v11278_v42, %v5576_v6  ;;  %v5200_v8 = vrot.slane %v11758_v63, 7 }
 0x595   : > { %14497 = vst [vmem:[#allocation291_spill] sm:$0xff] %v11753_v54  ;;  %v5184_v60 = vmul.f32 %v11272_v58, %v11758_v63  ;;  %v5252_v51 = vmul.f32 %v11281_v46, %v5232_v49  ;;  %v5127_v54 = vpop.f32.mrf.mxu0  ;;  %v5285_v27 = vmul.f32 %v11758_v63, %v14402_v36  ;;  %v5187_v1 = vmul.f32 %v11272_v58, %v11764_v55 }
 0x596   : > { %14500 = vst [vmem:[#allocation273_spill] sm:$0xff] %v11768_v48  ;;  %14501 = vst [vmem:[#allocation277_spill] sm:$0xff] %v11771_v45  ;;  %v5203_v43 = vrot.slane %v11764_v55, 7  ;;  %v5226_v6 = vsel %vm752_vm0, %v5200_v8, %v5201_v61  ;;  %v11787_v45 = vsel %vm752_vm0, %v5199_v40, %v5200_v8  ;;  %v5288_v49 = vmul.f32 %v11764_v55, %v14403_v16 }
 0x597   : > { %14502 = vst [vmem:[#allocation269_spill] sm:$0xff] %v11787_v45  ;;  %v5268_v56 = vadd.f32 %v5252_v51, %v5184_v60  ;;  %v5233_v36 = vmul.f32 %v11787_v45, %v14405_v37  ;;  %v5305_v9 = vmul.f32 %v11275_v34, %v5285_v27  ;;  %v5420_v20 = vmul.f32 %v11787_v45, %v14406_v3  ;;  %v6929_v16 = vpop.f32.mrf.mxu0 }
 0x598   : > { %v5421_v52 = vmul.f32 %v5226_v6, %v14407_v53  ;;  %v11800_v29 = vmul.f32 %v5226_v6, %v14408_v62  ;;  %v5308_v40 = vmul.f32 %v11275_v34, %v5288_v49  ;;  %v5186_v53 = vmul.f32 %v11272_v58, %v5118_v38 }
 0x599   : > { %v11797_v63 = vadd.f32 %v5304_v32, %v5268_v56  ;;  %v5253_v8 = vmul.f32 %v11281_v46, %v5233_v36  ;;  %v11806_v37 = vmul.f32 %v11286_v59, %v5420_v20  ;;  %v5202_v3 = vrot.slane %v5118_v38, 7 }
 0x59a   : > { %14504 = vst [vmem:[#allocation283_spill] sm:$0xff] %v11800_v29  ;;  %v11809_v51 = vmul.f32 %v11286_v59, %v5421_v52  ;;  %v5234_v32 = vmul.f32 %v5226_v6, %v14413_v17  ;;  %v5287_v62 = vmul.f32 %v5118_v38, %v14414_v10  ;;  %v5338_v56 = vrot.slane %v5118_v38, 1 }
 0x59b   : > { %14503 = vst [vmem:[#allocation287_spill] sm:$0xff] %v11797_v63  ;;  %14505 = vst [vmem:[#allocation177_spill] sm:$0xff] %v11806_v37  ;;  %v5269_v27 = vadd.f32 %v5253_v8, %v5185_v15  ;;  %v5577_v49 = vmul.f32 %v5118_v38, %v14415_v28  ;;  %v5189_v36 = vmul.f32 %v11272_v58, %v11768_v48  ;;  %v5205_v20 = vrot.slane %v11768_v48, 7  ;;  %v5137_v15 = vpop.f32.mrf.mxu0  ;;  %v14625_v63 = vld [vmem:[#allocation237_spill] sm:$0xff] }
 0x59c   : > { %14506 = vst [vmem:[#allocation276_spill] sm:$0xff] %v11809_v51  ;;  %v11820_v52 = vsel %vm752_vm0, %v5202_v3, %v5203_v43  ;;  %v11824_v60 = vsel %vm752_vm0, %v5201_v61, %v5202_v3  ;;  %v5254_v17 = vmul.f32 %v11281_v46, %v5234_v32  ;;  %v5307_v10 = vmul.f32 %v11275_v34, %v5287_v62 }
 0x59d   : > { %14507 = vst [vmem:[#allocation292_spill] sm:$0xff] %v11820_v52  ;;  %14508 = vst [vmem:[#allocation285_spill] sm:$0xff] %v11824_v60  ;;  %v11828_v6 = vadd.f32 %v5305_v9, %v5269_v27  ;;  %v5235_v28 = vmul.f32 %v11824_v60, %v14423_v24  ;;  %v14510_v38 = vrot.slane %v11764_v55, 1  ;;  %v14512_v29 = vrot.slane %v11705_v21, 1  ;;  %v14575_v55 = vld [vmem:[#allocation170_spill] sm:$0xff] }
 0x59e   : > { %v5270_v3 = vadd.f32 %v5254_v17, %v5186_v53  ;;  %v11859_v27 = vmul.f32 %v11824_v60, %v14432_v50  ;;  %v6932_v17 = vpop.f32.mrf.mxu0 }
 0x59f   : > { %14509 = vst [vmem:[#allocation281_spill] sm:$0xff] %v11828_v6  ;;  %v11836_v8 = vsel %vm2267_vm12, %v5338_v56, %v14510_v38  ;;  %v11842_v61 = vsel %vm2267_vm12, %v14512_v29, %v5338_v56  ;;  %v5255_v62 = vmul.f32 %v11281_v46, %v5235_v28  ;;  %v11862_v29 = vmul.f32 %v11278_v42, %v5577_v49  ;;  %v14623_v6 = vld [vmem:[#allocation183_spill] sm:$0xff] }
 0x5a0   : > { %14511 = vst [vmem:[#allocation275_spill] sm:$0xff] %v11836_v8  ;;  %14513 = vst [vmem:[#allocation173_spill] sm:$0xff] %v11842_v61  ;;  %v11846_v9 = vmul.f32 %v11842_v61, %v14426_v4  ;;  %v11850_v24 = vmul.f32 %v11836_v8, %v14428_v25  ;;  %v11854_v32 = vmul.f32 %v11842_v61, %v14430_v14  ;;  %v14527_v25 = vld [vmem:[#allocation89_spill] sm:$0xff]  ;;  %v14583_v61 = vld [vmem:[#allocation140_spill] sm:$0xff] }
 0x5a1   : > { %14517 = vst [vmem:[#allocation282_spill] sm:$0xff] %v11859_v27  ;;  %14518 = vst [vmem:[#allocation279_spill] sm:$0xff] %v11862_v29  ;;  %v5290_v4 = vmul.f32 %v11768_v48, %v14436_v11  ;;  %v11866_v53 = vadd.f32 %v5306_v31, %v5270_v3  ;;  %v11870_v56 = vadd.f32 %v11664_v18, %v5127_v54 }
 0x5a2   : > { %14514 = vst [vmem:[#allocation289_spill] sm:$0xff] %v11846_v9  ;;  %14515 = vst [vmem:[#allocation181_spill] sm:$0xff] %v11850_v24  ;;  %v5236_v14 = vmul.f32 %v11820_v52, %v14438_v26  ;;  %v5271_v28 = vadd.f32 %v5255_v62, %v5187_v1  ;;  %v11876_v49 = vadd.f32 %v6929_v16, %v11664_v18  ;;  %v14573_v24 = vld [vmem:[#allocation226_spill] sm:$0xff] }
 0x5a3   : > { %14516 = vst [vmem:[#allocation290_spill] sm:$0xff] %v11854_v32  ;;  %14519 = vst [vmem:[#allocation274_spill] sm:$0xff] %v11866_v53  ;;  %v5310_v50 = vmul.f32 %v11275_v34, %v5290_v4  ;;  %v11879_v38 = vadd.f32 %v11664_v18, %v5137_v15  ;;  %v5188_v11 = vmul.f32 %v11272_v58, %v11870_v56  ;;  %v5204_v31 = vrot.slane %v11870_v56, 7 }
 0x5a4   : > { %14520 = vst [vmem:[#allocation293_spill] sm:$0xff] %v11870_v56  ;;  %14521 = vst [vmem:[#allocation182_spill] sm:$0xff] %v11876_v49  ;;  %v5256_v54 = vmul.f32 %v11281_v46, %v5236_v14  ;;  %v5289_v26 = vmul.f32 %v11870_v56, %v14441_v33  ;;  %v11887_v3 = vadd.f32 %v5307_v10, %v5271_v28  ;;  %v5207_v15 = vrot.slane %v11876_v49, 7  ;;  %v5147_v10 = vpop.f32.mrf.mxu0  ;;  %v14526_v28 = vld [vmem:[#allocation43_spill] sm:$0xff] }
 0x5a5   : > { %14522 = vst [vmem:[#allocation294_spill] sm:$0xff] %v11879_v38  ;;  %v5191_v16 = vmul.f32 %v11272_v58, %v11876_v49  ;;  %v11895_v62 = vsel %vm752_vm0, %v5204_v31, %v5205_v20  ;;  %v11899_v4 = vsel %vm752_vm0, %v5203_v43, %v5204_v31  ;;  %v5292_v52 = vmul.f32 %v11876_v49, %v14527_v25  ;;  %v14529_v31 = vld [vmem:[#allocation44_spill] sm:$0xff]  ;;  %v14576_v56 = vld [vmem:[#allocation223_spill] sm:$0xff] }
 0x5a6   : > { %14523 = vst [vmem:[#allocation178_spill] sm:$0xff] %v11887_v3  ;;  %14524 = vst [vmem:[#allocation229_spill] sm:$0xff] %v11895_v62  ;;  %v5272_v14 = vadd.f32 %v5256_v54, %v5188_v11  ;;  %v5309_v33 = vmul.f32 %v11275_v34, %v5289_v26  ;;  %v5237_v1 = vmul.f32 %v11899_v4, %v14526_v28  ;;  %v5206_v43 = vrot.slane %v11879_v38, 7  ;;  %v14530_v54 = vld [vmem:[#allocation82_spill] sm:$0xff] }
 0x5a7   : > { %14525 = vst [vmem:[#allocation164_spill] sm:$0xff] %v11899_v4  ;;  %v5190_v3 = vmul.f32 %v11272_v58, %v11879_v38  ;;  %v5238_v11 = vmul.f32 %v11895_v62, %v14529_v31  ;;  %v5291_v26 = vmul.f32 %v11879_v38, %v14530_v54  ;;  %v5312_v4 = vmul.f32 %v11275_v34, %v5292_v52  ;;  %v14534_v38 = vld [vmem:[#allocation54_spill] sm:$0xff] }
 0x5a8   : > { %v11909_v53 = vadd.f32 %v5308_v40, %v5272_v14  ;;  %v5257_v28 = vmul.f32 %v11281_v46, %v5237_v1  ;;  %v11920_v60 = vadd.f32 %v6932_v17, %v11664_v18  ;;  %v11924_v40 = vsel %vm752_vm0, %v5206_v43, %v5207_v15  ;;  %v6935_v1 = vpop.f32.mrf.mxu0 }
 0x5a9   : > { %14532 = vst [vmem:[#allocation155_spill] sm:$0xff] %v11924_v40  ;;  %v11928_v14 = vsel %vm752_vm0, %v5205_v20, %v5206_v43  ;;  %v5258_v31 = vmul.f32 %v11281_v46, %v5238_v11  ;;  %v5311_v54 = vmul.f32 %v11275_v34, %v5291_v26  ;;  %v11941_v43 = vadd.f32 %v11664_v18, %v5147_v10  ;;  %v14537_v26 = vld [vmem:[#allocation77_spill] sm:$0xff] }
 0x5aa   : > { %14528 = vst [vmem:[#allocation153_spill] sm:$0xff] %v11909_v53  ;;  %14531 = vst [vmem:[#allocation154_spill] sm:$0xff] %v11920_v60  ;;  %v5273_v62 = vadd.f32 %v5257_v28, %v5189_v36  ;;  %v5239_v52 = vmul.f32 %v11928_v14, %v14453_v23  ;;  %v5193_v17 = vmul.f32 %v11272_v58, %v11920_v60  ;;  %v5209_v25 = vrot.slane %v11920_v60, 7  ;;  %v5157_v20 = vpop.f32.mrf.mxu0 }
 0x5ab   : > { %14533 = vst [vmem:[#allocation38_spill] sm:$0xff] %v11928_v14  ;;  %v5274_v53 = vadd.f32 %v5258_v31, %v5190_v3  ;;  %v5294_v49 = vmul.f32 %v11920_v60, %v14534_v38  ;;  %14535 = vst [vmem:[#allocation159_spill] sm:$0xff] %v11941_v43  ;;  %v5240_v23 = vmul.f32 %v11924_v40, %v14537_v26  ;;  %v5208_v10 = vrot.slane %v11941_v43, 7  ;;  %v14545_v40 = vld [vmem:[#allocation133_spill] sm:$0xff] }
 0x5ac   : > { %v11943_v11 = vadd.f32 %v5309_v33, %v5273_v62  ;;  %v5259_v36 = vmul.f32 %v11281_v46, %v5239_v52  ;;  %v11949_v28 = vadd.f32 %v6935_v1, %v11664_v18  ;;  %v5192_v38 = vmul.f32 %v11272_v58, %v11941_v43  ;;  %v14540_v33 = vld [vmem:[#allocation91_spill] sm:$0xff] }
 0x5ad   : > { %v11951_v14 = vadd.f32 %v5310_v50, %v5274_v53  ;;  %v5314_v3 = vmul.f32 %v11275_v34, %v5294_v49  ;;  %v5260_v62 = vmul.f32 %v11281_v46, %v5240_v23  ;;  %v5293_v52 = vmul.f32 %v11941_v43, %v14540_v33 }
 0x5ae   : > { %14536 = vst [vmem:[#allocation24_spill] sm:$0xff] %v11943_v11  ;;  %14538 = vst [vmem:[#allocation50_spill] sm:$0xff] %v11949_v28  ;;  %v5275_v31 = vadd.f32 %v5259_v36, %v5191_v16  ;;  %v11963_v53 = vsel %vm752_vm0, %v5208_v10, %v5209_v25  ;;  %v11967_v50 = vsel %vm752_vm0, %v5207_v15, %v5208_v10  ;;  %v14544_v36 = vld [vmem:[#allocation78_spill] sm:$0xff]  ;;  %v14547_v10 = vld [vmem:[#allocation48_spill] sm:$0xff] }
 0x5af   : > { %14539 = vst [vmem:[#allocation37_spill] sm:$0xff] %v11951_v14  ;;  %14541 = vst [vmem:[#allocation143_spill] sm:$0xff] %v11963_v53  ;;  %v5195_v49 = vmul.f32 %v11272_v58, %v11949_v28  ;;  %v5241_v23 = vmul.f32 %v11967_v50, %v14544_v36  ;;  %v5276_v33 = vadd.f32 %v5260_v62, %v5192_v38  ;;  %v14549_v16 = vld [vmem:[#allocation232_spill] sm:$0xff]  ;;  %v14550_v62 = vld [vmem:[#allocation219_spill] sm:$0xff] }
 0x5b0   : > { %14542 = vst [vmem:[#allocation41_spill] sm:$0xff] %v11967_v50  ;;  %v11972_v1 = vadd.f32 %v5311_v54, %v5275_v31  ;;  %v5313_v26 = vmul.f32 %v11275_v34, %v5293_v52  ;;  %v5296_v14 = vmul.f32 %v11949_v28, %v14545_v40  ;;  %v11981_v15 = vadd.f32 %v11664_v18, %v5157_v20 }
 0x5b1   : > { %v5242_v60 = vmul.f32 %v11963_v53, %v14547_v10  ;;  %v5261_v54 = vmul.f32 %v11281_v46, %v5241_v23  ;;  %v11986_v31 = vadd.f32 %v5312_v4, %v5276_v33  ;;  %v4356_v38 = vadd.f32 %v11697_v44, %v14549_v16  ;;  %v14551_v23 = vld [vmem:[#allocation130_spill] sm:$0xff] }
 0x5b2   : > { %14543 = vst [vmem:[#allocation26_spill] sm:$0xff] %v11972_v1  ;;  %14546 = vst [vmem:[#allocation42_spill] sm:$0xff] %v11981_v15  ;;  %v4357_v52 = vadd.f32 %v11683_v19, %v14550_v62  ;;  %v11993_v40 = vmul.f32 %v11275_v34, %v5296_v14  ;;  %v5194_v20 = vmul.f32 %v11272_v58, %v11981_v15  ;;  %v5210_v36 = vrot.slane %v11981_v15, 7  ;;  %v14559_v53 = vld [vmem:[#allocation230_spill] sm:$0xff] }
 0x5b3   : > { %14548 = vst [vmem:[#allocation49_spill] sm:$0xff] %v11986_v31  ;;  %v5262_v10 = vmul.f32 %v11281_v46, %v5242_v60  ;;  %v5277_v43 = vadd.f32 %v5261_v54, %v5193_v17  ;;  %v5295_v4 = vmul.f32 %v11981_v15, %v14551_v23  ;;  %v4408_v44 = vadd.f32 %v11646_v13, %v4356_v38  ;;  %v14555_v60 = vld [vmem:[#allocation227_spill] sm:$0xff]  ;;  %v14557_v38 = vld [vmem:[#allocation218_spill] sm:$0xff] }
 0x5b4   : > { %v14552_v19 = vrot.slane %v11949_v28, 7  ;;  %v12011_v16 = vsel %vm752_vm0, %v5209_v25, %v5210_v36  ;;  %v4409_v17 = vadd.f32 %v14555_v60, %v4357_v52  ;;  %v14558_v33 = vrot.slane %v14557_v38, 1  ;;  %v14567_v60 = vld [vmem:[#allocation35_spill] sm:$0xff] }
 0x5b5   : > { %14554 = vst [vmem:[#allocation28_spill] sm:$0xff] %v12011_v16  ;;  %v5278_v62 = vadd.f32 %v5262_v10, %v5194_v20  ;;  %v12014_v54 = vadd.f32 %v5313_v26, %v5277_v43  ;;  %v5243_v23 = vmul.f32 %v12011_v16, %v14474_v0  ;;  %v5315_v13 = vmul.f32 %v11275_v34, %v5295_v4  ;;  %v14563_v20 = vld [vmem:[#allocation201_spill] sm:$0xff]  ;;  %v14565_v26 = vld [vmem:[#allocation59_spill] sm:$0xff] }
 0x5b6   : > { %v12007_v14 = vsel %vm752_vm0, %v5210_v36, %v14552_v19  ;;  %v14560_v31 = vrot.slane %v14559_v53, 1  ;;  %v14564_v52 = vrot.slane %v14563_v20, 1  ;;  %v14566_v36 = vld [vmem:[#allocation208_spill] sm:$0xff]  ;;  %v14568_v16 = vld [vmem:[#allocation187_spill] sm:$0xff]  ;;  %v4580_v48 = vmul.f32 %v14576_v56, %v14575_v55  ;;  %v6938_v55 = vpop.f32.mrf.mxu0 }
 0x5b7   : > { %14553 = vst [vmem:[#allocation31_spill] sm:$0xff] %v12007_v14  ;;  %14556 = vst [vmem:[#allocation29_spill] sm:$0xff] %v12014_v54  ;;  %v12025_v15 = vadd.f32 %v5314_v3, %v5278_v62  ;;  %v4476_v10 = vmul.f32 %v14566_v36, %v11668_v7  ;;  %v5263_v4 = vmul.f32 %v11281_v46, %v5243_v23  ;;  %v14572_v54 = vld [vmem:[#allocation101_spill] sm:$0xff] }
 0x5b8   : > { %v4452_v19 = vsel %vm2267_vm12, %v14560_v31, %v14558_v33  ;;  %v14562_v25 = vmov %v14560_v31  ;;  %v4477_v3 = vmul.f32 %v14566_v36, %v14568_v16  ;;  %v14569_v31 = vld [vmem:[#allocation33_spill] sm:$0xff]  ;;  %v14574_v16 = vld [vmem:[#allocation108_spill] sm:$0xff]  ;;  %v4665_v27 = vmul.f32 %v14559_v53, %v14583_v61 }
 0x5b9   : > { %14561 = vst [vmem:[#allocation127_spill] sm:$0xff] %v12025_v15  ;;  %v4453_v43 = vsel %vm2267_vm12, %v14564_v52, %v14562_v25  ;;  %v4459_v0 = vmul.f32 %v4452_v19, %v14565_v26  ;;  %v4508_v33 = vmul.f32 %v11643_v2, %v14569_v31  ;;  %v4492_v20 = vadd.f32 %v4476_v10, %v4408_v44  ;;  %v14570_v15 = vld [vmem:[#allocation236_spill] sm:$0xff]  ;;  %v14571_v25 = vld [vmem:[#allocation202_spill] sm:$0xff] }
 0x5ba   : > { %v4458_v38 = vmul.f32 %v4453_v43, %v14567_v60  ;;  %v4529_v52 = vmul.f32 %v14571_v25, %v14570_v15  ;;  %v4561_v50 = vmul.f32 %v4453_v43, %v14572_v54  ;;  %v5279_v1 = vadd.f32 %v5263_v4, %v5195_v49  ;;  %v14578_v15 = vld [vmem:[#allocation231_spill] sm:$0xff]  ;;  %v14614_v61 = vld [vmem:[#allocation56_spill] sm:$0xff] }
 0x5bb   : > { %v4479_v62 = vmul.f32 %v14566_v36, %v4459_v0  ;;  %v4493_v23 = vadd.f32 %v4477_v3, %v4409_v17  ;;  %v4528_v11 = vmul.f32 %v14571_v25, %v4508_v33  ;;  %v4562_v9 = vmul.f32 %v4452_v19, %v14574_v16  ;;  %v14579_v17 = vld [vmem:[#allocation46_spill] sm:$0xff]  ;;  %v14581_v33 = vld [vmem:[#allocation125_spill] sm:$0xff] }
 0x5bc   : > { %v4478_v7 = vmul.f32 %v14566_v36, %v4458_v38  ;;  %v4581_v44 = vmul.f32 %v14576_v56, %v4561_v50  ;;  %v12053_v0 = vadd.f32 %v5315_v13, %v5279_v1  ;;  %v14580_v38 = vld [vmem:[#allocation158_spill] sm:$0xff]  ;;  %v14584_v1 = vld [vmem:[#allocation215_spill] sm:$0xff]  ;;  %v14585_v13 = vld [vmem:[#allocation204_spill] sm:$0xff] }
 0x5bd   : > { %v4495_v29 = vadd.f32 %v4479_v62, %v14573_v24  ;;  %v4544_v8 = vadd.f32 %v4528_v11, %v4492_v20  ;;  %v4545_v49 = vadd.f32 %v4529_v52, %v4493_v23  ;;  %v4582_v4 = vmul.f32 %v14576_v56, %v4562_v9  ;;  %v14582_v24 = vld [vmem:[#allocation166_spill] sm:$0xff]  ;;  %v12066_v20 = vld [vmem:[#allocation13 + $0x30] ss:$0 sm:$0xff]  ;;  %v14587_v9 = vld [vmem:[#allocation211_spill] sm:$0xff] }
 0x5be   : > { %14577 = vst [vmem:[#allocation32_spill] sm:$0xff] %v12053_v0  ;;  %v4494_v10 = vadd.f32 %v4478_v7, %v14578_v15  ;;  %v4612_v3 = vmul.f32 %v14580_v38, %v14579_v17  ;;  %v4613_v62 = vmul.f32 %v14582_v24, %v14581_v33  ;;  %v4684_v0 = vmul.f32 %v14585_v13, %v14584_v1  ;;  %v14586_v7 = vld [vmem:[#allocation62_spill] sm:$0xff]  ;;  %v14588_v38 = vld [vmem:[#allocation81_spill] sm:$0xff]  ;;  %v14622_v17 = vld [vmem:[#allocation60_spill] sm:$0xff] }
 0x5bf   : > { %v4596_v32 = vadd.f32 %v4580_v48, %v4544_v8  ;;  %v4597_v50 = vadd.f32 %v4581_v44, %v4545_v49  ;;  %v4716_v11 = vmul.f32 %v4453_v43, %v14586_v7  ;;  %v4685_v15 = vmul.f32 %v14585_v13, %v4665_v27  ;;  %v14590_v8 = vld [vmem:[#allocation157_spill] sm:$0xff]  ;;  %v14591_v49 = vld [vmem:[#allocation220_spill] sm:$0xff] }
 0x5c0   : > { %v4632_v52 = vmul.f32 %v14587_v9, %v4612_v3  ;;  %v4633_v23 = vmul.f32 %v14587_v9, %v4613_v62  ;;  %v4717_v24 = vmul.f32 %v4452_v19, %v14588_v38  ;;  %v12074_v48 = vadd.f32 %v6938_v55, %v11664_v18  ;;  %v14592_v3 = vld [vmem:[#allocation244_spill] sm:$0xff]  ;;  %v14608_v38 = vld [vmem:[#allocation249_spill] sm:$0xff] }
 0x5c1   : > { %v4736_v53 = vmul.f32 %v12066_v20, %v4716_v11  ;;  %v4546_v44 = vadd.f32 %v14590_v8, %v4494_v10  ;;  %v4547_v1 = vadd.f32 %v14591_v49, %v4495_v29  ;;  %v4583_v62 = vmul.f32 %v14576_v56, %v14592_v3  ;;  %v14593_v11 = vld [vmem:[#allocation23_spill] sm:$0xff]  ;;  %v14599_v3 = vld [vmem:[#allocation57_spill] sm:$0xff] }
 0x5c2   : > { %14589 = vst [vmem:[#allocation34_spill] sm:$0xff] %v12074_v48  ;;  %v4648_v43 = vadd.f32 %v4632_v52, %v4596_v32  ;;  %v4649_v51 = vadd.f32 %v4633_v23, %v4597_v50  ;;  %v4737_v37 = vmul.f32 %v12066_v20, %v4717_v24  ;;  %v12083_v27 = vmul.f32 %v11272_v58, %v12074_v48 }
 0x5c3   : > { %v13585_v19 = vrot.slane %v12074_v48, 7  ;;  %v5282_v55 = vmul.f32 %v12074_v48, %v14593_v11  ;;  %v13584_v10 = vrot.slane %v12074_v48, 1  ;;  %v4598_v32 = vadd.f32 %v4582_v4, %v4546_v44  ;;  %v12119_v11 = vld [vmem:[%s12991_s9 + $0x2] ss:$0 sm:$0xff] }
 0x5c4   : > { %v4700_v8 = vadd.f32 %v4684_v0, %v4648_v43  ;;  %v4701_v29 = vadd.f32 %v4685_v15, %v4649_v51  ;;  %v4599_v50 = vadd.f32 %v4583_v62, %v4547_v1  ;;  %v14594_v52 = vrot.slane %v11702_v12, 7  ;;  %v14597_v0 = vld [vmem:[#allocation214_spill] sm:$0xff] }
 0x5c5   : > { %v12098_v24 = vmul.f32 %v11275_v34, %v5282_v55  ;;  %v14595_v49 = vrot.slane %v11702_v12, 1  ;;  %v4634_v4 = vmul.f32 %v14587_v9, %v14597_v0  ;;  %v14598_v1 = vld [vmem:[#allocation30_spill] sm:$0xff]  ;;  %v14606_v12 = vld [vmem:[#allocation221_spill] sm:$0xff]  ;;  %v14609_v42 = vrot.slane %v14608_v38, 1 }
 0x5c6   : > { %v12095_v23 = vsel %vm752_vm0, %v13585_v19, %v14594_v52  ;;  %v4752_v15 = vadd.f32 %v4736_v53, %v4700_v8  ;;  %v4753_v44 = vadd.f32 %v4737_v37, %v4701_v29  ;;  %v14601_v55 = vld [vmem:[#allocation238_spill] sm:$0xff]  ;;  %v14604_v37 = vld [vmem:[#allocation71_spill] sm:$0xff]  ;;  %v14605_v8 = vld [vmem:[#allocation216_spill] sm:$0xff] }
 0x5c7   : > { %v12106_v51 = vsel %vm2267_vm12, %v13584_v10, %v14595_v49  ;;  %v5231_v43 = vmul.f32 %v12095_v23, %v14598_v1  ;;  %v4635_v52 = vmul.f32 %v14587_v9, %v14601_v55  ;;  %v4650_v49 = vadd.f32 %v4634_v4, %v4598_v32  ;;  %v14602_v10 = vld [vmem:[#allocation83_spill] sm:$0xff]  ;;  %v14603_v0 = vld [vmem:[#allocation234_spill] sm:$0xff]  ;;  %v14610_v55 = vld [vmem:[#allocation224_spill] sm:$0xff] }
 0x5c8   : > { %14596 = vst [vmem:[#allocation58_spill] sm:$0xff] %v12106_v51  ;;  %v12114_v62 = vmul.f32 %v12106_v51, %v14599_v3  ;;  %v4718_v53 = vmul.f32 %v14603_v0, %v14602_v10  ;;  %v4719_v29 = vmul.f32 %v14605_v8, %v14604_v37  ;;  %v4775_v1 = vadd.f32 %v12119_v11, %v4752_v15 }
 0x5c9   : > { %v4776_v3 = vadd.f32 %v12119_v11, %v4753_v44  ;;  %v12130_v19 = vmul.f32 %v11281_v46, %v5231_v43  ;;  %v14607_v51 = vrot.slane %v14606_v12, 1  ;;  %v4651_v4 = vadd.f32 %v4635_v52, %v4599_v50  ;;  %v14612_v44 = vld [vmem:[#allocation225_spill] sm:$0xff]  ;;  %v14616_v52 = vld [vmem:[#allocation55_spill] sm:$0xff] }
 0x5ca   : > { %14600 = vst [vmem:[#allocation47_spill] sm:$0xff] %v12114_v62  ;;  %v4702_v0 = vadd.f32 %v14610_v55, %v4650_v49  ;;  %v4738_v10 = vmul.f32 %v12066_v20, %v4718_v53  ;;  %v4739_v37 = vmul.f32 %v12066_v20, %v4719_v29  ;;  %vm4791_vm4 = vcmp.gt.f32.partialorder %v4775_v1, 0.0  ;;  %v14617_v53 = vld [vmem:[#allocation165_spill] sm:$0xff]  ;;  %v14626_v62 = vld [vmem:[#allocation75_spill] sm:$0xff] }
 0x5cb   : > { %v4448_v32 = vsel %vm2267_vm12, %v14609_v42, %v14607_v51  ;;  %vm4792_vm5 = vcmp.gt.f32.partialorder %v4776_v3, 0.0  ;;  %v14611_v15 = vmov %v14609_v42  ;;  %v14613_v43 = vrot.slane %v14612_v44, 1  ;;  %v14615_v42 = vld [vmem:[#allocation235_spill] sm:$0xff]  ;;  %v14619_v3 = vld [vmem:[#allocation240_spill] sm:$0xff] }
 0x5cc   : > { %v4463_v45 = vmul.f32 %v4448_v32, %v14614_v61  ;;  %vm6240_vm6 = vmpackc.low %vm4792_vm5, %vm4791_vm4  ;;  %v4703_v50 = vadd.f32 %v14615_v42, %v4651_v4  ;;  %v4754_v51 = vadd.f32 %v4738_v10, %v4702_v0  ;;  %v4480_v29 = vmul.f32 %v14566_v36, %v14617_v53  ;;  %v14624_v53 = vld [vmem:[#allocation243_spill] sm:$0xff] }
 0x5cd   : > { %v4449_v7 = vsel %vm2267_vm12, %v14613_v43, %v14611_v15  ;;  %v14618_v1 = vmov 1.0|1.0   ;;  %v4481_v55 = vmul.f32 %v14566_v36, %v14619_v3  ;;  %v14620_v15 = vld [vmem:[#allocation74_spill] sm:$0xff]  ;;  %v14621_v43 = vld [vmem:[#allocation217_spill] sm:$0xff]  ;;  %v4513_v4 = vmul.f32 %v14623_v6, %v14622_v17 }
 0x5ce   : > { %v4462_v49 = vmul.f32 %v4449_v7, %v14616_v52  ;;  %6867 = vmatprep.mubr.msk.bf16.mxu1 %vm6240_vm6, %v14618_v1  ;;  %v12156_v33 = vmul.f32 %v14566_v36, %v4463_v45  ;;  %v4512_v61 = vmul.f32 %v14621_v43, %v14620_v15  ;;  %v4755_v10 = vadd.f32 %v4739_v37, %v4703_v50  ;;  %v14627_v37 = vld [vmem:[#allocation111_spill] sm:$0xff] }
 0x5cf   : > { %v4777_v0 = vadd.f32 %v12119_v11, %v4754_v51  ;;  %v4496_v52 = vadd.f32 %v4480_v29, %v14624_v53  ;;  %v4497_v59 = vadd.f32 %v4481_v55, %v14625_v63  ;;  %v4533_v45 = vmul.f32 %v14571_v25, %v4513_v4  ;;  %v14628_v51 = vld [vmem:[#allocation113_spill] sm:$0xff] }
 0x5d0   : > { %v12164_v42 = vmul.f32 %v14566_v36, %v4462_v49  ;;  %v4532_v3 = vmul.f32 %v14571_v25, %v4512_v61  ;;  %v4564_v43 = vmul.f32 %v14605_v8, %v14626_v62  ;;  %v4778_v15 = vadd.f32 %v12119_v11, %v4755_v10  ;;  %v14629_v63 = vld [vmem:[#allocation85_spill] sm:$0xff]  ;;  %v14632_v10 = vld [vmem:[#allocation98_spill] sm:$0xff] }
 0x5d1   : > { %vm4793_vm7 = vcmp.gt.f32.partialorder %v4777_v0, 0.0  ;;  %v4565_v50 = vmul.f32 %v4449_v7, %v14627_v37  ;;  %v12175_v17 = vmul.f32 %v4448_v32, %v14628_v51  ;;  %v4549_v16 = vadd.f32 %v4533_v45, %v4497_v59  ;;  %v14630_v4 = vld [vmem:[#allocation129_spill] sm:$0xff]  ;;  %v5167_v37 = vpop.f32.mrf.mxu0  ;;  %v14634_v45 = vld [vmem:[#allocation114_spill] sm:$0xff] }
 0x5d2   : > { %v4548_v49 = vadd.f32 %v4532_v3, %v4496_v52  ;;  %v4584_v29 = vmul.f32 %v14576_v56, %v4564_v43  ;;  %v4616_v61 = vmul.f32 %v14623_v6, %v14629_v63  ;;  %vm4794_vm8 = vcmp.gt.f32.partialorder %v4778_v15, 0.0  ;;  %v14631_v8 = vld [vmem:[#allocation233_spill] sm:$0xff] }
 0x5d3   : > { %v4585_v55 = vmul.f32 %v14576_v56, %v4565_v50  ;;  %v4617_v53 = vmul.f32 %v14631_v8, %v14630_v4  ;;  %v4668_v0 = vmul.f32 %v14612_v44, %v14632_v10  ;;  %v7248_v62 = vld [vmem:[#allocation14 + $0xf0] sm:$0xff]   ;;  %vm6242_vm9 = vmpackc.low %vm4794_vm8, %vm4793_vm7  ;;  %v4720_v6 = vmul.f32 %v4449_v7, %v14634_v45  ;;  %v14635_v4 = vld [vmem:[#allocation87_spill] sm:$0xff] }
 0x5d4   : > { %v4600_v51 = vadd.f32 %v4584_v29, %v4548_v49  ;;  %v4636_v59 = vmul.f32 %v14587_v9, %v4616_v61  ;;  %v14633_v52 = vld [vmem:[#allocation145_spill] sm:$0xff]  ;;  %6868 = vmatmul.mubr.msk.bf16.vlgmr.msra.gmra.mxu1 %vm6242_vm9, %v14618_v1  ;;  %v4721_v44 = vmul.f32 %v4448_v32, %v14635_v4  ;;  %v7295_v10 = vld [vmem:[#allocation14 + $0xf8] sm:$0xff]  }
 0x5d5   : > { %v4669_v3 = vmul.f32 %v14608_v38, %v14633_v52  ;;  %v4601_v15 = vadd.f32 %v4585_v55, %v4549_v16  ;;  %v4637_v43 = vmul.f32 %v14587_v9, %v4617_v53  ;;  %v4688_v50 = vmul.f32 %v14585_v13, %v4668_v0  ;;  %6940 = vmatpush3.bf16.msra.mxu1 %v7295_v10  ;;  %v14637_v16 = vld [vmem:[#allocation124_spill] sm:$0xff]  ;;  %v14638_v0 = vld [vmem:[#allocation239_spill] sm:$0xff]  ;;  %v14640_v4 = vld [vmem:[#allocation241_spill] sm:$0xff] }
 0x5d6   : > { %v4652_v63 = vadd.f32 %v4636_v59, %v4600_v51  ;;  %v4740_v29 = vmul.f32 %v12066_v20, %v4720_v6  ;;  %v12196_v38 = vadd.f32 %v11664_v18, %v5167_v37  ;;  %v4741_v61 = vmul.f32 %v12066_v20, %v4721_v44  ;;  %6941 = vmatprep.subr.bf16.mxu1 %v7248_v62  ;;  %v7249_v53 = vld [vmem:[#allocation14 + $0xe8] sm:$0xff]  }
 0x5d7   : > { %v4689_v49 = vmul.f32 %v14585_v13, %v4669_v3  ;;  %v4653_v7 = vadd.f32 %v4637_v43, %v4601_v15  ;;  %v5244_v55 = vmul.f32 %v12007_v14, %v14637_v16  ;;  %v14639_v32 = vrot.slane %v14638_v0, 1  ;;  %v14649_v14 = vld [vmem:[#allocation95_spill] sm:$0xff] }
 0x5d8   : > { %14636 = vst [vmem:[#allocation61_spill] sm:$0xff] %v12196_v38  ;;  %v14641_v10 = vrot.slane %v14640_v4, 1  ;;  %v4704_v59 = vadd.f32 %v4688_v50, %v4652_v63  ;;  %v5196_v18 = vmul.f32 %v11272_v58, %v12196_v38  ;;  %v5212_v37 = vrot.slane %v12196_v38, 7 }
 0x5d9   : > { %v5297_v3 = vmul.f32 %v12196_v38, %v14487_v30  ;;  %v4705_v6 = vadd.f32 %v4689_v49, %v4653_v7  ;;  %v5264_v15 = vmul.f32 %v11281_v46, %v5244_v55  ;;  %v14643_v16 = vrot.slane %v14606_v12, 1  ;;  %6942 = vmatpush3.bf16.msra.mxu1 %v7248_v62  ;;  %v14662_v38 = vld [vmem:[#allocation147_spill] sm:$0xff] }
 0x5da   : > { %v4446_v51 = vsel %vm2267_vm12, %v14641_v10, %v14639_v32  ;;  %v14642_v44 = vmov %v14641_v10  ;;  %v4756_v50 = vadd.f32 %v4740_v29, %v4704_v59  ;;  %v14644_v58 = vrot.slane %v12074_v48, 7  ;;  %6943 = vmatprep.subr.bf16.mxu1 %v7249_v53  ;;  %v14663_v48 = vld [vmem:[#allocation110_spill] sm:$0xff] }
 0x5db   : > { %v4447_v63 = vsel %vm2267_vm12, %v14643_v16, %v14642_v44  ;;  %v14646_v30 = vrot.slane %v11949_v28, 7  ;;  %v5317_v7 = vmul.f32 %v11275_v34, %v5297_v3  ;;  %v4757_v55 = vadd.f32 %v4741_v61, %v4705_v6  ;;  %v7250_v44 = vld [vmem:[#allocation14 + $0xe0] sm:$0xff]   ;;  %v14652_v6 = vld [vmem:[#allocation250_spill] sm:$0xff]  ;;  %v7252_v28 = vld [vmem:[#allocation14 + $0xd0] sm:$0xff]  }
 0x5dc   : > { %v12224_v32 = vsel %vm752_vm0, %v5212_v37, %v14644_v58  ;;  %v5280_v59 = vadd.f32 %v5264_v15, %v5196_v18  ;;  %v4779_v16 = vadd.f32 %v12119_v11, %v4756_v50  ;;  %v14648_v58 = vld [vmem:[#allocation63_spill] sm:$0xff]  ;;  %v4499_v15 = vadd.f32 %v12156_v33, %v14652_v6  ;;  %v14653_v50 = vld [vmem:[#allocation64_spill] sm:$0xff] }
 0x5dd   : > { %14645 = vst [vmem:[#allocation51_spill] sm:$0xff] %v12224_v32  ;;  %v12230_v49 = vsel %vm752_vm0, %v14646_v30, %v5212_v37  ;;  %v5230_v10 = vmul.f32 %v12224_v32, %v14488_v5  ;;  %v4464_v43 = vmul.f32 %v4447_v63, %v14648_v58  ;;  %v4465_v37 = vmul.f32 %v4446_v51, %v14649_v14  ;;  %v14650_v30 = vld [vmem:[#allocation246_spill] sm:$0xff]  ;;  %v14661_v6 = vld [vmem:[#allocation255_spill] sm:$0xff] }
 0x5de   : > { %14647 = vst [vmem:[#allocation45_spill] sm:$0xff] %v12230_v49  ;;  %v5245_v29 = vmul.f32 %v12230_v49, %v14489_v41  ;;  %v4498_v34 = vadd.f32 %v12164_v42, %v14650_v30  ;;  %v4780_v62 = vadd.f32 %v12119_v11, %v4757_v55  ;;  %v12248_v41 = vadd.f32 %v11993_v40, %v5280_v59  ;;  %v7251_v40 = vld [vmem:[#allocation14 + $0xd8] sm:$0xff]   ;;  %v14656_v59 = vld [vmem:[#allocation80_spill] sm:$0xff] }
 0x5df   : > { %v12244_v61 = vmul.f32 %v11281_v46, %v5230_v10  ;;  %vm4795_vm0 = vcmp.gt.f32.partialorder %v4779_v16, 0.0  ;;  %v4484_v18 = vmul.f32 %v14566_v36, %v4464_v43  ;;  %v4485_v3 = vmul.f32 %v14566_v36, %v4465_v37  ;;  %6944 = vmatpush3.bf16.msra.mxu1 %v7249_v53  ;;  %v14654_v10 = vld [vmem:[#allocation66_spill] sm:$0xff]  ;;  %v14657_v16 = vld [vmem:[#allocation123_spill] sm:$0xff] }
 0x5e0   : > { %v5265_v5 = vmul.f32 %v11281_v46, %v5245_v29  ;;  %14651 = vst [vmem:[#allocation25_spill] sm:$0xff] %v12248_v41  ;;  %vm4796_vm10 = vcmp.gt.f32.partialorder %v4780_v62, 0.0  ;;  %v4514_v55 = vmul.f32 %v14631_v8, %v14653_v50  ;;  %v14655_v46 = vld [vmem:[#allocation242_spill] sm:$0xff]  ;;  %6945 = vmatprep.subr.bf16.mxu1 %v7250_v44  ;;  %v4567_v43 = vmul.f32 %v4447_v63, %v14656_v59  ;;  %v14658_v53 = vld [vmem:[#allocation131_spill] sm:$0xff] }
 0x5e1   : > { %v4515_v29 = vmul.f32 %v14655_v46, %v14654_v10  ;;  %vm6244_vm11 = vmpackc.low %vm4796_vm10, %vm4795_vm0  ;;  %v4568_v37 = vmul.f32 %v4446_v51, %v14657_v16  ;;  %v4586_v33 = vmul.f32 %v14576_v56, %v12175_v17  ;;  %v4618_v30 = vmul.f32 %v14655_v46, %v14658_v53  ;;  %v14666_v16 = vld [vmem:[#allocation252_spill] sm:$0xff] }
 0x5e2   : > { %v5281_v42 = vadd.f32 %v5265_v5, %v12083_v27  ;;  %6871 = vmatprep.mubr.msk.bf16.mxu1 %vm6244_vm11, %v14618_v1  ;;  %v4534_v8 = vmul.f32 %v14571_v25, %v4514_v55  ;;  %v14660_v5 = vld [vmem:[#allocation93_spill] sm:$0xff]  ;;  %v4587_v41 = vmul.f32 %v14576_v56, %v4567_v43  ;;  %v4670_v17 = vmul.f32 %v14606_v12, %v14662_v38 }
 0x5e3   : > { %v4535_v62 = vmul.f32 %v14571_v25, %v4515_v29  ;;  %v4619_v32 = vmul.f32 %v14661_v6, %v14660_v5  ;;  %v4638_v49 = vmul.f32 %v14587_v9, %v4618_v30  ;;  %v4671_v46 = vmul.f32 %v14640_v4, %v14663_v48  ;;  %6946 = vmatpush3.bf16.msra.mxu1 %v7250_v44  ;;  %v14665_v30 = vld [vmem:[#allocation119_spill] sm:$0xff]  ;;  %v14668_v38 = vld [vmem:[#allocation257_spill] sm:$0xff] }
 0x5e4   : > { %v12266_v27 = vadd.f32 %v5317_v7, %v5281_v42  ;;  %v4550_v7 = vadd.f32 %v4534_v8, %v4498_v34  ;;  %6947 = vmatprep.subr.bf16.mxu1 %v7251_v40  ;;  %v4690_v5 = vmul.f32 %v14585_v13, %v4670_v17  ;;  %v4723_v53 = vmul.f32 %v4446_v51, %v14665_v30 }
 0x5e5   : > { %v4551_v42 = vadd.f32 %v4535_v62, %v4499_v15  ;;  %v4639_v55 = vmul.f32 %v14587_v9, %v4619_v32  ;;  %v4691_v43 = vmul.f32 %v14585_v13, %v4671_v46  ;;  %v14667_v12 = vrot.slane %v14666_v16, 1  ;;  %v14672_v62 = vld [vmem:[#allocation102_spill] sm:$0xff]  ;;  %v14673_v46 = vld [vmem:[#allocation105_spill] sm:$0xff] }
 0x5e6   : > { %14659 = vst [vmem:[#allocation52_spill] sm:$0xff] %v12266_v27  ;;  %v14664_v27 = vld [vmem:[#allocation92_spill] sm:$0xff]  ;;  %v14669_v59 = vrot.slane %v14668_v38, 1  ;;  %v4602_v44 = vadd.f32 %v4586_v33, %v4550_v7  ;;  %v14671_v15 = vrot.slane %v14638_v0, 1  ;;  %v4743_v51 = vmul.f32 %v12066_v20, %v4723_v53  ;;  %v14675_v33 = vld [vmem:[#allocation247_spill] sm:$0xff] }
 0x5e7   : > { %v4722_v29 = vmul.f32 %v4447_v63, %v14664_v27  ;;  %v4603_v34 = vadd.f32 %v4587_v41, %v4551_v42  ;;  %v14674_v27 = vld [vmem:[#allocation254_spill] sm:$0xff]  ;;  %6948 = vmatpush3.bf16.msra.mxu1 %v7251_v40  ;;  %v4501_v7 = vadd.f32 %v4485_v3, %v14675_v33  ;;  %v14676_v42 = vld [vmem:[#allocation76_spill] sm:$0xff] }
 0x5e8   : > { %v4444_v4 = vsel %vm2267_vm12, %v14669_v59, %v14667_v12  ;;  %v14670_v63 = vmov %v14669_v59  ;;  %v4500_v48 = vadd.f32 %v4484_v18, %v14674_v27  ;;  %v4654_v59 = vadd.f32 %v4638_v49, %v4602_v44  ;;  %6949 = vmatprep.subr.bf16.mxu1 %v7252_v28  ;;  %v7253_v12 = vld [vmem:[#allocation14 + $0xc8] sm:$0xff]   ;;  %v14680_v27 = vld [vmem:[#allocation118_spill] sm:$0xff] }
 0x5e9   : > { %v4742_v32 = vmul.f32 %v12066_v20, %v4722_v29  ;;  %v4445_v8 = vsel %vm2267_vm12, %v14671_v15, %v14670_v63  ;;  %v4467_v30 = vmul.f32 %v4444_v4, %v14673_v46  ;;  %v4655_v41 = vadd.f32 %v4639_v55, %v4603_v34  ;;  %v14677_v15 = vld [vmem:[#allocation112_spill] sm:$0xff] }
 0x5ea   : > { %v4466_v17 = vmul.f32 %v4445_v8, %v14672_v62  ;;  %v4516_v29 = vmul.f32 %v14661_v6, %v14676_v42  ;;  %v14678_v62 = vld [vmem:[#allocation251_spill] sm:$0xff]  ;;  %v14679_v46 = vld [vmem:[#allocation116_spill] sm:$0xff]  ;;  %v4706_v18 = vadd.f32 %v4690_v5, %v4654_v59  ;;  %v4570_v3 = vmul.f32 %v4444_v4, %v14680_v27  ;;  %v14683_v5 = vld [vmem:[#allocation245_spill] sm:$0xff] }
 0x5eb   : > { %v4487_v53 = vmul.f32 %v14566_v36, %v4467_v30  ;;  %v4517_v10 = vmul.f32 %v14678_v62, %v14677_v15  ;;  %v4569_v50 = vmul.f32 %v4445_v8, %v14679_v46  ;;  %v4707_v40 = vadd.f32 %v4691_v43, %v4655_v41  ;;  %v14681_v34 = vld [vmem:[#allocation132_spill] sm:$0xff]  ;;  %6950 = vmatpush3.bf16.msra.mxu1 %v7252_v28  ;;  %v14682_v46 = vld [vmem:[#allocation134_spill] sm:$0xff]  ;;  %v7254_v59 = vld [vmem:[#allocation14 + $0xc0] sm:$0xff]  }
 0x5ec   : > { %v4486_v63 = vmul.f32 %v14566_v36, %v4466_v17  ;;  %v4536_v49 = vmul.f32 %v14571_v25, %v4516_v29  ;;  %v4588_v6 = vmul.f32 %v14576_v56, %v4568_v37  ;;  %v4620_v30 = vmul.f32 %v14678_v62, %v14681_v34  ;;  %6951 = vmatprep.subr.bf16.mxu1 %v7253_v12  ;;  %v14685_v27 = vld [vmem:[#allocation149_spill] sm:$0xff] }
 0x5ed   : > { %v4537_v55 = vmul.f32 %v14571_v25, %v4517_v10  ;;  %v4589_v44 = vmul.f32 %v14576_v56, %v4569_v50  ;;  %v4758_v17 = vadd.f32 %v4742_v32, %v4706_v18  ;;  %v4759_v33 = vadd.f32 %v4743_v51, %v4707_v40  ;;  %v14684_v10 = vld [vmem:[#allocation141_spill] sm:$0xff]  ;;  %v14686_v40 = vld [vmem:[#allocation150_spill] sm:$0xff] }
 0x5ee   : > { %v4552_v15 = vadd.f32 %v4536_v49, %v4500_v48  ;;  %v4621_v43 = vmul.f32 %v14683_v5, %v14682_v46  ;;  %v4640_v29 = vmul.f32 %v14587_v9, %v4620_v30  ;;  %v4672_v37 = vmul.f32 %v14638_v0, %v14684_v10 }
 0x5ef   : > { %v4553_v41 = vadd.f32 %v4537_v55, %v4501_v7  ;;  %v4673_v50 = vmul.f32 %v14668_v38, %v14685_v27  ;;  %v4781_v62 = vadd.f32 %v12119_v11, %v4758_v17  ;;  %v4782_v28 = vadd.f32 %v12119_v11, %v4759_v33  ;;  %6952 = vmatpush3.bf16.msra.mxu1 %v7253_v12  ;;  %v14687_v55 = vld [vmem:[#allocation94_spill] sm:$0xff] }
 0x5f0   : > { %v4604_v32 = vadd.f32 %v4588_v6, %v4552_v15  ;;  %v4641_v48 = vmul.f32 %v14587_v9, %v4621_v43  ;;  %v4692_v18 = vmul.f32 %v14585_v13, %v4672_v37  ;;  %v4724_v49 = vmul.f32 %v4445_v8, %v14686_v40  ;;  %6953 = vmatprep.subr.bf16.mxu1 %v7254_v59  ;;  %v14688_v6 = vld [vmem:[#allocation248_spill] sm:$0xff] }
 0x5f1   : > { %v4605_v51 = vadd.f32 %v4589_v44, %v4553_v41  ;;  %v4693_v7 = vmul.f32 %v14585_v13, %v4673_v50  ;;  %vm4797_vm13 = vcmp.gt.f32.partialorder %v4781_v62, 0.0  ;;  %vm4798_vm14 = vcmp.gt.f32.partialorder %v4782_v28, 0.0  ;;  %v14690_v44 = vld [vmem:[#allocation261_spill] sm:$0xff]  ;;  %v14694_v37 = vld [vmem:[#allocation68_spill] sm:$0xff]  ;;  %v14695_v62 = vld [vmem:[#allocation139_spill] sm:$0xff] }
 0x5f2   : > { %v4656_v0 = vadd.f32 %v4640_v29, %v4604_v32  ;;  %v4725_v38 = vmul.f32 %v4444_v4, %v14687_v55  ;;  %vm6246_vm15 = vmpackc.low %vm4798_vm14, %vm4797_vm13  ;;  %v4744_v15 = vmul.f32 %v12066_v20, %v4724_v49  ;;  %v14689_v17 = vrot.slane %v14688_v6, 1  ;;  %v14697_v49 = vld [vmem:[#allocation268_spill] sm:$0xff] }
 0x5f3   : > { %v4657_v30 = vadd.f32 %v4641_v48, %v4605_v51  ;;  %v14691_v33 = vrot.slane %v14690_v44, 1  ;;  %v14693_v12 = vrot.slane %v14666_v16, 1  ;;  %6872 = vmatmul.mubr.msk.bf16.gmra.mxu1 %vm6246_vm15, %v14618_v1  ;;  %v14696_v48 = vld [vmem:[#allocation259_spill] sm:$0xff] }
 0x5f4   : > { %v4708_v4 = vadd.f32 %v4692_v18, %v4656_v0  ;;  %v4745_v29 = vmul.f32 %v12066_v20, %v4725_v38  ;;  %v4502_v51 = vadd.f32 %v4486_v63, %v14696_v48  ;;  %6954 = vmatpush3.bf16.msra.mxu1 %v7254_v59  ;;  %v14699_v0 = vld [vmem:[#allocation117_spill] sm:$0xff]  ;;  %v14702_v63 = vld [vmem:[#allocation120_spill] sm:$0xff]  ;;  %v4590_v59 = vmul.f32 %v14576_v56, %v4570_v3 }
 0x5f5   : > { %v4442_v43 = vsel %vm2267_vm12, %v14691_v33, %v14689_v17  ;;  %v14692_v8 = vmov %v14691_v33  ;;  %v4709_v32 = vadd.f32 %v4693_v7, %v4657_v30  ;;  %v4503_v17 = vadd.f32 %v4487_v53, %v14697_v49  ;;  %v14698_v33 = vld [vmem:[#allocation115_spill] sm:$0xff]  ;;  %v14700_v38 = vld [vmem:[#allocation253_spill] sm:$0xff]  ;;  %v14701_v7 = vld [vmem:[#allocation128_spill] sm:$0xff] }
 0x5f6   : > { %v4443_v41 = vsel %vm2267_vm12, %v14693_v12, %v14692_v8  ;;  %v4469_v28 = vmul.f32 %v4442_v43, %v14695_v62  ;;  %v4518_v55 = vmul.f32 %v14683_v5, %v14698_v33  ;;  %v4760_v40 = vadd.f32 %v4744_v15, %v4708_v4  ;;  %v14703_v15 = vld [vmem:[#allocation136_spill] sm:$0xff] }
 0x5f7   : > { %v4468_v50 = vmul.f32 %v4443_v41, %v14694_v37  ;;  %v4519_v12 = vmul.f32 %v14700_v38, %v14699_v0  ;;  %v4761_v37 = vadd.f32 %v4745_v29, %v4709_v32  ;;  %v4571_v30 = vmul.f32 %v4443_v41, %v14701_v7  ;;  %v14704_v32 = vld [vmem:[#allocation137_spill] sm:$0xff] }
 0x5f8   : > { %v4489_v18 = vmul.f32 %v14566_v36, %v4469_v28  ;;  %v4538_v62 = vmul.f32 %v14571_v25, %v4518_v55  ;;  %v4572_v48 = vmul.f32 %v4442_v43, %v14702_v63  ;;  %v4783_v53 = vadd.f32 %v12119_v11, %v4760_v40  ;;  %v14705_v55 = vld [vmem:[#allocation266_spill] sm:$0xff]  ;;  %v14706_v40 = vld [vmem:[#allocation151_spill] sm:$0xff] }
 0x5f9   : > { %v4488_v8 = vmul.f32 %v14566_v36, %v4468_v50  ;;  %v4539_v5 = vmul.f32 %v14571_v25, %v4519_v12  ;;  %v4622_v4 = vmul.f32 %v14700_v38, %v14703_v15  ;;  %v4784_v50 = vadd.f32 %v12119_v11, %v4761_v37  ;;  %v14707_v38 = vld [vmem:[#allocation146_spill] sm:$0xff]  ;;  %v14718_v15 = vld [vmem:[#allocation79_spill] sm:$0xff] }
 0x5fa   : > { %v4554_v28 = vadd.f32 %v4538_v62, %v4502_v51  ;;  %v4591_v29 = vmul.f32 %v14576_v56, %v4571_v30  ;;  %v4623_v49 = vmul.f32 %v14705_v55, %v14704_v32  ;;  %vm4799_vm1 = vcmp.gt.f32.partialorder %v4783_v53, 0.0  ;;  %v14708_v30 = vld [vmem:[#allocation97_spill] sm:$0xff]  ;;  %v14709_v53 = vld [vmem:[#allocation168_spill] sm:$0xff] }
 0x5fb   : > { %v4555_v7 = vadd.f32 %v4539_v5, %v4503_v17  ;;  %v4642_v63 = vmul.f32 %v14587_v9, %v4622_v4  ;;  %v4674_v12 = vmul.f32 %v14666_v16, %v14706_v40  ;;  %vm4800_vm2 = vcmp.gt.f32.partialorder %v4784_v50, 0.0  ;;  %v14710_v4 = vld [vmem:[#allocation263_spill] sm:$0xff] }
 0x5fc   : > { %v4606_v3 = vadd.f32 %v4590_v59, %v4554_v28  ;;  %v4643_v0 = vmul.f32 %v14587_v9, %v4623_v49  ;;  %v4675_v37 = vmul.f32 %v14690_v44, %v14707_v38  ;;  %vm6248_vm3 = vmpackc.low %vm4800_vm2, %vm4799_vm1  ;;  %v4726_v32 = vmul.f32 %v4443_v41, %v14708_v30  ;;  %v14715_v49 = vld [vmem:[#allocation142_spill] sm:$0xff]  ;;  %v14717_v30 = vld [vmem:[#allocation260_spill] sm:$0xff] }
 0x5fd   : > { %v4607_v62 = vadd.f32 %v4591_v29, %v4555_v7  ;;  %v4694_v51 = vmul.f32 %v14585_v13, %v4674_v12  ;;  %v4727_v17 = vmul.f32 %v4442_v43, %v14709_v53  ;;  %6875 = vmatprep.mubr.msk.bf16.mxu1 %vm6248_vm3, %v14618_v1  ;;  %v14711_v59 = vrot.slane %v14710_v4, 1 }
 0x5fe   : > { %v4658_v5 = vadd.f32 %v4642_v63, %v4606_v3  ;;  %v4695_v16 = vmul.f32 %v14585_v13, %v4675_v37  ;;  %v14712_v50 = vrot.slane %v11624_v35, 1  ;;  %v14714_v28 = vrot.slane %v14688_v6, 1  ;;  %v14716_v37 = vld [vmem:[#allocation144_spill] sm:$0xff] }
 0x5ff   : > { %v4659_v43 = vadd.f32 %v4643_v0, %v4607_v62  ;;  %v4746_v29 = vmul.f32 %v12066_v20, %v4726_v32  ;;  %v4747_v63 = vmul.f32 %v12066_v20, %v4727_v17  ;;  %v4504_v38 = vadd.f32 %v4488_v8, %v14717_v30  ;;  %v14719_v0 = vld [vmem:[#allocation148_spill] sm:$0xff] }
 0x600   : > { %v4440_v44 = vsel %vm2267_vm12, %v14712_v50, %v14711_v59  ;;  %v14713_v7 = vmov %v14712_v50  ;;  %v4710_v3 = vadd.f32 %v4694_v51, %v4658_v5  ;;  %v4505_v59 = vadd.f32 %v4489_v18, %v11680_v22  ;;  %v14720_v62 = vld [vmem:[#allocation264_spill] sm:$0xff] }
 0x601   : > { %v4441_v41 = vsel %vm2267_vm12, %v14714_v28, %v14713_v7  ;;  %v4471_v53 = vmul.f32 %v4440_v44, %v14716_v37  ;;  %v4711_v50 = vadd.f32 %v4695_v16, %v4659_v43  ;;  %v4520_v7 = vmul.f32 %v14705_v55, %v14718_v15  ;;  %v14722_v5 = vld [vmem:[#allocation180_spill] sm:$0xff]  ;;  %v14723_v16 = vld [vmem:[#allocation186_spill] sm:$0xff] }
 0x602   : > { %v4470_v12 = vmul.f32 %v4441_v41, %v14715_v49  ;;  %v4521_v32 = vmul.f32 %v14720_v62, %v14719_v0  ;;  %v4762_v28 = vadd.f32 %v4746_v29, %v4710_v3  ;;  %v14721_v49 = vld [vmem:[#allocation174_spill] sm:$0xff]  ;;  %v4574_v37 = vmul.f32 %v4440_v44, %v14722_v5 }
 0x603   : > { %v4491_v17 = vmul.f32 %v14566_v36, %v4471_v53  ;;  %v4573_v51 = vmul.f32 %v4441_v41, %v14721_v49  ;;  %v4763_v33 = vadd.f32 %v4747_v63, %v4711_v50  ;;  %v4540_v8 = vmul.f32 %v14571_v25, %v4520_v7  ;;  %v14724_v29 = vld [vmem:[#allocation138_spill] sm:$0xff]  ;;  %v14726_v50 = vld [vmem:[#allocation161_spill] sm:$0xff] }
 0x604   : > { %v4490_v40 = vmul.f32 %v14566_v36, %v4470_v12  ;;  %v4541_v22 = vmul.f32 %v14571_v25, %v4521_v32  ;;  %v4592_v18 = vmul.f32 %v14576_v56, %v4572_v48  ;;  %v4785_v30 = vadd.f32 %v12119_v11, %v4762_v28  ;;  %v14725_v36 = vld [vmem:[#allocation265_spill] sm:$0xff]  ;;  %v14727_v28 = vld [vmem:[#allocation191_spill] sm:$0xff] }
 0x605   : > { %v4593_v55 = vmul.f32 %v14576_v56, %v4573_v51  ;;  %v4624_v43 = vmul.f32 %v14720_v62, %v14723_v16  ;;  %v4625_v53 = vmul.f32 %v14725_v36, %v14724_v29  ;;  %v4786_v12 = vadd.f32 %v12119_v11, %v4763_v33 }
 0x606   : > { %v4556_v3 = vadd.f32 %v4540_v8, %v4504_v38  ;;  %v4557_v63 = vadd.f32 %v4541_v22, %v4505_v59  ;;  %v4676_v7 = vmul.f32 %v14688_v6, %v14726_v50  ;;  %vm4801_vm4 = vcmp.gt.f32.partialorder %v4785_v30, 0.0  ;;  %v14728_v38 = vld [vmem:[#allocation176_spill] sm:$0xff] }
 0x607   : > { %v4644_v48 = vmul.f32 %v14587_v9, %v4624_v43  ;;  %v4645_v32 = vmul.f32 %v14587_v9, %v4625_v53  ;;  %v4677_v51 = vmul.f32 %v11624_v35, %v14727_v28  ;;  %vm4802_vm5 = vcmp.gt.f32.partialorder %v4786_v12, 0.0  ;;  %v14729_v8 = vld [vmem:[#allocation288_spill] sm:$0xff] }
 0x608   : > { %v4608_v62 = vadd.f32 %v4592_v18, %v4556_v3  ;;  %v4609_v16 = vadd.f32 %v4593_v55, %v4557_v63  ;;  %v4696_v29 = vmul.f32 %v14585_v13, %v4676_v7  ;;  %vm6250_vm6 = vmpackc.low %vm4802_vm5, %vm4801_vm4  ;;  %v4728_v59 = vmul.f32 %v4441_v41, %v14728_v38  ;;  %v14730_v53 = vld [vmem:[#allocation152_spill] sm:$0xff]  ;;  %v14733_v7 = vld [vmem:[#allocation122_spill] sm:$0xff] }
 0x609   : > { %v4697_v33 = vmul.f32 %v14585_v13, %v4677_v51  ;;  %v4729_v6 = vmul.f32 %v4440_v44, %v14729_v8  ;;  %v4506_v22 = vadd.f32 %v4490_v40, %v11720_v47  ;;  %6876 = vmatmul.mubr.msk.bf16.gmra.mxu1 %vm6250_vm6, %v14618_v1  ;;  %v4507_v35 = vadd.f32 %v4491_v17, %v11726_v57  ;;  %v14731_v3 = vld [vmem:[#allocation156_spill] sm:$0xff] }
 0x60a   : > { %v4660_v30 = vadd.f32 %v4644_v48, %v4608_v62  ;;  %v4661_v43 = vadd.f32 %v4645_v32, %v4609_v16  ;;  %v4522_v18 = vmul.f32 %v14725_v36, %v14730_v53  ;;  %v4748_v55 = vmul.f32 %v12066_v20, %v4728_v59  ;;  %v14732_v63 = vld [vmem:[#allocation256_spill] sm:$0xff]  ;;  %v14735_v36 = vld [vmem:[#allocation189_spill] sm:$0xff]  ;;  %v14736_v62 = vld [vmem:[#allocation190_spill] sm:$0xff] }
 0x60b   : > { %v4749_v12 = vmul.f32 %v12066_v20, %v4729_v6  ;;  %v4523_v41 = vmul.f32 %v14732_v63, %v14731_v3  ;;  %v14734_v44 = vld [vmem:[#allocation272_spill] sm:$0xff]  ;;  %v4594_v16 = vmul.f32 %v14576_v56, %v4574_v37  ;;  %v4626_v32 = vmul.f32 %v14732_v63, %v14735_v36 }
 0x60c   : > { %v4575_v51 = vmul.f32 %v14734_v44, %v14733_v7  ;;  %v4712_v47 = vadd.f32 %v4696_v29, %v4660_v30  ;;  %v4713_v40 = vadd.f32 %v4697_v33, %v4661_v43  ;;  %v4542_v48 = vmul.f32 %v14571_v25, %v4522_v18  ;;  %v14737_v7 = vld [vmem:[#allocation198_spill] sm:$0xff]  ;;  %v14739_v43 = vld [vmem:[#allocation209_spill] sm:$0xff] }
 0x60d   : > { %v4543_v57 = vmul.f32 %v14571_v25, %v4523_v41  ;;  %v4627_v59 = vmul.f32 %v11643_v2, %v14736_v62  ;;  %v4678_v29 = vmul.f32 %v14710_v4, %v14737_v7  ;;  %v4646_v30 = vmul.f32 %v14587_v9, %v4626_v32  ;;  %v14738_v25 = vld [vmem:[#allocation172_spill] sm:$0xff] }
 0x60e   : > { %v4595_v17 = vmul.f32 %v14576_v56, %v4575_v51  ;;  %v4764_v6 = vadd.f32 %v4748_v55, %v4712_v47  ;;  %v4765_v3 = vadd.f32 %v4749_v12, %v4713_v40  ;;  %v4558_v53 = vadd.f32 %v4542_v48, %v4506_v22  ;;  %v14740_v12 = vld [vmem:[#allocation206_spill] sm:$0xff]  ;;  %v14742_v51 = vld [vmem:[#allocation228_spill] sm:$0xff] }
 0x60f   : > { %v4559_v33 = vadd.f32 %v4543_v57, %v4507_v35  ;;  %v4647_v37 = vmul.f32 %v14587_v9, %v4627_v59  ;;  %v4679_v56 = vmul.f32 %v14739_v43, %v14738_v25  ;;  %v4698_v2 = vmul.f32 %v14585_v13, %v4678_v29  ;;  %v14741_v35 = vld [vmem:[#allocation162_spill] sm:$0xff] }
 0x610   : > { %v4787_v18 = vadd.f32 %v12119_v11, %v4764_v6  ;;  %v4788_v63 = vadd.f32 %v12119_v11, %v4765_v3  ;;  %v4610_v41 = vadd.f32 %v4594_v16, %v4558_v53  ;;  %v4730_v4 = vmul.f32 %v14734_v44, %v14740_v12  ;;  %v14743_v40 = vld [vmem:[#allocation270_spill] sm:$0xff] }
 0x611   : > { %v4611_v55 = vadd.f32 %v4595_v17, %v4559_v33  ;;  %v4699_v22 = vmul.f32 %v14585_v13, %v4679_v56  ;;  %v4731_v47 = vmul.f32 %v14742_v51, %v14741_v35  ;;  %v5266_v48 = vadd.f32 %v12244_v61, %v14743_v40  ;;  %v14744_v57 = vld [vmem:[#allocation258_spill] sm:$0xff] }
 0x612   : > { %vm4803_vm7 = vcmp.gt.f32.partialorder %v4787_v18, 0.0  ;;  %vm4804_vm8 = vcmp.gt.f32.partialorder %v4788_v63, 0.0  ;;  %v4662_v9 = vadd.f32 %v4646_v30, %v4610_v41  ;;  %v4750_v53 = vmul.f32 %v12066_v20, %v4730_v4  ;;  %v14746_v59 = vld [vmem:[#allocation286_spill] sm:$0xff]  ;;  %v14752_v63 = vld [vmem:[#allocation160_spill] sm:$0xff] }
 0x613   : > { %vm6252_vm9 = vmpackc.low %vm4804_vm8, %vm4803_vm7  ;;  %v4663_v3 = vadd.f32 %v4647_v37, %v4611_v55  ;;  %v4751_v16 = vmul.f32 %v12066_v20, %v4731_v47  ;;  %v5267_v13 = vadd.f32 %v12130_v19, %v14744_v57  ;;  %v5318_v17 = vadd.f32 %v12098_v24, %v5266_v48  ;;  %v14749_v33 = vld [vmem:[#allocation262_spill] sm:$0xff]  ;;  %v14751_v37 = vld [vmem:[#allocation280_spill] sm:$0xff] }
 0x614   : > { %6879 = vmatprep.mubr.msk.bf16.mxu1 %vm6252_vm9, %v14618_v1  ;;  %v4714_v44 = vadd.f32 %v4698_v2, %v4662_v9  ;;  %v14745_v32 = vrot.slane %v11705_v21, 1  ;;  %v14747_v6 = vrot.slane %v14746_v59, 1  ;;  %v14750_v30 = vrot.slane %v14749_v33, 1  ;;  %v7296_v18 = vld [vmem:[#allocation13 + $0x18] sm:$0xff]  ;;  %v14753_v55 = vld [vmem:[#allocation72_spill] sm:$0xff]  ;;  %v14755_v9 = vld [vmem:[#allocation27_spill] sm:$0xff] }
 0x615   : > { %v4715_v19 = vadd.f32 %v4699_v22, %v4663_v3  ;;  %v5319_v43 = vadd.f32 %v14751_v37, %v5267_v13  ;;  %v12480_v41 = vrot.slane %v7296_v18, %v14752_v63  ;;  %v5418_v2 = vmul.f32 %v12095_v23, %v14569_v31  ;;  %v14754_v4 = vld [vmem:[#allocation278_spill] sm:$0xff]  ;;  %v14756_v22 = vld [vmem:[#allocation271_spill] sm:$0xff]  ;;  %v14762_v63 = vld [vmem:[#allocation281_spill] sm:$0xff] }
 0x616   : > { %v5362_v61 = vsel %vm2267_vm12, %v14747_v6, %v14745_v32  ;;  %v14748_v29 = vmov %v14747_v6  ;;  %v4766_v21 = vadd.f32 %v4750_v53, %v4714_v44  ;;  %v5419_v51 = vmul.f32 %v14754_v4, %v14753_v55  ;;  %v14758_v53 = vld [vmem:[#allocation47_spill] sm:$0xff] }
 0x617   : > { %v5363_v20 = vsel %vm2267_vm12, %v14750_v30, %v14748_v29  ;;  %v5369_v24 = vmul.f32 %v5362_v61, %v14565_v26  ;;  %v4767_v47 = vadd.f32 %v4751_v16, %v4715_v19  ;;  %v5470_v40 = vmul.f32 %v14756_v22, %v14755_v9  ;;  %v14759_v13 = vld [vmem:[#allocation291_spill] sm:$0xff] }
 0x618   : > { %v5368_v56 = vmul.f32 %v5363_v20, %v14567_v60  ;;  %v5471_v48 = vmul.f32 %v5363_v20, %v14572_v54  ;;  %v14757_v60 = vld [vmem:[#allocation108_spill] sm:$0xff]  ;;  %v4789_v26 = vadd.f32 %v12119_v11, %v4766_v21  ;;  %v5386_v57 = vmul.f32 %v12480_v41, %v14758_v53  ;;  %v14760_v6 = vld [vmem:[#allocation207_spill] sm:$0xff]  ;;  %v14766_v53 = vld [vmem:[#allocation269_spill] sm:$0xff] }
 0x619   : > { %v5472_v3 = vmul.f32 %v5362_v61, %v14757_v60  ;;  %v5387_v44 = vmul.f32 %v12480_v41, %v14759_v13  ;;  %v4790_v32 = vadd.f32 %v12119_v11, %v4767_v47  ;;  %v5389_v16 = vmul.f32 %v12480_v41, %v5369_v24  ;;  %v14761_v37 = vld [vmem:[#allocation287_spill] sm:$0xff] }
 0x61a   : > { %v5388_v31 = vmul.f32 %v12480_v41, %v5368_v56  ;;  %v5438_v29 = vmul.f32 %v14760_v6, %v5418_v2  ;;  %v5439_v54 = vmul.f32 %v14760_v6, %v5419_v51  ;;  %vm4805_vm0 = vcmp.gt.f32.partialorder %v4789_v26, 0.0  ;;  %v14763_v9 = vld [vmem:[#allocation163_spill] sm:$0xff]  ;;  %v14764_v56 = vld [vmem:[#allocation46_spill] sm:$0xff]  ;;  %v14765_v2 = vld [vmem:[#allocation125_spill] sm:$0xff] }
 0x61b   : > { %v5402_v30 = vadd.f32 %v5386_v57, %v5318_v17  ;;  %v5403_v19 = vadd.f32 %v5387_v44, %v5319_v43  ;;  %vm4806_vm10 = vcmp.gt.f32.partialorder %v4790_v32, 0.0  ;;  %v5405_v55 = vadd.f32 %v5389_v16, %v14762_v63  ;;  %v14767_v26 = vld [vmem:[#allocation167_spill] sm:$0xff]  ;;  %v14768_v44 = vld [vmem:[#allocation53_spill] sm:$0xff]  ;;  %v14769_v16 = vld [vmem:[#allocation140_spill] sm:$0xff] }
 0x61c   : > { %v5404_v21 = vadd.f32 %v5388_v31, %v14761_v37  ;;  %v12503_v60 = vrot.slane %v7296_v18, %v14763_v9  ;;  %v5522_v11 = vmul.f32 %v14754_v4, %v14764_v56  ;;  %vm6254_vm11 = vmpackc.low %vm4806_vm10, %vm4805_vm0  ;;  %v5523_v51 = vmul.f32 %v14766_v53, %v14765_v2  ;;  %v14771_v37 = vld [vmem:[#allocation184_spill] sm:$0xff]  ;;  %v14772_v63 = vld [vmem:[#allocation81_spill] sm:$0xff] }
 0x61d   : > { %v5454_v24 = vadd.f32 %v5438_v29, %v5402_v30  ;;  %v5455_v47 = vadd.f32 %v5439_v54, %v5403_v19  ;;  %v12510_v17 = vrot.slane %v7296_v18, %v14767_v26  ;;  %6880 = vmatmul.mubr.msk.bf16.gmra.mxu1 %vm6254_vm11, %v14618_v1  ;;  %v5574_v4 = vmul.f32 %v14749_v33, %v14768_v44  ;;  %v14770_v18 = vld [vmem:[#allocation62_spill] sm:$0xff]  ;;  %v14773_v56 = vld [vmem:[#allocation177_spill] sm:$0xff]  ;;  %v14774_v2 = vld [vmem:[#allocation276_spill] sm:$0xff] }
 0x61e   : > { %v5490_v43 = vmul.f32 %v12503_v60, %v5470_v40  ;;  %v5491_v57 = vmul.f32 %v12503_v60, %v5471_v48  ;;  %v5492_v13 = vmul.f32 %v12503_v60, %v5472_v3  ;;  %v5575_v29 = vmul.f32 %v14746_v59, %v14769_v16  ;;  %v12523_v30 = vld [vmem:[#allocation13 + $0x38] ss:$0 sm:$0xff]  ;;  %v14779_v16 = vld [vmem:[#allocation173_spill] sm:$0xff] }
 0x61f   : > { %v5542_v31 = vmul.f32 %v12510_v17, %v5522_v11  ;;  %v5543_v32 = vmul.f32 %v12510_v17, %v5523_v51  ;;  %v5626_v54 = vmul.f32 %v5363_v20, %v14770_v18  ;;  %v5594_v48 = vmul.f32 %v14771_v37, %v5574_v4  ;;  %v14775_v26 = vld [vmem:[#allocation290_spill] sm:$0xff]  ;;  %v14778_v4 = vld [vmem:[#allocation83_spill] sm:$0xff] }
 0x620   : > { %v5506_v19 = vadd.f32 %v5490_v43, %v5454_v24  ;;  %v5507_v40 = vadd.f32 %v5491_v57, %v5455_v47  ;;  %v5627_v3 = vmul.f32 %v5362_v61, %v14772_v63  ;;  %v5595_v9 = vmul.f32 %v14771_v37, %v5575_v29  ;;  %v14776_v43 = vld [vmem:[#allocation283_spill] sm:$0xff]  ;;  %v14777_v61 = vld [vmem:[#allocation282_spill] sm:$0xff]  ;;  %v14782_v63 = vld [vmem:[#allocation273_spill] sm:$0xff] }
 0x621   : > { %v5646_v33 = vmul.f32 %v12523_v30, %v5626_v54  ;;  %v5456_v11 = vadd.f32 %v14773_v56, %v5404_v21  ;;  %v5457_v53 = vadd.f32 %v14774_v2, %v5405_v55  ;;  %v5493_v24 = vmul.f32 %v12503_v60, %v14775_v26  ;;  %v14787_v26 = vld [vmem:[#allocation284_spill] sm:$0xff] }
 0x622   : > { %v5558_v51 = vadd.f32 %v5542_v31, %v5506_v19  ;;  %v5559_v59 = vadd.f32 %v5543_v32, %v5507_v40  ;;  %v5647_v20 = vmul.f32 %v12523_v30, %v5627_v3  ;;  %v5544_v57 = vmul.f32 %v12510_v17, %v14776_v43  ;;  %v14780_v31 = vld [vmem:[#allocation71_spill] sm:$0xff]  ;;  %v14784_v3 = vld [vmem:[#allocation293_spill] sm:$0xff] }
 0x623   : > { %v5508_v47 = vadd.f32 %v5492_v13, %v5456_v11  ;;  %v5545_v44 = vmul.f32 %v12510_v17, %v14777_v61  ;;  %v5628_v29 = vmul.f32 %v14779_v16, %v14778_v4  ;;  %v5509_v55 = vadd.f32 %v5493_v24, %v5457_v53  ;;  %v14781_v32 = vld [vmem:[#allocation275_spill] sm:$0xff]  ;;  %v14791_v16 = vld [vmem:[#allocation56_spill] sm:$0xff] }
 0x624   : > { %v5610_v21 = vadd.f32 %v5594_v48, %v5558_v51  ;;  %v5611_v18 = vadd.f32 %v5595_v9, %v5559_v59  ;;  %v5629_v54 = vmul.f32 %v14781_v32, %v14780_v31  ;;  %v14783_v13 = vrot.slane %v14782_v63, 1  ;;  %v12559_v24 = vld [vmem:[%s12991_s9 + $0x3] ss:$0 sm:$0xff]  ;;  %v14792_v31 = vld [vmem:[#allocation289_spill] sm:$0xff] }
 0x625   : > { %v5560_v19 = vadd.f32 %v5544_v57, %v5508_v47  ;;  %v5648_v40 = vmul.f32 %v12523_v30, %v5628_v29  ;;  %v14785_v56 = vrot.slane %v14784_v3, 1  ;;  %v14788_v43 = vrot.slane %v14787_v26, 1  ;;  %v14789_v47 = vld [vmem:[#allocation277_spill] sm:$0xff]  ;;  %v14790_v61 = vld [vmem:[#allocation55_spill] sm:$0xff] }
 0x626   : > { %v5662_v9 = vadd.f32 %v5646_v33, %v5610_v21  ;;  %v5663_v53 = vadd.f32 %v5647_v20, %v5611_v18  ;;  %v5561_v51 = vadd.f32 %v5545_v44, %v5509_v55  ;;  %v5649_v59 = vmul.f32 %v12523_v30, %v5629_v54  ;;  %v14793_v44 = vld [vmem:[#allocation279_spill] sm:$0xff]  ;;  %v14794_v18 = vld [vmem:[#allocation181_spill] sm:$0xff] }
 0x627   : > { %v5358_v11 = vsel %vm2267_vm12, %v14785_v56, %v14783_v13  ;;  %v14786_v2 = vmov %v14785_v56  ;;  %v5612_v57 = vadd.f32 %v14789_v47, %v5560_v19  ;;  %v5390_v13 = vmul.f32 %v12480_v41, %v14792_v31 }
 0x628   : > { %v5359_v48 = vsel %vm2267_vm12, %v14788_v43, %v14786_v2  ;;  %v5373_v29 = vmul.f32 %v5358_v11, %v14791_v16  ;;  %v5685_v33 = vadd.f32 %v12559_v24, %v5662_v9  ;;  %v5686_v20 = vadd.f32 %v12559_v24, %v5663_v53  ;;  %v14795_v2 = vld [vmem:[#allocation274_spill] sm:$0xff] }
 0x629   : > { %v5372_v4 = vmul.f32 %v5359_v48, %v14790_v61  ;;  %v5613_v21 = vadd.f32 %v14793_v44, %v5561_v51  ;;  %v5391_v55 = vmul.f32 %v12480_v41, %v14794_v18  ;;  %v5664_v54 = vadd.f32 %v5648_v40, %v5612_v57  ;;  %v14796_v61 = vld [vmem:[#allocation178_spill] sm:$0xff]  ;;  %v14798_v51 = vld [vmem:[#allocation285_spill] sm:$0xff]  ;;  %v14799_v44 = vld [vmem:[#allocation60_spill] sm:$0xff] }
 0x62a   : > { %v5393_v19 = vmul.f32 %v12480_v41, %v5373_v29  ;;  %v5406_v43 = vadd.f32 %v5390_v13, %v14795_v2  ;;  %vm5701_vm13 = vcmp.gt.f32.partialorder %v5685_v33, 0.0  ;;  %vm5702_vm14 = vcmp.gt.f32.partialorder %v5686_v20, 0.0  ;;  %v14797_v53 = vld [vmem:[#allocation74_spill] sm:$0xff]  ;;  %v14800_v18 = vld [vmem:[#allocation292_spill] sm:$0xff]  ;;  %v14801_v57 = vld [vmem:[#allocation75_spill] sm:$0xff] }
 0x62b   : > { %v5392_v56 = vmul.f32 %v12480_v41, %v5372_v4  ;;  %v5665_v47 = vadd.f32 %v5649_v59, %v5613_v21  ;;  %v5407_v16 = vadd.f32 %v5391_v55, %v14796_v61  ;;  %vm6267_vm15 = vmpackc.low %vm5702_vm14, %vm5701_vm13  ;;  %v5687_v9 = vadd.f32 %v12559_v24, %v5664_v54  ;;  %v14802_v13 = vld [vmem:[#allocation111_spill] sm:$0xff]  ;;  %v14803_v33 = vld [vmem:[#allocation113_spill] sm:$0xff] }
 0x62c   : > { %v5422_v31 = vmul.f32 %v14798_v51, %v14797_v53  ;;  %v5423_v40 = vmul.f32 %v14800_v18, %v14799_v44  ;;  %v5474_v4 = vmul.f32 %v14781_v32, %v14801_v57  ;;  %6955 = vmatprep.mubr.msk.bf16.mxu1 %vm6267_vm15, %v14618_v1  ;;  %v5475_v59 = vmul.f32 %v5359_v48, %v14802_v13  ;;  %v14804_v21 = vld [vmem:[#allocation85_spill] sm:$0xff]  ;;  %v14806_v51 = vld [vmem:[#allocation164_spill] sm:$0xff] }
 0x62d   : > { %v5688_v29 = vadd.f32 %v12559_v24, %v5665_v47  ;;  %v5476_v20 = vmul.f32 %v5358_v11, %v14803_v33  ;;  %v5526_v55 = vmul.f32 %v14800_v18, %v14804_v21  ;;  %vm5703_vm1 = vcmp.gt.f32.partialorder %v5687_v9, 0.0  ;;  %v14805_v53 = vld [vmem:[#allocation129_spill] sm:$0xff]  ;;  %v14807_v33 = vld [vmem:[#allocation98_spill] sm:$0xff] }
 0x62e   : > { %v5442_v54 = vmul.f32 %v14760_v6, %v5422_v31  ;;  %v5443_v2 = vmul.f32 %v14760_v6, %v5423_v40  ;;  %v5494_v61 = vmul.f32 %v12503_v60, %v5474_v4  ;;  %v5495_v32 = vmul.f32 %v12503_v60, %v5475_v59  ;;  %v14808_v4 = vld [vmem:[#allocation87_spill] sm:$0xff]  ;;  %v14809_v59 = vld [vmem:[#allocation182_spill] sm:$0xff] }
 0x62f   : > { %vm5704_vm2 = vcmp.gt.f32.partialorder %v5688_v29, 0.0  ;;  %v5527_v47 = vmul.f32 %v14806_v51, %v14805_v53  ;;  %v5546_v44 = vmul.f32 %v12510_v17, %v5526_v55  ;;  %v5578_v9 = vmul.f32 %v14787_v26, %v14807_v33  ;;  %v14811_v55 = vld [vmem:[#allocation294_spill] sm:$0xff] }
 0x630   : > { %vm6269_vm3 = vmpackc.low %vm5704_vm2, %vm5703_vm1  ;;  %v5458_v57 = vadd.f32 %v5442_v54, %v5406_v43  ;;  %v5459_v13 = vadd.f32 %v5443_v2, %v5407_v16  ;;  %v5579_v31 = vmul.f32 %v14784_v3, %v14633_v52  ;;  %v5630_v40 = vmul.f32 %v5359_v48, %v14634_v45 }
 0x631   : > { %6956 = vmatmul.mubr.msk.bf16.vlgmr.msra.gmra.mxu1 %vm6269_vm3, %v14618_v1  ;;  %v5547_v18 = vmul.f32 %v12510_v17, %v5527_v47  ;;  %v5631_v29 = vmul.f32 %v5358_v11, %v14808_v4  ;;  %v14810_v21 = vrot.slane %v14809_v59, 1  ;;  %v14812_v53 = vrot.slane %v14811_v55, 1  ;;  %v14817_v4 = vld [vmem:[#allocation64_spill] sm:$0xff] }
 0x632   : > { %v5510_v16 = vadd.f32 %v5494_v61, %v5458_v57  ;;  %v5511_v26 = vadd.f32 %v5495_v32, %v5459_v13  ;;  %v5598_v54 = vmul.f32 %v14771_v37, %v5578_v9  ;;  %v5599_v52 = vmul.f32 %v14771_v37, %v5579_v31  ;;  %v14815_v57 = vld [vmem:[#allocation153_spill] sm:$0xff]  ;;  %v14816_v31 = vld [vmem:[#allocation24_spill] sm:$0xff] }
 0x633   : > { %v5356_v43 = vsel %vm2267_vm12, %v14812_v53, %v14810_v21  ;;  %v5650_v3 = vmul.f32 %v12523_v30, %v5630_v40  ;;  %v5651_v2 = vmul.f32 %v12523_v30, %v5631_v29  ;;  %v14813_v45 = vmov %v14812_v53  ;;  %v14818_v21 = vld [vmem:[#allocation66_spill] sm:$0xff]  ;;  %v14819_v53 = vld [vmem:[#allocation229_spill] sm:$0xff] }
 0x634   : > { %v14814_v11 = vrot.slane %v14782_v63, 1  ;;  %v5375_v47 = vmul.f32 %v5356_v43, %v14649_v14  ;;  %v5562_v33 = vadd.f32 %v5546_v44, %v5510_v16  ;;  %v5563_v61 = vadd.f32 %v5547_v18, %v5511_v26  ;;  %v14820_v44 = vld [vmem:[#allocation80_spill] sm:$0xff]  ;;  %v14821_v16 = vld [vmem:[#allocation123_spill] sm:$0xff] }
 0x635   : > { %v5408_v13 = vadd.f32 %v5392_v56, %v14815_v57  ;;  %v5409_v40 = vadd.f32 %v5393_v19, %v14816_v31  ;;  %v5424_v29 = vmul.f32 %v14806_v51, %v14817_v4  ;;  %v5425_v22 = vmul.f32 %v14819_v53, %v14818_v21  ;;  %v14822_v57 = vld [vmem:[#allocation131_spill] sm:$0xff] }
 0x636   : > { %v5357_v48 = vsel %vm2267_vm12, %v14814_v11, %v14813_v45  ;;  %v5395_v9 = vmul.f32 %v12480_v41, %v5375_v47  ;;  %v5614_v35 = vadd.f32 %v5598_v54, %v5562_v33  ;;  %v5615_v45 = vadd.f32 %v5599_v52, %v5563_v61  ;;  %v14823_v61 = vld [vmem:[#allocation93_spill] sm:$0xff]  ;;  %v14825_v4 = vld [vmem:[#allocation147_spill] sm:$0xff] }
 0x637   : > { %v5374_v32 = vmul.f32 %v5357_v48, %v14648_v58  ;;  %v5477_v18 = vmul.f32 %v5357_v48, %v14820_v44  ;;  %v5444_v58 = vmul.f32 %v14760_v6, %v5424_v29  ;;  %v5445_v56 = vmul.f32 %v14760_v6, %v5425_v22 }
 0x638   : > { %v5478_v26 = vmul.f32 %v5356_v43, %v14821_v16  ;;  %v5496_v19 = vmul.f32 %v12503_v60, %v5476_v20  ;;  %v5666_v11 = vadd.f32 %v5650_v3, %v5614_v35  ;;  %v5667_v47 = vadd.f32 %v5651_v2, %v5615_v45  ;;  %v14826_v20 = vld [vmem:[#allocation110_spill] sm:$0xff] }
 0x639   : > { %v5394_v14 = vmul.f32 %v12480_v41, %v5374_v32  ;;  %v5497_v51 = vmul.f32 %v12503_v60, %v5477_v18  ;;  %v5528_v54 = vmul.f32 %v14819_v53, %v14822_v57  ;;  %v5460_v52 = vadd.f32 %v5444_v58, %v5408_v13  ;;  %v14824_v32 = vld [vmem:[#allocation38_spill] sm:$0xff] }
 0x63a   : > { %v5461_v33 = vadd.f32 %v5445_v56, %v5409_v40  ;;  %v5529_v31 = vmul.f32 %v14824_v32, %v14823_v61  ;;  %v5580_v29 = vmul.f32 %v14782_v63, %v14825_v4  ;;  %v5689_v22 = vadd.f32 %v12559_v24, %v5666_v11  ;;  %v14827_v63 = vld [vmem:[#allocation92_spill] sm:$0xff]  ;;  %v14828_v56 = vld [vmem:[#allocation119_spill] sm:$0xff]  ;;  %v14829_v11 = vld [vmem:[#allocation154_spill] sm:$0xff] }
 0x63b   : > { %v5690_v21 = vadd.f32 %v12559_v24, %v5667_v47  ;;  %v5548_v35 = vmul.f32 %v12510_v17, %v5528_v54  ;;  %v5581_v3 = vmul.f32 %v14811_v55, %v14826_v20  ;;  %v5512_v2 = vadd.f32 %v5496_v19, %v5460_v52  ;;  %v14831_v55 = vld [vmem:[#allocation159_spill] sm:$0xff]  ;;  %v14836_v61 = vld [vmem:[#allocation37_spill] sm:$0xff] }
 0x63c   : > { %v5513_v45 = vadd.f32 %v5497_v51, %v5461_v33  ;;  %v5549_v13 = vmul.f32 %v12510_v17, %v5529_v31  ;;  %v5600_v40 = vmul.f32 %v14771_v37, %v5580_v29  ;;  %vm5705_vm4 = vcmp.gt.f32.partialorder %v5689_v22, 0.0  ;;  %v14835_v33 = vld [vmem:[#allocation105_spill] sm:$0xff] }
 0x63d   : > { %vm5706_vm5 = vcmp.gt.f32.partialorder %v5690_v21, 0.0  ;;  %v5601_v53 = vmul.f32 %v14771_v37, %v5581_v3  ;;  %v5632_v44 = vmul.f32 %v5357_v48, %v14827_v63  ;;  %v5564_v18 = vadd.f32 %v5548_v35, %v5512_v2  ;;  %v14837_v21 = vld [vmem:[#allocation102_spill] sm:$0xff]  ;;  %v14840_v63 = vld [vmem:[#allocation155_spill] sm:$0xff] }
 0x63e   : > { %vm6271_vm6 = vmpackc.low %vm5706_vm5, %vm5705_vm4  ;;  %v5565_v58 = vadd.f32 %v5549_v13, %v5513_v45  ;;  %v5633_v16 = vmul.f32 %v5356_v43, %v14828_v56  ;;  %v14830_v47 = vrot.slane %v14829_v11, 1  ;;  %v14832_v19 = vrot.slane %v14831_v55, 1  ;;  %v14838_v3 = vld [vmem:[#allocation26_spill] sm:$0xff]  ;;  %v14839_v13 = vld [vmem:[#allocation112_spill] sm:$0xff] }
 0x63f   : > { %6959 = vmatprep.mubr.msk.bf16.mxu1 %vm6271_vm6, %v14618_v1  ;;  %v5652_v57 = vmul.f32 %v12523_v30, %v5632_v44  ;;  %v14834_v48 = vrot.slane %v14809_v59, 1  ;;  %v5410_v31 = vadd.f32 %v5394_v14, %v14836_v61  ;;  %v5616_v4 = vadd.f32 %v5600_v40, %v5564_v18  ;;  %v14841_v40 = vld [vmem:[#allocation116_spill] sm:$0xff] }
 0x640   : > { %v5354_v51 = vsel %vm2267_vm12, %v14832_v19, %v14830_v47  ;;  %v14833_v54 = vmov %v14832_v19  ;;  %v5617_v29 = vadd.f32 %v5601_v53, %v5565_v58  ;;  %v5653_v22 = vmul.f32 %v12523_v30, %v5633_v16  ;;  %v14842_v16 = vld [vmem:[#allocation118_spill] sm:$0xff] }
 0x641   : > { %v5355_v52 = vsel %vm2267_vm12, %v14834_v48, %v14833_v54  ;;  %v5377_v43 = vmul.f32 %v5354_v51, %v14835_v33  ;;  %v5411_v2 = vadd.f32 %v5395_v9, %v14838_v3  ;;  %v5426_v45 = vmul.f32 %v14824_v32, %v14676_v42 }
 0x642   : > { %v5376_v35 = vmul.f32 %v5355_v52, %v14837_v21  ;;  %v5427_v44 = vmul.f32 %v14840_v63, %v14839_v13  ;;  %v5668_v56 = vadd.f32 %v5652_v57, %v5616_v4  ;;  %v5669_v47 = vadd.f32 %v5653_v22, %v5617_v29  ;;  %v14848_v13 = vld [vmem:[#allocation42_spill] sm:$0xff] }
 0x643   : > { %v5397_v20 = vmul.f32 %v12480_v41, %v5377_v43  ;;  %v5479_v53 = vmul.f32 %v5355_v52, %v14841_v40  ;;  %v5446_v18 = vmul.f32 %v14760_v6, %v5426_v45  ;;  %v5480_v19 = vmul.f32 %v5354_v51, %v14842_v16  ;;  %v14843_v43 = vld [vmem:[#allocation41_spill] sm:$0xff] }
 0x644   : > { %v5396_v14 = vmul.f32 %v12480_v41, %v5376_v35  ;;  %v5447_v58 = vmul.f32 %v14760_v6, %v5427_v44  ;;  %v5498_v9 = vmul.f32 %v12503_v60, %v5478_v26  ;;  %v5691_v54 = vadd.f32 %v12559_v24, %v5668_v56  ;;  %v14844_v35 = vld [vmem:[#allocation150_spill] sm:$0xff] }
 0x645   : > { %v5692_v42 = vadd.f32 %v12559_v24, %v5669_v47  ;;  %v5499_v32 = vmul.f32 %v12503_v60, %v5479_v53  ;;  %v5530_v57 = vmul.f32 %v14840_v63, %v14681_v34  ;;  %v5462_v48 = vadd.f32 %v5446_v18, %v5410_v31  ;;  %v14852_v53 = vld [vmem:[#allocation139_spill] sm:$0xff] }
 0x646   : > { %v5463_v33 = vadd.f32 %v5447_v58, %v5411_v2  ;;  %v5531_v61 = vmul.f32 %v14843_v43, %v14682_v46  ;;  %v5582_v4 = vmul.f32 %v14809_v59, %v14684_v10  ;;  %vm5707_vm7 = vcmp.gt.f32.partialorder %v5691_v54, 0.0  ;;  %v14845_v59 = vld [vmem:[#allocation94_spill] sm:$0xff]  ;;  %v14853_v58 = vld [vmem:[#allocation68_spill] sm:$0xff] }
 0x647   : > { %vm5708_vm8 = vcmp.gt.f32.partialorder %v5692_v42, 0.0  ;;  %v5550_v26 = vmul.f32 %v12510_v17, %v5530_v57  ;;  %v5583_v29 = vmul.f32 %v14831_v55, %v14685_v27  ;;  %v5514_v22 = vadd.f32 %v5498_v9, %v5462_v48  ;;  %v14846_v2 = vld [vmem:[#allocation50_spill] sm:$0xff]  ;;  %v14854_v9 = vld [vmem:[#allocation49_spill] sm:$0xff] }
 0x648   : > { %vm6273_vm9 = vmpackc.low %vm5708_vm8, %vm5707_vm7  ;;  %v5515_v21 = vadd.f32 %v5499_v32, %v5463_v33  ;;  %v5551_v34 = vmul.f32 %v12510_v17, %v5531_v61  ;;  %v5602_v31 = vmul.f32 %v14771_v37, %v5582_v4  ;;  %v5634_v10 = vmul.f32 %v5355_v52, %v14844_v35  ;;  %v14855_v48 = vld [vmem:[#allocation29_spill] sm:$0xff]  ;;  %v14856_v4 = vld [vmem:[#allocation115_spill] sm:$0xff] }
 0x649   : > { %6960 = vmatmul.mubr.msk.bf16.gmra.mxu1 %vm6273_vm9, %v14618_v1  ;;  %v5603_v46 = vmul.f32 %v14771_v37, %v5583_v29  ;;  %v5635_v3 = vmul.f32 %v5354_v51, %v14845_v59  ;;  %v14847_v45 = vrot.slane %v14846_v2, 1  ;;  %v14849_v63 = vrot.slane %v14848_v13, 1  ;;  %v14857_v29 = vld [vmem:[#allocation117_spill] sm:$0xff] }
 0x64a   : > { %v5566_v55 = vadd.f32 %v5550_v26, %v5514_v22  ;;  %v5567_v44 = vadd.f32 %v5551_v34, %v5515_v21  ;;  %v14851_v47 = vrot.slane %v14829_v11, 1  ;;  %v5654_v51 = vmul.f32 %v12523_v30, %v5634_v10  ;;  %v14858_v22 = vld [vmem:[#allocation143_spill] sm:$0xff]  ;;  %v14859_v34 = vld [vmem:[#allocation128_spill] sm:$0xff] }
 0x64b   : > { %v5352_v27 = vsel %vm2267_vm12, %v14849_v63, %v14847_v45  ;;  %v14850_v56 = vmov %v14849_v63  ;;  %v5655_v18 = vmul.f32 %v12523_v30, %v5635_v3  ;;  %v5412_v54 = vadd.f32 %v5396_v14, %v14854_v9  ;;  %v14860_v3 = vld [vmem:[#allocation120_spill] sm:$0xff] }
 0x64c   : > { %v5353_v40 = vsel %vm2267_vm12, %v14851_v47, %v14850_v56  ;;  %v5379_v52 = vmul.f32 %v5352_v27, %v14852_v53  ;;  %v5618_v42 = vadd.f32 %v5602_v31, %v5566_v55  ;;  %v5619_v32 = vadd.f32 %v5603_v46, %v5567_v44  ;;  %v14861_v63 = vld [vmem:[#allocation136_spill] sm:$0xff]  ;;  %v14862_v56 = vld [vmem:[#allocation137_spill] sm:$0xff] }
 0x64d   : > { %v5378_v16 = vmul.f32 %v5353_v40, %v14853_v58  ;;  %v5413_v33 = vadd.f32 %v5397_v20, %v14855_v48  ;;  %v5428_v26 = vmul.f32 %v14843_v43, %v14856_v4  ;;  %v5429_v21 = vmul.f32 %v14858_v22, %v14857_v29  ;;  %v14863_v47 = vld [vmem:[#allocation28_spill] sm:$0xff]  ;;  %v14866_v29 = vld [vmem:[#allocation97_spill] sm:$0xff] }
 0x64e   : > { %v5399_v57 = vmul.f32 %v12480_v41, %v5379_v52  ;;  %v5481_v35 = vmul.f32 %v5353_v40, %v14859_v34  ;;  %v5670_v10 = vadd.f32 %v5654_v51, %v5618_v42  ;;  %v5671_v59 = vadd.f32 %v5655_v18, %v5619_v32  ;;  %v14864_v52 = vld [vmem:[#allocation151_spill] sm:$0xff] }
 0x64f   : > { %v5398_v61 = vmul.f32 %v12480_v41, %v5378_v16  ;;  %v5482_v14 = vmul.f32 %v5352_v27, %v14860_v3  ;;  %v5500_v31 = vmul.f32 %v12503_v60, %v5480_v19  ;;  %v5448_v46 = vmul.f32 %v14760_v6, %v5428_v26  ;;  %v14865_v16 = vld [vmem:[#allocation146_spill] sm:$0xff] }
 0x650   : > { %v5449_v20 = vmul.f32 %v14760_v6, %v5429_v21  ;;  %v5501_v45 = vmul.f32 %v12503_v60, %v5481_v35  ;;  %v5532_v43 = vmul.f32 %v14858_v22, %v14861_v63  ;;  %v5693_v55 = vadd.f32 %v12559_v24, %v5670_v10  ;;  %v14868_v22 = vld [vmem:[#allocation34_spill] sm:$0xff] }
 0x651   : > { %v5694_v44 = vadd.f32 %v12559_v24, %v5671_v59  ;;  %v5533_v53 = vmul.f32 %v14863_v47, %v14862_v56  ;;  %v5584_v51 = vmul.f32 %v14829_v11, %v14864_v52  ;;  %v5464_v19 = vadd.f32 %v5448_v46, %v5412_v54  ;;  %v14867_v54 = vld [vmem:[#allocation168_spill] sm:$0xff] }
 0x652   : > { %v5465_v18 = vadd.f32 %v5449_v20, %v5413_v33  ;;  %v5552_v58 = vmul.f32 %v12510_v17, %v5532_v43  ;;  %v5585_v9 = vmul.f32 %v14848_v13, %v14865_v16  ;;  %vm5709_vm0 = vcmp.gt.f32.partialorder %v5693_v55, 0.0  ;;  %v14870_v13 = vld [vmem:[#allocation61_spill] sm:$0xff]  ;;  %v14876_v55 = vld [vmem:[#allocation144_spill] sm:$0xff] }
 0x653   : > { %vm5710_vm10 = vcmp.gt.f32.partialorder %v5694_v44, 0.0  ;;  %v5553_v42 = vmul.f32 %v12510_v17, %v5533_v53  ;;  %v5604_v32 = vmul.f32 %v14771_v37, %v5584_v51  ;;  %v5516_v48 = vadd.f32 %v5500_v31, %v5464_v19  ;;  %v14874_v31 = vld [vmem:[#allocation127_spill] sm:$0xff]  ;;  %v14877_v56 = vld [vmem:[#allocation32_spill] sm:$0xff] }
 0x654   : > { %vm6275_vm11 = vmpackc.low %vm5710_vm10, %vm5709_vm0  ;;  %v5517_v4 = vadd.f32 %v5501_v45, %v5465_v18  ;;  %v5605_v26 = vmul.f32 %v14771_v37, %v5585_v9  ;;  %v5636_v11 = vmul.f32 %v5353_v40, %v14866_v29  ;;  %v5637_v33 = vmul.f32 %v5352_v27, %v14867_v54  ;;  %v14875_v45 = vld [vmem:[#allocation142_spill] sm:$0xff] }
 0x655   : > { %6963 = vmatprep.mubr.msk.bf16.mxu1 %vm6275_vm11, %v14618_v1  ;;  %v14869_v21 = vrot.slane %v14868_v22, 1  ;;  %v14871_v34 = vrot.slane %v14870_v13, 1  ;;  %v14873_v59 = vrot.slane %v14846_v2, 1  ;;  %v5414_v40 = vadd.f32 %v5398_v61, %v14874_v31  ;;  %v14878_v61 = vld [vmem:[#allocation31_spill] sm:$0xff]  ;;  %v14880_v29 = vld [vmem:[#allocation138_spill] sm:$0xff] }
 0x656   : > { %v5568_v46 = vadd.f32 %v5552_v58, %v5516_v48  ;;  %v5569_v20 = vadd.f32 %v5553_v42, %v5517_v4  ;;  %v5656_v27 = vmul.f32 %v12523_v30, %v5636_v11  ;;  %v5657_v43 = vmul.f32 %v12523_v30, %v5637_v33 }
 0x657   : > { %v5350_v35 = vsel %vm2267_vm12, %v14871_v34, %v14869_v21  ;;  %v14872_v10 = vmov %v14871_v34  ;;  %v5415_v53 = vadd.f32 %v5399_v57, %v14877_v56  ;;  %v5430_v52 = vmul.f32 %v14863_v47, %v14718_v15  ;;  %v14885_v56 = vld [vmem:[#allocation156_spill] sm:$0xff] }
 0x658   : > { %v5351_v3 = vsel %vm2267_vm12, %v14873_v59, %v14872_v10  ;;  %v5381_v44 = vmul.f32 %v5350_v35, %v14876_v55  ;;  %v5620_v51 = vadd.f32 %v5604_v32, %v5568_v46  ;;  %v5621_v39 = vadd.f32 %v5605_v26, %v5569_v20  ;;  %v14879_v26 = vld [vmem:[#allocation186_spill] sm:$0xff] }
 0x659   : > { %v5380_v63 = vmul.f32 %v5351_v3, %v14875_v45  ;;  %v5431_v18 = vmul.f32 %v14878_v61, %v14719_v0  ;;  %v5450_v16 = vmul.f32 %v14760_v6, %v5430_v52  ;;  %v5483_v9 = vmul.f32 %v5351_v3, %v14721_v49 }
 0x65a   : > { %v5401_v58 = vmul.f32 %v12480_v41, %v5381_v44  ;;  %v5484_v42 = vmul.f32 %v5350_v35, %v14722_v5  ;;  %v5672_v48 = vadd.f32 %v5656_v27, %v5620_v51  ;;  %v5673_v57 = vadd.f32 %v5657_v43, %v5621_v39  ;;  %v14882_v27 = vld [vmem:[#allocation25_spill] sm:$0xff] }
 0x65b   : > { %v5400_v19 = vmul.f32 %v12480_v41, %v5380_v63  ;;  %v5451_v4 = vmul.f32 %v14760_v6, %v5431_v18  ;;  %v5502_v15 = vmul.f32 %v12503_v60, %v5482_v14  ;;  %v5466_v47 = vadd.f32 %v5450_v16, %v5414_v40  ;;  %v14881_v41 = vld [vmem:[#allocation45_spill] sm:$0xff]  ;;  %v14883_v63 = vld [vmem:[#allocation52_spill] sm:$0xff] }
 0x65c   : > { %v5503_v32 = vmul.f32 %v12503_v60, %v5483_v9  ;;  %v5534_v0 = vmul.f32 %v14878_v61, %v14879_v26  ;;  %v5535_v11 = vmul.f32 %v14881_v41, %v14880_v29  ;;  %v5695_v54 = vadd.f32 %v12559_v24, %v5672_v48  ;;  %v14889_v26 = vld [vmem:[#allocation267_spill] sm:$0xff] }
 0x65d   : > { %v5696_v49 = vadd.f32 %v12559_v24, %v5673_v57  ;;  %v5467_v5 = vadd.f32 %v5451_v4, %v5415_v53  ;;  %v5586_v33 = vmul.f32 %v14846_v2, %v14726_v50  ;;  %v5518_v21 = vadd.f32 %v5502_v15, %v5466_v47  ;;  %v14886_v53 = vld [vmem:[#allocation51_spill] sm:$0xff] }
 0x65e   : > { %v5554_v14 = vmul.f32 %v12510_v17, %v5534_v0  ;;  %v5555_v34 = vmul.f32 %v12510_v17, %v5535_v11  ;;  %v5587_v10 = vmul.f32 %v14870_v13, %v14727_v28  ;;  %vm5711_vm12 = vcmp.gt.f32.partialorder %v5695_v54, 0.0  ;;  %v14884_v13 = vld [vmem:[#allocation152_spill] sm:$0xff] }
 0x65f   : > { %vm5712_vm13 = vcmp.gt.f32.partialorder %v5696_v49, 0.0  ;;  %v5519_v59 = vadd.f32 %v5503_v32, %v5467_v5  ;;  %v5606_v31 = vmul.f32 %v14771_v37, %v5586_v33  ;;  %v5638_v20 = vmul.f32 %v5351_v3, %v14728_v38  ;;  %v14888_v3 = vld [vmem:[#allocation58_spill] sm:$0xff] }
 0x660   : > { %vm6277_vm14 = vmpackc.low %vm5712_vm13, %vm5711_vm12  ;;  %v5570_v40 = vadd.f32 %v5554_v14, %v5518_v21  ;;  %v5607_v46 = vmul.f32 %v14771_v37, %v5587_v10  ;;  %v5639_v50 = vmul.f32 %v5350_v35, %v14729_v8  ;;  %v5416_v45 = vadd.f32 %v5400_v19, %v14882_v27  ;;  %v14887_v35 = vld [vmem:[#allocation122_spill] sm:$0xff] }
 0x661   : > { %6964 = vmatmul.mubr.msk.bf16.gmra.mxu1 %vm6277_vm14, %v14618_v1  ;;  %v5571_v2 = vadd.f32 %v5555_v34, %v5519_v59  ;;  %v5417_v28 = vadd.f32 %v5401_v58, %v14883_v63  ;;  %v5432_v43 = vmul.f32 %v14881_v41, %v14884_v13  ;;  %v5658_v44 = vmul.f32 %v12523_v30, %v5638_v20  ;;  %v14892_v63 = vld [vmem:[#allocation185_spill] sm:$0xff] }
 0x662   : > { %v5622_v55 = vadd.f32 %v5606_v31, %v5570_v40  ;;  %v5433_v52 = vmul.f32 %v14886_v53, %v14885_v56  ;;  %v5659_v38 = vmul.f32 %v12523_v30, %v5639_v50  ;;  %v5485_v39 = vmul.f32 %v14888_v3, %v14887_v35  ;;  %v14893_v13 = vld [vmem:[#allocation213_spill] sm:$0xff]  ;;  %v14897_v35 = vld [vmem:[#allocation194_spill] sm:$0xff] }
 0x663   : > { %v5623_v51 = vadd.f32 %v5607_v46, %v5571_v2  ;;  %v5452_v8 = vmul.f32 %v14760_v6, %v5432_v43  ;;  %v5536_v18 = vmul.f32 %v14886_v53, %v14735_v36  ;;  %v5537_v58 = vmul.f32 %v12095_v23, %v14736_v62  ;;  %v14895_v53 = vld [vmem:[#allocation205_spill] sm:$0xff] }
 0x664   : > { %v5674_v19 = vadd.f32 %v5658_v44, %v5622_v55  ;;  %v5453_v61 = vmul.f32 %v14760_v6, %v5433_v52  ;;  %v5504_v48 = vmul.f32 %v12503_v60, %v5484_v42  ;;  %v5588_v57 = vmul.f32 %v14868_v22, %v14737_v7  ;;  %v14890_v7 = vld [vmem:[#allocation162_spill] sm:$0xff]  ;;  %v14891_v22 = vld [vmem:[#allocation271_spill] sm:$0xff]  ;;  %v14894_v44 = vld [vmem:[#allocation212_spill] sm:$0xff] }
 0x665   : > { %v5675_v16 = vadd.f32 %v5659_v38, %v5623_v51  ;;  %v5468_v9 = vadd.f32 %v5452_v8, %v5416_v45  ;;  %v5505_v47 = vmul.f32 %v12503_v60, %v5485_v39  ;;  %v5556_v36 = vmul.f32 %v12510_v17, %v5536_v18  ;;  %v14896_v8 = vld [vmem:[#allocation175_spill] sm:$0xff]  ;;  %v14898_v39 = vld [vmem:[#allocation169_spill] sm:$0xff] }
 0x666   : > { %v5697_v4 = vadd.f32 %v12559_v24, %v5674_v19  ;;  %v5469_v15 = vadd.f32 %v5453_v61, %v5417_v28  ;;  %v5589_v23 = vmul.f32 %v14889_v26, %v14738_v25  ;;  %v5557_v0 = vmul.f32 %v12510_v17, %v5537_v58  ;;  %v14899_v19 = vld [vmem:[#allocation195_spill] sm:$0xff] }
 0x667   : > { %v5698_v6 = vadd.f32 %v12559_v24, %v5675_v16  ;;  %v5520_v32 = vadd.f32 %v5504_v48, %v5468_v9  ;;  %v5640_v42 = vmul.f32 %v14888_v3, %v14740_v12  ;;  %v5641_v29 = vmul.f32 %v14891_v22, %v14890_v7  ;;  %v14900_v16 = vld [vmem:[#allocation179_spill] sm:$0xff]  ;;  %v14901_v9 = vld [vmem:[#allocation192_spill] sm:$0xff] }
 0x668   : > { %v5521_v62 = vadd.f32 %v5505_v47, %v5469_v15  ;;  %vm5713_vm15 = vcmp.gt.f32.partialorder %v5697_v4, 0.0  ;;  %v5608_v41 = vmul.f32 %v14771_v37, %v5588_v57  ;;  %v5609_v54 = vmul.f32 %v14771_v37, %v5589_v23  ;;  %v4086_v37 = vpop.f32.mrf.mxu1  ;;  %v12860_v15 = vld [vmem:[%s12993_s11] ss:$0 sm:$0xff]  ;;  %v14904_v23 = vld [vmem:[#allocation69_spill] sm:$0xff] }
 0x669   : > { %vm5714_vm1 = vcmp.gt.f32.partialorder %v5698_v6, 0.0  ;;  %v5572_v60 = vadd.f32 %v5556_v36, %v5520_v32  ;;  %v5660_v17 = vmul.f32 %v12523_v30, %v5640_v42  ;;  %v5661_v12 = vmul.f32 %v12523_v30, %v5641_v29  ;;  %v14902_v6 = vld [vmem:[#allocation188_spill] sm:$0xff]  ;;  %v14905_v29 = vld [vmem:[#allocation65_spill] sm:$0xff] }
 0x66a   : > { %vm6279_vm2 = vmpackc.low %vm5714_vm1, %vm5713_vm15  ;;  %v5573_v11 = vadd.f32 %v5557_v0, %v5521_v62  ;;  %v4087_v56 = vadd.f32 %v4086_v37, %v14894_v44  ;;  %v4044_v3 = vadd.f32 %v14897_v35, %v14896_v8  ;;  %v4036_v61 = vadd.f32 %v14899_v19, %v14898_v39  ;;  %v14903_v32 = vld [vmem:[#allocation196_spill] sm:$0xff]  ;;  %v14914_v19 = vld [vmem:[#allocation90_spill] sm:$0xff] }
 0x66b   : > { %6967 = vmatprep.mubr.msk.bf16.mxu1 %vm6279_vm2, %v14618_v1  ;;  %v5624_v25 = vadd.f32 %v5608_v41, %v5572_v60  ;;  %v4047_v48 = vadd.f32 %v14901_v9, %v14900_v16  ;;  %v4039_v36 = vadd.f32 %v14903_v32, %v14902_v6  ;;  %v14913_v35 = vld [vmem:[#allocation84_spill] sm:$0xff]  ;;  %v14916_v9 = vld [vmem:[#allocation203_spill] sm:$0xff] }
 0x66c   : > { %v5625_v49 = vadd.f32 %v5609_v54, %v5573_v11 }
 0x66d   : > { %v5676_v5 = vadd.f32 %v5660_v17, %v5624_v25  ;;  %v14906_v25 = vld [vmem:[#allocation70_spill] sm:$0xff] }
 0x66e   : > { %v5677_v33 = vadd.f32 %v5661_v12, %v5625_v49 }
 0x66f   : > { %v5699_v21 = vadd.f32 %v12559_v24, %v5676_v5  ;;  %v14907_v5 = vld [vmem:[#allocation67_spill] sm:$0xff] }
 0x670   : > { %v5700_v14 = vadd.f32 %v12559_v24, %v5677_v33 }
 0x671   : > { %vm5715_vm3 = vcmp.gt.f32.partialorder %v5699_v21, 0.0 }
 0x672   : > { %vm5716_vm4 = vcmp.gt.f32.partialorder %v5700_v14, 0.0  ;;  %v14908_v14 = vld [vmem:[#allocation197_spill] sm:$0xff] }
 0x673   : > { %vm6281_vm5 = vmpackc.low %vm5716_vm4, %vm5715_vm3 }
 0x674   : > { %6968 = vmatmul.mubr.msk.bf16.gmra.mxu1 %vm6281_vm5, %v14618_v1 }
 0x694   : > { %v6869_v34 = vpop.f32.mrf.mxu1 }
 0x695   : > { %v4994_v18 = vadd.f32 %v6869_v34, %v4044_v3 }
 0x696   : > { %v4929_v10 = vpop.f32.mrf.mxu1 }
 0x697   : > { %v4992_v57 = vadd.f32 %v4929_v10, %v4036_v61  ;;  %v14909_v10 = vld [vmem:[#allocation199_spill] sm:$0xff] }
 0x698   : > { %v6870_v59 = vpop.f32.mrf.mxu1 }
 0x699   : > { %v4995_v26 = vadd.f32 %v6870_v59, %v4047_v48 }
 0x69a   : > { %v4932_v31 = vpop.f32.mrf.mxu1 }
 0x69b   : > { %v4993_v7 = vadd.f32 %v4932_v31, %v4039_v36  ;;  %v14918_v36 = vld [vmem:[#allocation171_spill] sm:$0xff] }
 0x6b3   : > { %v6873_v40 = vpop.f32.mrf.mxu1 }
 0x6b4   : > { %v4998_v37 = vadd.f32 %v6873_v40, %v14908_v14  ;;  %v14924_v14 = vld [vmem:[#allocation107_spill] sm:$0xff] }
 0x6b5   : > { %v4945_v46 = vpop.f32.mrf.mxu1 }
 0x6b6   : > { %v4996_v59 = vadd.f32 %v4945_v46, %v14909_v10 }
 0x6b7   : > { %v6874_v20 = vpop.f32.mrf.mxu1 }
 0x6b9   : > { %v4948_v30 = vpop.f32.mrf.mxu1 }
 0x6c9   : > { %v12831_v50 = vpop.f32.mrf.mxu1 }
 0x6ca   : > { %v5002_v48 = vadd.f32 %v12831_v50, %v14916_v9 }
 0x6cb   : > { %v12833_v2 = vpop.f32.mrf.mxu1 }
 0x6cd   : > { %v12835_v27 = vpop.f32.mrf.mxu1 }
 0x6cf   : > { %v12837_v24 = vpop.f32.mrf.mxu1 }
 0x6dd   : > { %v6881_v45 = vpop.f32.mrf.mxu1 }
 0x6de   : > { %v12840_v1 = vadd.f32 %v6881_v45, %v14892_v63  ;;  %v14910_v63 = vld [vmem:[#allocation210_spill] sm:$0xff] }
 0x6df   : > { %v4977_v28 = vpop.f32.mrf.mxu1 }
 0x6e0   : > { %v12843_v43 = vadd.f32 %v4977_v28, %v14893_v13  ;;  %v4999_v28 = vadd.f32 %v6874_v20, %v14910_v63  ;;  %v14911_v13 = vld [vmem:[#allocation88_spill] sm:$0xff] }
 0x6e1   : > { %v6882_v55 = vpop.f32.mrf.mxu1 }
 0x6e2   : > { %v12847_v52 = vadd.f32 %v6882_v55, %v14895_v53  ;;  %v14912_v53 = vld [vmem:[#allocation193_spill] sm:$0xff] }
 0x6e3   : > { %v4980_v51 = vpop.f32.mrf.mxu1 }
 0x6e4   : > { %v12849_v38 = vadd.f32 %v4980_v51, %v4087_v56  ;;  %v4997_v51 = vadd.f32 %v4948_v30, %v14912_v53 }
 0x6f1   : > { %v6957_v58 = vpop.f32.mrf.mxu1 }
 0x6f2   : > { %v5904_v4 = vadd.f32 %v6957_v58, %v4994_v18  ;;  %v14915_v58 = vld [vmem:[#allocation86_spill] sm:$0xff] }
 0x6f3   : > { %v5839_v47 = vpop.f32.mrf.mxu1 }
 0x6f4   : > { %v5920_v62 = vadd.f32 %v5904_v4, %v14904_v23  ;;  %v5902_v0 = vadd.f32 %v5839_v47, %v4992_v57  ;;  %v14917_v4 = vld [vmem:[#allocation222_spill] sm:$0xff]  ;;  %v14919_v23 = vld [vmem:[#allocation100_spill] sm:$0xff] }
 0x6f5   : > { %v6958_v42 = vpop.f32.mrf.mxu1  ;;  %v5000_v47 = vadd.f32 %v12833_v2, %v14917_v4 }
 0x6f6   : > { %v5943_v22 = vadd.f32 %v12860_v15, %v5920_v62  ;;  %v5918_v60 = vadd.f32 %v5902_v0, %v14905_v29  ;;  %v5905_v41 = vadd.f32 %v6958_v42, %v4995_v26  ;;  %v5003_v26 = vadd.f32 %v12835_v27, %v14918_v36  ;;  %v14921_v29 = vld [vmem:[#allocation96_spill] sm:$0xff] }
 0x6f7   : > { %v5842_v11 = vpop.f32.mrf.mxu1 }
 0x6f8   : > { %5959 = vst [vmem:[%s12869_s12 + $0x10] sm:$0xff] %v5943_v22  ;;  %v5941_v54 = vadd.f32 %v12860_v15, %v5918_v60  ;;  %v5921_v17 = vadd.f32 %v5905_v41, %v14906_v25  ;;  %v5903_v49 = vadd.f32 %v5842_v11, %v4993_v7  ;;  %v14920_v7 = vld [vmem:[#allocation200_spill] sm:$0xff] }
 0x6f9   : > { %v5001_v22 = vadd.f32 %v12837_v24, %v14920_v7 }
 0x6fa   : > { %5957 = vst [vmem:[%s12869_s12] sm:$0xff] %v5941_v54  ;;  %v5944_v12 = vadd.f32 %v12860_v15, %v5921_v17  ;;  %v5919_v33 = vadd.f32 %v5903_v49, %v14907_v5  ;;  %v14922_v54 = vld [vmem:[#allocation103_spill] sm:$0xff] }
 0x6fb   : > { %v14923_v49 = vld [vmem:[#allocation99_spill] sm:$0xff] }
 0x6fc   : > { %5960 = vst [vmem:[%s12869_s12 + $0x18] sm:$0xff] %v5944_v12  ;;  %v5942_v21 = vadd.f32 %v12860_v15, %v5919_v33 }
 0x6fe   : > { %5958 = vst [vmem:[%s12869_s12 + $0x8] sm:$0xff] %v5942_v21 }
 0x709   : > { %v6961_v34 = vpop.f32.mrf.mxu1 }
 0x70a   : > { %v5908_v31 = vadd.f32 %v6961_v34, %v4998_v37 }
 0x70b   : > { %v5855_v45 = vpop.f32.mrf.mxu1 }
 0x70c   : > { %v5924_v55 = vadd.f32 %v5908_v31, %v14911_v13  ;;  %v5906_v44 = vadd.f32 %v5855_v45, %v4996_v59  ;;  %v14925_v31 = vld [vmem:[#allocation104_spill] sm:$0xff] }
 0x70d   : > { %v6962_v56 = vpop.f32.mrf.mxu1 }
 0x70e   : > { %v5947_v8 = vadd.f32 %v12860_v15, %v5924_v55  ;;  %v5922_v40 = vadd.f32 %v5906_v44, %v14913_v35  ;;  %v5909_v3 = vadd.f32 %v6962_v56, %v4999_v28  ;;  %v14927_v56 = vld [vmem:[#allocation106_spill] sm:$0xff] }
 0x70f   : > { %v5858_v39 = vpop.f32.mrf.mxu1 }
 0x710   : > { %5963 = vst [vmem:[%s12869_s12 + $0x30] sm:$0xff] %v5947_v8  ;;  %v5945_v46 = vadd.f32 %v12860_v15, %v5922_v40  ;;  %v5925_v61 = vadd.f32 %v5909_v3, %v14914_v19  ;;  %v5907_v20 = vadd.f32 %v5858_v39, %v4997_v51 }
 0x712   : > { %5961 = vst [vmem:[%s12869_s12 + $0x20] sm:$0xff] %v5945_v46  ;;  %v5948_v18 = vadd.f32 %v12860_v15, %v5925_v61  ;;  %v5923_v16 = vadd.f32 %v5907_v20, %v14915_v58 }
 0x714   : > { %5964 = vst [vmem:[%s12869_s12 + $0x38] sm:$0xff] %v5948_v18  ;;  %v5946_v30 = vadd.f32 %v12860_v15, %v5923_v16 }
 0x716   : > { %5962 = vst [vmem:[%s12869_s12 + $0x28] sm:$0xff] %v5946_v30 }
 0x721   : > { %v6965_v57 = vpop.f32.mrf.mxu1 }
 0x722   : > { %v5912_v6 = vadd.f32 %v6965_v57, %v5002_v48 }
 0x723   : > { %v5871_v32 = vpop.f32.mrf.mxu1 }
 0x724   : > { %v5928_v62 = vadd.f32 %v5912_v6, %v14919_v23  ;;  %v5910_v0 = vadd.f32 %v5871_v32, %v5000_v47 }
 0x725   : > { %v6966_v42 = vpop.f32.mrf.mxu1 }
 0x726   : > { %v5951_v50 = vadd.f32 %v12860_v15, %v5928_v62  ;;  %v5926_v60 = vadd.f32 %v5910_v0, %v14921_v29  ;;  %v5913_v2 = vadd.f32 %v6966_v42, %v5003_v26 }
 0x727   : > { %v5874_v41 = vpop.f32.mrf.mxu1 }
 0x728   : > { %5967 = vst [vmem:[%s12869_s12 + $0x50] sm:$0xff] %v5951_v50  ;;  %v5949_v11 = vadd.f32 %v12860_v15, %v5926_v60  ;;  %v5929_v27 = vadd.f32 %v5913_v2, %v14922_v54  ;;  %v5911_v25 = vadd.f32 %v5874_v41, %v5001_v22 }
 0x72a   : > { %5965 = vst [vmem:[%s12869_s12 + $0x40] sm:$0xff] %v5949_v11  ;;  %v5952_v17 = vadd.f32 %v12860_v15, %v5929_v27  ;;  %v5927_v12 = vadd.f32 %v5911_v25, %v14923_v49 }
 0x72c   : > { %5968 = vst [vmem:[%s12869_s12 + $0x58] sm:$0xff] %v5952_v17  ;;  %v5950_v24 = vadd.f32 %v12860_v15, %v5927_v12 }
 0x72e   : > { %5966 = vst [vmem:[%s12869_s12 + $0x48] sm:$0xff] %v5950_v24 }
 0x734   : > { %v6969_v5 = vpop.f32.mrf.mxu1 }
 0x735   : > { %v5916_v33 = vadd.f32 %v6969_v5, %v12840_v1  ;;  %v14926_v1 = vld [vmem:[#allocation109_spill] sm:$0xff] }
 0x736   : > { %v5887_v21 = vpop.f32.mrf.mxu1 }
 0x737   : > { %v5932_v37 = vadd.f32 %v5916_v33, %v14924_v14  ;;  %v5914_v34 = vadd.f32 %v5887_v21, %v12843_v43 }
 0x738   : > { %v6970_v10 = vpop.f32.mrf.mxu1 }
 0x739   : > { %v5955_v59 = vadd.f32 %v12860_v15, %v5932_v37  ;;  %v5930_v45 = vadd.f32 %v5914_v34, %v14925_v31  ;;  %v5917_v63 = vadd.f32 %v6970_v10, %v12847_v52 }
 0x73a   : > { %v5890_v28 = vpop.f32.mrf.mxu1 }
 0x73b   : > { %5971 = vst [vmem:[%s12869_s12 + $0x70] sm:$0xff] %v5955_v59  ;;  %v5953_v13 = vadd.f32 %v12860_v15, %v5930_v45  ;;  %v5933_v55 = vadd.f32 %v5917_v63, %v14926_v1  ;;  %v5915_v44 = vadd.f32 %v5890_v28, %v12849_v38 }
 0x73d   : > { %5969 = vst [vmem:[%s12869_s12 + $0x60] sm:$0xff] %v5953_v13  ;;  %v5956_v43 = vadd.f32 %v12860_v15, %v5933_v55  ;;  %v5931_v53 = vadd.f32 %v5915_v44, %v14927_v56 }
 0x73f   : > { %5972 = vst [vmem:[%s12869_s12 + $0x78] sm:$0xff] %v5956_v43  ;;  %v5954_v52 = vadd.f32 %v12860_v15, %v5931_v53 }
 0x741   : > { %5970 = vst [vmem:[%s12869_s12 + $0x68] sm:$0xff] %v5954_v52 }
 0x742   : > { %7520 = shalt.err (!%p7517_p9)
}
 0x743   : > { %s7521_s19 = scalar_lea.hbm %s12934_s30, 2048  ;;  %s7525_s5 = scalar_lea.hbm %s14928_s28, 4096 }
 0x744   : > { %p7522_p6 = scmp.ne.s32.totalorder %s12934_s30, %s7521_s19  ;;  %p7526_p0 = scmp.lt.s32.totalorder %s12934_s30, %s14928_s28 }
 0x745   : > { %p7527_p2 = scmp.lt.s32.totalorder %s7525_s5, %s7521_s19 }
 0x746   : > { %p7523_p11 = pnand %p7522_p6, %p14929_p8 }
 0x747   : > { %p7528_p5 = por %p7527_p2, %p7526_p0 }
 0x748   : > { %p7524_p7 = pneg %p7523_p11 }
 0x74a   : > { %p7529_p10 = pnand %p7528_p5, %p7524_p7 }
 0x74c   : > { %7532 = shalt.err (!%p7529_p10)
}
 0x74d   : > { %s7619_s2 = smov 128   ;;  %s7620_s4 = smov 8  }
 0x74e   : > { %7001 = dma.vmem_to_hbm [thread:$0]  (%p14929_p8), %s12936_s1, 2048, %s12934_s30, %s5974_s27, %s7619_s2, %s7619_s2, %s7620_s4  }
 0x74f PF: > { %s6002_s26 = sand.u32 1, %s7575_s21   ;;  %p14930_p12 = scmp.ne.s32.totalorder %s13627_s29, 0 }
 0x750   : > { %p14931_p13 = scmp.ge.s32.totalorder %s7587_s24, 2  ;;  %s6003_s16 = scalar_lea.sflag [#allocation4], %s6002_s26 }
 0x752   : > { %p7030_p1 = pnand %p14931_p13, %p14930_p12 }
 0x754   : > { %p7031_p3 = pneg %p7030_p1 }
 0x756   : > { %7570 = dma.done.wait (%p7031_p3), %s6003_s16, 2048  }
 0x757   : > { %7572 = vsyncadd (%p7031_p3), %s6003_s16, 4294965248  ;;  %p29_p4 = scmp.ge.s32.totalorder %s7807_s13, 4   ;;  %s14932_s21 = smov %s7579_s22 }
 0x758   : > { %s14933_s22 = smov %s7583_s23  ;;  %s14934_s23 = smov %s7819_s14 }
 0x759   : > { %s14935_s24 = smov %s7807_s13  ;;  %31 = sbr.rel (!%p29_p4) target bundleno = 17 (0x11), region = 141 }
 0x75e   :  { %6008 = vsyncpa [#allocation3], 1 }
 0x75f   :  { %6010 = vsyncpa [#allocation3 + $0x1], 1 }
 0x760   :  { %6011 = vsyncpa [#allocation6], 1 }
 0x761   :  { %6012 = vsyncpa [#allocation9], 1 }
 0x762   :  { %6013 = vsyncpa [#allocation12], 1 }
 0x763   :  { %6014 = vsyncpa [#allocation15], 1 }
 0x764   :  { %6015 = vsyncpa [#allocation4], 1 }
 0x765   :  { %6017 = vsyncpa [#allocation4 + $0x1], 1 }

</bundles_post_ra>
